<compile_context>
chip_gen: v7x
topology: tpu7x:2x2x1
jax: 0.10.0
libtpu: 0.0.40
codegen_flags: <defaults>
</compile_context>

<pallas_src>
import jax
import jax.numpy as jnp
from jax import lax
from jax.experimental import pallas as pl
from jax.experimental.pallas import tpu as pltpu

# Small stand-ins for the module's globals (image_size=128, z_dim=50).
IMAGE_SIZE = 16
Z_DIM = 50
IMAGE_CHANNELS = 1
ZP = 128                       # z_dim padded to one full lane group

assert IMAGE_SIZE % 4 == 0
H4 = IMAGE_SIZE // 4           # spatial side after the two stride-2 convs
W4 = IMAGE_SIZE // 4
PW2 = W4 + 2                   # flat-plane row width: W4 valid cols + 2 ring/garbage cols
NRF = H4 * PW2                 # rows of every per-phase flattened computation
PR1 = (H4 + 2) * PW2           # conv1 input plane rows (ring + shift-overrun)
PRD = (H4 + 3) * PW2           # ring-padded plane rows for conv2/dconv1/dconv2 inputs
KFC = NRF * 32                 # fc1/fc2 contraction size (extended-h layout)
ND = PRD * 32                  # fc3 output size (ring-padded decoder-input layout)
C0 = IMAGE_CHANNELS


# ----------------------------------------------------------------------------
# helpers
# ----------------------------------------------------------------------------
def _vmem_limit_bytes():
    """Generation-aware VMEM limit: ~half of physical (32 MiB v7x, 64 MiB v5e/v6e)."""
    cap = 128 * 1024 * 1024
    try:
        info = pltpu.get_tpu_info()
        cap = int(getattr(info, "vmem_capacity_bytes", cap))
    except Exception:
        pass
    return int(min(max(cap // 2, 16 * 1024 * 1024), 64 * 1024 * 1024))


def _col_mask():
    """(NRF, 1) bool mask of the valid (non-garbage) flat-plane columns."""
    col = lax.broadcasted_iota(jnp.int32, (NRF, 1), 0) % PW2
    return col < W4


# ----------------------------------------------------------------------------
# Kernel 1: fused encoder  conv1(4,2,1)+ReLU -> conv2(4,2,1)+ReLU  (per image)
# ----------------------------------------------------------------------------
def _encoder_kernel(x_ref, w1_ref, b1_ref, w2_ref, b2_ref, h_ref, s1_ref):
    # x_ref : (1, PR1, 16*C0)  f32  — 4x4 phase planes of the padded input,
    #         spatially flattened with row width PW2; lane = (sh*4+sw)*C0 + c.
    # s1_ref: (2, 2, PRD, 16)  f32  — conv1 output, per output phase, with a
    #         zero ring (conv2's zero padding) and a shift-overrun row.
    s1_ref[...] = jnp.zeros_like(s1_ref)
    valid = _col_mask()
    b1 = b1_ref[...].astype(jnp.float32)

    # ---- conv1: one (H4 x W4) output-phase sub-grid at a time --------------
    for p1h in range(2):
        for p1w in range(2):
            acc = jnp.zeros((NRF, 16), jnp.float32)
            for kh in range(4):
                th = 2 * p1h + kh
                sh, dq = th % 4, th // 4
                for kw in range(4):
                    tw = 2 * p1w + kw
                    sw, dr = tw % 4, tw // 4
                    lane0 = (sh * 4 + sw) * C0
                    shift = dq * PW2 + dr
                    xt = x_ref[0, shift:shift + NRF, lane0:lane0 + C0]
                    wt = w1_ref[(kh * 4 + kw) * C0:(kh * 4 + kw + 1) * C0, :]
                    if C0 == 1:      # outer-product tap on the VPU
                        acc = acc + xt.astype(jnp.float32) * wt.astype(jnp.float32)
                    else:
                        acc = acc + jnp.dot(xt, wt, preferred_element_type=jnp.float32)
            v = jnp.maximum(acc + b1, 0.0)
            v = jnp.where(valid, v, 0.0)            # keep conv2's zero ring exact
            s1_ref[p1h, p1w, PW2 + 1:PW2 + 1 + NRF, :] = v

    # ---- conv2: taps are shifted reads of the phase planes -----------------
    acc2 = jnp.zeros((NRF, 32), jnp.float32)
    for kh in range(4):
        p1h, dq = (kh + 1) % 2, (kh + 1) // 2
        for kw in range(4):
            p1w, dr = (kw + 1) % 2, (kw + 1) // 2
            shift = dq * PW2 + dr
            xt = s1_ref[p1h, p1w, shift:shift + NRF, :]
            wt = w2_ref[(kh * 4 + kw) * 16:(kh * 4 + kw + 1) * 16, :]
            acc2 = acc2 + jnp.dot(xt, wt, preferred_element_type=jnp.float32)
    h = jnp.maximum(acc2 + b2_ref[...].astype(jnp.float32), 0.0)
    h_ref[0, :, :] = h.astype(h_ref.dtype)


def encoder(xs1, w1, b1, w2, b2):
    B = xs1.shape[0]
    return pl.pallas_call(
        _encoder_kernel,
        out_shape=jax.ShapeDtypeStruct((B, NRF, 32), jnp.bfloat16),
        grid_spec=pltpu.PrefetchScalarGridSpec(
            num_scalar_prefetch=0,
            grid=(B,),
            in_specs=[
                pl.BlockSpec((1, PR1, 16 * C0), lambda b: (b, 0, 0)),
                pl.BlockSpec((16 * C0, 16), lambda b: (0, 0)),
                pl.BlockSpec((1, 16), lambda b: (0, 0)),
                pl.BlockSpec((16 * 16, 32), lambda b: (0, 0)),
                pl.BlockSpec((1, 32), lambda b: (0, 0)),
            ],
            out_specs=pl.BlockSpec((1, NRF, 32), lambda b: (b, 0, 0)),
            scratch_shapes=[pltpu.VMEM((2, 2, PRD, 16), jnp.float32)],
        ),
        compiler_params=pltpu.CompilerParams(
            dimension_semantics=("parallel",),
            vmem_limit_bytes=_vmem_limit_bytes(),
        ),
    )(xs1, w1, b1, w2, b2)


# ----------------------------------------------------------------------------
# Kernel 2: fused fc1 + fc2 + reparameterize + fc3
# ----------------------------------------------------------------------------
def _fc_kernel(h_ref, w12_ref, b12_ref, eps_ref, w3_ref, b3_ref,
               mu_ref, lv_ref, d_ref):
    y = jnp.dot(h_ref[...], w12_ref[...], preferred_element_type=jnp.float32)
    y = y + b12_ref[...]
    mu = y[:, :ZP]
    lv = y[:, ZP:]
    mu_ref[...] = mu
    lv_ref[...] = lv
    z = mu + eps_ref[...] * jnp.exp(0.5 * lv)
    d = jnp.dot(z.astype(jnp.bfloat16), w3_ref[...],
                preferred_element_type=jnp.float32) + b3_ref[...]
    d_ref[...] = d.astype(d_ref.dtype)


def fc_reparam_fc3(h2d, eps_p, w12, b12, w3, b3):
    B = h2d.shape[0]
    return pl.pallas_call(
        _fc_kernel,
        out_shape=(
            jax.ShapeDtypeStruct((B, ZP), jnp.float32),
            jax.ShapeDtypeStruct((B, ZP), jnp.float32),
            jax.ShapeDtypeStruct((B, ND), jnp.float32),
        ),
        grid_spec=pltpu.PrefetchScalarGridSpec(
            num_scalar_prefetch=0,
            grid=(1,),
            in_specs=[
                pl.BlockSpec((B, KFC), lambda i: (0, 0)),
                pl.BlockSpec((KFC, 2 * ZP), lambda i: (0, 0)),
                pl.BlockSpec((1, 2 * ZP), lambda i: (0, 0)),
                pl.BlockSpec((B, ZP), lambda i: (0, 0)),
                pl.BlockSpec((ZP, ND), lambda i: (0, 0)),
                pl.BlockSpec((1, ND), lambda i: (0, 0)),
            ],
            out_specs=(
                pl.BlockSpec((B, ZP), lambda i: (0, 0)),
                pl.BlockSpec((B, ZP), lambda i: (0, 0)),
                pl.BlockSpec((B, ND), lambda i: (0, 0)),
            ),
        ),
        compiler_params=pltpu.CompilerParams(
            dimension_semantics=("arbitrary",),
            vmem_limit_bytes=_vmem_limit_bytes(),
        ),
    )(h2d, w12, b12, eps_p, w3, b3)


# ----------------------------------------------------------------------------
# Kernel 3: fused decoder  dconv1(4,2,1)+ReLU -> dconv2(4,2,1)+Sigmoid
# ----------------------------------------------------------------------------
def _decoder_kernel(d_ref, w1_ref, b1_ref, w2_ref, b2_ref, o_ref, s2_ref):
    # d_ref : (1, PRD, 32) f32 — fc3 output already in ring-padded plane layout.
    # s2_ref: (2, 2, PRD, 16) f32 — dconv1 output, per output phase, zero ring.
    # o_ref : (1, 2, 2, NRF, 4*C0) f32 — dconv2 output per input-parity class,
    #         lanes = (or, oc, c) of the 2x2 upsampled output block.
    s2_ref[...] = jnp.zeros_like(s2_ref)
    valid = _col_mask()
    b1 = b1_ref[...].astype(jnp.float32)

    # ---- dconv1: one (H4 x W4) output-phase sub-grid at a time -------------
    for pr in range(2):
        for pc in range(2):
            acc = jnp.zeros((NRF, 16), jnp.float32)
            for di in range(3):
                kh = 3 - 2 * di + pr
                if not 0 <= kh <= 3:
                    continue
                for dj in range(3):
                    kw = 3 - 2 * dj + pc
                    if not 0 <= kw <= 3:
                        continue
                    shift = di * PW2 + dj
                    xt = d_ref[0, shift:shift + NRF, :]
                    wt = w1_ref[(kh * 4 + kw) * 32:(kh * 4 + kw + 1) * 32, :]
                    acc = acc + jnp.dot(xt, wt, preferred_element_type=jnp.float32)
            v = jnp.maximum(acc + b1, 0.0)
            v = jnp.where(valid, v, 0.0)            # keep dconv2's zero ring exact
            s2_ref[pr, pc, PW2 + 1:PW2 + 1 + NRF, :] = v

    # ---- dconv2 (+ sigmoid): per input-position parity class ---------------
    b2 = b2_ref[...].astype(jnp.float32)
    for prh in range(2):
        for prw in range(2):
            acc = jnp.zeros((NRF, 4 * C0), jnp.float32)
            for di in range(3):
                p1h = (prh + di - 1) % 2
                sh = (prh + di - 1 - p1h) // 2 + 1
                for dj in range(3):
                    p1w = (prw + dj - 1) % 2
                    sw = (prw + dj - 1 - p1w) // 2 + 1
                    shift = sh * PW2 + sw
                    xt = s2_ref[p1h, p1w, shift:shift + NRF, :]
                    wt = w2_ref[(di * 3 + dj) * 16:(di * 3 + dj + 1) * 16, :]
                    acc = acc + jnp.dot(xt, wt, preferred_element_type=jnp.float32)
            y = acc + b2
            # stable sigmoid with a single exact reciprocal (stays in [0, 1])
            e = jnp.exp(-jnp.abs(y))
            r = 1.0 / (1.0 + e)
            o_ref[0, prh, prw, :, :] = jnp.where(y >= 0.0, r, e * r)


def decoder(dpad, wd1, bd1, wd2, bd2):
    B = dpad.shape[0]
    return pl.pallas_call(
        _decoder_kernel,
        out_shape=jax.ShapeDtypeStruct((B, 2, 2, NRF, 4 * C0), jnp.float32),
        grid_spec=pltpu.PrefetchScalarGridSpec(
            num_scalar_prefetch=0,
            grid=(B,),
            in_specs=[
                pl.BlockSpec((1, PRD, 32), lambda b: (b, 0, 0)),
                pl.BlockSpec((16 * 32, 16), lambda b: (0, 0)),
                pl.BlockSpec((1, 16), lambda b: (0, 0)),
                pl.BlockSpec((9 * 16, 4 * C0), lambda b: (0, 0)),
                pl.BlockSpec((1, 4 * C0), lambda b: (0, 0)),
            ],
            out_specs=pl.BlockSpec((1, 2, 2, NRF, 4 * C0), lambda b: (b, 0, 0, 0, 0)),
            scratch_shapes=[pltpu.VMEM((2, 2, PRD, 16), jnp.float32)],
        ),
        compiler_params=pltpu.CompilerParams(
            dimension_semantics=("parallel",),
            vmem_limit_bytes=_vmem_limit_bytes(),
        ),
    )(dpad, wd1, bd1, wd2, bd2)


# ----------------------------------------------------------------------------
# Parameters: PyTorch layouts -> kernel-ready matrices
# ----------------------------------------------------------------------------
def init_params(key):
    """Deterministic synthetic init in the original PyTorch layouts."""
    fdim = 32 * H4 * W4
    ks = jax.random.split(key, 14)

    def n(k, shape, scale=0.05):
        return (scale * jax.random.normal(k, shape)).astype(jnp.float32)

    return dict(
        conv1_w=n(ks[0], (16, C0, 4, 4)),
        conv1_b=n(ks[1], (16,)),
        conv2_w=n(ks[2], (32, 16, 4, 4)),
        conv2_b=n(ks[3], (32,)),
        fc1_w=n(ks[4], (Z_DIM, fdim)),          # nn.Linear stores (out, in)
        fc1_b=n(ks[5], (Z_DIM,)),
        fc2_w=n(ks[6], (Z_DIM, fdim)),
        fc2_b=n(ks[7], (Z_DIM,)),
        fc3_w=n(ks[8], (fdim, Z_DIM)),
        fc3_b=n(ks[9], (fdim,)),
        dconv1_w=n(ks[10], (32, 16, 4, 4)),     # ConvTranspose2d stores (Cin, Cout, KH, KW)
        dconv1_b=n(ks[11], (16,)),
        dconv2_w=n(ks[12], (16, C0, 4, 4)),
        dconv2_b=n(ks[13], (C0,)),
    )


def prepare_params(p):
    """One-time conversion to kernel-ready matrices (done outside the forward)."""
    # conv1: (16, C0, 4, 4) -> rows (kh*4+kw)*C0 + cin, cols cout
    w1 = jnp.transpose(p["conv1_w"], (2, 3, 1, 0)).reshape(16 * C0, 16).astype(jnp.bfloat16)
    b1 = p["conv1_b"].reshape(1, 16).astype(jnp.float32)
    # conv2: (32, 16, 4, 4) -> (256, 32)
    w2 = jnp.transpose(p["conv2_w"], (2, 3, 1, 0)).reshape(16 * 16, 32).astype(jnp.bfloat16)
    b2 = p["conv2_b"].reshape(1, 32).astype(jnp.float32)

    # fc1/fc2: (z, fdim[c,h,w]) -> extended-h rows (h, w_ext, c) with zero rows
    # at the garbage columns of the encoder's flattened-plane output.
    def fc_enc(w):
        z = w.shape[0]
        m = jnp.transpose(w.reshape(z, 32, H4, W4), (2, 3, 1, 0))       # (h, w, c, z)
        m_ext = jnp.zeros((H4, PW2, 32, z), m.dtype).at[:, :W4].set(m)
        return jnp.pad(m_ext.reshape(KFC, z), ((0, 0), (0, ZP - z)))

    w12 = jnp.concatenate([fc_enc(p["fc1_w"]), fc_enc(p["fc2_w"])], axis=1).astype(jnp.bfloat16)
    b12 = jnp.concatenate([jnp.pad(p["fc1_b"], (0, ZP - Z_DIM)),
                           jnp.pad(p["fc2_b"], (0, ZP - Z_DIM))]).reshape(1, 2 * ZP)
    b12 = b12.astype(jnp.float32)

    # fc3: (fdim[c,h,w], z) -> columns laid out as the decoder's ring-padded
    # flattened plane (zero columns on the ring / garbage positions).
    m3 = jnp.transpose(p["fc3_w"].reshape(32, H4, W4, Z_DIM), (3, 1, 2, 0))  # (z, h, w, c)
    w3 = jnp.zeros((Z_DIM, H4 + 3, PW2, 32), m3.dtype)
    w3 = w3.at[:, 1:H4 + 1, 1:W4 + 1, :].set(m3).reshape(Z_DIM, ND)
    w3 = jnp.pad(w3, ((0, ZP - Z_DIM), (0, 0))).astype(jnp.bfloat16)
    b3m = jnp.transpose(p["fc3_b"].reshape(32, H4, W4), (1, 2, 0))           # (h, w, c)
    b3 = jnp.zeros((H4 + 3, PW2, 32), jnp.float32)
    b3 = b3.at[1:H4 + 1, 1:W4 + 1, :].set(b3m).reshape(1, ND)

    # dconv1: (Cin=32, Cout=16, 4, 4) -> rows (kh*4+kw)*32 + cin, cols cout
    wd1 = jnp.transpose(p["dconv1_w"], (2, 3, 0, 1)).reshape(16 * 32, 16).astype(jnp.bfloat16)
    bd1 = p["dconv1_b"].reshape(1, 16).astype(jnp.float32)

    # dconv2: (Cin=16, Cout=C0, 4, 4) -> per 3x3 window offset (di,dj), a
    # (16, 4*C0) matrix mapping cin -> the (or, oc, c) output phases.
    wd2 = jnp.zeros((9, 16, 2, 2, C0), jnp.float32)
    for di in range(3):
        for dj in range(3):
            for orr in range(2):
                kh = 3 - 2 * di + orr
                if not 0 <= kh <= 3:
                    continue
                for occ in range(2):
                    kw = 3 - 2 * dj + occ
                    if not 0 <= kw <= 3:
                        continue
                    wd2 = wd2.at[di * 3 + dj, :, orr, occ, :].set(p["dconv2_w"][:, :, kh, kw])
    wd2 = wd2.reshape(9 * 16, 4 * C0).astype(jnp.bfloat16)
    bd2 = jnp.tile(p["dconv2_b"], 4).reshape(1, 4 * C0).astype(jnp.float32)

    return dict(w1=w1, b1=b1, w2=w2, b2=b2, w12=w12, b12=b12, w3=w3, b3=b3,
                wd1=wd1, bd1=bd1, wd2=wd2, bd2=bd2)


# ----------------------------------------------------------------------------
# Forward pass
# ----------------------------------------------------------------------------
def _build_conv1_planes(x_nchw):
    """(B, C0, H, W) -> (B, PR1, 16*C0): 4x4 phase planes of the padded input,
    spatially flattened with row width PW2 (one pad + one 1x transpose)."""
    B = x_nchw.shape[0]
    x = jnp.transpose(x_nchw, (0, 2, 3, 1)).astype(jnp.float32)      # NHWC
    x = jnp.pad(x, ((0, 0), (1, 7), (1, 7), (0, 0)))
    x = x.reshape(B, H4 + 2, 4, W4 + 2, 4, C0)
    x = jnp.transpose(x, (0, 1, 3, 2, 4, 5))                          # (B, Hb, Wb, 4, 4, C0)
    return x.reshape(B, PR1, 16 * C0)


def vae_forward(pp, x_nchw, eps):
    B = x_nchw.shape[0]

    # ---- encoder (single fused Pallas kernel) ----
    xs1 = _build_conv1_planes(x_nchw)
    h = encoder(xs1, pp["w1"], pp["b1"], pp["w2"], pp["b2"])          # (B, NRF, 32) bf16
    h2d = h.reshape(B, KFC)                                           # free reshape

    # ---- fc1 + fc2 + reparameterize + fc3 (single fused Pallas kernel) ----
    eps_p = jnp.pad(eps.astype(jnp.float32), ((0, 0), (0, ZP - Z_DIM)))
    mu_p, lv_p, d = fc_reparam_fc3(h2d, eps_p, pp["w12"], pp["b12"], pp["w3"], pp["b3"])
    mu, logvar = mu_p[:, :Z_DIM], lv_p[:, :Z_DIM]

    # ---- decoder (single fused Pallas kernel) ----
    dpad = d.reshape(B, PRD, 32)                                      # free reshape
    y = decoder(dpad, pp["wd1"], pp["bd1"], pp["wd2"], pp["bd2"])     # (B,2,2,NRF,4*C0)

    # detile the 4x4 output phase planes back to NCHW (one small XLA transpose)
    y = y.reshape(B, 2, 2, H4, PW2, 2, 2, C0)[:, :, :, :, :W4]
    y = jnp.transpose(y, (0, 7, 3, 1, 5, 4, 2, 6))
    x_recon = y.reshape(B, C0, IMAGE_SIZE, IMAGE_SIZE)
    return x_recon, mu, logvar


# ----------------------------------------------------------------------------
# Plain-JAX fp32 reference of the PyTorch module (for verification only)
# ----------------------------------------------------------------------------
def vae_reference(p, x, eps):
    def conv(x, w, b, stride, pad):
        y = lax.conv_general_dilated(
            x, w, (stride, stride), ((pad, pad), (pad, pad)),
            dimension_numbers=("NCHW", "OIHW", "NCHW"))
        return y + b.reshape(1, -1, 1, 1)

    def deconv(x, w, b, stride, pad):
        k = w.shape[2]
        wt = jnp.flip(w, (2, 3)).transpose(1, 0, 2, 3)                # (Cout,Cin,KH,KW)
        y = lax.conv_general_dilated(
            x, wt, (1, 1), ((k - 1 - pad, k - 1 - pad),) * 2,
            lhs_dilation=(stride, stride),
            dimension_numbers=("NCHW", "OIHW", "NCHW"))
        return y + b.reshape(1, -1, 1, 1)

    B = x.shape[0]
    h1 = jax.nn.relu(conv(x, p["conv1_w"], p["conv1_b"], 2, 1))
    h2 = jax.nn.relu(conv(h1, p["conv2_w"], p["conv2_b"], 2, 1))
    h = h2.reshape(B, -1)
    mu = h @ p["fc1_w"].T + p["fc1_b"]
    logvar = h @ p["fc2_w"].T + p["fc2_b"]
    z = mu + eps * jnp.exp(0.5 * logvar)
    d = (z @ p["fc3_w"].T + p["fc3_b"]).reshape(B, 32, H4, W4)
    d1 = jax.nn.relu(deconv(d, p["dconv1_w"], p["dconv1_b"], 2, 1))
    xr = jax.nn.sigmoid(deconv(d1, p["dconv2_w"], p["dconv2_b"], 2, 1))
    return xr, mu, logvar


# ----------------------------------------------------------------------------
if __name__ == "__main__":
    key = jax.random.PRNGKey(0)
    k_params, k_x, k_eps = jax.random.split(key, 3)

    B = 2
    raw_params = init_params(k_params)
    pp = prepare_params(raw_params)

    x = jax.random.normal(k_x, (B, C0, IMAGE_SIZE, IMAGE_SIZE), dtype=jnp.float32)
    eps = jax.random.normal(k_eps, (B, Z_DIM), dtype=jnp.float32)

    fwd = jax.jit(vae_forward)
    x_recon, mu, logvar = fwd(pp, x, eps)
    jax.block_until_ready((x_recon, mu, logvar))

    assert x_recon.shape == (B, C0, IMAGE_SIZE, IMAGE_SIZE)
    assert mu.shape == (B, Z_DIM) and logvar.shape == (B, Z_DIM)
    assert x_recon.dtype == jnp.float32
    assert bool(jnp.all(jnp.isfinite(x_recon)))
    assert bool(jnp.all((x_recon >= 0.0) & (x_recon <= 1.0)))        # sigmoid output

    # cross-check against a plain-JAX fp32 reference of the PyTorch module
    xr_ref, mu_ref, lv_ref = jax.jit(vae_reference)(raw_params, x, eps)
    for got, ref, name in ((x_recon, xr_ref, "x_recon"), (mu, mu_ref, "mu"),
                           (logvar, lv_ref, "logvar")):
        err = float(jnp.max(jnp.abs(got - ref)))
        assert err < 2e-2, f"{name} mismatch: max|diff|={err}"

    print("KERNEL_OK")
</pallas_src>

<mosaic_0001>
module attributes {stable_mosaic.version = 11 : i64} {
  func.func @_encoder_kernel(%arg0: i32, %arg1: memref<1x36x16xf32, #tpu.memory_space<vmem>>, %arg2: memref<16x16xbf16, #tpu.memory_space<vmem>>, %arg3: memref<1x16xf32, #tpu.memory_space<vmem>>, %arg4: memref<256x32xbf16, #tpu.memory_space<vmem>>, %arg5: memref<1x32xf32, #tpu.memory_space<vmem>>, %arg6: memref<1x24x32xbf16, #tpu.memory_space<vmem>>, %arg7: memref<2x2x42x16xf32, #tpu.memory_space<vmem>>) attributes {dimension_semantics = [#tpu.dimension_semantics<parallel>], iteration_bounds = array<i64: 2>, scalar_prefetch = 0 : i64, scratch_operands = 1 : i64, tpu.core_type = #tpu.core_type<tc>, window_params = [{transform_indices = @transform_0, window_bounds = array<i64: 1, 36, 16>}, {pipeline_mode = #tpu.pipeline_mode<synchronous>, transform_indices = @transform_1, window_bounds = array<i64: 16, 16>}, {pipeline_mode = #tpu.pipeline_mode<synchronous>, transform_indices = @transform_2, window_bounds = array<i64: 1, 16>}, {pipeline_mode = #tpu.pipeline_mode<synchronous>, transform_indices = @transform_3, window_bounds = array<i64: 256, 32>}, {pipeline_mode = #tpu.pipeline_mode<synchronous>, transform_indices = @transform_4, window_bounds = array<i64: 1, 32>}, {transform_indices = @transform_5, window_bounds = array<i64: 1, 24, 32>}]} {
    %cst = arith.constant 0.000000e+00 : f32
    %0 = vector.broadcast %cst : f32 to vector<2x2x42x16xf32>
    %c0 = arith.constant 0 : index
    %c0_0 = arith.constant 0 : index
    %c0_1 = arith.constant 0 : index
    %c0_2 = arith.constant 0 : index
    %1 = vector.load %arg7[%c0, %c0_0, %c0_1, %c0_2] : memref<2x2x42x16xf32, #tpu.memory_space<vmem>>, vector<2x2x42x16xf32>
    tpu.vector_store %arg7[%c0, %c0_0, %c0_1, %c0_2], %0 {strides = array<i32>} : memref<2x2x42x16xf32, #tpu.memory_space<vmem>>, vector<2x2x42x16xf32>,
    %2 = tpu.iota {dimensions = array<i32: 0>} : vector<24x1xi32>
    %c6_i32 = arith.constant 6 : i32
    %c0_i32 = arith.constant 0 : i32
    %3 = arith.cmpi eq, %c6_i32, %c0_i32 : i32
    %c1_i32 = arith.constant 1 : i32
    %4 = arith.select %3, %c1_i32, %c6_i32 : i32
    %5 = vector.broadcast %4 : i32 to vector<24x1xi32>
    %6 = arith.remsi %2, %5 : vector<24x1xi32>
    %c0_i32_3 = arith.constant 0 : i32
    %7 = vector.broadcast %c0_i32_3 : i32 to vector<24x1xi32>
    %8 = arith.cmpi ne, %6, %7 : vector<24x1xi32>
    %c0_i32_4 = arith.constant 0 : i32
    %9 = vector.broadcast %c0_i32_4 : i32 to vector<24x1xi32>
    %10 = arith.cmpi slt, %6, %9 : vector<24x1xi32>
    %c0_i32_5 = arith.constant 0 : i32
    %11 = arith.cmpi slt, %4, %c0_i32_5 : i32
    %12 = vector.broadcast %11 : i1 to vector<24x1xi1>
    %13 = vector.broadcast %12 : vector<24x1xi1> to vector<24x1xi1>
    %14 = arith.xori %10, %13 : vector<24x1xi1>
    %15 = arith.andi %14, %8 : vector<24x1xi1>
    %16 = vector.broadcast %4 : i32 to vector<24x1xi32>
    %17 = arith.addi %6, %16 : vector<24x1xi32>
    %18 = arith.select %15, %17, %6 : vector<24x1xi1>, vector<24x1xi32>
    %c4_i32 = arith.constant 4 : i32
    %19 = vector.broadcast %c4_i32 : i32 to vector<24x1xi32>
    %20 = arith.cmpi slt, %18, %19 : vector<24x1xi32>
    %c0_6 = arith.constant 0 : index
    %c0_7 = arith.constant 0 : index
    %21 = vector.load %arg3[%c0_6, %c0_7] : memref<1x16xf32, #tpu.memory_space<vmem>>, vector<1x16xf32>
    %cst_8 = arith.constant 0.000000e+00 : f32
    %22 = vector.broadcast %cst_8 : f32 to vector<24x16xf32>
    %c0_9 = arith.constant 0 : index
    %c0_10 = arith.constant 0 : index
    %c0_11 = arith.constant 0 : index
    %23 = vector.load %arg1[%c0_9, %c0_10, %c0_11] : memref<1x36x16xf32, #tpu.memory_space<vmem>>, vector<1x24x1xf32>
    %24 = vector.shape_cast %23 : vector<1x24x1xf32> to vector<24x1xf32>
    %c0_12 = arith.constant 0 : index
    %c0_13 = arith.constant 0 : index
    %25 = vector.load %arg2[%c0_12, %c0_13] : memref<16x16xbf16, #tpu.memory_space<vmem>>, vector<1x16xbf16>
    %26 = arith.extf %25 : vector<1x16xbf16> to vector<1x16xf32>
    %27 = vector.broadcast %24 : vector<24x1xf32> to vector<24x16xf32>
    %28 = vector.broadcast %26 : vector<1x16xf32> to vector<24x16xf32>
    %29 = arith.mulf %27, %28 : vector<24x16xf32>
    %30 = arith.addf %22, %29 : vector<24x16xf32>
    %c0_14 = arith.constant 0 : index
    %c0_15 = arith.constant 0 : index
    %c1 = arith.constant 1 : index
    %31 = vector.load %arg1[%c0_14, %c0_15, %c1] : memref<1x36x16xf32, #tpu.memory_space<vmem>>, vector<1x24x1xf32>
    %32 = vector.shape_cast %31 : vector<1x24x1xf32> to vector<24x1xf32>
    %c1_16 = arith.constant 1 : index
    %c0_17 = arith.constant 0 : index
    %33 = vector.load %arg2[%c1_16, %c0_17] : memref<16x16xbf16, #tpu.memory_space<vmem>>, vector<1x16xbf16>
    %34 = arith.extf %33 : vector<1x16xbf16> to vector<1x16xf32>
    %35 = vector.broadcast %32 : vector<24x1xf32> to vector<24x16xf32>
    %36 = vector.broadcast %34 : vector<1x16xf32> to vector<24x16xf32>
    %37 = arith.mulf %35, %36 : vector<24x16xf32>
    %38 = arith.addf %30, %37 : vector<24x16xf32>
    %c0_18 = arith.constant 0 : index
    %c0_19 = arith.constant 0 : index
    %c2 = arith.constant 2 : index
    %39 = vector.load %arg1[%c0_18, %c0_19, %c2] : memref<1x36x16xf32, #tpu.memory_space<vmem>>, vector<1x24x1xf32>
    %40 = vector.shape_cast %39 : vector<1x24x1xf32> to vector<24x1xf32>
    %c2_20 = arith.constant 2 : index
    %c0_21 = arith.constant 0 : index
    %41 = vector.load %arg2[%c2_20, %c0_21] : memref<16x16xbf16, #tpu.memory_space<vmem>>, vector<1x16xbf16>
    %42 = arith.extf %41 : vector<1x16xbf16> to vector<1x16xf32>
    %43 = vector.broadcast %40 : vector<24x1xf32> to vector<24x16xf32>
    %44 = vector.broadcast %42 : vector<1x16xf32> to vector<24x16xf32>
    %45 = arith.mulf %43, %44 : vector<24x16xf32>
    %46 = arith.addf %38, %45 : vector<24x16xf32>
    %c0_22 = arith.constant 0 : index
    %c0_23 = arith.constant 0 : index
    %c3 = arith.constant 3 : index
    %47 = vector.load %arg1[%c0_22, %c0_23, %c3] : memref<1x36x16xf32, #tpu.memory_space<vmem>>, vector<1x24x1xf32>
    %48 = vector.shape_cast %47 : vector<1x24x1xf32> to vector<24x1xf32>
    %c3_24 = arith.constant 3 : index
    %c0_25 = arith.constant 0 : index
    %49 = vector.load %arg2[%c3_24, %c0_25] : memref<16x16xbf16, #tpu.memory_space<vmem>>, vector<1x16xbf16>
    %50 = arith.extf %49 : vector<1x16xbf16> to vector<1x16xf32>
    %51 = vector.broadcast %48 : vector<24x1xf32> to vector<24x16xf32>
    %52 = vector.broadcast %50 : vector<1x16xf32> to vector<24x16xf32>
    %53 = arith.mulf %51, %52 : vector<24x16xf32>
    %54 = arith.addf %46, %53 : vector<24x16xf32>
    %c0_26 = arith.constant 0 : index
    %c0_27 = arith.constant 0 : index
    %c4 = arith.constant 4 : index
    %55 = vector.load %arg1[%c0_26, %c0_27, %c4] : memref<1x36x16xf32, #tpu.memory_space<vmem>>, vector<1x24x1xf32>
    %56 = vector.shape_cast %55 : vector<1x24x1xf32> to vector<24x1xf32>
    %c4_28 = arith.constant 4 : index
    %c0_29 = arith.constant 0 : index
    %57 = vector.load %arg2[%c4_28, %c0_29] : memref<16x16xbf16, #tpu.memory_space<vmem>>, vector<1x16xbf16>
    %58 = arith.extf %57 : vector<1x16xbf16> to vector<1x16xf32>
    %59 = vector.broadcast %56 : vector<24x1xf32> to vector<24x16xf32>
    %60 = vector.broadcast %58 : vector<1x16xf32> to vector<24x16xf32>
    %61 = arith.mulf %59, %60 : vector<24x16xf32>
    %62 = arith.addf %54, %61 : vector<24x16xf32>
    %c0_30 = arith.constant 0 : index
    %c0_31 = arith.constant 0 : index
    %c5 = arith.constant 5 : index
    %63 = vector.load %arg1[%c0_30, %c0_31, %c5] : memref<1x36x16xf32, #tpu.memory_space<vmem>>, vector<1x24x1xf32>
    %64 = vector.shape_cast %63 : vector<1x24x1xf32> to vector<24x1xf32>
    %c5_32 = arith.constant 5 : index
    %c0_33 = arith.constant 0 : index
    %65 = vector.load %arg2[%c5_32, %c0_33] : memref<16x16xbf16, #tpu.memory_space<vmem>>, vector<1x16xbf16>
    %66 = arith.extf %65 : vector<1x16xbf16> to vector<1x16xf32>
    %67 = vector.broadcast %64 : vector<24x1xf32> to vector<24x16xf32>
    %68 = vector.broadcast %66 : vector<1x16xf32> to vector<24x16xf32>
    %69 = arith.mulf %67, %68 : vector<24x16xf32>
    %70 = arith.addf %62, %69 : vector<24x16xf32>
    %c0_34 = arith.constant 0 : index
    %c0_35 = arith.constant 0 : index
    %c6 = arith.constant 6 : index
    %71 = vector.load %arg1[%c0_34, %c0_35, %c6] : memref<1x36x16xf32, #tpu.memory_space<vmem>>, vector<1x24x1xf32>
    %72 = vector.shape_cast %71 : vector<1x24x1xf32> to vector<24x1xf32>
    %c6_36 = arith.constant 6 : index
    %c0_37 = arith.constant 0 : index
    %73 = vector.load %arg2[%c6_36, %c0_37] : memref<16x16xbf16, #tpu.memory_space<vmem>>, vector<1x16xbf16>
    %74 = arith.extf %73 : vector<1x16xbf16> to vector<1x16xf32>
    %75 = vector.broadcast %72 : vector<24x1xf32> to vector<24x16xf32>
    %76 = vector.broadcast %74 : vector<1x16xf32> to vector<24x16xf32>
    %77 = arith.mulf %75, %76 : vector<24x16xf32>
    %78 = arith.addf %70, %77 : vector<24x16xf32>
    %c0_38 = arith.constant 0 : index
    %c0_39 = arith.constant 0 : index
    %c7 = arith.constant 7 : index
    %79 = vector.load %arg1[%c0_38, %c0_39, %c7] : memref<1x36x16xf32, #tpu.memory_space<vmem>>, vector<1x24x1xf32>
    %80 = vector.shape_cast %79 : vector<1x24x1xf32> to vector<24x1xf32>
    %c7_40 = arith.constant 7 : index
    %c0_41 = arith.constant 0 : index
    %81 = vector.load %arg2[%c7_40, %c0_41] : memref<16x16xbf16, #tpu.memory_space<vmem>>, vector<1x16xbf16>
    %82 = arith.extf %81 : vector<1x16xbf16> to vector<1x16xf32>
    %83 = vector.broadcast %80 : vector<24x1xf32> to vector<24x16xf32>
    %84 = vector.broadcast %82 : vector<1x16xf32> to vector<24x16xf32>
    %85 = arith.mulf %83, %84 : vector<24x16xf32>
    %86 = arith.addf %78, %85 : vector<24x16xf32>
    %c0_42 = arith.constant 0 : index
    %c0_43 = arith.constant 0 : index
    %c8 = arith.constant 8 : index
    %87 = vector.load %arg1[%c0_42, %c0_43, %c8] : memref<1x36x16xf32, #tpu.memory_space<vmem>>, vector<1x24x1xf32>
    %88 = vector.shape_cast %87 : vector<1x24x1xf32> to vector<24x1xf32>
    %c8_44 = arith.constant 8 : index
    %c0_45 = arith.constant 0 : index
    %89 = vector.load %arg2[%c8_44, %c0_45] : memref<16x16xbf16, #tpu.memory_space<vmem>>, vector<1x16xbf16>
    %90 = arith.extf %89 : vector<1x16xbf16> to vector<1x16xf32>
    %91 = vector.broadcast %88 : vector<24x1xf32> to vector<24x16xf32>
    %92 = vector.broadcast %90 : vector<1x16xf32> to vector<24x16xf32>
    %93 = arith.mulf %91, %92 : vector<24x16xf32>
    %94 = arith.addf %86, %93 : vector<24x16xf32>
    %c0_46 = arith.constant 0 : index
    %c0_47 = arith.constant 0 : index
    %c9 = arith.constant 9 : index
    %95 = vector.load %arg1[%c0_46, %c0_47, %c9] : memref<1x36x16xf32, #tpu.memory_space<vmem>>, vector<1x24x1xf32>
    %96 = vector.shape_cast %95 : vector<1x24x1xf32> to vector<24x1xf32>
    %c9_48 = arith.constant 9 : index
    %c0_49 = arith.constant 0 : index
    %97 = vector.load %arg2[%c9_48, %c0_49] : memref<16x16xbf16, #tpu.memory_space<vmem>>, vector<1x16xbf16>
    %98 = arith.extf %97 : vector<1x16xbf16> to vector<1x16xf32>
    %99 = vector.broadcast %96 : vector<24x1xf32> to vector<24x16xf32>
    %100 = vector.broadcast %98 : vector<1x16xf32> to vector<24x16xf32>
    %101 = arith.mulf %99, %100 : vector<24x16xf32>
    %102 = arith.addf %94, %101 : vector<24x16xf32>
    %c0_50 = arith.constant 0 : index
    %c0_51 = arith.constant 0 : index
    %c10 = arith.constant 10 : index
    %103 = vector.load %arg1[%c0_50, %c0_51, %c10] : memref<1x36x16xf32, #tpu.memory_space<vmem>>, vector<1x24x1xf32>
    %104 = vector.shape_cast %103 : vector<1x24x1xf32> to vector<24x1xf32>
    %c10_52 = arith.constant 10 : index
    %c0_53 = arith.constant 0 : index
    %105 = vector.load %arg2[%c10_52, %c0_53] : memref<16x16xbf16, #tpu.memory_space<vmem>>, vector<1x16xbf16>
    %106 = arith.extf %105 : vector<1x16xbf16> to vector<1x16xf32>
    %107 = vector.broadcast %104 : vector<24x1xf32> to vector<24x16xf32>
    %108 = vector.broadcast %106 : vector<1x16xf32> to vector<24x16xf32>
    %109 = arith.mulf %107, %108 : vector<24x16xf32>
    %110 = arith.addf %102, %109 : vector<24x16xf32>
    %c0_54 = arith.constant 0 : index
    %c0_55 = arith.constant 0 : index
    %c11 = arith.constant 11 : index
    %111 = vector.load %arg1[%c0_54, %c0_55, %c11] : memref<1x36x16xf32, #tpu.memory_space<vmem>>, vector<1x24x1xf32>
    %112 = vector.shape_cast %111 : vector<1x24x1xf32> to vector<24x1xf32>
    %c11_56 = arith.constant 11 : index
    %c0_57 = arith.constant 0 : index
    %113 = vector.load %arg2[%c11_56, %c0_57] : memref<16x16xbf16, #tpu.memory_space<vmem>>, vector<1x16xbf16>
    %114 = arith.extf %113 : vector<1x16xbf16> to vector<1x16xf32>
    %115 = vector.broadcast %112 : vector<24x1xf32> to vector<24x16xf32>
    %116 = vector.broadcast %114 : vector<1x16xf32> to vector<24x16xf32>
    %117 = arith.mulf %115, %116 : vector<24x16xf32>
    %118 = arith.addf %110, %117 : vector<24x16xf32>
    %c0_58 = arith.constant 0 : index
    %c0_59 = arith.constant 0 : index
    %c12 = arith.constant 12 : index
    %119 = vector.load %arg1[%c0_58, %c0_59, %c12] : memref<1x36x16xf32, #tpu.memory_space<vmem>>, vector<1x24x1xf32>
    %120 = vector.shape_cast %119 : vector<1x24x1xf32> to vector<24x1xf32>
    %c12_60 = arith.constant 12 : index
    %c0_61 = arith.constant 0 : index
    %121 = vector.load %arg2[%c12_60, %c0_61] : memref<16x16xbf16, #tpu.memory_space<vmem>>, vector<1x16xbf16>
    %122 = arith.extf %121 : vector<1x16xbf16> to vector<1x16xf32>
    %123 = vector.broadcast %120 : vector<24x1xf32> to vector<24x16xf32>
    %124 = vector.broadcast %122 : vector<1x16xf32> to vector<24x16xf32>
    %125 = arith.mulf %123, %124 : vector<24x16xf32>
    %126 = arith.addf %118, %125 : vector<24x16xf32>
    %c0_62 = arith.constant 0 : index
    %c0_63 = arith.constant 0 : index
    %c13 = arith.constant 13 : index
    %127 = vector.load %arg1[%c0_62, %c0_63, %c13] : memref<1x36x16xf32, #tpu.memory_space<vmem>>, vector<1x24x1xf32>
    %128 = vector.shape_cast %127 : vector<1x24x1xf32> to vector<24x1xf32>
    %c13_64 = arith.constant 13 : index
    %c0_65 = arith.constant 0 : index
    %129 = vector.load %arg2[%c13_64, %c0_65] : memref<16x16xbf16, #tpu.memory_space<vmem>>, vector<1x16xbf16>
    %130 = arith.extf %129 : vector<1x16xbf16> to vector<1x16xf32>
    %131 = vector.broadcast %128 : vector<24x1xf32> to vector<24x16xf32>
    %132 = vector.broadcast %130 : vector<1x16xf32> to vector<24x16xf32>
    %133 = arith.mulf %131, %132 : vector<24x16xf32>
    %134 = arith.addf %126, %133 : vector<24x16xf32>
    %c0_66 = arith.constant 0 : index
    %c0_67 = arith.constant 0 : index
    %c14 = arith.constant 14 : index
    %135 = vector.load %arg1[%c0_66, %c0_67, %c14] : memref<1x36x16xf32, #tpu.memory_space<vmem>>, vector<1x24x1xf32>
    %136 = vector.shape_cast %135 : vector<1x24x1xf32> to vector<24x1xf32>
    %c14_68 = arith.constant 14 : index
    %c0_69 = arith.constant 0 : index
    %137 = vector.load %arg2[%c14_68, %c0_69] : memref<16x16xbf16, #tpu.memory_space<vmem>>, vector<1x16xbf16>
    %138 = arith.extf %137 : vector<1x16xbf16> to vector<1x16xf32>
    %139 = vector.broadcast %136 : vector<24x1xf32> to vector<24x16xf32>
    %140 = vector.broadcast %138 : vector<1x16xf32> to vector<24x16xf32>
    %141 = arith.mulf %139, %140 : vector<24x16xf32>
    %142 = arith.addf %134, %141 : vector<24x16xf32>
    %c0_70 = arith.constant 0 : index
    %c0_71 = arith.constant 0 : index
    %c15 = arith.constant 15 : index
    %143 = vector.load %arg1[%c0_70, %c0_71, %c15] : memref<1x36x16xf32, #tpu.memory_space<vmem>>, vector<1x24x1xf32>
    %144 = vector.shape_cast %143 : vector<1x24x1xf32> to vector<24x1xf32>
    %c15_72 = arith.constant 15 : index
    %c0_73 = arith.constant 0 : index
    %145 = vector.load %arg2[%c15_72, %c0_73] : memref<16x16xbf16, #tpu.memory_space<vmem>>, vector<1x16xbf16>
    %146 = arith.extf %145 : vector<1x16xbf16> to vector<1x16xf32>
    %147 = vector.broadcast %144 : vector<24x1xf32> to vector<24x16xf32>
    %148 = vector.broadcast %146 : vector<1x16xf32> to vector<24x16xf32>
    %149 = arith.mulf %147, %148 : vector<24x16xf32>
    %150 = arith.addf %142, %149 : vector<24x16xf32>
    %151 = vector.broadcast %21 : vector<1x16xf32> to vector<24x16xf32>
    %152 = arith.addf %150, %151 : vector<24x16xf32>
    %cst_74 = arith.constant 0.000000e+00 : f32
    %153 = vector.broadcast %cst_74 : f32 to vector<24x16xf32>
    %154 = arith.maximumf %152, %153 : vector<24x16xf32>
    %cst_75 = arith.constant 0.000000e+00 : f32
    %155 = vector.shape_cast %20 : vector<24x1xi1> to vector<24x1xi1>
    %156 = vector.broadcast %155 : vector<24x1xi1> to vector<24x16xi1>
    %157 = vector.broadcast %cst_75 : f32 to vector<24x16xf32>
    %158 = arith.select %156, %154, %157 : vector<24x16xi1>, vector<24x16xf32>
    %c0_76 = arith.constant 0 : index
    %c0_77 = arith.constant 0 : index
    %c7_78 = arith.constant 7 : index
    %c0_79 = arith.constant 0 : index
    %159 = vector.load %arg7[%c0_76, %c0_77, %c7_78, %c0_79] : memref<2x2x42x16xf32, #tpu.memory_space<vmem>>, vector<1x1x24x16xf32>
    %160 = vector.shape_cast %159 : vector<1x1x24x16xf32> to vector<24x16xf32>
    %161 = vector.shape_cast %158 : vector<24x16xf32> to vector<1x1x24x16xf32>
    tpu.vector_store %arg7[%c0_76, %c0_77, %c7_78, %c0_79], %161 {strides = array<i32>} : memref<2x2x42x16xf32, #tpu.memory_space<vmem>>, vector<1x1x24x16xf32>,
    %cst_80 = arith.constant 0.000000e+00 : f32
    %162 = vector.broadcast %cst_80 : f32 to vector<24x16xf32>
    %c0_81 = arith.constant 0 : index
    %c0_82 = arith.constant 0 : index
    %c2_83 = arith.constant 2 : index
    %163 = vector.load %arg1[%c0_81, %c0_82, %c2_83] : memref<1x36x16xf32, #tpu.memory_space<vmem>>, vector<1x24x1xf32>
    %164 = vector.shape_cast %163 : vector<1x24x1xf32> to vector<24x1xf32>
    %c0_84 = arith.constant 0 : index
    %c0_85 = arith.constant 0 : index
    %165 = vector.load %arg2[%c0_84, %c0_85] : memref<16x16xbf16, #tpu.memory_space<vmem>>, vector<1x16xbf16>
    %166 = arith.extf %165 : vector<1x16xbf16> to vector<1x16xf32>
    %167 = vector.broadcast %164 : vector<24x1xf32> to vector<24x16xf32>
    %168 = vector.broadcast %166 : vector<1x16xf32> to vector<24x16xf32>
    %169 = arith.mulf %167, %168 : vector<24x16xf32>
    %170 = arith.addf %162, %169 : vector<24x16xf32>
    %c0_86 = arith.constant 0 : index
    %c0_87 = arith.constant 0 : index
    %c3_88 = arith.constant 3 : index
    %171 = vector.load %arg1[%c0_86, %c0_87, %c3_88] : memref<1x36x16xf32, #tpu.memory_space<vmem>>, vector<1x24x1xf32>
    %172 = vector.shape_cast %171 : vector<1x24x1xf32> to vector<24x1xf32>
    %c1_89 = arith.constant 1 : index
    %c0_90 = arith.constant 0 : index
    %173 = vector.load %arg2[%c1_89, %c0_90] : memref<16x16xbf16, #tpu.memory_space<vmem>>, vector<1x16xbf16>
    %174 = arith.extf %173 : vector<1x16xbf16> to vector<1x16xf32>
    %175 = vector.broadcast %172 : vector<24x1xf32> to vector<24x16xf32>
    %176 = vector.broadcast %174 : vector<1x16xf32> to vector<24x16xf32>
    %177 = arith.mulf %175, %176 : vector<24x16xf32>
    %178 = arith.addf %170, %177 : vector<24x16xf32>
    %c0_91 = arith.constant 0 : index
    %c1_92 = arith.constant 1 : index
    %c0_93 = arith.constant 0 : index
    %179 = vector.load %arg1[%c0_91, %c1_92, %c0_93] : memref<1x36x16xf32, #tpu.memory_space<vmem>>, vector<1x24x1xf32>
    %180 = vector.shape_cast %179 : vector<1x24x1xf32> to vector<24x1xf32>
    %c2_94 = arith.constant 2 : index
    %c0_95 = arith.constant 0 : index
    %181 = vector.load %arg2[%c2_94, %c0_95] : memref<16x16xbf16, #tpu.memory_space<vmem>>, vector<1x16xbf16>
    %182 = arith.extf %181 : vector<1x16xbf16> to vector<1x16xf32>
    %183 = vector.broadcast %180 : vector<24x1xf32> to vector<24x16xf32>
    %184 = vector.broadcast %182 : vector<1x16xf32> to vector<24x16xf32>
    %185 = arith.mulf %183, %184 : vector<24x16xf32>
    %186 = arith.addf %178, %185 : vector<24x16xf32>
    %c0_96 = arith.constant 0 : index
    %c1_97 = arith.constant 1 : index
    %c1_98 = arith.constant 1 : index
    %187 = vector.load %arg1[%c0_96, %c1_97, %c1_98] : memref<1x36x16xf32, #tpu.memory_space<vmem>>, vector<1x24x1xf32>
    %188 = vector.shape_cast %187 : vector<1x24x1xf32> to vector<24x1xf32>
    %c3_99 = arith.constant 3 : index
    %c0_100 = arith.constant 0 : index
    %189 = vector.load %arg2[%c3_99, %c0_100] : memref<16x16xbf16, #tpu.memory_space<vmem>>, vector<1x16xbf16>
    %190 = arith.extf %189 : vector<1x16xbf16> to vector<1x16xf32>
    %191 = vector.broadcast %188 : vector<24x1xf32> to vector<24x16xf32>
    %192 = vector.broadcast %190 : vector<1x16xf32> to vector<24x16xf32>
    %193 = arith.mulf %191, %192 : vector<24x16xf32>
    %194 = arith.addf %186, %193 : vector<24x16xf32>
    %c0_101 = arith.constant 0 : index
    %c0_102 = arith.constant 0 : index
    %c6_103 = arith.constant 6 : index
    %195 = vector.load %arg1[%c0_101, %c0_102, %c6_103] : memref<1x36x16xf32, #tpu.memory_space<vmem>>, vector<1x24x1xf32>
    %196 = vector.shape_cast %195 : vector<1x24x1xf32> to vector<24x1xf32>
    %c4_104 = arith.constant 4 : index
    %c0_105 = arith.constant 0 : index
    %197 = vector.load %arg2[%c4_104, %c0_105] : memref<16x16xbf16, #tpu.memory_space<vmem>>, vector<1x16xbf16>
    %198 = arith.extf %197 : vector<1x16xbf16> to vector<1x16xf32>
    %199 = vector.broadcast %196 : vector<24x1xf32> to vector<24x16xf32>
    %200 = vector.broadcast %198 : vector<1x16xf32> to vector<24x16xf32>
    %201 = arith.mulf %199, %200 : vector<24x16xf32>
    %202 = arith.addf %194, %201 : vector<24x16xf32>
    %c0_106 = arith.constant 0 : index
    %c0_107 = arith.constant 0 : index
    %c7_108 = arith.constant 7 : index
    %203 = vector.load %arg1[%c0_106, %c0_107, %c7_108] : memref<1x36x16xf32, #tpu.memory_space<vmem>>, vector<1x24x1xf32>
    %204 = vector.shape_cast %203 : vector<1x24x1xf32> to vector<24x1xf32>
    %c5_109 = arith.constant 5 : index
    %c0_110 = arith.constant 0 : index
    %205 = vector.load %arg2[%c5_109, %c0_110] : memref<16x16xbf16, #tpu.memory_space<vmem>>, vector<1x16xbf16>
    %206 = arith.extf %205 : vector<1x16xbf16> to vector<1x16xf32>
    %207 = vector.broadcast %204 : vector<24x1xf32> to vector<24x16xf32>
    %208 = vector.broadcast %206 : vector<1x16xf32> to vector<24x16xf32>
    %209 = arith.mulf %207, %208 : vector<24x16xf32>
    %210 = arith.addf %202, %209 : vector<24x16xf32>
    %c0_111 = arith.constant 0 : index
    %c1_112 = arith.constant 1 : index
    %c4_113 = arith.constant 4 : index
    %211 = vector.load %arg1[%c0_111, %c1_112, %c4_113] : memref<1x36x16xf32, #tpu.memory_space<vmem>>, vector<1x24x1xf32>
    %212 = vector.shape_cast %211 : vector<1x24x1xf32> to vector<24x1xf32>
    %c6_114 = arith.constant 6 : index
    %c0_115 = arith.constant 0 : index
    %213 = vector.load %arg2[%c6_114, %c0_115] : memref<16x16xbf16, #tpu.memory_space<vmem>>, vector<1x16xbf16>
    %214 = arith.extf %213 : vector<1x16xbf16> to vector<1x16xf32>
    %215 = vector.broadcast %212 : vector<24x1xf32> to vector<24x16xf32>
    %216 = vector.broadcast %214 : vector<1x16xf32> to vector<24x16xf32>
    %217 = arith.mulf %215, %216 : vector<24x16xf32>
    %218 = arith.addf %210, %217 : vector<24x16xf32>
    %c0_116 = arith.constant 0 : index
    %c1_117 = arith.constant 1 : index
    %c5_118 = arith.constant 5 : index
    %219 = vector.load %arg1[%c0_116, %c1_117, %c5_118] : memref<1x36x16xf32, #tpu.memory_space<vmem>>, vector<1x24x1xf32>
    %220 = vector.shape_cast %219 : vector<1x24x1xf32> to vector<24x1xf32>
    %c7_119 = arith.constant 7 : index
    %c0_120 = arith.constant 0 : index
    %221 = vector.load %arg2[%c7_119, %c0_120] : memref<16x16xbf16, #tpu.memory_space<vmem>>, vector<1x16xbf16>
    %222 = arith.extf %221 : vector<1x16xbf16> to vector<1x16xf32>
    %223 = vector.broadcast %220 : vector<24x1xf32> to vector<24x16xf32>
    %224 = vector.broadcast %222 : vector<1x16xf32> to vector<24x16xf32>
    %225 = arith.mulf %223, %224 : vector<24x16xf32>
    %226 = arith.addf %218, %225 : vector<24x16xf32>
    %c0_121 = arith.constant 0 : index
    %c0_122 = arith.constant 0 : index
    %c10_123 = arith.constant 10 : index
    %227 = vector.load %arg1[%c0_121, %c0_122, %c10_123] : memref<1x36x16xf32, #tpu.memory_space<vmem>>, vector<1x24x1xf32>
    %228 = vector.shape_cast %227 : vector<1x24x1xf32> to vector<24x1xf32>
    %c8_124 = arith.constant 8 : index
    %c0_125 = arith.constant 0 : index
    %229 = vector.load %arg2[%c8_124, %c0_125] : memref<16x16xbf16, #tpu.memory_space<vmem>>, vector<1x16xbf16>
    %230 = arith.extf %229 : vector<1x16xbf16> to vector<1x16xf32>
    %231 = vector.broadcast %228 : vector<24x1xf32> to vector<24x16xf32>
    %232 = vector.broadcast %230 : vector<1x16xf32> to vector<24x16xf32>
    %233 = arith.mulf %231, %232 : vector<24x16xf32>
    %234 = arith.addf %226, %233 : vector<24x16xf32>
    %c0_126 = arith.constant 0 : index
    %c0_127 = arith.constant 0 : index
    %c11_128 = arith.constant 11 : index
    %235 = vector.load %arg1[%c0_126, %c0_127, %c11_128] : memref<1x36x16xf32, #tpu.memory_space<vmem>>, vector<1x24x1xf32>
    %236 = vector.shape_cast %235 : vector<1x24x1xf32> to vector<24x1xf32>
    %c9_129 = arith.constant 9 : index
    %c0_130 = arith.constant 0 : index
    %237 = vector.load %arg2[%c9_129, %c0_130] : memref<16x16xbf16, #tpu.memory_space<vmem>>, vector<1x16xbf16>
    %238 = arith.extf %237 : vector<1x16xbf16> to vector<1x16xf32>
    %239 = vector.broadcast %236 : vector<24x1xf32> to vector<24x16xf32>
    %240 = vector.broadcast %238 : vector<1x16xf32> to vector<24x16xf32>
    %241 = arith.mulf %239, %240 : vector<24x16xf32>
    %242 = arith.addf %234, %241 : vector<24x16xf32>
    %c0_131 = arith.constant 0 : index
    %c1_132 = arith.constant 1 : index
    %c8_133 = arith.constant 8 : index
    %243 = vector.load %arg1[%c0_131, %c1_132, %c8_133] : memref<1x36x16xf32, #tpu.memory_space<vmem>>, vector<1x24x1xf32>
    %244 = vector.shape_cast %243 : vector<1x24x1xf32> to vector<24x1xf32>
    %c10_134 = arith.constant 10 : index
    %c0_135 = arith.constant 0 : index
    %245 = vector.load %arg2[%c10_134, %c0_135] : memref<16x16xbf16, #tpu.memory_space<vmem>>, vector<1x16xbf16>
    %246 = arith.extf %245 : vector<1x16xbf16> to vector<1x16xf32>
    %247 = vector.broadcast %244 : vector<24x1xf32> to vector<24x16xf32>
    %248 = vector.broadcast %246 : vector<1x16xf32> to vector<24x16xf32>
    %249 = arith.mulf %247, %248 : vector<24x16xf32>
    %250 = arith.addf %242, %249 : vector<24x16xf32>
    %c0_136 = arith.constant 0 : index
    %c1_137 = arith.constant 1 : index
    %c9_138 = arith.constant 9 : index
    %251 = vector.load %arg1[%c0_136, %c1_137, %c9_138] : memref<1x36x16xf32, #tpu.memory_space<vmem>>, vector<1x24x1xf32>
    %252 = vector.shape_cast %251 : vector<1x24x1xf32> to vector<24x1xf32>
    %c11_139 = arith.constant 11 : index
    %c0_140 = arith.constant 0 : index
    %253 = vector.load %arg2[%c11_139, %c0_140] : memref<16x16xbf16, #tpu.memory_space<vmem>>, vector<1x16xbf16>
    %254 = arith.extf %253 : vector<1x16xbf16> to vector<1x16xf32>
    %255 = vector.broadcast %252 : vector<24x1xf32> to vector<24x16xf32>
    %256 = vector.broadcast %254 : vector<1x16xf32> to vector<24x16xf32>
    %257 = arith.mulf %255, %256 : vector<24x16xf32>
    %258 = arith.addf %250, %257 : vector<24x16xf32>
    %c0_141 = arith.constant 0 : index
    %c0_142 = arith.constant 0 : index
    %c14_143 = arith.constant 14 : index
    %259 = vector.load %arg1[%c0_141, %c0_142, %c14_143] : memref<1x36x16xf32, #tpu.memory_space<vmem>>, vector<1x24x1xf32>
    %260 = vector.shape_cast %259 : vector<1x24x1xf32> to vector<24x1xf32>
    %c12_144 = arith.constant 12 : index
    %c0_145 = arith.constant 0 : index
    %261 = vector.load %arg2[%c12_144, %c0_145] : memref<16x16xbf16, #tpu.memory_space<vmem>>, vector<1x16xbf16>
    %262 = arith.extf %261 : vector<1x16xbf16> to vector<1x16xf32>
    %263 = vector.broadcast %260 : vector<24x1xf32> to vector<24x16xf32>
    %264 = vector.broadcast %262 : vector<1x16xf32> to vector<24x16xf32>
    %265 = arith.mulf %263, %264 : vector<24x16xf32>
    %266 = arith.addf %258, %265 : vector<24x16xf32>
    %c0_146 = arith.constant 0 : index
    %c0_147 = arith.constant 0 : index
    %c15_148 = arith.constant 15 : index
    %267 = vector.load %arg1[%c0_146, %c0_147, %c15_148] : memref<1x36x16xf32, #tpu.memory_space<vmem>>, vector<1x24x1xf32>
    %268 = vector.shape_cast %267 : vector<1x24x1xf32> to vector<24x1xf32>
    %c13_149 = arith.constant 13 : index
    %c0_150 = arith.constant 0 : index
    %269 = vector.load %arg2[%c13_149, %c0_150] : memref<16x16xbf16, #tpu.memory_space<vmem>>, vector<1x16xbf16>
    %270 = arith.extf %269 : vector<1x16xbf16> to vector<1x16xf32>
    %271 = vector.broadcast %268 : vector<24x1xf32> to vector<24x16xf32>
    %272 = vector.broadcast %270 : vector<1x16xf32> to vector<24x16xf32>
    %273 = arith.mulf %271, %272 : vector<24x16xf32>
    %274 = arith.addf %266, %273 : vector<24x16xf32>
    %c0_151 = arith.constant 0 : index
    %c1_152 = arith.constant 1 : index
    %c12_153 = arith.constant 12 : index
    %275 = vector.load %arg1[%c0_151, %c1_152, %c12_153] : memref<1x36x16xf32, #tpu.memory_space<vmem>>, vector<1x24x1xf32>
    %276 = vector.shape_cast %275 : vector<1x24x1xf32> to vector<24x1xf32>
    %c14_154 = arith.constant 14 : index
    %c0_155 = arith.constant 0 : index
    %277 = vector.load %arg2[%c14_154, %c0_155] : memref<16x16xbf16, #tpu.memory_space<vmem>>, vector<1x16xbf16>
    %278 = arith.extf %277 : vector<1x16xbf16> to vector<1x16xf32>
    %279 = vector.broadcast %276 : vector<24x1xf32> to vector<24x16xf32>
    %280 = vector.broadcast %278 : vector<1x16xf32> to vector<24x16xf32>
    %281 = arith.mulf %279, %280 : vector<24x16xf32>
    %282 = arith.addf %274, %281 : vector<24x16xf32>
    %c0_156 = arith.constant 0 : index
    %c1_157 = arith.constant 1 : index
    %c13_158 = arith.constant 13 : index
    %283 = vector.load %arg1[%c0_156, %c1_157, %c13_158] : memref<1x36x16xf32, #tpu.memory_space<vmem>>, vector<1x24x1xf32>
    %284 = vector.shape_cast %283 : vector<1x24x1xf32> to vector<24x1xf32>
    %c15_159 = arith.constant 15 : index
    %c0_160 = arith.constant 0 : index
    %285 = vector.load %arg2[%c15_159, %c0_160] : memref<16x16xbf16, #tpu.memory_space<vmem>>, vector<1x16xbf16>
    %286 = arith.extf %285 : vector<1x16xbf16> to vector<1x16xf32>
    %287 = vector.broadcast %284 : vector<24x1xf32> to vector<24x16xf32>
    %288 = vector.broadcast %286 : vector<1x16xf32> to vector<24x16xf32>
    %289 = arith.mulf %287, %288 : vector<24x16xf32>
    %290 = arith.addf %282, %289 : vector<24x16xf32>
    %291 = vector.broadcast %21 : vector<1x16xf32> to vector<24x16xf32>
    %292 = arith.addf %290, %291 : vector<24x16xf32>
    %cst_161 = arith.constant 0.000000e+00 : f32
    %293 = vector.broadcast %cst_161 : f32 to vector<24x16xf32>
    %294 = arith.maximumf %292, %293 : vector<24x16xf32>
    %cst_162 = arith.constant 0.000000e+00 : f32
    %295 = vector.shape_cast %20 : vector<24x1xi1> to vector<24x1xi1>
    %296 = vector.broadcast %295 : vector<24x1xi1> to vector<24x16xi1>
    %297 = vector.broadcast %cst_162 : f32 to vector<24x16xf32>
    %298 = arith.select %296, %294, %297 : vector<24x16xi1>, vector<24x16xf32>
    %c0_163 = arith.constant 0 : index
    %c1_164 = arith.constant 1 : index
    %c7_165 = arith.constant 7 : index
    %c0_166 = arith.constant 0 : index
    %299 = vector.load %arg7[%c0_163, %c1_164, %c7_165, %c0_166] : memref<2x2x42x16xf32, #tpu.memory_space<vmem>>, vector<1x1x24x16xf32>
    %300 = vector.shape_cast %299 : vector<1x1x24x16xf32> to vector<24x16xf32>
    %301 = vector.shape_cast %298 : vector<24x16xf32> to vector<1x1x24x16xf32>
    tpu.vector_store %arg7[%c0_163, %c1_164, %c7_165, %c0_166], %301 {strides = array<i32>} : memref<2x2x42x16xf32, #tpu.memory_space<vmem>>, vector<1x1x24x16xf32>,
    %cst_167 = arith.constant 0.000000e+00 : f32
    %302 = vector.broadcast %cst_167 : f32 to vector<24x16xf32>
    %c0_168 = arith.constant 0 : index
    %c0_169 = arith.constant 0 : index
    %c8_170 = arith.constant 8 : index
    %303 = vector.load %arg1[%c0_168, %c0_169, %c8_170] : memref<1x36x16xf32, #tpu.memory_space<vmem>>, vector<1x24x1xf32>
    %304 = vector.shape_cast %303 : vector<1x24x1xf32> to vector<24x1xf32>
    %c0_171 = arith.constant 0 : index
    %c0_172 = arith.constant 0 : index
    %305 = vector.load %arg2[%c0_171, %c0_172] : memref<16x16xbf16, #tpu.memory_space<vmem>>, vector<1x16xbf16>
    %306 = arith.extf %305 : vector<1x16xbf16> to vector<1x16xf32>
    %307 = vector.broadcast %304 : vector<24x1xf32> to vector<24x16xf32>
    %308 = vector.broadcast %306 : vector<1x16xf32> to vector<24x16xf32>
    %309 = arith.mulf %307, %308 : vector<24x16xf32>
    %310 = arith.addf %302, %309 : vector<24x16xf32>
    %c0_173 = arith.constant 0 : index
    %c0_174 = arith.constant 0 : index
    %c9_175 = arith.constant 9 : index
    %311 = vector.load %arg1[%c0_173, %c0_174, %c9_175] : memref<1x36x16xf32, #tpu.memory_space<vmem>>, vector<1x24x1xf32>
    %312 = vector.shape_cast %311 : vector<1x24x1xf32> to vector<24x1xf32>
    %c1_176 = arith.constant 1 : index
    %c0_177 = arith.constant 0 : index
    %313 = vector.load %arg2[%c1_176, %c0_177] : memref<16x16xbf16, #tpu.memory_space<vmem>>, vector<1x16xbf16>
    %314 = arith.extf %313 : vector<1x16xbf16> to vector<1x16xf32>
    %315 = vector.broadcast %312 : vector<24x1xf32> to vector<24x16xf32>
    %316 = vector.broadcast %314 : vector<1x16xf32> to vector<24x16xf32>
    %317 = arith.mulf %315, %316 : vector<24x16xf32>
    %318 = arith.addf %310, %317 : vector<24x16xf32>
    %c0_178 = arith.constant 0 : index
    %c0_179 = arith.constant 0 : index
    %c10_180 = arith.constant 10 : index
    %319 = vector.load %arg1[%c0_178, %c0_179, %c10_180] : memref<1x36x16xf32, #tpu.memory_space<vmem>>, vector<1x24x1xf32>
    %320 = vector.shape_cast %319 : vector<1x24x1xf32> to vector<24x1xf32>
    %c2_181 = arith.constant 2 : index
    %c0_182 = arith.constant 0 : index
    %321 = vector.load %arg2[%c2_181, %c0_182] : memref<16x16xbf16, #tpu.memory_space<vmem>>, vector<1x16xbf16>
    %322 = arith.extf %321 : vector<1x16xbf16> to vector<1x16xf32>
    %323 = vector.broadcast %320 : vector<24x1xf32> to vector<24x16xf32>
    %324 = vector.broadcast %322 : vector<1x16xf32> to vector<24x16xf32>
    %325 = arith.mulf %323, %324 : vector<24x16xf32>
    %326 = arith.addf %318, %325 : vector<24x16xf32>
    %c0_183 = arith.constant 0 : index
    %c0_184 = arith.constant 0 : index
    %c11_185 = arith.constant 11 : index
    %327 = vector.load %arg1[%c0_183, %c0_184, %c11_185] : memref<1x36x16xf32, #tpu.memory_space<vmem>>, vector<1x24x1xf32>
    %328 = vector.shape_cast %327 : vector<1x24x1xf32> to vector<24x1xf32>
    %c3_186 = arith.constant 3 : index
    %c0_187 = arith.constant 0 : index
    %329 = vector.load %arg2[%c3_186, %c0_187] : memref<16x16xbf16, #tpu.memory_space<vmem>>, vector<1x16xbf16>
    %330 = arith.extf %329 : vector<1x16xbf16> to vector<1x16xf32>
    %331 = vector.broadcast %328 : vector<24x1xf32> to vector<24x16xf32>
    %332 = vector.broadcast %330 : vector<1x16xf32> to vector<24x16xf32>
    %333 = arith.mulf %331, %332 : vector<24x16xf32>
    %334 = arith.addf %326, %333 : vector<24x16xf32>
    %c0_188 = arith.constant 0 : index
    %c0_189 = arith.constant 0 : index
    %c12_190 = arith.constant 12 : index
    %335 = vector.load %arg1[%c0_188, %c0_189, %c12_190] : memref<1x36x16xf32, #tpu.memory_space<vmem>>, vector<1x24x1xf32>
    %336 = vector.shape_cast %335 : vector<1x24x1xf32> to vector<24x1xf32>
    %c4_191 = arith.constant 4 : index
    %c0_192 = arith.constant 0 : index
    %337 = vector.load %arg2[%c4_191, %c0_192] : memref<16x16xbf16, #tpu.memory_space<vmem>>, vector<1x16xbf16>
    %338 = arith.extf %337 : vector<1x16xbf16> to vector<1x16xf32>
    %339 = vector.broadcast %336 : vector<24x1xf32> to vector<24x16xf32>
    %340 = vector.broadcast %338 : vector<1x16xf32> to vector<24x16xf32>
    %341 = arith.mulf %339, %340 : vector<24x16xf32>
    %342 = arith.addf %334, %341 : vector<24x16xf32>
    %c0_193 = arith.constant 0 : index
    %c0_194 = arith.constant 0 : index
    %c13_195 = arith.constant 13 : index
    %343 = vector.load %arg1[%c0_193, %c0_194, %c13_195] : memref<1x36x16xf32, #tpu.memory_space<vmem>>, vector<1x24x1xf32>
    %344 = vector.shape_cast %343 : vector<1x24x1xf32> to vector<24x1xf32>
    %c5_196 = arith.constant 5 : index
    %c0_197 = arith.constant 0 : index
    %345 = vector.load %arg2[%c5_196, %c0_197] : memref<16x16xbf16, #tpu.memory_space<vmem>>, vector<1x16xbf16>
    %346 = arith.extf %345 : vector<1x16xbf16> to vector<1x16xf32>
    %347 = vector.broadcast %344 : vector<24x1xf32> to vector<24x16xf32>
    %348 = vector.broadcast %346 : vector<1x16xf32> to vector<24x16xf32>
    %349 = arith.mulf %347, %348 : vector<24x16xf32>
    %350 = arith.addf %342, %349 : vector<24x16xf32>
    %c0_198 = arith.constant 0 : index
    %c0_199 = arith.constant 0 : index
    %c14_200 = arith.constant 14 : index
    %351 = vector.load %arg1[%c0_198, %c0_199, %c14_200] : memref<1x36x16xf32, #tpu.memory_space<vmem>>, vector<1x24x1xf32>
    %352 = vector.shape_cast %351 : vector<1x24x1xf32> to vector<24x1xf32>
    %c6_201 = arith.constant 6 : index
    %c0_202 = arith.constant 0 : index
    %353 = vector.load %arg2[%c6_201, %c0_202] : memref<16x16xbf16, #tpu.memory_space<vmem>>, vector<1x16xbf16>
    %354 = arith.extf %353 : vector<1x16xbf16> to vector<1x16xf32>
    %355 = vector.broadcast %352 : vector<24x1xf32> to vector<24x16xf32>
    %356 = vector.broadcast %354 : vector<1x16xf32> to vector<24x16xf32>
    %357 = arith.mulf %355, %356 : vector<24x16xf32>
    %358 = arith.addf %350, %357 : vector<24x16xf32>
    %c0_203 = arith.constant 0 : index
    %c0_204 = arith.constant 0 : index
    %c15_205 = arith.constant 15 : index
    %359 = vector.load %arg1[%c0_203, %c0_204, %c15_205] : memref<1x36x16xf32, #tpu.memory_space<vmem>>, vector<1x24x1xf32>
    %360 = vector.shape_cast %359 : vector<1x24x1xf32> to vector<24x1xf32>
    %c7_206 = arith.constant 7 : index
    %c0_207 = arith.constant 0 : index
    %361 = vector.load %arg2[%c7_206, %c0_207] : memref<16x16xbf16, #tpu.memory_space<vmem>>, vector<1x16xbf16>
    %362 = arith.extf %361 : vector<1x16xbf16> to vector<1x16xf32>
    %363 = vector.broadcast %360 : vector<24x1xf32> to vector<24x16xf32>
    %364 = vector.broadcast %362 : vector<1x16xf32> to vector<24x16xf32>
    %365 = arith.mulf %363, %364 : vector<24x16xf32>
    %366 = arith.addf %358, %365 : vector<24x16xf32>
    %c0_208 = arith.constant 0 : index
    %c6_209 = arith.constant 6 : index
    %c0_210 = arith.constant 0 : index
    %367 = vector.load %arg1[%c0_208, %c6_209, %c0_210] : memref<1x36x16xf32, #tpu.memory_space<vmem>>, vector<1x24x1xf32>
    %368 = vector.shape_cast %367 : vector<1x24x1xf32> to vector<24x1xf32>
    %c8_211 = arith.constant 8 : index
    %c0_212 = arith.constant 0 : index
    %369 = vector.load %arg2[%c8_211, %c0_212] : memref<16x16xbf16, #tpu.memory_space<vmem>>, vector<1x16xbf16>
    %370 = arith.extf %369 : vector<1x16xbf16> to vector<1x16xf32>
    %371 = vector.broadcast %368 : vector<24x1xf32> to vector<24x16xf32>
    %372 = vector.broadcast %370 : vector<1x16xf32> to vector<24x16xf32>
    %373 = arith.mulf %371, %372 : vector<24x16xf32>
    %374 = arith.addf %366, %373 : vector<24x16xf32>
    %c0_213 = arith.constant 0 : index
    %c6_214 = arith.constant 6 : index
    %c1_215 = arith.constant 1 : index
    %375 = vector.load %arg1[%c0_213, %c6_214, %c1_215] : memref<1x36x16xf32, #tpu.memory_space<vmem>>, vector<1x24x1xf32>
    %376 = vector.shape_cast %375 : vector<1x24x1xf32> to vector<24x1xf32>
    %c9_216 = arith.constant 9 : index
    %c0_217 = arith.constant 0 : index
    %377 = vector.load %arg2[%c9_216, %c0_217] : memref<16x16xbf16, #tpu.memory_space<vmem>>, vector<1x16xbf16>
    %378 = arith.extf %377 : vector<1x16xbf16> to vector<1x16xf32>
    %379 = vector.broadcast %376 : vector<24x1xf32> to vector<24x16xf32>
    %380 = vector.broadcast %378 : vector<1x16xf32> to vector<24x16xf32>
    %381 = arith.mulf %379, %380 : vector<24x16xf32>
    %382 = arith.addf %374, %381 : vector<24x16xf32>
    %c0_218 = arith.constant 0 : index
    %c6_219 = arith.constant 6 : index
    %c2_220 = arith.constant 2 : index
    %383 = vector.load %arg1[%c0_218, %c6_219, %c2_220] : memref<1x36x16xf32, #tpu.memory_space<vmem>>, vector<1x24x1xf32>
    %384 = vector.shape_cast %383 : vector<1x24x1xf32> to vector<24x1xf32>
    %c10_221 = arith.constant 10 : index
    %c0_222 = arith.constant 0 : index
    %385 = vector.load %arg2[%c10_221, %c0_222] : memref<16x16xbf16, #tpu.memory_space<vmem>>, vector<1x16xbf16>
    %386 = arith.extf %385 : vector<1x16xbf16> to vector<1x16xf32>
    %387 = vector.broadcast %384 : vector<24x1xf32> to vector<24x16xf32>
    %388 = vector.broadcast %386 : vector<1x16xf32> to vector<24x16xf32>
    %389 = arith.mulf %387, %388 : vector<24x16xf32>
    %390 = arith.addf %382, %389 : vector<24x16xf32>
    %c0_223 = arith.constant 0 : index
    %c6_224 = arith.constant 6 : index
    %c3_225 = arith.constant 3 : index
    %391 = vector.load %arg1[%c0_223, %c6_224, %c3_225] : memref<1x36x16xf32, #tpu.memory_space<vmem>>, vector<1x24x1xf32>
    %392 = vector.shape_cast %391 : vector<1x24x1xf32> to vector<24x1xf32>
    %c11_226 = arith.constant 11 : index
    %c0_227 = arith.constant 0 : index
    %393 = vector.load %arg2[%c11_226, %c0_227] : memref<16x16xbf16, #tpu.memory_space<vmem>>, vector<1x16xbf16>
    %394 = arith.extf %393 : vector<1x16xbf16> to vector<1x16xf32>
    %395 = vector.broadcast %392 : vector<24x1xf32> to vector<24x16xf32>
    %396 = vector.broadcast %394 : vector<1x16xf32> to vector<24x16xf32>
    %397 = arith.mulf %395, %396 : vector<24x16xf32>
    %398 = arith.addf %390, %397 : vector<24x16xf32>
    %c0_228 = arith.constant 0 : index
    %c6_229 = arith.constant 6 : index
    %c4_230 = arith.constant 4 : index
    %399 = vector.load %arg1[%c0_228, %c6_229, %c4_230] : memref<1x36x16xf32, #tpu.memory_space<vmem>>, vector<1x24x1xf32>
    %400 = vector.shape_cast %399 : vector<1x24x1xf32> to vector<24x1xf32>
    %c12_231 = arith.constant 12 : index
    %c0_232 = arith.constant 0 : index
    %401 = vector.load %arg2[%c12_231, %c0_232] : memref<16x16xbf16, #tpu.memory_space<vmem>>, vector<1x16xbf16>
    %402 = arith.extf %401 : vector<1x16xbf16> to vector<1x16xf32>
    %403 = vector.broadcast %400 : vector<24x1xf32> to vector<24x16xf32>
    %404 = vector.broadcast %402 : vector<1x16xf32> to vector<24x16xf32>
    %405 = arith.mulf %403, %404 : vector<24x16xf32>
    %406 = arith.addf %398, %405 : vector<24x16xf32>
    %c0_233 = arith.constant 0 : index
    %c6_234 = arith.constant 6 : index
    %c5_235 = arith.constant 5 : index
    %407 = vector.load %arg1[%c0_233, %c6_234, %c5_235] : memref<1x36x16xf32, #tpu.memory_space<vmem>>, vector<1x24x1xf32>
    %408 = vector.shape_cast %407 : vector<1x24x1xf32> to vector<24x1xf32>
    %c13_236 = arith.constant 13 : index
    %c0_237 = arith.constant 0 : index
    %409 = vector.load %arg2[%c13_236, %c0_237] : memref<16x16xbf16, #tpu.memory_space<vmem>>, vector<1x16xbf16>
    %410 = arith.extf %409 : vector<1x16xbf16> to vector<1x16xf32>
    %411 = vector.broadcast %408 : vector<24x1xf32> to vector<24x16xf32>
    %412 = vector.broadcast %410 : vector<1x16xf32> to vector<24x16xf32>
    %413 = arith.mulf %411, %412 : vector<24x16xf32>
    %414 = arith.addf %406, %413 : vector<24x16xf32>
    %c0_238 = arith.constant 0 : index
    %c6_239 = arith.constant 6 : index
    %c6_240 = arith.constant 6 : index
    %415 = vector.load %arg1[%c0_238, %c6_239, %c6_240] : memref<1x36x16xf32, #tpu.memory_space<vmem>>, vector<1x24x1xf32>
    %416 = vector.shape_cast %415 : vector<1x24x1xf32> to vector<24x1xf32>
    %c14_241 = arith.constant 14 : index
    %c0_242 = arith.constant 0 : index
    %417 = vector.load %arg2[%c14_241, %c0_242] : memref<16x16xbf16, #tpu.memory_space<vmem>>, vector<1x16xbf16>
    %418 = arith.extf %417 : vector<1x16xbf16> to vector<1x16xf32>
    %419 = vector.broadcast %416 : vector<24x1xf32> to vector<24x16xf32>
    %420 = vector.broadcast %418 : vector<1x16xf32> to vector<24x16xf32>
    %421 = arith.mulf %419, %420 : vector<24x16xf32>
    %422 = arith.addf %414, %421 : vector<24x16xf32>
    %c0_243 = arith.constant 0 : index
    %c6_244 = arith.constant 6 : index
    %c7_245 = arith.constant 7 : index
    %423 = vector.load %arg1[%c0_243, %c6_244, %c7_245] : memref<1x36x16xf32, #tpu.memory_space<vmem>>, vector<1x24x1xf32>
    %424 = vector.shape_cast %423 : vector<1x24x1xf32> to vector<24x1xf32>
    %c15_246 = arith.constant 15 : index
    %c0_247 = arith.constant 0 : index
    %425 = vector.load %arg2[%c15_246, %c0_247] : memref<16x16xbf16, #tpu.memory_space<vmem>>, vector<1x16xbf16>
    %426 = arith.extf %425 : vector<1x16xbf16> to vector<1x16xf32>
    %427 = vector.broadcast %424 : vector<24x1xf32> to vector<24x16xf32>
    %428 = vector.broadcast %426 : vector<1x16xf32> to vector<24x16xf32>
    %429 = arith.mulf %427, %428 : vector<24x16xf32>
    %430 = arith.addf %422, %429 : vector<24x16xf32>
    %431 = vector.broadcast %21 : vector<1x16xf32> to vector<24x16xf32>
    %432 = arith.addf %430, %431 : vector<24x16xf32>
    %cst_248 = arith.constant 0.000000e+00 : f32
    %433 = vector.broadcast %cst_248 : f32 to vector<24x16xf32>
    %434 = arith.maximumf %432, %433 : vector<24x16xf32>
    %cst_249 = arith.constant 0.000000e+00 : f32
    %435 = vector.shape_cast %20 : vector<24x1xi1> to vector<24x1xi1>
    %436 = vector.broadcast %435 : vector<24x1xi1> to vector<24x16xi1>
    %437 = vector.broadcast %cst_249 : f32 to vector<24x16xf32>
    %438 = arith.select %436, %434, %437 : vector<24x16xi1>, vector<24x16xf32>
    %c1_250 = arith.constant 1 : index
    %c0_251 = arith.constant 0 : index
    %c7_252 = arith.constant 7 : index
    %c0_253 = arith.constant 0 : index
    %439 = vector.load %arg7[%c1_250, %c0_251, %c7_252, %c0_253] : memref<2x2x42x16xf32, #tpu.memory_space<vmem>>, vector<1x1x24x16xf32>
    %440 = vector.shape_cast %439 : vector<1x1x24x16xf32> to vector<24x16xf32>
    %441 = vector.shape_cast %438 : vector<24x16xf32> to vector<1x1x24x16xf32>
    tpu.vector_store %arg7[%c1_250, %c0_251, %c7_252, %c0_253], %441 {strides = array<i32>} : memref<2x2x42x16xf32, #tpu.memory_space<vmem>>, vector<1x1x24x16xf32>,
    %cst_254 = arith.constant 0.000000e+00 : f32
    %442 = vector.broadcast %cst_254 : f32 to vector<24x16xf32>
    %c0_255 = arith.constant 0 : index
    %c0_256 = arith.constant 0 : index
    %c10_257 = arith.constant 10 : index
    %443 = vector.load %arg1[%c0_255, %c0_256, %c10_257] : memref<1x36x16xf32, #tpu.memory_space<vmem>>, vector<1x24x1xf32>
    %444 = vector.shape_cast %443 : vector<1x24x1xf32> to vector<24x1xf32>
    %c0_258 = arith.constant 0 : index
    %c0_259 = arith.constant 0 : index
    %445 = vector.load %arg2[%c0_258, %c0_259] : memref<16x16xbf16, #tpu.memory_space<vmem>>, vector<1x16xbf16>
    %446 = arith.extf %445 : vector<1x16xbf16> to vector<1x16xf32>
    %447 = vector.broadcast %444 : vector<24x1xf32> to vector<24x16xf32>
    %448 = vector.broadcast %446 : vector<1x16xf32> to vector<24x16xf32>
    %449 = arith.mulf %447, %448 : vector<24x16xf32>
    %450 = arith.addf %442, %449 : vector<24x16xf32>
    %c0_260 = arith.constant 0 : index
    %c0_261 = arith.constant 0 : index
    %c11_262 = arith.constant 11 : index
    %451 = vector.load %arg1[%c0_260, %c0_261, %c11_262] : memref<1x36x16xf32, #tpu.memory_space<vmem>>, vector<1x24x1xf32>
    %452 = vector.shape_cast %451 : vector<1x24x1xf32> to vector<24x1xf32>
    %c1_263 = arith.constant 1 : index
    %c0_264 = arith.constant 0 : index
    %453 = vector.load %arg2[%c1_263, %c0_264] : memref<16x16xbf16, #tpu.memory_space<vmem>>, vector<1x16xbf16>
    %454 = arith.extf %453 : vector<1x16xbf16> to vector<1x16xf32>
    %455 = vector.broadcast %452 : vector<24x1xf32> to vector<24x16xf32>
    %456 = vector.broadcast %454 : vector<1x16xf32> to vector<24x16xf32>
    %457 = arith.mulf %455, %456 : vector<24x16xf32>
    %458 = arith.addf %450, %457 : vector<24x16xf32>
    %c0_265 = arith.constant 0 : index
    %c1_266 = arith.constant 1 : index
    %c8_267 = arith.constant 8 : index
    %459 = vector.load %arg1[%c0_265, %c1_266, %c8_267] : memref<1x36x16xf32, #tpu.memory_space<vmem>>, vector<1x24x1xf32>
    %460 = vector.shape_cast %459 : vector<1x24x1xf32> to vector<24x1xf32>
    %c2_268 = arith.constant 2 : index
    %c0_269 = arith.constant 0 : index
    %461 = vector.load %arg2[%c2_268, %c0_269] : memref<16x16xbf16, #tpu.memory_space<vmem>>, vector<1x16xbf16>
    %462 = arith.extf %461 : vector<1x16xbf16> to vector<1x16xf32>
    %463 = vector.broadcast %460 : vector<24x1xf32> to vector<24x16xf32>
    %464 = vector.broadcast %462 : vector<1x16xf32> to vector<24x16xf32>
    %465 = arith.mulf %463, %464 : vector<24x16xf32>
    %466 = arith.addf %458, %465 : vector<24x16xf32>
    %c0_270 = arith.constant 0 : index
    %c1_271 = arith.constant 1 : index
    %c9_272 = arith.constant 9 : index
    %467 = vector.load %arg1[%c0_270, %c1_271, %c9_272] : memref<1x36x16xf32, #tpu.memory_space<vmem>>, vector<1x24x1xf32>
    %468 = vector.shape_cast %467 : vector<1x24x1xf32> to vector<24x1xf32>
    %c3_273 = arith.constant 3 : index
    %c0_274 = arith.constant 0 : index
    %469 = vector.load %arg2[%c3_273, %c0_274] : memref<16x16xbf16, #tpu.memory_space<vmem>>, vector<1x16xbf16>
    %470 = arith.extf %469 : vector<1x16xbf16> to vector<1x16xf32>
    %471 = vector.broadcast %468 : vector<24x1xf32> to vector<24x16xf32>
    %472 = vector.broadcast %470 : vector<1x16xf32> to vector<24x16xf32>
    %473 = arith.mulf %471, %472 : vector<24x16xf32>
    %474 = arith.addf %466, %473 : vector<24x16xf32>
    %c0_275 = arith.constant 0 : index
    %c0_276 = arith.constant 0 : index
    %c14_277 = arith.constant 14 : index
    %475 = vector.load %arg1[%c0_275, %c0_276, %c14_277] : memref<1x36x16xf32, #tpu.memory_space<vmem>>, vector<1x24x1xf32>
    %476 = vector.shape_cast %475 : vector<1x24x1xf32> to vector<24x1xf32>
    %c4_278 = arith.constant 4 : index
    %c0_279 = arith.constant 0 : index
    %477 = vector.load %arg2[%c4_278, %c0_279] : memref<16x16xbf16, #tpu.memory_space<vmem>>, vector<1x16xbf16>
    %478 = arith.extf %477 : vector<1x16xbf16> to vector<1x16xf32>
    %479 = vector.broadcast %476 : vector<24x1xf32> to vector<24x16xf32>
    %480 = vector.broadcast %478 : vector<1x16xf32> to vector<24x16xf32>
    %481 = arith.mulf %479, %480 : vector<24x16xf32>
    %482 = arith.addf %474, %481 : vector<24x16xf32>
    %c0_280 = arith.constant 0 : index
    %c0_281 = arith.constant 0 : index
    %c15_282 = arith.constant 15 : index
    %483 = vector.load %arg1[%c0_280, %c0_281, %c15_282] : memref<1x36x16xf32, #tpu.memory_space<vmem>>, vector<1x24x1xf32>
    %484 = vector.shape_cast %483 : vector<1x24x1xf32> to vector<24x1xf32>
    %c5_283 = arith.constant 5 : index
    %c0_284 = arith.constant 0 : index
    %485 = vector.load %arg2[%c5_283, %c0_284] : memref<16x16xbf16, #tpu.memory_space<vmem>>, vector<1x16xbf16>
    %486 = arith.extf %485 : vector<1x16xbf16> to vector<1x16xf32>
    %487 = vector.broadcast %484 : vector<24x1xf32> to vector<24x16xf32>
    %488 = vector.broadcast %486 : vector<1x16xf32> to vector<24x16xf32>
    %489 = arith.mulf %487, %488 : vector<24x16xf32>
    %490 = arith.addf %482, %489 : vector<24x16xf32>
    %c0_285 = arith.constant 0 : index
    %c1_286 = arith.constant 1 : index
    %c12_287 = arith.constant 12 : index
    %491 = vector.load %arg1[%c0_285, %c1_286, %c12_287] : memref<1x36x16xf32, #tpu.memory_space<vmem>>, vector<1x24x1xf32>
    %492 = vector.shape_cast %491 : vector<1x24x1xf32> to vector<24x1xf32>
    %c6_288 = arith.constant 6 : index
    %c0_289 = arith.constant 0 : index
    %493 = vector.load %arg2[%c6_288, %c0_289] : memref<16x16xbf16, #tpu.memory_space<vmem>>, vector<1x16xbf16>
    %494 = arith.extf %493 : vector<1x16xbf16> to vector<1x16xf32>
    %495 = vector.broadcast %492 : vector<24x1xf32> to vector<24x16xf32>
    %496 = vector.broadcast %494 : vector<1x16xf32> to vector<24x16xf32>
    %497 = arith.mulf %495, %496 : vector<24x16xf32>
    %498 = arith.addf %490, %497 : vector<24x16xf32>
    %c0_290 = arith.constant 0 : index
    %c1_291 = arith.constant 1 : index
    %c13_292 = arith.constant 13 : index
    %499 = vector.load %arg1[%c0_290, %c1_291, %c13_292] : memref<1x36x16xf32, #tpu.memory_space<vmem>>, vector<1x24x1xf32>
    %500 = vector.shape_cast %499 : vector<1x24x1xf32> to vector<24x1xf32>
    %c7_293 = arith.constant 7 : index
    %c0_294 = arith.constant 0 : index
    %501 = vector.load %arg2[%c7_293, %c0_294] : memref<16x16xbf16, #tpu.memory_space<vmem>>, vector<1x16xbf16>
    %502 = arith.extf %501 : vector<1x16xbf16> to vector<1x16xf32>
    %503 = vector.broadcast %500 : vector<24x1xf32> to vector<24x16xf32>
    %504 = vector.broadcast %502 : vector<1x16xf32> to vector<24x16xf32>
    %505 = arith.mulf %503, %504 : vector<24x16xf32>
    %506 = arith.addf %498, %505 : vector<24x16xf32>
    %c0_295 = arith.constant 0 : index
    %c6_296 = arith.constant 6 : index
    %c2_297 = arith.constant 2 : index
    %507 = vector.load %arg1[%c0_295, %c6_296, %c2_297] : memref<1x36x16xf32, #tpu.memory_space<vmem>>, vector<1x24x1xf32>
    %508 = vector.shape_cast %507 : vector<1x24x1xf32> to vector<24x1xf32>
    %c8_298 = arith.constant 8 : index
    %c0_299 = arith.constant 0 : index
    %509 = vector.load %arg2[%c8_298, %c0_299] : memref<16x16xbf16, #tpu.memory_space<vmem>>, vector<1x16xbf16>
    %510 = arith.extf %509 : vector<1x16xbf16> to vector<1x16xf32>
    %511 = vector.broadcast %508 : vector<24x1xf32> to vector<24x16xf32>
    %512 = vector.broadcast %510 : vector<1x16xf32> to vector<24x16xf32>
    %513 = arith.mulf %511, %512 : vector<24x16xf32>
    %514 = arith.addf %506, %513 : vector<24x16xf32>
    %c0_300 = arith.constant 0 : index
    %c6_301 = arith.constant 6 : index
    %c3_302 = arith.constant 3 : index
    %515 = vector.load %arg1[%c0_300, %c6_301, %c3_302] : memref<1x36x16xf32, #tpu.memory_space<vmem>>, vector<1x24x1xf32>
    %516 = vector.shape_cast %515 : vector<1x24x1xf32> to vector<24x1xf32>
    %c9_303 = arith.constant 9 : index
    %c0_304 = arith.constant 0 : index
    %517 = vector.load %arg2[%c9_303, %c0_304] : memref<16x16xbf16, #tpu.memory_space<vmem>>, vector<1x16xbf16>
    %518 = arith.extf %517 : vector<1x16xbf16> to vector<1x16xf32>
    %519 = vector.broadcast %516 : vector<24x1xf32> to vector<24x16xf32>
    %520 = vector.broadcast %518 : vector<1x16xf32> to vector<24x16xf32>
    %521 = arith.mulf %519, %520 : vector<24x16xf32>
    %522 = arith.addf %514, %521 : vector<24x16xf32>
    %c0_305 = arith.constant 0 : index
    %c7_306 = arith.constant 7 : index
    %c0_307 = arith.constant 0 : index
    %523 = vector.load %arg1[%c0_305, %c7_306, %c0_307] : memref<1x36x16xf32, #tpu.memory_space<vmem>>, vector<1x24x1xf32>
    %524 = vector.shape_cast %523 : vector<1x24x1xf32> to vector<24x1xf32>
    %c10_308 = arith.constant 10 : index
    %c0_309 = arith.constant 0 : index
    %525 = vector.load %arg2[%c10_308, %c0_309] : memref<16x16xbf16, #tpu.memory_space<vmem>>, vector<1x16xbf16>
    %526 = arith.extf %525 : vector<1x16xbf16> to vector<1x16xf32>
    %527 = vector.broadcast %524 : vector<24x1xf32> to vector<24x16xf32>
    %528 = vector.broadcast %526 : vector<1x16xf32> to vector<24x16xf32>
    %529 = arith.mulf %527, %528 : vector<24x16xf32>
    %530 = arith.addf %522, %529 : vector<24x16xf32>
    %c0_310 = arith.constant 0 : index
    %c7_311 = arith.constant 7 : index
    %c1_312 = arith.constant 1 : index
    %531 = vector.load %arg1[%c0_310, %c7_311, %c1_312] : memref<1x36x16xf32, #tpu.memory_space<vmem>>, vector<1x24x1xf32>
    %532 = vector.shape_cast %531 : vector<1x24x1xf32> to vector<24x1xf32>
    %c11_313 = arith.constant 11 : index
    %c0_314 = arith.constant 0 : index
    %533 = vector.load %arg2[%c11_313, %c0_314] : memref<16x16xbf16, #tpu.memory_space<vmem>>, vector<1x16xbf16>
    %534 = arith.extf %533 : vector<1x16xbf16> to vector<1x16xf32>
    %535 = vector.broadcast %532 : vector<24x1xf32> to vector<24x16xf32>
    %536 = vector.broadcast %534 : vector<1x16xf32> to vector<24x16xf32>
    %537 = arith.mulf %535, %536 : vector<24x16xf32>
    %538 = arith.addf %530, %537 : vector<24x16xf32>
    %c0_315 = arith.constant 0 : index
    %c6_316 = arith.constant 6 : index
    %c6_317 = arith.constant 6 : index
    %539 = vector.load %arg1[%c0_315, %c6_316, %c6_317] : memref<1x36x16xf32, #tpu.memory_space<vmem>>, vector<1x24x1xf32>
    %540 = vector.shape_cast %539 : vector<1x24x1xf32> to vector<24x1xf32>
    %c12_318 = arith.constant 12 : index
    %c0_319 = arith.constant 0 : index
    %541 = vector.load %arg2[%c12_318, %c0_319] : memref<16x16xbf16, #tpu.memory_space<vmem>>, vector<1x16xbf16>
    %542 = arith.extf %541 : vector<1x16xbf16> to vector<1x16xf32>
    %543 = vector.broadcast %540 : vector<24x1xf32> to vector<24x16xf32>
    %544 = vector.broadcast %542 : vector<1x16xf32> to vector<24x16xf32>
    %545 = arith.mulf %543, %544 : vector<24x16xf32>
    %546 = arith.addf %538, %545 : vector<24x16xf32>
    %c0_320 = arith.constant 0 : index
    %c6_321 = arith.constant 6 : index
    %c7_322 = arith.constant 7 : index
    %547 = vector.load %arg1[%c0_320, %c6_321, %c7_322] : memref<1x36x16xf32, #tpu.memory_space<vmem>>, vector<1x24x1xf32>
    %548 = vector.shape_cast %547 : vector<1x24x1xf32> to vector<24x1xf32>
    %c13_323 = arith.constant 13 : index
    %c0_324 = arith.constant 0 : index
    %549 = vector.load %arg2[%c13_323, %c0_324] : memref<16x16xbf16, #tpu.memory_space<vmem>>, vector<1x16xbf16>
    %550 = arith.extf %549 : vector<1x16xbf16> to vector<1x16xf32>
    %551 = vector.broadcast %548 : vector<24x1xf32> to vector<24x16xf32>
    %552 = vector.broadcast %550 : vector<1x16xf32> to vector<24x16xf32>
    %553 = arith.mulf %551, %552 : vector<24x16xf32>
    %554 = arith.addf %546, %553 : vector<24x16xf32>
    %c0_325 = arith.constant 0 : index
    %c7_326 = arith.constant 7 : index
    %c4_327 = arith.constant 4 : index
    %555 = vector.load %arg1[%c0_325, %c7_326, %c4_327] : memref<1x36x16xf32, #tpu.memory_space<vmem>>, vector<1x24x1xf32>
    %556 = vector.shape_cast %555 : vector<1x24x1xf32> to vector<24x1xf32>
    %c14_328 = arith.constant 14 : index
    %c0_329 = arith.constant 0 : index
    %557 = vector.load %arg2[%c14_328, %c0_329] : memref<16x16xbf16, #tpu.memory_space<vmem>>, vector<1x16xbf16>
    %558 = arith.extf %557 : vector<1x16xbf16> to vector<1x16xf32>
    %559 = vector.broadcast %556 : vector<24x1xf32> to vector<24x16xf32>
    %560 = vector.broadcast %558 : vector<1x16xf32> to vector<24x16xf32>
    %561 = arith.mulf %559, %560 : vector<24x16xf32>
    %562 = arith.addf %554, %561 : vector<24x16xf32>
    %c0_330 = arith.constant 0 : index
    %c7_331 = arith.constant 7 : index
    %c5_332 = arith.constant 5 : index
    %563 = vector.load %arg1[%c0_330, %c7_331, %c5_332] : memref<1x36x16xf32, #tpu.memory_space<vmem>>, vector<1x24x1xf32>
    %564 = vector.shape_cast %563 : vector<1x24x1xf32> to vector<24x1xf32>
    %c15_333 = arith.constant 15 : index
    %c0_334 = arith.constant 0 : index
    %565 = vector.load %arg2[%c15_333, %c0_334] : memref<16x16xbf16, #tpu.memory_space<vmem>>, vector<1x16xbf16>
    %566 = arith.extf %565 : vector<1x16xbf16> to vector<1x16xf32>
    %567 = vector.broadcast %564 : vector<24x1xf32> to vector<24x16xf32>
    %568 = vector.broadcast %566 : vector<1x16xf32> to vector<24x16xf32>
    %569 = arith.mulf %567, %568 : vector<24x16xf32>
    %570 = arith.addf %562, %569 : vector<24x16xf32>
    %571 = vector.broadcast %21 : vector<1x16xf32> to vector<24x16xf32>
    %572 = arith.addf %570, %571 : vector<24x16xf32>
    %cst_335 = arith.constant 0.000000e+00 : f32
    %573 = vector.broadcast %cst_335 : f32 to vector<24x16xf32>
    %574 = arith.maximumf %572, %573 : vector<24x16xf32>
    %cst_336 = arith.constant 0.000000e+00 : f32
    %575 = vector.shape_cast %20 : vector<24x1xi1> to vector<24x1xi1>
    %576 = vector.broadcast %575 : vector<24x1xi1> to vector<24x16xi1>
    %577 = vector.broadcast %cst_336 : f32 to vector<24x16xf32>
    %578 = arith.select %576, %574, %577 : vector<24x16xi1>, vector<24x16xf32>
    %c1_337 = arith.constant 1 : index
    %c1_338 = arith.constant 1 : index
    %c7_339 = arith.constant 7 : index
    %c0_340 = arith.constant 0 : index
    %579 = vector.load %arg7[%c1_337, %c1_338, %c7_339, %c0_340] : memref<2x2x42x16xf32, #tpu.memory_space<vmem>>, vector<1x1x24x16xf32>
    %580 = vector.shape_cast %579 : vector<1x1x24x16xf32> to vector<24x16xf32>
    %581 = vector.shape_cast %578 : vector<24x16xf32> to vector<1x1x24x16xf32>
    tpu.vector_store %arg7[%c1_337, %c1_338, %c7_339, %c0_340], %581 {strides = array<i32>} : memref<2x2x42x16xf32, #tpu.memory_space<vmem>>, vector<1x1x24x16xf32>,
    %cst_341 = arith.constant 0.000000e+00 : f32
    %582 = vector.broadcast %cst_341 : f32 to vector<24x32xf32>
    %c1_342 = arith.constant 1 : index
    %c1_343 = arith.constant 1 : index
    %c0_344 = arith.constant 0 : index
    %c0_345 = arith.constant 0 : index
    %583 = vector.load %arg7[%c1_342, %c1_343, %c0_344, %c0_345] : memref<2x2x42x16xf32, #tpu.memory_space<vmem>>, vector<1x1x24x16xf32>
    %584 = vector.shape_cast %583 : vector<1x1x24x16xf32> to vector<24x16xf32>
    %c0_346 = arith.constant 0 : index
    %c0_347 = arith.constant 0 : index
    %585 = vector.load %arg4[%c0_346, %c0_347] : memref<256x32xbf16, #tpu.memory_space<vmem>>, vector<16x32xbf16>
    %cst_348 = arith.constant dense<0.000000e+00> : vector<24x32xf32>
    %586 = tpu.matmul %584, %585, %cst_348 {dimension_numbers = #tpu.dot_dimension_numbers<[1], [0], [0], [1], [0, 0, 1, 1], [], []>} : vector<24x16xf32>, vector<16x32xbf16>, vector<24x32xf32> -> vector<24x32xf32>
    %587 = arith.addf %582, %586 : vector<24x32xf32>
    %c1_349 = arith.constant 1 : index
    %c0_350 = arith.constant 0 : index
    %c1_351 = arith.constant 1 : index
    %c0_352 = arith.constant 0 : index
    %588 = vector.load %arg7[%c1_349, %c0_350, %c1_351, %c0_352] : memref<2x2x42x16xf32, #tpu.memory_space<vmem>>, vector<1x1x24x16xf32>
    %589 = vector.shape_cast %588 : vector<1x1x24x16xf32> to vector<24x16xf32>
    %c16 = arith.constant 16 : index
    %c0_353 = arith.constant 0 : index
    %590 = vector.load %arg4[%c16, %c0_353] : memref<256x32xbf16, #tpu.memory_space<vmem>>, vector<16x32xbf16>
    %cst_354 = arith.constant dense<0.000000e+00> : vector<24x32xf32>
    %591 = tpu.matmul %589, %590, %cst_354 {dimension_numbers = #tpu.dot_dimension_numbers<[1], [0], [0], [1], [0, 0, 1, 1], [], []>} : vector<24x16xf32>, vector<16x32xbf16>, vector<24x32xf32> -> vector<24x32xf32>
    %592 = arith.addf %587, %591 : vector<24x32xf32>
    %c1_355 = arith.constant 1 : index
    %c1_356 = arith.constant 1 : index
    %c1_357 = arith.constant 1 : index
    %c0_358 = arith.constant 0 : index
    %593 = vector.load %arg7[%c1_355, %c1_356, %c1_357, %c0_358] : memref<2x2x42x16xf32, #tpu.memory_space<vmem>>, vector<1x1x24x16xf32>
    %594 = vector.shape_cast %593 : vector<1x1x24x16xf32> to vector<24x16xf32>
    %c32 = arith.constant 32 : index
    %c0_359 = arith.constant 0 : index
    %595 = vector.load %arg4[%c32, %c0_359] : memref<256x32xbf16, #tpu.memory_space<vmem>>, vector<16x32xbf16>
    %cst_360 = arith.constant dense<0.000000e+00> : vector<24x32xf32>
    %596 = tpu.matmul %594, %595, %cst_360 {dimension_numbers = #tpu.dot_dimension_numbers<[1], [0], [0], [1], [0, 0, 1, 1], [], []>} : vector<24x16xf32>, vector<16x32xbf16>, vector<24x32xf32> -> vector<24x32xf32>
    %597 = arith.addf %592, %596 : vector<24x32xf32>
    %c1_361 = arith.constant 1 : index
    %c0_362 = arith.constant 0 : index
    %c2_363 = arith.constant 2 : index
    %c0_364 = arith.constant 0 : index
    %598 = vector.load %arg7[%c1_361, %c0_362, %c2_363, %c0_364] : memref<2x2x42x16xf32, #tpu.memory_space<vmem>>, vector<1x1x24x16xf32>
    %599 = vector.shape_cast %598 : vector<1x1x24x16xf32> to vector<24x16xf32>
    %c48 = arith.constant 48 : index
    %c0_365 = arith.constant 0 : index
    %600 = vector.load %arg4[%c48, %c0_365] : memref<256x32xbf16, #tpu.memory_space<vmem>>, vector<16x32xbf16>
    %cst_366 = arith.constant dense<0.000000e+00> : vector<24x32xf32>
    %601 = tpu.matmul %599, %600, %cst_366 {dimension_numbers = #tpu.dot_dimension_numbers<[1], [0], [0], [1], [0, 0, 1, 1], [], []>} : vector<24x16xf32>, vector<16x32xbf16>, vector<24x32xf32> -> vector<24x32xf32>
    %602 = arith.addf %597, %601 : vector<24x32xf32>
    %c0_367 = arith.constant 0 : index
    %c1_368 = arith.constant 1 : index
    %c6_369 = arith.constant 6 : index
    %c0_370 = arith.constant 0 : index
    %603 = vector.load %arg7[%c0_367, %c1_368, %c6_369, %c0_370] : memref<2x2x42x16xf32, #tpu.memory_space<vmem>>, vector<1x1x24x16xf32>
    %604 = vector.shape_cast %603 : vector<1x1x24x16xf32> to vector<24x16xf32>
    %c64 = arith.constant 64 : index
    %c0_371 = arith.constant 0 : index
    %605 = vector.load %arg4[%c64, %c0_371] : memref<256x32xbf16, #tpu.memory_space<vmem>>, vector<16x32xbf16>
    %cst_372 = arith.constant dense<0.000000e+00> : vector<24x32xf32>
    %606 = tpu.matmul %604, %605, %cst_372 {dimension_numbers = #tpu.dot_dimension_numbers<[1], [0], [0], [1], [0, 0, 1, 1], [], []>} : vector<24x16xf32>, vector<16x32xbf16>, vector<24x32xf32> -> vector<24x32xf32>
    %607 = arith.addf %602, %606 : vector<24x32xf32>
    %c0_373 = arith.constant 0 : index
    %c0_374 = arith.constant 0 : index
    %c7_375 = arith.constant 7 : index
    %c0_376 = arith.constant 0 : index
    %608 = vector.load %arg7[%c0_373, %c0_374, %c7_375, %c0_376] : memref<2x2x42x16xf32, #tpu.memory_space<vmem>>, vector<1x1x24x16xf32>
    %609 = vector.shape_cast %608 : vector<1x1x24x16xf32> to vector<24x16xf32>
    %c80 = arith.constant 80 : index
    %c0_377 = arith.constant 0 : index
    %610 = vector.load %arg4[%c80, %c0_377] : memref<256x32xbf16, #tpu.memory_space<vmem>>, vector<16x32xbf16>
    %cst_378 = arith.constant dense<0.000000e+00> : vector<24x32xf32>
    %611 = tpu.matmul %609, %610, %cst_378 {dimension_numbers = #tpu.dot_dimension_numbers<[1], [0], [0], [1], [0, 0, 1, 1], [], []>} : vector<24x16xf32>, vector<16x32xbf16>, vector<24x32xf32> -> vector<24x32xf32>
    %612 = arith.addf %607, %611 : vector<24x32xf32>
    %c0_379 = arith.constant 0 : index
    %c1_380 = arith.constant 1 : index
    %c7_381 = arith.constant 7 : index
    %c0_382 = arith.constant 0 : index
    %613 = vector.load %arg7[%c0_379, %c1_380, %c7_381, %c0_382] : memref<2x2x42x16xf32, #tpu.memory_space<vmem>>, vector<1x1x24x16xf32>
    %614 = vector.shape_cast %613 : vector<1x1x24x16xf32> to vector<24x16xf32>
    %c96 = arith.constant 96 : index
    %c0_383 = arith.constant 0 : index
    %615 = vector.load %arg4[%c96, %c0_383] : memref<256x32xbf16, #tpu.memory_space<vmem>>, vector<16x32xbf16>
    %cst_384 = arith.constant dense<0.000000e+00> : vector<24x32xf32>
    %616 = tpu.matmul %614, %615, %cst_384 {dimension_numbers = #tpu.dot_dimension_numbers<[1], [0], [0], [1], [0, 0, 1, 1], [], []>} : vector<24x16xf32>, vector<16x32xbf16>, vector<24x32xf32> -> vector<24x32xf32>
    %617 = arith.addf %612, %616 : vector<24x32xf32>
    %c0_385 = arith.constant 0 : index
    %c0_386 = arith.constant 0 : index
    %c8_387 = arith.constant 8 : index
    %c0_388 = arith.constant 0 : index
    %618 = vector.load %arg7[%c0_385, %c0_386, %c8_387, %c0_388] : memref<2x2x42x16xf32, #tpu.memory_space<vmem>>, vector<1x1x24x16xf32>
    %619 = vector.shape_cast %618 : vector<1x1x24x16xf32> to vector<24x16xf32>
    %c112 = arith.constant 112 : index
    %c0_389 = arith.constant 0 : index
    %620 = vector.load %arg4[%c112, %c0_389] : memref<256x32xbf16, #tpu.memory_space<vmem>>, vector<16x32xbf16>
    %cst_390 = arith.constant dense<0.000000e+00> : vector<24x32xf32>
    %621 = tpu.matmul %619, %620, %cst_390 {dimension_numbers = #tpu.dot_dimension_numbers<[1], [0], [0], [1], [0, 0, 1, 1], [], []>} : vector<24x16xf32>, vector<16x32xbf16>, vector<24x32xf32> -> vector<24x32xf32>
    %622 = arith.addf %617, %621 : vector<24x32xf32>
    %c1_391 = arith.constant 1 : index
    %c1_392 = arith.constant 1 : index
    %c6_393 = arith.constant 6 : index
    %c0_394 = arith.constant 0 : index
    %623 = vector.load %arg7[%c1_391, %c1_392, %c6_393, %c0_394] : memref<2x2x42x16xf32, #tpu.memory_space<vmem>>, vector<1x1x24x16xf32>
    %624 = vector.shape_cast %623 : vector<1x1x24x16xf32> to vector<24x16xf32>
    %c128 = arith.constant 128 : index
    %c0_395 = arith.constant 0 : index
    %625 = vector.load %arg4[%c128, %c0_395] : memref<256x32xbf16, #tpu.memory_space<vmem>>, vector<16x32xbf16>
    %cst_396 = arith.constant dense<0.000000e+00> : vector<24x32xf32>
    %626 = tpu.matmul %624, %625, %cst_396 {dimension_numbers = #tpu.dot_dimension_numbers<[1], [0], [0], [1], [0, 0, 1, 1], [], []>} : vector<24x16xf32>, vector<16x32xbf16>, vector<24x32xf32> -> vector<24x32xf32>
    %627 = arith.addf %622, %626 : vector<24x32xf32>
    %c1_397 = arith.constant 1 : index
    %c0_398 = arith.constant 0 : index
    %c7_399 = arith.constant 7 : index
    %c0_400 = arith.constant 0 : index
    %628 = vector.load %arg7[%c1_397, %c0_398, %c7_399, %c0_400] : memref<2x2x42x16xf32, #tpu.memory_space<vmem>>, vector<1x1x24x16xf32>
    %629 = vector.shape_cast %628 : vector<1x1x24x16xf32> to vector<24x16xf32>
    %c144 = arith.constant 144 : index
    %c0_401 = arith.constant 0 : index
    %630 = vector.load %arg4[%c144, %c0_401] : memref<256x32xbf16, #tpu.memory_space<vmem>>, vector<16x32xbf16>
    %cst_402 = arith.constant dense<0.000000e+00> : vector<24x32xf32>
    %631 = tpu.matmul %629, %630, %cst_402 {dimension_numbers = #tpu.dot_dimension_numbers<[1], [0], [0], [1], [0, 0, 1, 1], [], []>} : vector<24x16xf32>, vector<16x32xbf16>, vector<24x32xf32> -> vector<24x32xf32>
    %632 = arith.addf %627, %631 : vector<24x32xf32>
    %c1_403 = arith.constant 1 : index
    %c1_404 = arith.constant 1 : index
    %c7_405 = arith.constant 7 : index
    %c0_406 = arith.constant 0 : index
    %633 = vector.load %arg7[%c1_403, %c1_404, %c7_405, %c0_406] : memref<2x2x42x16xf32, #tpu.memory_space<vmem>>, vector<1x1x24x16xf32>
    %634 = vector.shape_cast %633 : vector<1x1x24x16xf32> to vector<24x16xf32>
    %c160 = arith.constant 160 : index
    %c0_407 = arith.constant 0 : index
    %635 = vector.load %arg4[%c160, %c0_407] : memref<256x32xbf16, #tpu.memory_space<vmem>>, vector<16x32xbf16>
    %cst_408 = arith.constant dense<0.000000e+00> : vector<24x32xf32>
    %636 = tpu.matmul %634, %635, %cst_408 {dimension_numbers = #tpu.dot_dimension_numbers<[1], [0], [0], [1], [0, 0, 1, 1], [], []>} : vector<24x16xf32>, vector<16x32xbf16>, vector<24x32xf32> -> vector<24x32xf32>
    %637 = arith.addf %632, %636 : vector<24x32xf32>
    %c1_409 = arith.constant 1 : index
    %c0_410 = arith.constant 0 : index
    %c8_411 = arith.constant 8 : index
    %c0_412 = arith.constant 0 : index
    %638 = vector.load %arg7[%c1_409, %c0_410, %c8_411, %c0_412] : memref<2x2x42x16xf32, #tpu.memory_space<vmem>>, vector<1x1x24x16xf32>
    %639 = vector.shape_cast %638 : vector<1x1x24x16xf32> to vector<24x16xf32>
    %c176 = arith.constant 176 : index
    %c0_413 = arith.constant 0 : index
    %640 = vector.load %arg4[%c176, %c0_413] : memref<256x32xbf16, #tpu.memory_space<vmem>>, vector<16x32xbf16>
    %cst_414 = arith.constant dense<0.000000e+00> : vector<24x32xf32>
    %641 = tpu.matmul %639, %640, %cst_414 {dimension_numbers = #tpu.dot_dimension_numbers<[1], [0], [0], [1], [0, 0, 1, 1], [], []>} : vector<24x16xf32>, vector<16x32xbf16>, vector<24x32xf32> -> vector<24x32xf32>
    %642 = arith.addf %637, %641 : vector<24x32xf32>
    %c0_415 = arith.constant 0 : index
    %c1_416 = arith.constant 1 : index
    %c12_417 = arith.constant 12 : index
    %c0_418 = arith.constant 0 : index
    %643 = vector.load %arg7[%c0_415, %c1_416, %c12_417, %c0_418] : memref<2x2x42x16xf32, #tpu.memory_space<vmem>>, vector<1x1x24x16xf32>
    %644 = vector.shape_cast %643 : vector<1x1x24x16xf32> to vector<24x16xf32>
    %c192 = arith.constant 192 : index
    %c0_419 = arith.constant 0 : index
    %645 = vector.load %arg4[%c192, %c0_419] : memref<256x32xbf16, #tpu.memory_space<vmem>>, vector<16x32xbf16>
    %cst_420 = arith.constant dense<0.000000e+00> : vector<24x32xf32>
    %646 = tpu.matmul %644, %645, %cst_420 {dimension_numbers = #tpu.dot_dimension_numbers<[1], [0], [0], [1], [0, 0, 1, 1], [], []>} : vector<24x16xf32>, vector<16x32xbf16>, vector<24x32xf32> -> vector<24x32xf32>
    %647 = arith.addf %642, %646 : vector<24x32xf32>
    %c0_421 = arith.constant 0 : index
    %c0_422 = arith.constant 0 : index
    %c13_423 = arith.constant 13 : index
    %c0_424 = arith.constant 0 : index
    %648 = vector.load %arg7[%c0_421, %c0_422, %c13_423, %c0_424] : memref<2x2x42x16xf32, #tpu.memory_space<vmem>>, vector<1x1x24x16xf32>
    %649 = vector.shape_cast %648 : vector<1x1x24x16xf32> to vector<24x16xf32>
    %c208 = arith.constant 208 : index
    %c0_425 = arith.constant 0 : index
    %650 = vector.load %arg4[%c208, %c0_425] : memref<256x32xbf16, #tpu.memory_space<vmem>>, vector<16x32xbf16>
    %cst_426 = arith.constant dense<0.000000e+00> : vector<24x32xf32>
    %651 = tpu.matmul %649, %650, %cst_426 {dimension_numbers = #tpu.dot_dimension_numbers<[1], [0], [0], [1], [0, 0, 1, 1], [], []>} : vector<24x16xf32>, vector<16x32xbf16>, vector<24x32xf32> -> vector<24x32xf32>
    %652 = arith.addf %647, %651 : vector<24x32xf32>
    %c0_427 = arith.constant 0 : index
    %c1_428 = arith.constant 1 : index
    %c13_429 = arith.constant 13 : index
    %c0_430 = arith.constant 0 : index
    %653 = vector.load %arg7[%c0_427, %c1_428, %c13_429, %c0_430] : memref<2x2x42x16xf32, #tpu.memory_space<vmem>>, vector<1x1x24x16xf32>
    %654 = vector.shape_cast %653 : vector<1x1x24x16xf32> to vector<24x16xf32>
    %c224 = arith.constant 224 : index
    %c0_431 = arith.constant 0 : index
    %655 = vector.load %arg4[%c224, %c0_431] : memref<256x32xbf16, #tpu.memory_space<vmem>>, vector<16x32xbf16>
    %cst_432 = arith.constant dense<0.000000e+00> : vector<24x32xf32>
    %656 = tpu.matmul %654, %655, %cst_432 {dimension_numbers = #tpu.dot_dimension_numbers<[1], [0], [0], [1], [0, 0, 1, 1], [], []>} : vector<24x16xf32>, vector<16x32xbf16>, vector<24x32xf32> -> vector<24x32xf32>
    %657 = arith.addf %652, %656 : vector<24x32xf32>
    %c0_433 = arith.constant 0 : index
    %c0_434 = arith.constant 0 : index
    %c14_435 = arith.constant 14 : index
    %c0_436 = arith.constant 0 : index
    %658 = vector.load %arg7[%c0_433, %c0_434, %c14_435, %c0_436] : memref<2x2x42x16xf32, #tpu.memory_space<vmem>>, vector<1x1x24x16xf32>
    %659 = vector.shape_cast %658 : vector<1x1x24x16xf32> to vector<24x16xf32>
    %c240 = arith.constant 240 : index
    %c0_437 = arith.constant 0 : index
    %660 = vector.load %arg4[%c240, %c0_437] : memref<256x32xbf16, #tpu.memory_space<vmem>>, vector<16x32xbf16>
    %cst_438 = arith.constant dense<0.000000e+00> : vector<24x32xf32>
    %661 = tpu.matmul %659, %660, %cst_438 {dimension_numbers = #tpu.dot_dimension_numbers<[1], [0], [0], [1], [0, 0, 1, 1], [], []>} : vector<24x16xf32>, vector<16x32xbf16>, vector<24x32xf32> -> vector<24x32xf32>
    %662 = arith.addf %657, %661 : vector<24x32xf32>
    %c0_439 = arith.constant 0 : index
    %c0_440 = arith.constant 0 : index
    %663 = vector.load %arg5[%c0_439, %c0_440] : memref<1x32xf32, #tpu.memory_space<vmem>>, vector<1x32xf32>
    %664 = vector.broadcast %663 : vector<1x32xf32> to vector<24x32xf32>
    %665 = arith.addf %662, %664 : vector<24x32xf32>
    %cst_441 = arith.constant 0.000000e+00 : f32
    %666 = vector.broadcast %cst_441 : f32 to vector<24x32xf32>
    %667 = arith.maximumf %665, %666 : vector<24x32xf32>
    %668 = arith.truncf %667 : vector<24x32xf32> to vector<24x32xbf16>
    %c0_442 = arith.constant 0 : index
    %c0_443 = arith.constant 0 : index
    %c0_444 = arith.constant 0 : index
    %669 = vector.load %arg6[%c0_442, %c0_443, %c0_444] : memref<1x24x32xbf16, #tpu.memory_space<vmem>>, vector<1x24x32xbf16>
    %670 = vector.shape_cast %669 : vector<1x24x32xbf16> to vector<24x32xbf16>
    %671 = vector.shape_cast %668 : vector<24x32xbf16> to vector<1x24x32xbf16>
    tpu.vector_store %arg6[%c0_442, %c0_443, %c0_444], %671 {strides = array<i32>} : memref<1x24x32xbf16, #tpu.memory_space<vmem>>, vector<1x24x32xbf16>,
    return
  }
  func.func @transform_0(%arg0: i32) -> (i32, i32, i32) {
    %c0_i32 = arith.constant 0 : i32
    %c0_i32_0 = arith.constant 0 : i32
    %c0_i32_1 = arith.constant 0 : i32
    return %arg0, %c0_i32, %c0_i32_0 : i32, i32, i32
  }
  func.func @transform_1(%arg0: i32) -> (i32, i32) {
    %c0_i32 = arith.constant 0 : i32
    %c0_i32_0 = arith.constant 0 : i32
    %c0_i32_1 = arith.constant 0 : i32
    return %c0_i32, %c0_i32_0 : i32, i32
  }
  func.func @transform_2(%arg0: i32) -> (i32, i32) {
    %c0_i32 = arith.constant 0 : i32
    %c0_i32_0 = arith.constant 0 : i32
    %c0_i32_1 = arith.constant 0 : i32
    return %c0_i32, %c0_i32_0 : i32, i32
  }
  func.func @transform_3(%arg0: i32) -> (i32, i32) {
    %c0_i32 = arith.constant 0 : i32
    %c0_i32_0 = arith.constant 0 : i32
    %c0_i32_1 = arith.constant 0 : i32
    return %c0_i32, %c0_i32_0 : i32, i32
  }
  func.func @transform_4(%arg0: i32) -> (i32, i32) {
    %c0_i32 = arith.constant 0 : i32
    %c0_i32_0 = arith.constant 0 : i32
    %c0_i32_1 = arith.constant 0 : i32
    return %c0_i32, %c0_i32_0 : i32, i32
  }
  func.func @transform_5(%arg0: i32) -> (i32, i32, i32) {
    %c0_i32 = arith.constant 0 : i32
    %c0_i32_0 = arith.constant 0 : i32
    %c0_i32_1 = arith.constant 0 : i32
    return %arg0, %c0_i32, %c0_i32_0 : i32, i32, i32
  }
}

module attributes {stable_mosaic.version = 11 : i64} {
  func.func @_fc_kernel(%arg0: i32, %arg1: memref<2x768xbf16, #tpu.memory_space<vmem>>, %arg2: memref<768x256xbf16, #tpu.memory_space<vmem>>, %arg3: memref<1x256xf32, #tpu.memory_space<vmem>>, %arg4: memref<2x128xf32, #tpu.memory_space<vmem>>, %arg5: memref<128x1344xbf16, #tpu.memory_space<vmem>>, %arg6: memref<1x1344xf32, #tpu.memory_space<vmem>>, %arg7: memref<2x128xf32, #tpu.memory_space<vmem>>, %arg8: memref<2x128xf32, #tpu.memory_space<vmem>>, %arg9: memref<2x1344xf32, #tpu.memory_space<vmem>>) attributes {dimension_semantics = [#tpu.dimension_semantics<arbitrary>], iteration_bounds = array<i64: 1>, scalar_prefetch = 0 : i64, scratch_operands = 0 : i64, tpu.core_type = #tpu.core_type<tc>, window_params = [{pipeline_mode = #tpu.pipeline_mode<synchronous>, transform_indices = @transform_0, window_bounds = array<i64: 2, 768>}, {pipeline_mode = #tpu.pipeline_mode<synchronous>, transform_indices = @transform_1, window_bounds = array<i64: 768, 256>}, {pipeline_mode = #tpu.pipeline_mode<synchronous>, transform_indices = @transform_2, window_bounds = array<i64: 1, 256>}, {pipeline_mode = #tpu.pipeline_mode<synchronous>, transform_indices = @transform_3, window_bounds = array<i64: 2, 128>}, {pipeline_mode = #tpu.pipeline_mode<synchronous>, transform_indices = @transform_4, window_bounds = array<i64: 128, 1344>}, {pipeline_mode = #tpu.pipeline_mode<synchronous>, transform_indices = @transform_5, window_bounds = array<i64: 1, 1344>}, {pipeline_mode = #tpu.pipeline_mode<synchronous>, transform_indices = @transform_6, window_bounds = array<i64: 2, 128>}, {pipeline_mode = #tpu.pipeline_mode<synchronous>, transform_indices = @transform_7, window_bounds = array<i64: 2, 128>}, {pipeline_mode = #tpu.pipeline_mode<synchronous>, transform_indices = @transform_8, window_bounds = array<i64: 2, 1344>}]} {
    %c0 = arith.constant 0 : index
    %c0_0 = arith.constant 0 : index
    %0 = vector.load %arg1[%c0, %c0_0] : memref<2x768xbf16, #tpu.memory_space<vmem>>, vector<2x768xbf16>
    %c0_1 = arith.constant 0 : index
    %c0_2 = arith.constant 0 : index
    %1 = vector.load %arg2[%c0_1, %c0_2] : memref<768x256xbf16, #tpu.memory_space<vmem>>, vector<768x256xbf16>
    %cst = arith.constant dense<0.000000e+00> : vector<2x256xf32>
    %2 = tpu.matmul %0, %1, %cst {dimension_numbers = #tpu.dot_dimension_numbers<[1], [0], [0], [1], [0, 0, 1, 1], [], []>} : vector<2x768xbf16>, vector<768x256xbf16>, vector<2x256xf32> -> vector<2x256xf32>
    %c0_3 = arith.constant 0 : index
    %c0_4 = arith.constant 0 : index
    %3 = vector.load %arg3[%c0_3, %c0_4] : memref<1x256xf32, #tpu.memory_space<vmem>>, vector<1x256xf32>
    %4 = vector.broadcast %3 : vector<1x256xf32> to vector<2x256xf32>
    %5 = arith.addf %2, %4 : vector<2x256xf32>
    %6 = vector.extract_strided_slice %5 {offsets = [0, 0], sizes = [2, 128], strides = [1, 1]} : vector<2x256xf32> to vector<2x128xf32>
    %7 = vector.extract_strided_slice %5 {offsets = [0, 128], sizes = [2, 128], strides = [1, 1]} : vector<2x256xf32> to vector<2x128xf32>
    %c0_5 = arith.constant 0 : index
    %c0_6 = arith.constant 0 : index
    %8 = vector.load %arg7[%c0_5, %c0_6] : memref<2x128xf32, #tpu.memory_space<vmem>>, vector<2x128xf32>
    tpu.vector_store %arg7[%c0_5, %c0_6], %6 {strides = array<i32>} : memref<2x128xf32, #tpu.memory_space<vmem>>, vector<2x128xf32>,
    %c0_7 = arith.constant 0 : index
    %c0_8 = arith.constant 0 : index
    %9 = vector.load %arg8[%c0_7, %c0_8] : memref<2x128xf32, #tpu.memory_space<vmem>>, vector<2x128xf32>
    tpu.vector_store %arg8[%c0_7, %c0_8], %7 {strides = array<i32>} : memref<2x128xf32, #tpu.memory_space<vmem>>, vector<2x128xf32>,
    %c0_9 = arith.constant 0 : index
    %c0_10 = arith.constant 0 : index
    %10 = vector.load %arg4[%c0_9, %c0_10] : memref<2x128xf32, #tpu.memory_space<vmem>>, vector<2x128xf32>
    %cst_11 = arith.constant 5.000000e-01 : f32
    %11 = vector.broadcast %cst_11 : f32 to vector<2x128xf32>
    %12 = arith.mulf %11, %7 : vector<2x128xf32>
    %13 = math.exp %12 : vector<2x128xf32>
    %14 = arith.mulf %10, %13 : vector<2x128xf32>
    %15 = arith.addf %6, %14 : vector<2x128xf32>
    %16 = arith.truncf %15 : vector<2x128xf32> to vector<2x128xbf16>
    %c0_12 = arith.constant 0 : index
    %c0_13 = arith.constant 0 : index
    %17 = vector.load %arg5[%c0_12, %c0_13] : memref<128x1344xbf16, #tpu.memory_space<vmem>>, vector<128x1344xbf16>
    %cst_14 = arith.constant dense<0.000000e+00> : vector<2x1344xf32>
    %18 = tpu.matmul %16, %17, %cst_14 {dimension_numbers = #tpu.dot_dimension_numbers<[1], [0], [0], [1], [0, 0, 1, 1], [], []>} : vector<2x128xbf16>, vector<128x1344xbf16>, vector<2x1344xf32> -> vector<2x1344xf32>
    %c0_15 = arith.constant 0 : index
    %c0_16 = arith.constant 0 : index
    %19 = vector.load %arg6[%c0_15, %c0_16] : memref<1x1344xf32, #tpu.memory_space<vmem>>, vector<1x1344xf32>
    %20 = vector.broadcast %19 : vector<1x1344xf32> to vector<2x1344xf32>
    %21 = arith.addf %18, %20 : vector<2x1344xf32>
    %c0_17 = arith.constant 0 : index
    %c0_18 = arith.constant 0 : index
    %22 = vector.load %arg9[%c0_17, %c0_18] : memref<2x1344xf32, #tpu.memory_space<vmem>>, vector<2x1344xf32>
    tpu.vector_store %arg9[%c0_17, %c0_18], %21 {strides = array<i32>} : memref<2x1344xf32, #tpu.memory_space<vmem>>, vector<2x1344xf32>,
    return
  }
  func.func @transform_0(%arg0: i32) -> (i32, i32) {
    %c0_i32 = arith.constant 0 : i32
    %c0_i32_0 = arith.constant 0 : i32
    %c0_i32_1 = arith.constant 0 : i32
    return %c0_i32, %c0_i32_0 : i32, i32
  }
  func.func @transform_1(%arg0: i32) -> (i32, i32) {
    %c0_i32 = arith.constant 0 : i32
    %c0_i32_0 = arith.constant 0 : i32
    %c0_i32_1 = arith.constant 0 : i32
    return %c0_i32, %c0_i32_0 : i32, i32
  }
  func.func @transform_2(%arg0: i32) -> (i32, i32) {
    %c0_i32 = arith.constant 0 : i32
    %c0_i32_0 = arith.constant 0 : i32
    %c0_i32_1 = arith.constant 0 : i32
    return %c0_i32, %c0_i32_0 : i32, i32
  }
  func.func @transform_3(%arg0: i32) -> (i32, i32) {
    %c0_i32 = arith.constant 0 : i32
    %c0_i32_0 = arith.constant 0 : i32
    %c0_i32_1 = arith.constant 0 : i32
    return %c0_i32, %c0_i32_0 : i32, i32
  }
  func.func @transform_4(%arg0: i32) -> (i32, i32) {
    %c0_i32 = arith.constant 0 : i32
    %c0_i32_0 = arith.constant 0 : i32
    %c0_i32_1 = arith.constant 0 : i32
    return %c0_i32, %c0_i32_0 : i32, i32
  }
  func.func @transform_5(%arg0: i32) -> (i32, i32) {
    %c0_i32 = arith.constant 0 : i32
    %c0_i32_0 = arith.constant 0 : i32
    %c0_i32_1 = arith.constant 0 : i32
    return %c0_i32, %c0_i32_0 : i32, i32
  }
  func.func @transform_6(%arg0: i32) -> (i32, i32) {
    %c0_i32 = arith.constant 0 : i32
    %c0_i32_0 = arith.constant 0 : i32
    %c0_i32_1 = arith.constant 0 : i32
    return %c0_i32, %c0_i32_0 : i32, i32
  }
  func.func @transform_7(%arg0: i32) -> (i32, i32) {
    %c0_i32 = arith.constant 0 : i32
    %c0_i32_0 = arith.constant 0 : i32
    %c0_i32_1 = arith.constant 0 : i32
    return %c0_i32, %c0_i32_0 : i32, i32
  }
  func.func @transform_8(%arg0: i32) -> (i32, i32) {
    %c0_i32 = arith.constant 0 : i32
    %c0_i32_0 = arith.constant 0 : i32
    %c0_i32_1 = arith.constant 0 : i32
    return %c0_i32, %c0_i32_0 : i32, i32
  }
}

module attributes {stable_mosaic.version = 11 : i64} {
  func.func @_decoder_kernel(%arg0: i32, %arg1: memref<1x42x32xf32, #tpu.memory_space<vmem>>, %arg2: memref<512x16xbf16, #tpu.memory_space<vmem>>, %arg3: memref<1x16xf32, #tpu.memory_space<vmem>>, %arg4: memref<144x4xbf16, #tpu.memory_space<vmem>>, %arg5: memref<1x4xf32, #tpu.memory_space<vmem>>, %arg6: memref<1x2x2x24x4xf32, #tpu.memory_space<vmem>>, %arg7: memref<2x2x42x16xf32, #tpu.memory_space<vmem>>) attributes {dimension_semantics = [#tpu.dimension_semantics<parallel>], iteration_bounds = array<i64: 2>, scalar_prefetch = 0 : i64, scratch_operands = 1 : i64, tpu.core_type = #tpu.core_type<tc>, window_params = [{transform_indices = @transform_0, window_bounds = array<i64: 1, 42, 32>}, {pipeline_mode = #tpu.pipeline_mode<synchronous>, transform_indices = @transform_1, window_bounds = array<i64: 512, 16>}, {pipeline_mode = #tpu.pipeline_mode<synchronous>, transform_indices = @transform_2, window_bounds = array<i64: 1, 16>}, {pipeline_mode = #tpu.pipeline_mode<synchronous>, transform_indices = @transform_3, window_bounds = array<i64: 144, 4>}, {pipeline_mode = #tpu.pipeline_mode<synchronous>, transform_indices = @transform_4, window_bounds = array<i64: 1, 4>}, {transform_indices = @transform_5, window_bounds = array<i64: 1, 2, 2, 24, 4>}]} {
    %cst = arith.constant 0.000000e+00 : f32
    %0 = vector.broadcast %cst : f32 to vector<2x2x42x16xf32>
    %c0 = arith.constant 0 : index
    %c0_0 = arith.constant 0 : index
    %c0_1 = arith.constant 0 : index
    %c0_2 = arith.constant 0 : index
    %1 = vector.load %arg7[%c0, %c0_0, %c0_1, %c0_2] : memref<2x2x42x16xf32, #tpu.memory_space<vmem>>, vector<2x2x42x16xf32>
    tpu.vector_store %arg7[%c0, %c0_0, %c0_1, %c0_2], %0 {strides = array<i32>} : memref<2x2x42x16xf32, #tpu.memory_space<vmem>>, vector<2x2x42x16xf32>,
    %2 = tpu.iota {dimensions = array<i32: 0>} : vector<24x1xi32>
    %c6_i32 = arith.constant 6 : i32
    %c0_i32 = arith.constant 0 : i32
    %3 = arith.cmpi eq, %c6_i32, %c0_i32 : i32
    %c1_i32 = arith.constant 1 : i32
    %4 = arith.select %3, %c1_i32, %c6_i32 : i32
    %5 = vector.broadcast %4 : i32 to vector<24x1xi32>
    %6 = arith.remsi %2, %5 : vector<24x1xi32>
    %c0_i32_3 = arith.constant 0 : i32
    %7 = vector.broadcast %c0_i32_3 : i32 to vector<24x1xi32>
    %8 = arith.cmpi ne, %6, %7 : vector<24x1xi32>
    %c0_i32_4 = arith.constant 0 : i32
    %9 = vector.broadcast %c0_i32_4 : i32 to vector<24x1xi32>
    %10 = arith.cmpi slt, %6, %9 : vector<24x1xi32>
    %c0_i32_5 = arith.constant 0 : i32
    %11 = arith.cmpi slt, %4, %c0_i32_5 : i32
    %12 = vector.broadcast %11 : i1 to vector<24x1xi1>
    %13 = vector.broadcast %12 : vector<24x1xi1> to vector<24x1xi1>
    %14 = arith.xori %10, %13 : vector<24x1xi1>
    %15 = arith.andi %14, %8 : vector<24x1xi1>
    %16 = vector.broadcast %4 : i32 to vector<24x1xi32>
    %17 = arith.addi %6, %16 : vector<24x1xi32>
    %18 = arith.select %15, %17, %6 : vector<24x1xi1>, vector<24x1xi32>
    %c4_i32 = arith.constant 4 : i32
    %19 = vector.broadcast %c4_i32 : i32 to vector<24x1xi32>
    %20 = arith.cmpi slt, %18, %19 : vector<24x1xi32>
    %c0_6 = arith.constant 0 : index
    %c0_7 = arith.constant 0 : index
    %21 = vector.load %arg3[%c0_6, %c0_7] : memref<1x16xf32, #tpu.memory_space<vmem>>, vector<1x16xf32>
    %cst_8 = arith.constant 0.000000e+00 : f32
    %22 = vector.broadcast %cst_8 : f32 to vector<24x16xf32>
    %c0_9 = arith.constant 0 : index
    %c0_10 = arith.constant 0 : index
    %c0_11 = arith.constant 0 : index
    %23 = vector.load %arg1[%c0_9, %c0_10, %c0_11] : memref<1x42x32xf32, #tpu.memory_space<vmem>>, vector<1x24x32xf32>
    %24 = vector.shape_cast %23 : vector<1x24x32xf32> to vector<24x32xf32>
    %c480 = arith.constant 480 : index
    %c0_12 = arith.constant 0 : index
    %25 = vector.load %arg2[%c480, %c0_12] : memref<512x16xbf16, #tpu.memory_space<vmem>>, vector<32x16xbf16>
    %cst_13 = arith.constant dense<0.000000e+00> : vector<24x16xf32>
    %26 = tpu.matmul %24, %25, %cst_13 {dimension_numbers = #tpu.dot_dimension_numbers<[1], [0], [0], [1], [0, 0, 1, 1], [], []>} : vector<24x32xf32>, vector<32x16xbf16>, vector<24x16xf32> -> vector<24x16xf32>
    %27 = arith.addf %22, %26 : vector<24x16xf32>
    %c0_14 = arith.constant 0 : index
    %c1 = arith.constant 1 : index
    %c0_15 = arith.constant 0 : index
    %28 = vector.load %arg1[%c0_14, %c1, %c0_15] : memref<1x42x32xf32, #tpu.memory_space<vmem>>, vector<1x24x32xf32>
    %29 = vector.shape_cast %28 : vector<1x24x32xf32> to vector<24x32xf32>
    %c416 = arith.constant 416 : index
    %c0_16 = arith.constant 0 : index
    %30 = vector.load %arg2[%c416, %c0_16] : memref<512x16xbf16, #tpu.memory_space<vmem>>, vector<32x16xbf16>
    %cst_17 = arith.constant dense<0.000000e+00> : vector<24x16xf32>
    %31 = tpu.matmul %29, %30, %cst_17 {dimension_numbers = #tpu.dot_dimension_numbers<[1], [0], [0], [1], [0, 0, 1, 1], [], []>} : vector<24x32xf32>, vector<32x16xbf16>, vector<24x16xf32> -> vector<24x16xf32>
    %32 = arith.addf %27, %31 : vector<24x16xf32>
    %c0_18 = arith.constant 0 : index
    %c6 = arith.constant 6 : index
    %c0_19 = arith.constant 0 : index
    %33 = vector.load %arg1[%c0_18, %c6, %c0_19] : memref<1x42x32xf32, #tpu.memory_space<vmem>>, vector<1x24x32xf32>
    %34 = vector.shape_cast %33 : vector<1x24x32xf32> to vector<24x32xf32>
    %c224 = arith.constant 224 : index
    %c0_20 = arith.constant 0 : index
    %35 = vector.load %arg2[%c224, %c0_20] : memref<512x16xbf16, #tpu.memory_space<vmem>>, vector<32x16xbf16>
    %cst_21 = arith.constant dense<0.000000e+00> : vector<24x16xf32>
    %36 = tpu.matmul %34, %35, %cst_21 {dimension_numbers = #tpu.dot_dimension_numbers<[1], [0], [0], [1], [0, 0, 1, 1], [], []>} : vector<24x32xf32>, vector<32x16xbf16>, vector<24x16xf32> -> vector<24x16xf32>
    %37 = arith.addf %32, %36 : vector<24x16xf32>
    %c0_22 = arith.constant 0 : index
    %c7 = arith.constant 7 : index
    %c0_23 = arith.constant 0 : index
    %38 = vector.load %arg1[%c0_22, %c7, %c0_23] : memref<1x42x32xf32, #tpu.memory_space<vmem>>, vector<1x24x32xf32>
    %39 = vector.shape_cast %38 : vector<1x24x32xf32> to vector<24x32xf32>
    %c160 = arith.constant 160 : index
    %c0_24 = arith.constant 0 : index
    %40 = vector.load %arg2[%c160, %c0_24] : memref<512x16xbf16, #tpu.memory_space<vmem>>, vector<32x16xbf16>
    %cst_25 = arith.constant dense<0.000000e+00> : vector<24x16xf32>
    %41 = tpu.matmul %39, %40, %cst_25 {dimension_numbers = #tpu.dot_dimension_numbers<[1], [0], [0], [1], [0, 0, 1, 1], [], []>} : vector<24x32xf32>, vector<32x16xbf16>, vector<24x16xf32> -> vector<24x16xf32>
    %42 = arith.addf %37, %41 : vector<24x16xf32>
    %43 = vector.broadcast %21 : vector<1x16xf32> to vector<24x16xf32>
    %44 = arith.addf %42, %43 : vector<24x16xf32>
    %cst_26 = arith.constant 0.000000e+00 : f32
    %45 = vector.broadcast %cst_26 : f32 to vector<24x16xf32>
    %46 = arith.maximumf %44, %45 : vector<24x16xf32>
    %cst_27 = arith.constant 0.000000e+00 : f32
    %47 = vector.shape_cast %20 : vector<24x1xi1> to vector<24x1xi1>
    %48 = vector.broadcast %47 : vector<24x1xi1> to vector<24x16xi1>
    %49 = vector.broadcast %cst_27 : f32 to vector<24x16xf32>
    %50 = arith.select %48, %46, %49 : vector<24x16xi1>, vector<24x16xf32>
    %c0_28 = arith.constant 0 : index
    %c0_29 = arith.constant 0 : index
    %c7_30 = arith.constant 7 : index
    %c0_31 = arith.constant 0 : index
    %51 = vector.load %arg7[%c0_28, %c0_29, %c7_30, %c0_31] : memref<2x2x42x16xf32, #tpu.memory_space<vmem>>, vector<1x1x24x16xf32>
    %52 = vector.shape_cast %51 : vector<1x1x24x16xf32> to vector<24x16xf32>
    %53 = vector.shape_cast %50 : vector<24x16xf32> to vector<1x1x24x16xf32>
    tpu.vector_store %arg7[%c0_28, %c0_29, %c7_30, %c0_31], %53 {strides = array<i32>} : memref<2x2x42x16xf32, #tpu.memory_space<vmem>>, vector<1x1x24x16xf32>,
    %cst_32 = arith.constant 0.000000e+00 : f32
    %54 = vector.broadcast %cst_32 : f32 to vector<24x16xf32>
    %c0_33 = arith.constant 0 : index
    %c1_34 = arith.constant 1 : index
    %c0_35 = arith.constant 0 : index
    %55 = vector.load %arg1[%c0_33, %c1_34, %c0_35] : memref<1x42x32xf32, #tpu.memory_space<vmem>>, vector<1x24x32xf32>
    %56 = vector.shape_cast %55 : vector<1x24x32xf32> to vector<24x32xf32>
    %c448 = arith.constant 448 : index
    %c0_36 = arith.constant 0 : index
    %57 = vector.load %arg2[%c448, %c0_36] : memref<512x16xbf16, #tpu.memory_space<vmem>>, vector<32x16xbf16>
    %cst_37 = arith.constant dense<0.000000e+00> : vector<24x16xf32>
    %58 = tpu.matmul %56, %57, %cst_37 {dimension_numbers = #tpu.dot_dimension_numbers<[1], [0], [0], [1], [0, 0, 1, 1], [], []>} : vector<24x32xf32>, vector<32x16xbf16>, vector<24x16xf32> -> vector<24x16xf32>
    %59 = arith.addf %54, %58 : vector<24x16xf32>
    %c0_38 = arith.constant 0 : index
    %c2 = arith.constant 2 : index
    %c0_39 = arith.constant 0 : index
    %60 = vector.load %arg1[%c0_38, %c2, %c0_39] : memref<1x42x32xf32, #tpu.memory_space<vmem>>, vector<1x24x32xf32>
    %61 = vector.shape_cast %60 : vector<1x24x32xf32> to vector<24x32xf32>
    %c384 = arith.constant 384 : index
    %c0_40 = arith.constant 0 : index
    %62 = vector.load %arg2[%c384, %c0_40] : memref<512x16xbf16, #tpu.memory_space<vmem>>, vector<32x16xbf16>
    %cst_41 = arith.constant dense<0.000000e+00> : vector<24x16xf32>
    %63 = tpu.matmul %61, %62, %cst_41 {dimension_numbers = #tpu.dot_dimension_numbers<[1], [0], [0], [1], [0, 0, 1, 1], [], []>} : vector<24x32xf32>, vector<32x16xbf16>, vector<24x16xf32> -> vector<24x16xf32>
    %64 = arith.addf %59, %63 : vector<24x16xf32>
    %c0_42 = arith.constant 0 : index
    %c7_43 = arith.constant 7 : index
    %c0_44 = arith.constant 0 : index
    %65 = vector.load %arg1[%c0_42, %c7_43, %c0_44] : memref<1x42x32xf32, #tpu.memory_space<vmem>>, vector<1x24x32xf32>
    %66 = vector.shape_cast %65 : vector<1x24x32xf32> to vector<24x32xf32>
    %c192 = arith.constant 192 : index
    %c0_45 = arith.constant 0 : index
    %67 = vector.load %arg2[%c192, %c0_45] : memref<512x16xbf16, #tpu.memory_space<vmem>>, vector<32x16xbf16>
    %cst_46 = arith.constant dense<0.000000e+00> : vector<24x16xf32>
    %68 = tpu.matmul %66, %67, %cst_46 {dimension_numbers = #tpu.dot_dimension_numbers<[1], [0], [0], [1], [0, 0, 1, 1], [], []>} : vector<24x32xf32>, vector<32x16xbf16>, vector<24x16xf32> -> vector<24x16xf32>
    %69 = arith.addf %64, %68 : vector<24x16xf32>
    %c0_47 = arith.constant 0 : index
    %c8 = arith.constant 8 : index
    %c0_48 = arith.constant 0 : index
    %70 = vector.load %arg1[%c0_47, %c8, %c0_48] : memref<1x42x32xf32, #tpu.memory_space<vmem>>, vector<1x24x32xf32>
    %71 = vector.shape_cast %70 : vector<1x24x32xf32> to vector<24x32xf32>
    %c128 = arith.constant 128 : index
    %c0_49 = arith.constant 0 : index
    %72 = vector.load %arg2[%c128, %c0_49] : memref<512x16xbf16, #tpu.memory_space<vmem>>, vector<32x16xbf16>
    %cst_50 = arith.constant dense<0.000000e+00> : vector<24x16xf32>
    %73 = tpu.matmul %71, %72, %cst_50 {dimension_numbers = #tpu.dot_dimension_numbers<[1], [0], [0], [1], [0, 0, 1, 1], [], []>} : vector<24x32xf32>, vector<32x16xbf16>, vector<24x16xf32> -> vector<24x16xf32>
    %74 = arith.addf %69, %73 : vector<24x16xf32>
    %75 = vector.broadcast %21 : vector<1x16xf32> to vector<24x16xf32>
    %76 = arith.addf %74, %75 : vector<24x16xf32>
    %cst_51 = arith.constant 0.000000e+00 : f32
    %77 = vector.broadcast %cst_51 : f32 to vector<24x16xf32>
    %78 = arith.maximumf %76, %77 : vector<24x16xf32>
    %cst_52 = arith.constant 0.000000e+00 : f32
    %79 = vector.shape_cast %20 : vector<24x1xi1> to vector<24x1xi1>
    %80 = vector.broadcast %79 : vector<24x1xi1> to vector<24x16xi1>
    %81 = vector.broadcast %cst_52 : f32 to vector<24x16xf32>
    %82 = arith.select %80, %78, %81 : vector<24x16xi1>, vector<24x16xf32>
    %c0_53 = arith.constant 0 : index
    %c1_54 = arith.constant 1 : index
    %c7_55 = arith.constant 7 : index
    %c0_56 = arith.constant 0 : index
    %83 = vector.load %arg7[%c0_53, %c1_54, %c7_55, %c0_56] : memref<2x2x42x16xf32, #tpu.memory_space<vmem>>, vector<1x1x24x16xf32>
    %84 = vector.shape_cast %83 : vector<1x1x24x16xf32> to vector<24x16xf32>
    %85 = vector.shape_cast %82 : vector<24x16xf32> to vector<1x1x24x16xf32>
    tpu.vector_store %arg7[%c0_53, %c1_54, %c7_55, %c0_56], %85 {strides = array<i32>} : memref<2x2x42x16xf32, #tpu.memory_space<vmem>>, vector<1x1x24x16xf32>,
    %cst_57 = arith.constant 0.000000e+00 : f32
    %86 = vector.broadcast %cst_57 : f32 to vector<24x16xf32>
    %c0_58 = arith.constant 0 : index
    %c6_59 = arith.constant 6 : index
    %c0_60 = arith.constant 0 : index
    %87 = vector.load %arg1[%c0_58, %c6_59, %c0_60] : memref<1x42x32xf32, #tpu.memory_space<vmem>>, vector<1x24x32xf32>
    %88 = vector.shape_cast %87 : vector<1x24x32xf32> to vector<24x32xf32>
    %c352 = arith.constant 352 : index
    %c0_61 = arith.constant 0 : index
    %89 = vector.load %arg2[%c352, %c0_61] : memref<512x16xbf16, #tpu.memory_space<vmem>>, vector<32x16xbf16>
    %cst_62 = arith.constant dense<0.000000e+00> : vector<24x16xf32>
    %90 = tpu.matmul %88, %89, %cst_62 {dimension_numbers = #tpu.dot_dimension_numbers<[1], [0], [0], [1], [0, 0, 1, 1], [], []>} : vector<24x32xf32>, vector<32x16xbf16>, vector<24x16xf32> -> vector<24x16xf32>
    %91 = arith.addf %86, %90 : vector<24x16xf32>
    %c0_63 = arith.constant 0 : index
    %c7_64 = arith.constant 7 : index
    %c0_65 = arith.constant 0 : index
    %92 = vector.load %arg1[%c0_63, %c7_64, %c0_65] : memref<1x42x32xf32, #tpu.memory_space<vmem>>, vector<1x24x32xf32>
    %93 = vector.shape_cast %92 : vector<1x24x32xf32> to vector<24x32xf32>
    %c288 = arith.constant 288 : index
    %c0_66 = arith.constant 0 : index
    %94 = vector.load %arg2[%c288, %c0_66] : memref<512x16xbf16, #tpu.memory_space<vmem>>, vector<32x16xbf16>
    %cst_67 = arith.constant dense<0.000000e+00> : vector<24x16xf32>
    %95 = tpu.matmul %93, %94, %cst_67 {dimension_numbers = #tpu.dot_dimension_numbers<[1], [0], [0], [1], [0, 0, 1, 1], [], []>} : vector<24x32xf32>, vector<32x16xbf16>, vector<24x16xf32> -> vector<24x16xf32>
    %96 = arith.addf %91, %95 : vector<24x16xf32>
    %c0_68 = arith.constant 0 : index
    %c12 = arith.constant 12 : index
    %c0_69 = arith.constant 0 : index
    %97 = vector.load %arg1[%c0_68, %c12, %c0_69] : memref<1x42x32xf32, #tpu.memory_space<vmem>>, vector<1x24x32xf32>
    %98 = vector.shape_cast %97 : vector<1x24x32xf32> to vector<24x32xf32>
    %c96 = arith.constant 96 : index
    %c0_70 = arith.constant 0 : index
    %99 = vector.load %arg2[%c96, %c0_70] : memref<512x16xbf16, #tpu.memory_space<vmem>>, vector<32x16xbf16>
    %cst_71 = arith.constant dense<0.000000e+00> : vector<24x16xf32>
    %100 = tpu.matmul %98, %99, %cst_71 {dimension_numbers = #tpu.dot_dimension_numbers<[1], [0], [0], [1], [0, 0, 1, 1], [], []>} : vector<24x32xf32>, vector<32x16xbf16>, vector<24x16xf32> -> vector<24x16xf32>
    %101 = arith.addf %96, %100 : vector<24x16xf32>
    %c0_72 = arith.constant 0 : index
    %c13 = arith.constant 13 : index
    %c0_73 = arith.constant 0 : index
    %102 = vector.load %arg1[%c0_72, %c13, %c0_73] : memref<1x42x32xf32, #tpu.memory_space<vmem>>, vector<1x24x32xf32>
    %103 = vector.shape_cast %102 : vector<1x24x32xf32> to vector<24x32xf32>
    %c32 = arith.constant 32 : index
    %c0_74 = arith.constant 0 : index
    %104 = vector.load %arg2[%c32, %c0_74] : memref<512x16xbf16, #tpu.memory_space<vmem>>, vector<32x16xbf16>
    %cst_75 = arith.constant dense<0.000000e+00> : vector<24x16xf32>
    %105 = tpu.matmul %103, %104, %cst_75 {dimension_numbers = #tpu.dot_dimension_numbers<[1], [0], [0], [1], [0, 0, 1, 1], [], []>} : vector<24x32xf32>, vector<32x16xbf16>, vector<24x16xf32> -> vector<24x16xf32>
    %106 = arith.addf %101, %105 : vector<24x16xf32>
    %107 = vector.broadcast %21 : vector<1x16xf32> to vector<24x16xf32>
    %108 = arith.addf %106, %107 : vector<24x16xf32>
    %cst_76 = arith.constant 0.000000e+00 : f32
    %109 = vector.broadcast %cst_76 : f32 to vector<24x16xf32>
    %110 = arith.maximumf %108, %109 : vector<24x16xf32>
    %cst_77 = arith.constant 0.000000e+00 : f32
    %111 = vector.shape_cast %20 : vector<24x1xi1> to vector<24x1xi1>
    %112 = vector.broadcast %111 : vector<24x1xi1> to vector<24x16xi1>
    %113 = vector.broadcast %cst_77 : f32 to vector<24x16xf32>
    %114 = arith.select %112, %110, %113 : vector<24x16xi1>, vector<24x16xf32>
    %c1_78 = arith.constant 1 : index
    %c0_79 = arith.constant 0 : index
    %c7_80 = arith.constant 7 : index
    %c0_81 = arith.constant 0 : index
    %115 = vector.load %arg7[%c1_78, %c0_79, %c7_80, %c0_81] : memref<2x2x42x16xf32, #tpu.memory_space<vmem>>, vector<1x1x24x16xf32>
    %116 = vector.shape_cast %115 : vector<1x1x24x16xf32> to vector<24x16xf32>
    %117 = vector.shape_cast %114 : vector<24x16xf32> to vector<1x1x24x16xf32>
    tpu.vector_store %arg7[%c1_78, %c0_79, %c7_80, %c0_81], %117 {strides = array<i32>} : memref<2x2x42x16xf32, #tpu.memory_space<vmem>>, vector<1x1x24x16xf32>,
    %cst_82 = arith.constant 0.000000e+00 : f32
    %118 = vector.broadcast %cst_82 : f32 to vector<24x16xf32>
    %c0_83 = arith.constant 0 : index
    %c7_84 = arith.constant 7 : index
    %c0_85 = arith.constant 0 : index
    %119 = vector.load %arg1[%c0_83, %c7_84, %c0_85] : memref<1x42x32xf32, #tpu.memory_space<vmem>>, vector<1x24x32xf32>
    %120 = vector.shape_cast %119 : vector<1x24x32xf32> to vector<24x32xf32>
    %c320 = arith.constant 320 : index
    %c0_86 = arith.constant 0 : index
    %121 = vector.load %arg2[%c320, %c0_86] : memref<512x16xbf16, #tpu.memory_space<vmem>>, vector<32x16xbf16>
    %cst_87 = arith.constant dense<0.000000e+00> : vector<24x16xf32>
    %122 = tpu.matmul %120, %121, %cst_87 {dimension_numbers = #tpu.dot_dimension_numbers<[1], [0], [0], [1], [0, 0, 1, 1], [], []>} : vector<24x32xf32>, vector<32x16xbf16>, vector<24x16xf32> -> vector<24x16xf32>
    %123 = arith.addf %118, %122 : vector<24x16xf32>
    %c0_88 = arith.constant 0 : index
    %c8_89 = arith.constant 8 : index
    %c0_90 = arith.constant 0 : index
    %124 = vector.load %arg1[%c0_88, %c8_89, %c0_90] : memref<1x42x32xf32, #tpu.memory_space<vmem>>, vector<1x24x32xf32>
    %125 = vector.shape_cast %124 : vector<1x24x32xf32> to vector<24x32xf32>
    %c256 = arith.constant 256 : index
    %c0_91 = arith.constant 0 : index
    %126 = vector.load %arg2[%c256, %c0_91] : memref<512x16xbf16, #tpu.memory_space<vmem>>, vector<32x16xbf16>
    %cst_92 = arith.constant dense<0.000000e+00> : vector<24x16xf32>
    %127 = tpu.matmul %125, %126, %cst_92 {dimension_numbers = #tpu.dot_dimension_numbers<[1], [0], [0], [1], [0, 0, 1, 1], [], []>} : vector<24x32xf32>, vector<32x16xbf16>, vector<24x16xf32> -> vector<24x16xf32>
    %128 = arith.addf %123, %127 : vector<24x16xf32>
    %c0_93 = arith.constant 0 : index
    %c13_94 = arith.constant 13 : index
    %c0_95 = arith.constant 0 : index
    %129 = vector.load %arg1[%c0_93, %c13_94, %c0_95] : memref<1x42x32xf32, #tpu.memory_space<vmem>>, vector<1x24x32xf32>
    %130 = vector.shape_cast %129 : vector<1x24x32xf32> to vector<24x32xf32>
    %c64 = arith.constant 64 : index
    %c0_96 = arith.constant 0 : index
    %131 = vector.load %arg2[%c64, %c0_96] : memref<512x16xbf16, #tpu.memory_space<vmem>>, vector<32x16xbf16>
    %cst_97 = arith.constant dense<0.000000e+00> : vector<24x16xf32>
    %132 = tpu.matmul %130, %131, %cst_97 {dimension_numbers = #tpu.dot_dimension_numbers<[1], [0], [0], [1], [0, 0, 1, 1], [], []>} : vector<24x32xf32>, vector<32x16xbf16>, vector<24x16xf32> -> vector<24x16xf32>
    %133 = arith.addf %128, %132 : vector<24x16xf32>
    %c0_98 = arith.constant 0 : index
    %c14 = arith.constant 14 : index
    %c0_99 = arith.constant 0 : index
    %134 = vector.load %arg1[%c0_98, %c14, %c0_99] : memref<1x42x32xf32, #tpu.memory_space<vmem>>, vector<1x24x32xf32>
    %135 = vector.shape_cast %134 : vector<1x24x32xf32> to vector<24x32xf32>
    %c0_100 = arith.constant 0 : index
    %c0_101 = arith.constant 0 : index
    %136 = vector.load %arg2[%c0_100, %c0_101] : memref<512x16xbf16, #tpu.memory_space<vmem>>, vector<32x16xbf16>
    %cst_102 = arith.constant dense<0.000000e+00> : vector<24x16xf32>
    %137 = tpu.matmul %135, %136, %cst_102 {dimension_numbers = #tpu.dot_dimension_numbers<[1], [0], [0], [1], [0, 0, 1, 1], [], []>} : vector<24x32xf32>, vector<32x16xbf16>, vector<24x16xf32> -> vector<24x16xf32>
    %138 = arith.addf %133, %137 : vector<24x16xf32>
    %139 = vector.broadcast %21 : vector<1x16xf32> to vector<24x16xf32>
    %140 = arith.addf %138, %139 : vector<24x16xf32>
    %cst_103 = arith.constant 0.000000e+00 : f32
    %141 = vector.broadcast %cst_103 : f32 to vector<24x16xf32>
    %142 = arith.maximumf %140, %141 : vector<24x16xf32>
    %cst_104 = arith.constant 0.000000e+00 : f32
    %143 = vector.shape_cast %20 : vector<24x1xi1> to vector<24x1xi1>
    %144 = vector.broadcast %143 : vector<24x1xi1> to vector<24x16xi1>
    %145 = vector.broadcast %cst_104 : f32 to vector<24x16xf32>
    %146 = arith.select %144, %142, %145 : vector<24x16xi1>, vector<24x16xf32>
    %c1_105 = arith.constant 1 : index
    %c1_106 = arith.constant 1 : index
    %c7_107 = arith.constant 7 : index
    %c0_108 = arith.constant 0 : index
    %147 = vector.load %arg7[%c1_105, %c1_106, %c7_107, %c0_108] : memref<2x2x42x16xf32, #tpu.memory_space<vmem>>, vector<1x1x24x16xf32>
    %148 = vector.shape_cast %147 : vector<1x1x24x16xf32> to vector<24x16xf32>
    %149 = vector.shape_cast %146 : vector<24x16xf32> to vector<1x1x24x16xf32>
    tpu.vector_store %arg7[%c1_105, %c1_106, %c7_107, %c0_108], %149 {strides = array<i32>} : memref<2x2x42x16xf32, #tpu.memory_space<vmem>>, vector<1x1x24x16xf32>,
    %c0_109 = arith.constant 0 : index
    %c0_110 = arith.constant 0 : index
    %150 = vector.load %arg5[%c0_109, %c0_110] : memref<1x4xf32, #tpu.memory_space<vmem>>, vector<1x4xf32>
    %cst_111 = arith.constant 0.000000e+00 : f32
    %151 = vector.broadcast %cst_111 : f32 to vector<24x4xf32>
    %c1_112 = arith.constant 1 : index
    %c1_113 = arith.constant 1 : index
    %c0_114 = arith.constant 0 : index
    %c0_115 = arith.constant 0 : index
    %152 = vector.load %arg7[%c1_112, %c1_113, %c0_114, %c0_115] : memref<2x2x42x16xf32, #tpu.memory_space<vmem>>, vector<1x1x24x16xf32>
    %153 = vector.shape_cast %152 : vector<1x1x24x16xf32> to vector<24x16xf32>
    %c0_116 = arith.constant 0 : index
    %c0_117 = arith.constant 0 : index
    %154 = vector.load %arg4[%c0_116, %c0_117] : memref<144x4xbf16, #tpu.memory_space<vmem>>, vector<16x4xbf16>
    %cst_118 = arith.constant dense<0.000000e+00> : vector<24x4xf32>
    %155 = tpu.matmul %153, %154, %cst_118 {dimension_numbers = #tpu.dot_dimension_numbers<[1], [0], [0], [1], [0, 0, 1, 1], [], []>} : vector<24x16xf32>, vector<16x4xbf16>, vector<24x4xf32> -> vector<24x4xf32>
    %156 = arith.addf %151, %155 : vector<24x4xf32>
    %c1_119 = arith.constant 1 : index
    %c0_120 = arith.constant 0 : index
    %c1_121 = arith.constant 1 : index
    %c0_122 = arith.constant 0 : index
    %157 = vector.load %arg7[%c1_119, %c0_120, %c1_121, %c0_122] : memref<2x2x42x16xf32, #tpu.memory_space<vmem>>, vector<1x1x24x16xf32>
    %158 = vector.shape_cast %157 : vector<1x1x24x16xf32> to vector<24x16xf32>
    %c16 = arith.constant 16 : index
    %c0_123 = arith.constant 0 : index
    %159 = vector.load %arg4[%c16, %c0_123] : memref<144x4xbf16, #tpu.memory_space<vmem>>, vector<16x4xbf16>
    %cst_124 = arith.constant dense<0.000000e+00> : vector<24x4xf32>
    %160 = tpu.matmul %158, %159, %cst_124 {dimension_numbers = #tpu.dot_dimension_numbers<[1], [0], [0], [1], [0, 0, 1, 1], [], []>} : vector<24x16xf32>, vector<16x4xbf16>, vector<24x4xf32> -> vector<24x4xf32>
    %161 = arith.addf %156, %160 : vector<24x4xf32>
    %c1_125 = arith.constant 1 : index
    %c1_126 = arith.constant 1 : index
    %c1_127 = arith.constant 1 : index
    %c0_128 = arith.constant 0 : index
    %162 = vector.load %arg7[%c1_125, %c1_126, %c1_127, %c0_128] : memref<2x2x42x16xf32, #tpu.memory_space<vmem>>, vector<1x1x24x16xf32>
    %163 = vector.shape_cast %162 : vector<1x1x24x16xf32> to vector<24x16xf32>
    %c32_129 = arith.constant 32 : index
    %c0_130 = arith.constant 0 : index
    %164 = vector.load %arg4[%c32_129, %c0_130] : memref<144x4xbf16, #tpu.memory_space<vmem>>, vector<16x4xbf16>
    %cst_131 = arith.constant dense<0.000000e+00> : vector<24x4xf32>
    %165 = tpu.matmul %163, %164, %cst_131 {dimension_numbers = #tpu.dot_dimension_numbers<[1], [0], [0], [1], [0, 0, 1, 1], [], []>} : vector<24x16xf32>, vector<16x4xbf16>, vector<24x4xf32> -> vector<24x4xf32>
    %166 = arith.addf %161, %165 : vector<24x4xf32>
    %c0_132 = arith.constant 0 : index
    %c1_133 = arith.constant 1 : index
    %c6_134 = arith.constant 6 : index
    %c0_135 = arith.constant 0 : index
    %167 = vector.load %arg7[%c0_132, %c1_133, %c6_134, %c0_135] : memref<2x2x42x16xf32, #tpu.memory_space<vmem>>, vector<1x1x24x16xf32>
    %168 = vector.shape_cast %167 : vector<1x1x24x16xf32> to vector<24x16xf32>
    %c48 = arith.constant 48 : index
    %c0_136 = arith.constant 0 : index
    %169 = vector.load %arg4[%c48, %c0_136] : memref<144x4xbf16, #tpu.memory_space<vmem>>, vector<16x4xbf16>
    %cst_137 = arith.constant dense<0.000000e+00> : vector<24x4xf32>
    %170 = tpu.matmul %168, %169, %cst_137 {dimension_numbers = #tpu.dot_dimension_numbers<[1], [0], [0], [1], [0, 0, 1, 1], [], []>} : vector<24x16xf32>, vector<16x4xbf16>, vector<24x4xf32> -> vector<24x4xf32>
    %171 = arith.addf %166, %170 : vector<24x4xf32>
    %c0_138 = arith.constant 0 : index
    %c0_139 = arith.constant 0 : index
    %c7_140 = arith.constant 7 : index
    %c0_141 = arith.constant 0 : index
    %172 = vector.load %arg7[%c0_138, %c0_139, %c7_140, %c0_141] : memref<2x2x42x16xf32, #tpu.memory_space<vmem>>, vector<1x1x24x16xf32>
    %173 = vector.shape_cast %172 : vector<1x1x24x16xf32> to vector<24x16xf32>
    %c64_142 = arith.constant 64 : index
    %c0_143 = arith.constant 0 : index
    %174 = vector.load %arg4[%c64_142, %c0_143] : memref<144x4xbf16, #tpu.memory_space<vmem>>, vector<16x4xbf16>
    %cst_144 = arith.constant dense<0.000000e+00> : vector<24x4xf32>
    %175 = tpu.matmul %173, %174, %cst_144 {dimension_numbers = #tpu.dot_dimension_numbers<[1], [0], [0], [1], [0, 0, 1, 1], [], []>} : vector<24x16xf32>, vector<16x4xbf16>, vector<24x4xf32> -> vector<24x4xf32>
    %176 = arith.addf %171, %175 : vector<24x4xf32>
    %c0_145 = arith.constant 0 : index
    %c1_146 = arith.constant 1 : index
    %c7_147 = arith.constant 7 : index
    %c0_148 = arith.constant 0 : index
    %177 = vector.load %arg7[%c0_145, %c1_146, %c7_147, %c0_148] : memref<2x2x42x16xf32, #tpu.memory_space<vmem>>, vector<1x1x24x16xf32>
    %178 = vector.shape_cast %177 : vector<1x1x24x16xf32> to vector<24x16xf32>
    %c80 = arith.constant 80 : index
    %c0_149 = arith.constant 0 : index
    %179 = vector.load %arg4[%c80, %c0_149] : memref<144x4xbf16, #tpu.memory_space<vmem>>, vector<16x4xbf16>
    %cst_150 = arith.constant dense<0.000000e+00> : vector<24x4xf32>
    %180 = tpu.matmul %178, %179, %cst_150 {dimension_numbers = #tpu.dot_dimension_numbers<[1], [0], [0], [1], [0, 0, 1, 1], [], []>} : vector<24x16xf32>, vector<16x4xbf16>, vector<24x4xf32> -> vector<24x4xf32>
    %181 = arith.addf %176, %180 : vector<24x4xf32>
    %c1_151 = arith.constant 1 : index
    %c1_152 = arith.constant 1 : index
    %c6_153 = arith.constant 6 : index
    %c0_154 = arith.constant 0 : index
    %182 = vector.load %arg7[%c1_151, %c1_152, %c6_153, %c0_154] : memref<2x2x42x16xf32, #tpu.memory_space<vmem>>, vector<1x1x24x16xf32>
    %183 = vector.shape_cast %182 : vector<1x1x24x16xf32> to vector<24x16xf32>
    %c96_155 = arith.constant 96 : index
    %c0_156 = arith.constant 0 : index
    %184 = vector.load %arg4[%c96_155, %c0_156] : memref<144x4xbf16, #tpu.memory_space<vmem>>, vector<16x4xbf16>
    %cst_157 = arith.constant dense<0.000000e+00> : vector<24x4xf32>
    %185 = tpu.matmul %183, %184, %cst_157 {dimension_numbers = #tpu.dot_dimension_numbers<[1], [0], [0], [1], [0, 0, 1, 1], [], []>} : vector<24x16xf32>, vector<16x4xbf16>, vector<24x4xf32> -> vector<24x4xf32>
    %186 = arith.addf %181, %185 : vector<24x4xf32>
    %c1_158 = arith.constant 1 : index
    %c0_159 = arith.constant 0 : index
    %c7_160 = arith.constant 7 : index
    %c0_161 = arith.constant 0 : index
    %187 = vector.load %arg7[%c1_158, %c0_159, %c7_160, %c0_161] : memref<2x2x42x16xf32, #tpu.memory_space<vmem>>, vector<1x1x24x16xf32>
    %188 = vector.shape_cast %187 : vector<1x1x24x16xf32> to vector<24x16xf32>
    %c112 = arith.constant 112 : index
    %c0_162 = arith.constant 0 : index
    %189 = vector.load %arg4[%c112, %c0_162] : memref<144x4xbf16, #tpu.memory_space<vmem>>, vector<16x4xbf16>
    %cst_163 = arith.constant dense<0.000000e+00> : vector<24x4xf32>
    %190 = tpu.matmul %188, %189, %cst_163 {dimension_numbers = #tpu.dot_dimension_numbers<[1], [0], [0], [1], [0, 0, 1, 1], [], []>} : vector<24x16xf32>, vector<16x4xbf16>, vector<24x4xf32> -> vector<24x4xf32>
    %191 = arith.addf %186, %190 : vector<24x4xf32>
    %c1_164 = arith.constant 1 : index
    %c1_165 = arith.constant 1 : index
    %c7_166 = arith.constant 7 : index
    %c0_167 = arith.constant 0 : index
    %192 = vector.load %arg7[%c1_164, %c1_165, %c7_166, %c0_167] : memref<2x2x42x16xf32, #tpu.memory_space<vmem>>, vector<1x1x24x16xf32>
    %193 = vector.shape_cast %192 : vector<1x1x24x16xf32> to vector<24x16xf32>
    %c128_168 = arith.constant 128 : index
    %c0_169 = arith.constant 0 : index
    %194 = vector.load %arg4[%c128_168, %c0_169] : memref<144x4xbf16, #tpu.memory_space<vmem>>, vector<16x4xbf16>
    %cst_170 = arith.constant dense<0.000000e+00> : vector<24x4xf32>
    %195 = tpu.matmul %193, %194, %cst_170 {dimension_numbers = #tpu.dot_dimension_numbers<[1], [0], [0], [1], [0, 0, 1, 1], [], []>} : vector<24x16xf32>, vector<16x4xbf16>, vector<24x4xf32> -> vector<24x4xf32>
    %196 = arith.addf %191, %195 : vector<24x4xf32>
    %197 = vector.broadcast %150 : vector<1x4xf32> to vector<24x4xf32>
    %198 = arith.addf %196, %197 : vector<24x4xf32>
    %199 = math.absf %198 : vector<24x4xf32>
    %cst_171 = arith.constant 0.000000e+00 : f32
    %200 = vector.broadcast %cst_171 : f32 to vector<24x4xf32>
    %201 = arith.subf %200, %199 : vector<24x4xf32>
    %202 = math.exp %201 : vector<24x4xf32>
    %cst_172 = arith.constant 1.000000e+00 : f32
    %203 = vector.broadcast %cst_172 : f32 to vector<24x4xf32>
    %204 = arith.addf %203, %202 : vector<24x4xf32>
    %cst_173 = arith.constant 1.000000e+00 : f32
    %205 = vector.broadcast %cst_173 : f32 to vector<24x4xf32>
    %206 = arith.divf %205, %204 : vector<24x4xf32>
    %cst_174 = arith.constant 0.000000e+00 : f32
    %207 = vector.broadcast %cst_174 : f32 to vector<24x4xf32>
    %208 = arith.cmpf oge, %198, %207 : vector<24x4xf32>
    %209 = arith.mulf %202, %206 : vector<24x4xf32>
    %210 = arith.select %208, %206, %209 : vector<24x4xi1>, vector<24x4xf32>
    %c0_175 = arith.constant 0 : index
    %c0_176 = arith.constant 0 : index
    %c0_177 = arith.constant 0 : index
    %c0_178 = arith.constant 0 : index
    %c0_179 = arith.constant 0 : index
    %211 = vector.load %arg6[%c0_175, %c0_176, %c0_177, %c0_178, %c0_179] : memref<1x2x2x24x4xf32, #tpu.memory_space<vmem>>, vector<1x1x1x24x4xf32>
    %212 = vector.shape_cast %211 : vector<1x1x1x24x4xf32> to vector<24x4xf32>
    %213 = vector.shape_cast %210 : vector<24x4xf32> to vector<1x1x1x24x4xf32>
    tpu.vector_store %arg6[%c0_175, %c0_176, %c0_177, %c0_178, %c0_179], %213 {strides = array<i32>} : memref<1x2x2x24x4xf32, #tpu.memory_space<vmem>>, vector<1x1x1x24x4xf32>,
    %cst_180 = arith.constant 0.000000e+00 : f32
    %214 = vector.broadcast %cst_180 : f32 to vector<24x4xf32>
    %c1_181 = arith.constant 1 : index
    %c0_182 = arith.constant 0 : index
    %c1_183 = arith.constant 1 : index
    %c0_184 = arith.constant 0 : index
    %215 = vector.load %arg7[%c1_181, %c0_182, %c1_183, %c0_184] : memref<2x2x42x16xf32, #tpu.memory_space<vmem>>, vector<1x1x24x16xf32>
    %216 = vector.shape_cast %215 : vector<1x1x24x16xf32> to vector<24x16xf32>
    %c0_185 = arith.constant 0 : index
    %c0_186 = arith.constant 0 : index
    %217 = vector.load %arg4[%c0_185, %c0_186] : memref<144x4xbf16, #tpu.memory_space<vmem>>, vector<16x4xbf16>
    %cst_187 = arith.constant dense<0.000000e+00> : vector<24x4xf32>
    %218 = tpu.matmul %216, %217, %cst_187 {dimension_numbers = #tpu.dot_dimension_numbers<[1], [0], [0], [1], [0, 0, 1, 1], [], []>} : vector<24x16xf32>, vector<16x4xbf16>, vector<24x4xf32> -> vector<24x4xf32>
    %219 = arith.addf %214, %218 : vector<24x4xf32>
    %c1_188 = arith.constant 1 : index
    %c1_189 = arith.constant 1 : index
    %c1_190 = arith.constant 1 : index
    %c0_191 = arith.constant 0 : index
    %220 = vector.load %arg7[%c1_188, %c1_189, %c1_190, %c0_191] : memref<2x2x42x16xf32, #tpu.memory_space<vmem>>, vector<1x1x24x16xf32>
    %221 = vector.shape_cast %220 : vector<1x1x24x16xf32> to vector<24x16xf32>
    %c16_192 = arith.constant 16 : index
    %c0_193 = arith.constant 0 : index
    %222 = vector.load %arg4[%c16_192, %c0_193] : memref<144x4xbf16, #tpu.memory_space<vmem>>, vector<16x4xbf16>
    %cst_194 = arith.constant dense<0.000000e+00> : vector<24x4xf32>
    %223 = tpu.matmul %221, %222, %cst_194 {dimension_numbers = #tpu.dot_dimension_numbers<[1], [0], [0], [1], [0, 0, 1, 1], [], []>} : vector<24x16xf32>, vector<16x4xbf16>, vector<24x4xf32> -> vector<24x4xf32>
    %224 = arith.addf %219, %223 : vector<24x4xf32>
    %c1_195 = arith.constant 1 : index
    %c0_196 = arith.constant 0 : index
    %c2_197 = arith.constant 2 : index
    %c0_198 = arith.constant 0 : index
    %225 = vector.load %arg7[%c1_195, %c0_196, %c2_197, %c0_198] : memref<2x2x42x16xf32, #tpu.memory_space<vmem>>, vector<1x1x24x16xf32>
    %226 = vector.shape_cast %225 : vector<1x1x24x16xf32> to vector<24x16xf32>
    %c32_199 = arith.constant 32 : index
    %c0_200 = arith.constant 0 : index
    %227 = vector.load %arg4[%c32_199, %c0_200] : memref<144x4xbf16, #tpu.memory_space<vmem>>, vector<16x4xbf16>
    %cst_201 = arith.constant dense<0.000000e+00> : vector<24x4xf32>
    %228 = tpu.matmul %226, %227, %cst_201 {dimension_numbers = #tpu.dot_dimension_numbers<[1], [0], [0], [1], [0, 0, 1, 1], [], []>} : vector<24x16xf32>, vector<16x4xbf16>, vector<24x4xf32> -> vector<24x4xf32>
    %229 = arith.addf %224, %228 : vector<24x4xf32>
    %c0_202 = arith.constant 0 : index
    %c0_203 = arith.constant 0 : index
    %c7_204 = arith.constant 7 : index
    %c0_205 = arith.constant 0 : index
    %230 = vector.load %arg7[%c0_202, %c0_203, %c7_204, %c0_205] : memref<2x2x42x16xf32, #tpu.memory_space<vmem>>, vector<1x1x24x16xf32>
    %231 = vector.shape_cast %230 : vector<1x1x24x16xf32> to vector<24x16xf32>
    %c48_206 = arith.constant 48 : index
    %c0_207 = arith.constant 0 : index
    %232 = vector.load %arg4[%c48_206, %c0_207] : memref<144x4xbf16, #tpu.memory_space<vmem>>, vector<16x4xbf16>
    %cst_208 = arith.constant dense<0.000000e+00> : vector<24x4xf32>
    %233 = tpu.matmul %231, %232, %cst_208 {dimension_numbers = #tpu.dot_dimension_numbers<[1], [0], [0], [1], [0, 0, 1, 1], [], []>} : vector<24x16xf32>, vector<16x4xbf16>, vector<24x4xf32> -> vector<24x4xf32>
    %234 = arith.addf %229, %233 : vector<24x4xf32>
    %c0_209 = arith.constant 0 : index
    %c1_210 = arith.constant 1 : index
    %c7_211 = arith.constant 7 : index
    %c0_212 = arith.constant 0 : index
    %235 = vector.load %arg7[%c0_209, %c1_210, %c7_211, %c0_212] : memref<2x2x42x16xf32, #tpu.memory_space<vmem>>, vector<1x1x24x16xf32>
    %236 = vector.shape_cast %235 : vector<1x1x24x16xf32> to vector<24x16xf32>
    %c64_213 = arith.constant 64 : index
    %c0_214 = arith.constant 0 : index
    %237 = vector.load %arg4[%c64_213, %c0_214] : memref<144x4xbf16, #tpu.memory_space<vmem>>, vector<16x4xbf16>
    %cst_215 = arith.constant dense<0.000000e+00> : vector<24x4xf32>
    %238 = tpu.matmul %236, %237, %cst_215 {dimension_numbers = #tpu.dot_dimension_numbers<[1], [0], [0], [1], [0, 0, 1, 1], [], []>} : vector<24x16xf32>, vector<16x4xbf16>, vector<24x4xf32> -> vector<24x4xf32>
    %239 = arith.addf %234, %238 : vector<24x4xf32>
    %c0_216 = arith.constant 0 : index
    %c0_217 = arith.constant 0 : index
    %c8_218 = arith.constant 8 : index
    %c0_219 = arith.constant 0 : index
    %240 = vector.load %arg7[%c0_216, %c0_217, %c8_218, %c0_219] : memref<2x2x42x16xf32, #tpu.memory_space<vmem>>, vector<1x1x24x16xf32>
    %241 = vector.shape_cast %240 : vector<1x1x24x16xf32> to vector<24x16xf32>
    %c80_220 = arith.constant 80 : index
    %c0_221 = arith.constant 0 : index
    %242 = vector.load %arg4[%c80_220, %c0_221] : memref<144x4xbf16, #tpu.memory_space<vmem>>, vector<16x4xbf16>
    %cst_222 = arith.constant dense<0.000000e+00> : vector<24x4xf32>
    %243 = tpu.matmul %241, %242, %cst_222 {dimension_numbers = #tpu.dot_dimension_numbers<[1], [0], [0], [1], [0, 0, 1, 1], [], []>} : vector<24x16xf32>, vector<16x4xbf16>, vector<24x4xf32> -> vector<24x4xf32>
    %244 = arith.addf %239, %243 : vector<24x4xf32>
    %c1_223 = arith.constant 1 : index
    %c0_224 = arith.constant 0 : index
    %c7_225 = arith.constant 7 : index
    %c0_226 = arith.constant 0 : index
    %245 = vector.load %arg7[%c1_223, %c0_224, %c7_225, %c0_226] : memref<2x2x42x16xf32, #tpu.memory_space<vmem>>, vector<1x1x24x16xf32>
    %246 = vector.shape_cast %245 : vector<1x1x24x16xf32> to vector<24x16xf32>
    %c96_227 = arith.constant 96 : index
    %c0_228 = arith.constant 0 : index
    %247 = vector.load %arg4[%c96_227, %c0_228] : memref<144x4xbf16, #tpu.memory_space<vmem>>, vector<16x4xbf16>
    %cst_229 = arith.constant dense<0.000000e+00> : vector<24x4xf32>
    %248 = tpu.matmul %246, %247, %cst_229 {dimension_numbers = #tpu.dot_dimension_numbers<[1], [0], [0], [1], [0, 0, 1, 1], [], []>} : vector<24x16xf32>, vector<16x4xbf16>, vector<24x4xf32> -> vector<24x4xf32>
    %249 = arith.addf %244, %248 : vector<24x4xf32>
    %c1_230 = arith.constant 1 : index
    %c1_231 = arith.constant 1 : index
    %c7_232 = arith.constant 7 : index
    %c0_233 = arith.constant 0 : index
    %250 = vector.load %arg7[%c1_230, %c1_231, %c7_232, %c0_233] : memref<2x2x42x16xf32, #tpu.memory_space<vmem>>, vector<1x1x24x16xf32>
    %251 = vector.shape_cast %250 : vector<1x1x24x16xf32> to vector<24x16xf32>
    %c112_234 = arith.constant 112 : index
    %c0_235 = arith.constant 0 : index
    %252 = vector.load %arg4[%c112_234, %c0_235] : memref<144x4xbf16, #tpu.memory_space<vmem>>, vector<16x4xbf16>
    %cst_236 = arith.constant dense<0.000000e+00> : vector<24x4xf32>
    %253 = tpu.matmul %251, %252, %cst_236 {dimension_numbers = #tpu.dot_dimension_numbers<[1], [0], [0], [1], [0, 0, 1, 1], [], []>} : vector<24x16xf32>, vector<16x4xbf16>, vector<24x4xf32> -> vector<24x4xf32>
    %254 = arith.addf %249, %253 : vector<24x4xf32>
    %c1_237 = arith.constant 1 : index
    %c0_238 = arith.constant 0 : index
    %c8_239 = arith.constant 8 : index
    %c0_240 = arith.constant 0 : index
    %255 = vector.load %arg7[%c1_237, %c0_238, %c8_239, %c0_240] : memref<2x2x42x16xf32, #tpu.memory_space<vmem>>, vector<1x1x24x16xf32>
    %256 = vector.shape_cast %255 : vector<1x1x24x16xf32> to vector<24x16xf32>
    %c128_241 = arith.constant 128 : index
    %c0_242 = arith.constant 0 : index
    %257 = vector.load %arg4[%c128_241, %c0_242] : memref<144x4xbf16, #tpu.memory_space<vmem>>, vector<16x4xbf16>
    %cst_243 = arith.constant dense<0.000000e+00> : vector<24x4xf32>
    %258 = tpu.matmul %256, %257, %cst_243 {dimension_numbers = #tpu.dot_dimension_numbers<[1], [0], [0], [1], [0, 0, 1, 1], [], []>} : vector<24x16xf32>, vector<16x4xbf16>, vector<24x4xf32> -> vector<24x4xf32>
    %259 = arith.addf %254, %258 : vector<24x4xf32>
    %260 = vector.broadcast %150 : vector<1x4xf32> to vector<24x4xf32>
    %261 = arith.addf %259, %260 : vector<24x4xf32>
    %262 = math.absf %261 : vector<24x4xf32>
    %cst_244 = arith.constant 0.000000e+00 : f32
    %263 = vector.broadcast %cst_244 : f32 to vector<24x4xf32>
    %264 = arith.subf %263, %262 : vector<24x4xf32>
    %265 = math.exp %264 : vector<24x4xf32>
    %cst_245 = arith.constant 1.000000e+00 : f32
    %266 = vector.broadcast %cst_245 : f32 to vector<24x4xf32>
    %267 = arith.addf %266, %265 : vector<24x4xf32>
    %cst_246 = arith.constant 1.000000e+00 : f32
    %268 = vector.broadcast %cst_246 : f32 to vector<24x4xf32>
    %269 = arith.divf %268, %267 : vector<24x4xf32>
    %cst_247 = arith.constant 0.000000e+00 : f32
    %270 = vector.broadcast %cst_247 : f32 to vector<24x4xf32>
    %271 = arith.cmpf oge, %261, %270 : vector<24x4xf32>
    %272 = arith.mulf %265, %269 : vector<24x4xf32>
    %273 = arith.select %271, %269, %272 : vector<24x4xi1>, vector<24x4xf32>
    %c0_248 = arith.constant 0 : index
    %c0_249 = arith.constant 0 : index
    %c1_250 = arith.constant 1 : index
    %c0_251 = arith.constant 0 : index
    %c0_252 = arith.constant 0 : index
    %274 = vector.load %arg6[%c0_248, %c0_249, %c1_250, %c0_251, %c0_252] : memref<1x2x2x24x4xf32, #tpu.memory_space<vmem>>, vector<1x1x1x24x4xf32>
    %275 = vector.shape_cast %274 : vector<1x1x1x24x4xf32> to vector<24x4xf32>
    %276 = vector.shape_cast %273 : vector<24x4xf32> to vector<1x1x1x24x4xf32>
    tpu.vector_store %arg6[%c0_248, %c0_249, %c1_250, %c0_251, %c0_252], %276 {strides = array<i32>} : memref<1x2x2x24x4xf32, #tpu.memory_space<vmem>>, vector<1x1x1x24x4xf32>,
    %cst_253 = arith.constant 0.000000e+00 : f32
    %277 = vector.broadcast %cst_253 : f32 to vector<24x4xf32>
    %c0_254 = arith.constant 0 : index
    %c1_255 = arith.constant 1 : index
    %c6_256 = arith.constant 6 : index
    %c0_257 = arith.constant 0 : index
    %278 = vector.load %arg7[%c0_254, %c1_255, %c6_256, %c0_257] : memref<2x2x42x16xf32, #tpu.memory_space<vmem>>, vector<1x1x24x16xf32>
    %279 = vector.shape_cast %278 : vector<1x1x24x16xf32> to vector<24x16xf32>
    %c0_258 = arith.constant 0 : index
    %c0_259 = arith.constant 0 : index
    %280 = vector.load %arg4[%c0_258, %c0_259] : memref<144x4xbf16, #tpu.memory_space<vmem>>, vector<16x4xbf16>
    %cst_260 = arith.constant dense<0.000000e+00> : vector<24x4xf32>
    %281 = tpu.matmul %279, %280, %cst_260 {dimension_numbers = #tpu.dot_dimension_numbers<[1], [0], [0], [1], [0, 0, 1, 1], [], []>} : vector<24x16xf32>, vector<16x4xbf16>, vector<24x4xf32> -> vector<24x4xf32>
    %282 = arith.addf %277, %281 : vector<24x4xf32>
    %c0_261 = arith.constant 0 : index
    %c0_262 = arith.constant 0 : index
    %c7_263 = arith.constant 7 : index
    %c0_264 = arith.constant 0 : index
    %283 = vector.load %arg7[%c0_261, %c0_262, %c7_263, %c0_264] : memref<2x2x42x16xf32, #tpu.memory_space<vmem>>, vector<1x1x24x16xf32>
    %284 = vector.shape_cast %283 : vector<1x1x24x16xf32> to vector<24x16xf32>
    %c16_265 = arith.constant 16 : index
    %c0_266 = arith.constant 0 : index
    %285 = vector.load %arg4[%c16_265, %c0_266] : memref<144x4xbf16, #tpu.memory_space<vmem>>, vector<16x4xbf16>
    %cst_267 = arith.constant dense<0.000000e+00> : vector<24x4xf32>
    %286 = tpu.matmul %284, %285, %cst_267 {dimension_numbers = #tpu.dot_dimension_numbers<[1], [0], [0], [1], [0, 0, 1, 1], [], []>} : vector<24x16xf32>, vector<16x4xbf16>, vector<24x4xf32> -> vector<24x4xf32>
    %287 = arith.addf %282, %286 : vector<24x4xf32>
    %c0_268 = arith.constant 0 : index
    %c1_269 = arith.constant 1 : index
    %c7_270 = arith.constant 7 : index
    %c0_271 = arith.constant 0 : index
    %288 = vector.load %arg7[%c0_268, %c1_269, %c7_270, %c0_271] : memref<2x2x42x16xf32, #tpu.memory_space<vmem>>, vector<1x1x24x16xf32>
    %289 = vector.shape_cast %288 : vector<1x1x24x16xf32> to vector<24x16xf32>
    %c32_272 = arith.constant 32 : index
    %c0_273 = arith.constant 0 : index
    %290 = vector.load %arg4[%c32_272, %c0_273] : memref<144x4xbf16, #tpu.memory_space<vmem>>, vector<16x4xbf16>
    %cst_274 = arith.constant dense<0.000000e+00> : vector<24x4xf32>
    %291 = tpu.matmul %289, %290, %cst_274 {dimension_numbers = #tpu.dot_dimension_numbers<[1], [0], [0], [1], [0, 0, 1, 1], [], []>} : vector<24x16xf32>, vector<16x4xbf16>, vector<24x4xf32> -> vector<24x4xf32>
    %292 = arith.addf %287, %291 : vector<24x4xf32>
    %c1_275 = arith.constant 1 : index
    %c1_276 = arith.constant 1 : index
    %c6_277 = arith.constant 6 : index
    %c0_278 = arith.constant 0 : index
    %293 = vector.load %arg7[%c1_275, %c1_276, %c6_277, %c0_278] : memref<2x2x42x16xf32, #tpu.memory_space<vmem>>, vector<1x1x24x16xf32>
    %294 = vector.shape_cast %293 : vector<1x1x24x16xf32> to vector<24x16xf32>
    %c48_279 = arith.constant 48 : index
    %c0_280 = arith.constant 0 : index
    %295 = vector.load %arg4[%c48_279, %c0_280] : memref<144x4xbf16, #tpu.memory_space<vmem>>, vector<16x4xbf16>
    %cst_281 = arith.constant dense<0.000000e+00> : vector<24x4xf32>
    %296 = tpu.matmul %294, %295, %cst_281 {dimension_numbers = #tpu.dot_dimension_numbers<[1], [0], [0], [1], [0, 0, 1, 1], [], []>} : vector<24x16xf32>, vector<16x4xbf16>, vector<24x4xf32> -> vector<24x4xf32>
    %297 = arith.addf %292, %296 : vector<24x4xf32>
    %c1_282 = arith.constant 1 : index
    %c0_283 = arith.constant 0 : index
    %c7_284 = arith.constant 7 : index
    %c0_285 = arith.constant 0 : index
    %298 = vector.load %arg7[%c1_282, %c0_283, %c7_284, %c0_285] : memref<2x2x42x16xf32, #tpu.memory_space<vmem>>, vector<1x1x24x16xf32>
    %299 = vector.shape_cast %298 : vector<1x1x24x16xf32> to vector<24x16xf32>
    %c64_286 = arith.constant 64 : index
    %c0_287 = arith.constant 0 : index
    %300 = vector.load %arg4[%c64_286, %c0_287] : memref<144x4xbf16, #tpu.memory_space<vmem>>, vector<16x4xbf16>
    %cst_288 = arith.constant dense<0.000000e+00> : vector<24x4xf32>
    %301 = tpu.matmul %299, %300, %cst_288 {dimension_numbers = #tpu.dot_dimension_numbers<[1], [0], [0], [1], [0, 0, 1, 1], [], []>} : vector<24x16xf32>, vector<16x4xbf16>, vector<24x4xf32> -> vector<24x4xf32>
    %302 = arith.addf %297, %301 : vector<24x4xf32>
    %c1_289 = arith.constant 1 : index
    %c1_290 = arith.constant 1 : index
    %c7_291 = arith.constant 7 : index
    %c0_292 = arith.constant 0 : index
    %303 = vector.load %arg7[%c1_289, %c1_290, %c7_291, %c0_292] : memref<2x2x42x16xf32, #tpu.memory_space<vmem>>, vector<1x1x24x16xf32>
    %304 = vector.shape_cast %303 : vector<1x1x24x16xf32> to vector<24x16xf32>
    %c80_293 = arith.constant 80 : index
    %c0_294 = arith.constant 0 : index
    %305 = vector.load %arg4[%c80_293, %c0_294] : memref<144x4xbf16, #tpu.memory_space<vmem>>, vector<16x4xbf16>
    %cst_295 = arith.constant dense<0.000000e+00> : vector<24x4xf32>
    %306 = tpu.matmul %304, %305, %cst_295 {dimension_numbers = #tpu.dot_dimension_numbers<[1], [0], [0], [1], [0, 0, 1, 1], [], []>} : vector<24x16xf32>, vector<16x4xbf16>, vector<24x4xf32> -> vector<24x4xf32>
    %307 = arith.addf %302, %306 : vector<24x4xf32>
    %c0_296 = arith.constant 0 : index
    %c1_297 = arith.constant 1 : index
    %c12_298 = arith.constant 12 : index
    %c0_299 = arith.constant 0 : index
    %308 = vector.load %arg7[%c0_296, %c1_297, %c12_298, %c0_299] : memref<2x2x42x16xf32, #tpu.memory_space<vmem>>, vector<1x1x24x16xf32>
    %309 = vector.shape_cast %308 : vector<1x1x24x16xf32> to vector<24x16xf32>
    %c96_300 = arith.constant 96 : index
    %c0_301 = arith.constant 0 : index
    %310 = vector.load %arg4[%c96_300, %c0_301] : memref<144x4xbf16, #tpu.memory_space<vmem>>, vector<16x4xbf16>
    %cst_302 = arith.constant dense<0.000000e+00> : vector<24x4xf32>
    %311 = tpu.matmul %309, %310, %cst_302 {dimension_numbers = #tpu.dot_dimension_numbers<[1], [0], [0], [1], [0, 0, 1, 1], [], []>} : vector<24x16xf32>, vector<16x4xbf16>, vector<24x4xf32> -> vector<24x4xf32>
    %312 = arith.addf %307, %311 : vector<24x4xf32>
    %c0_303 = arith.constant 0 : index
    %c0_304 = arith.constant 0 : index
    %c13_305 = arith.constant 13 : index
    %c0_306 = arith.constant 0 : index
    %313 = vector.load %arg7[%c0_303, %c0_304, %c13_305, %c0_306] : memref<2x2x42x16xf32, #tpu.memory_space<vmem>>, vector<1x1x24x16xf32>
    %314 = vector.shape_cast %313 : vector<1x1x24x16xf32> to vector<24x16xf32>
    %c112_307 = arith.constant 112 : index
    %c0_308 = arith.constant 0 : index
    %315 = vector.load %arg4[%c112_307, %c0_308] : memref<144x4xbf16, #tpu.memory_space<vmem>>, vector<16x4xbf16>
    %cst_309 = arith.constant dense<0.000000e+00> : vector<24x4xf32>
    %316 = tpu.matmul %314, %315, %cst_309 {dimension_numbers = #tpu.dot_dimension_numbers<[1], [0], [0], [1], [0, 0, 1, 1], [], []>} : vector<24x16xf32>, vector<16x4xbf16>, vector<24x4xf32> -> vector<24x4xf32>
    %317 = arith.addf %312, %316 : vector<24x4xf32>
    %c0_310 = arith.constant 0 : index
    %c1_311 = arith.constant 1 : index
    %c13_312 = arith.constant 13 : index
    %c0_313 = arith.constant 0 : index
    %318 = vector.load %arg7[%c0_310, %c1_311, %c13_312, %c0_313] : memref<2x2x42x16xf32, #tpu.memory_space<vmem>>, vector<1x1x24x16xf32>
    %319 = vector.shape_cast %318 : vector<1x1x24x16xf32> to vector<24x16xf32>
    %c128_314 = arith.constant 128 : index
    %c0_315 = arith.constant 0 : index
    %320 = vector.load %arg4[%c128_314, %c0_315] : memref<144x4xbf16, #tpu.memory_space<vmem>>, vector<16x4xbf16>
    %cst_316 = arith.constant dense<0.000000e+00> : vector<24x4xf32>
    %321 = tpu.matmul %319, %320, %cst_316 {dimension_numbers = #tpu.dot_dimension_numbers<[1], [0], [0], [1], [0, 0, 1, 1], [], []>} : vector<24x16xf32>, vector<16x4xbf16>, vector<24x4xf32> -> vector<24x4xf32>
    %322 = arith.addf %317, %321 : vector<24x4xf32>
    %323 = vector.broadcast %150 : vector<1x4xf32> to vector<24x4xf32>
    %324 = arith.addf %322, %323 : vector<24x4xf32>
    %325 = math.absf %324 : vector<24x4xf32>
    %cst_317 = arith.constant 0.000000e+00 : f32
    %326 = vector.broadcast %cst_317 : f32 to vector<24x4xf32>
    %327 = arith.subf %326, %325 : vector<24x4xf32>
    %328 = math.exp %327 : vector<24x4xf32>
    %cst_318 = arith.constant 1.000000e+00 : f32
    %329 = vector.broadcast %cst_318 : f32 to vector<24x4xf32>
    %330 = arith.addf %329, %328 : vector<24x4xf32>
    %cst_319 = arith.constant 1.000000e+00 : f32
    %331 = vector.broadcast %cst_319 : f32 to vector<24x4xf32>
    %332 = arith.divf %331, %330 : vector<24x4xf32>
    %cst_320 = arith.constant 0.000000e+00 : f32
    %333 = vector.broadcast %cst_320 : f32 to vector<24x4xf32>
    %334 = arith.cmpf oge, %324, %333 : vector<24x4xf32>
    %335 = arith.mulf %328, %332 : vector<24x4xf32>
    %336 = arith.select %334, %332, %335 : vector<24x4xi1>, vector<24x4xf32>
    %c0_321 = arith.constant 0 : index
    %c1_322 = arith.constant 1 : index
    %c0_323 = arith.constant 0 : index
    %c0_324 = arith.constant 0 : index
    %c0_325 = arith.constant 0 : index
    %337 = vector.load %arg6[%c0_321, %c1_322, %c0_323, %c0_324, %c0_325] : memref<1x2x2x24x4xf32, #tpu.memory_space<vmem>>, vector<1x1x1x24x4xf32>
    %338 = vector.shape_cast %337 : vector<1x1x1x24x4xf32> to vector<24x4xf32>
    %339 = vector.shape_cast %336 : vector<24x4xf32> to vector<1x1x1x24x4xf32>
    tpu.vector_store %arg6[%c0_321, %c1_322, %c0_323, %c0_324, %c0_325], %339 {strides = array<i32>} : memref<1x2x2x24x4xf32, #tpu.memory_space<vmem>>, vector<1x1x1x24x4xf32>,
    %cst_326 = arith.constant 0.000000e+00 : f32
    %340 = vector.broadcast %cst_326 : f32 to vector<24x4xf32>
    %c0_327 = arith.constant 0 : index
    %c0_328 = arith.constant 0 : index
    %c7_329 = arith.constant 7 : index
    %c0_330 = arith.constant 0 : index
    %341 = vector.load %arg7[%c0_327, %c0_328, %c7_329, %c0_330] : memref<2x2x42x16xf32, #tpu.memory_space<vmem>>, vector<1x1x24x16xf32>
    %342 = vector.shape_cast %341 : vector<1x1x24x16xf32> to vector<24x16xf32>
    %c0_331 = arith.constant 0 : index
    %c0_332 = arith.constant 0 : index
    %343 = vector.load %arg4[%c0_331, %c0_332] : memref<144x4xbf16, #tpu.memory_space<vmem>>, vector<16x4xbf16>
    %cst_333 = arith.constant dense<0.000000e+00> : vector<24x4xf32>
    %344 = tpu.matmul %342, %343, %cst_333 {dimension_numbers = #tpu.dot_dimension_numbers<[1], [0], [0], [1], [0, 0, 1, 1], [], []>} : vector<24x16xf32>, vector<16x4xbf16>, vector<24x4xf32> -> vector<24x4xf32>
    %345 = arith.addf %340, %344 : vector<24x4xf32>
    %c0_334 = arith.constant 0 : index
    %c1_335 = arith.constant 1 : index
    %c7_336 = arith.constant 7 : index
    %c0_337 = arith.constant 0 : index
    %346 = vector.load %arg7[%c0_334, %c1_335, %c7_336, %c0_337] : memref<2x2x42x16xf32, #tpu.memory_space<vmem>>, vector<1x1x24x16xf32>
    %347 = vector.shape_cast %346 : vector<1x1x24x16xf32> to vector<24x16xf32>
    %c16_338 = arith.constant 16 : index
    %c0_339 = arith.constant 0 : index
    %348 = vector.load %arg4[%c16_338, %c0_339] : memref<144x4xbf16, #tpu.memory_space<vmem>>, vector<16x4xbf16>
    %cst_340 = arith.constant dense<0.000000e+00> : vector<24x4xf32>
    %349 = tpu.matmul %347, %348, %cst_340 {dimension_numbers = #tpu.dot_dimension_numbers<[1], [0], [0], [1], [0, 0, 1, 1], [], []>} : vector<24x16xf32>, vector<16x4xbf16>, vector<24x4xf32> -> vector<24x4xf32>
    %350 = arith.addf %345, %349 : vector<24x4xf32>
    %c0_341 = arith.constant 0 : index
    %c0_342 = arith.constant 0 : index
    %c8_343 = arith.constant 8 : index
    %c0_344 = arith.constant 0 : index
    %351 = vector.load %arg7[%c0_341, %c0_342, %c8_343, %c0_344] : memref<2x2x42x16xf32, #tpu.memory_space<vmem>>, vector<1x1x24x16xf32>
    %352 = vector.shape_cast %351 : vector<1x1x24x16xf32> to vector<24x16xf32>
    %c32_345 = arith.constant 32 : index
    %c0_346 = arith.constant 0 : index
    %353 = vector.load %arg4[%c32_345, %c0_346] : memref<144x4xbf16, #tpu.memory_space<vmem>>, vector<16x4xbf16>
    %cst_347 = arith.constant dense<0.000000e+00> : vector<24x4xf32>
    %354 = tpu.matmul %352, %353, %cst_347 {dimension_numbers = #tpu.dot_dimension_numbers<[1], [0], [0], [1], [0, 0, 1, 1], [], []>} : vector<24x16xf32>, vector<16x4xbf16>, vector<24x4xf32> -> vector<24x4xf32>
    %355 = arith.addf %350, %354 : vector<24x4xf32>
    %c1_348 = arith.constant 1 : index
    %c0_349 = arith.constant 0 : index
    %c7_350 = arith.constant 7 : index
    %c0_351 = arith.constant 0 : index
    %356 = vector.load %arg7[%c1_348, %c0_349, %c7_350, %c0_351] : memref<2x2x42x16xf32, #tpu.memory_space<vmem>>, vector<1x1x24x16xf32>
    %357 = vector.shape_cast %356 : vector<1x1x24x16xf32> to vector<24x16xf32>
    %c48_352 = arith.constant 48 : index
    %c0_353 = arith.constant 0 : index
    %358 = vector.load %arg4[%c48_352, %c0_353] : memref<144x4xbf16, #tpu.memory_space<vmem>>, vector<16x4xbf16>
    %cst_354 = arith.constant dense<0.000000e+00> : vector<24x4xf32>
    %359 = tpu.matmul %357, %358, %cst_354 {dimension_numbers = #tpu.dot_dimension_numbers<[1], [0], [0], [1], [0, 0, 1, 1], [], []>} : vector<24x16xf32>, vector<16x4xbf16>, vector<24x4xf32> -> vector<24x4xf32>
    %360 = arith.addf %355, %359 : vector<24x4xf32>
    %c1_355 = arith.constant 1 : index
    %c1_356 = arith.constant 1 : index
    %c7_357 = arith.constant 7 : index
    %c0_358 = arith.constant 0 : index
    %361 = vector.load %arg7[%c1_355, %c1_356, %c7_357, %c0_358] : memref<2x2x42x16xf32, #tpu.memory_space<vmem>>, vector<1x1x24x16xf32>
    %362 = vector.shape_cast %361 : vector<1x1x24x16xf32> to vector<24x16xf32>
    %c64_359 = arith.constant 64 : index
    %c0_360 = arith.constant 0 : index
    %363 = vector.load %arg4[%c64_359, %c0_360] : memref<144x4xbf16, #tpu.memory_space<vmem>>, vector<16x4xbf16>
    %cst_361 = arith.constant dense<0.000000e+00> : vector<24x4xf32>
    %364 = tpu.matmul %362, %363, %cst_361 {dimension_numbers = #tpu.dot_dimension_numbers<[1], [0], [0], [1], [0, 0, 1, 1], [], []>} : vector<24x16xf32>, vector<16x4xbf16>, vector<24x4xf32> -> vector<24x4xf32>
    %365 = arith.addf %360, %364 : vector<24x4xf32>
    %c1_362 = arith.constant 1 : index
    %c0_363 = arith.constant 0 : index
    %c8_364 = arith.constant 8 : index
    %c0_365 = arith.constant 0 : index
    %366 = vector.load %arg7[%c1_362, %c0_363, %c8_364, %c0_365] : memref<2x2x42x16xf32, #tpu.memory_space<vmem>>, vector<1x1x24x16xf32>
    %367 = vector.shape_cast %366 : vector<1x1x24x16xf32> to vector<24x16xf32>
    %c80_366 = arith.constant 80 : index
    %c0_367 = arith.constant 0 : index
    %368 = vector.load %arg4[%c80_366, %c0_367] : memref<144x4xbf16, #tpu.memory_space<vmem>>, vector<16x4xbf16>
    %cst_368 = arith.constant dense<0.000000e+00> : vector<24x4xf32>
    %369 = tpu.matmul %367, %368, %cst_368 {dimension_numbers = #tpu.dot_dimension_numbers<[1], [0], [0], [1], [0, 0, 1, 1], [], []>} : vector<24x16xf32>, vector<16x4xbf16>, vector<24x4xf32> -> vector<24x4xf32>
    %370 = arith.addf %365, %369 : vector<24x4xf32>
    %c0_369 = arith.constant 0 : index
    %c0_370 = arith.constant 0 : index
    %c13_371 = arith.constant 13 : index
    %c0_372 = arith.constant 0 : index
    %371 = vector.load %arg7[%c0_369, %c0_370, %c13_371, %c0_372] : memref<2x2x42x16xf32, #tpu.memory_space<vmem>>, vector<1x1x24x16xf32>
    %372 = vector.shape_cast %371 : vector<1x1x24x16xf32> to vector<24x16xf32>
    %c96_373 = arith.constant 96 : index
    %c0_374 = arith.constant 0 : index
    %373 = vector.load %arg4[%c96_373, %c0_374] : memref<144x4xbf16, #tpu.memory_space<vmem>>, vector<16x4xbf16>
    %cst_375 = arith.constant dense<0.000000e+00> : vector<24x4xf32>
    %374 = tpu.matmul %372, %373, %cst_375 {dimension_numbers = #tpu.dot_dimension_numbers<[1], [0], [0], [1], [0, 0, 1, 1], [], []>} : vector<24x16xf32>, vector<16x4xbf16>, vector<24x4xf32> -> vector<24x4xf32>
    %375 = arith.addf %370, %374 : vector<24x4xf32>
    %c0_376 = arith.constant 0 : index
    %c1_377 = arith.constant 1 : index
    %c13_378 = arith.constant 13 : index
    %c0_379 = arith.constant 0 : index
    %376 = vector.load %arg7[%c0_376, %c1_377, %c13_378, %c0_379] : memref<2x2x42x16xf32, #tpu.memory_space<vmem>>, vector<1x1x24x16xf32>
    %377 = vector.shape_cast %376 : vector<1x1x24x16xf32> to vector<24x16xf32>
    %c112_380 = arith.constant 112 : index
    %c0_381 = arith.constant 0 : index
    %378 = vector.load %arg4[%c112_380, %c0_381] : memref<144x4xbf16, #tpu.memory_space<vmem>>, vector<16x4xbf16>
    %cst_382 = arith.constant dense<0.000000e+00> : vector<24x4xf32>
    %379 = tpu.matmul %377, %378, %cst_382 {dimension_numbers = #tpu.dot_dimension_numbers<[1], [0], [0], [1], [0, 0, 1, 1], [], []>} : vector<24x16xf32>, vector<16x4xbf16>, vector<24x4xf32> -> vector<24x4xf32>
    %380 = arith.addf %375, %379 : vector<24x4xf32>
    %c0_383 = arith.constant 0 : index
    %c0_384 = arith.constant 0 : index
    %c14_385 = arith.constant 14 : index
    %c0_386 = arith.constant 0 : index
    %381 = vector.load %arg7[%c0_383, %c0_384, %c14_385, %c0_386] : memref<2x2x42x16xf32, #tpu.memory_space<vmem>>, vector<1x1x24x16xf32>
    %382 = vector.shape_cast %381 : vector<1x1x24x16xf32> to vector<24x16xf32>
    %c128_387 = arith.constant 128 : index
    %c0_388 = arith.constant 0 : index
    %383 = vector.load %arg4[%c128_387, %c0_388] : memref<144x4xbf16, #tpu.memory_space<vmem>>, vector<16x4xbf16>
    %cst_389 = arith.constant dense<0.000000e+00> : vector<24x4xf32>
    %384 = tpu.matmul %382, %383, %cst_389 {dimension_numbers = #tpu.dot_dimension_numbers<[1], [0], [0], [1], [0, 0, 1, 1], [], []>} : vector<24x16xf32>, vector<16x4xbf16>, vector<24x4xf32> -> vector<24x4xf32>
    %385 = arith.addf %380, %384 : vector<24x4xf32>
    %386 = vector.broadcast %150 : vector<1x4xf32> to vector<24x4xf32>
    %387 = arith.addf %385, %386 : vector<24x4xf32>
    %388 = math.absf %387 : vector<24x4xf32>
    %cst_390 = arith.constant 0.000000e+00 : f32
    %389 = vector.broadcast %cst_390 : f32 to vector<24x4xf32>
    %390 = arith.subf %389, %388 : vector<24x4xf32>
    %391 = math.exp %390 : vector<24x4xf32>
    %cst_391 = arith.constant 1.000000e+00 : f32
    %392 = vector.broadcast %cst_391 : f32 to vector<24x4xf32>
    %393 = arith.addf %392, %391 : vector<24x4xf32>
    %cst_392 = arith.constant 1.000000e+00 : f32
    %394 = vector.broadcast %cst_392 : f32 to vector<24x4xf32>
    %395 = arith.divf %394, %393 : vector<24x4xf32>
    %cst_393 = arith.constant 0.000000e+00 : f32
    %396 = vector.broadcast %cst_393 : f32 to vector<24x4xf32>
    %397 = arith.cmpf oge, %387, %396 : vector<24x4xf32>
    %398 = arith.mulf %391, %395 : vector<24x4xf32>
    %399 = arith.select %397, %395, %398 : vector<24x4xi1>, vector<24x4xf32>
    %c0_394 = arith.constant 0 : index
    %c1_395 = arith.constant 1 : index
    %c1_396 = arith.constant 1 : index
    %c0_397 = arith.constant 0 : index
    %c0_398 = arith.constant 0 : index
    %400 = vector.load %arg6[%c0_394, %c1_395, %c1_396, %c0_397, %c0_398] : memref<1x2x2x24x4xf32, #tpu.memory_space<vmem>>, vector<1x1x1x24x4xf32>
    %401 = vector.shape_cast %400 : vector<1x1x1x24x4xf32> to vector<24x4xf32>
    %402 = vector.shape_cast %399 : vector<24x4xf32> to vector<1x1x1x24x4xf32>
    tpu.vector_store %arg6[%c0_394, %c1_395, %c1_396, %c0_397, %c0_398], %402 {strides = array<i32>} : memref<1x2x2x24x4xf32, #tpu.memory_space<vmem>>, vector<1x1x1x24x4xf32>,
    return
  }
  func.func @transform_0(%arg0: i32) -> (i32, i32, i32) {
    %c0_i32 = arith.constant 0 : i32
    %c0_i32_0 = arith.constant 0 : i32
    %c0_i32_1 = arith.constant 0 : i32
    return %arg0, %c0_i32, %c0_i32_0 : i32, i32, i32
  }
  func.func @transform_1(%arg0: i32) -> (i32, i32) {
    %c0_i32 = arith.constant 0 : i32
    %c0_i32_0 = arith.constant 0 : i32
    %c0_i32_1 = arith.constant 0 : i32
    return %c0_i32, %c0_i32_0 : i32, i32
  }
  func.func @transform_2(%arg0: i32) -> (i32, i32) {
    %c0_i32 = arith.constant 0 : i32
    %c0_i32_0 = arith.constant 0 : i32
    %c0_i32_1 = arith.constant 0 : i32
    return %c0_i32, %c0_i32_0 : i32, i32
  }
  func.func @transform_3(%arg0: i32) -> (i32, i32) {
    %c0_i32 = arith.constant 0 : i32
    %c0_i32_0 = arith.constant 0 : i32
    %c0_i32_1 = arith.constant 0 : i32
    return %c0_i32, %c0_i32_0 : i32, i32
  }
  func.func @transform_4(%arg0: i32) -> (i32, i32) {
    %c0_i32 = arith.constant 0 : i32
    %c0_i32_0 = arith.constant 0 : i32
    %c0_i32_1 = arith.constant 0 : i32
    return %c0_i32, %c0_i32_0 : i32, i32
  }
  func.func @transform_5(%arg0: i32) -> (i32, i32, i32, i32, i32) {
    %c0_i32 = arith.constant 0 : i32
    %c0_i32_0 = arith.constant 0 : i32
    %c0_i32_1 = arith.constant 0 : i32
    %c0_i32_2 = arith.constant 0 : i32
    %c0_i32_3 = arith.constant 0 : i32
    return %arg0, %c0_i32, %c0_i32_0, %c0_i32_1, %c0_i32_2 : i32, i32, i32, i32, i32
  }
}

</mosaic_0001>

<bundles_post_ra>
// kernel: vae_forward.4
= control target key start
LH: loop header
LB: loop body
LE: loop exit
PB: predicated region body
PF: predicated region fallthrough
CT: control target
= control target key end

     0   :  { %14 = vsyncpa [#allocation3], 0  ;;  %s2821_s0 = inlined_call_operand.hbm [shape: bf16[2,768], index: 0, kind: input, shape index: {}]   ;;  %s2822_s1 = inlined_call_operand.hbm [shape: bf16[768,256], index: 1, kind: input, shape index: {}]   ;;  %s2823_s2 = inlined_call_operand.hbm [shape: f32[1,256], index: 2, kind: input, shape index: {}]   ;;  %s2824_s3 = inlined_call_operand.hbm [shape: f32[2,128], index: 3, kind: input, shape index: {}]   ;;  %s2825_s4 = inlined_call_operand.hbm [shape: bf16[128,1344], index: 4, kind: input, shape index: {}]   ;;  %s2826_s5 = inlined_call_operand.hbm [shape: f32[1,1344], index: 5, kind: input, shape index: {}]   ;;  %s2827_s6 = inlined_call_operand.hbm [shape: f32[2,128], index: 6, kind: output, shape index: {0}]   ;;  %s2828_s7 = inlined_call_operand.hbm [shape: f32[2,128], index: 7, kind: output, shape index: {1}]   ;;  %s2829_s8 = inlined_call_operand.hbm [shape: f32[2,1344], index: 8, kind: output, shape index: {2}]  }
   0x1   :  { %15 = vsyncpa [#allocation6], 0 }
   0x2   :  { %16 = vsyncpa [#allocation9], 0 }
   0x3   :  { %17 = vsyncpa [#allocation12], 0 }
   0x4   :  { %18 = vsyncpa [#allocation4], 0 }
   0x5   :  { %19 = vsyncpa [#allocation15], 0  ;;  %s2569_s27 = smov [#allocation5]   ;;  %s2359_s9 = scalar_lea.hbm %s2822_s1, 12288 }
   0x6   :  { %s35_s28 = sshll.u32 %s2569_s27, 4  ;;  %p2360_p0 = scmp.ne.s32.totalorder %s2822_s1, %s2359_s9  ;;  %s36_s28 = int_to_ptr.vmem [resolvable:$true] %s35_s28 }
   0x7   :  { %p2363_p1 = scmp.lt.u32.totalorder %s2359_s9, %s2822_s1 }
   0x9   :  { %p2365_p2 = pnand %p2363_p1, %p2360_p0 }
   0xb   :  { %2368 = shalt.err (!%p2365_p2)
}
   0xc   :  { %s2369_s14 = scalar_lea.vmem %s36_s28, 12288  ;;  %p2374_p4 = scmp.lt.s32.totalorder %s36_s28, %s36_s28 }
   0xd   :  { %p2370_p3 = scmp.ne.s32.totalorder %s36_s28, %s2369_s14  ;;  %p2375_p5 = scmp.lt.s32.totalorder %s2369_s14, %s2369_s14 }
   0xf   :  { %p2376_p6 = por %p2375_p5, %p2374_p4 }
  0x11   :  { %p2377_p7 = pnand %p2376_p6, %p2370_p3 }
  0x13   :  { %2380 = shalt.err (!%p2377_p7)
}
  0x14   :  { %s2570_s15 = smov 128   ;;  %s2571_s16 = smov 8  }
  0x15   :  { %41 = dma.hbm_to_vmem [thread:$0]  %s2822_s1, 12288, %s36_s28, [#allocation6], %s2570_s15, %s2570_s15, %s2571_s16  }
  0x16   :  { %s2572_s19 = smov [#allocation8]   ;;  %s2573_s21 = smov [#allocation2]  }
  0x17   :  { %s58_s20 = sshll.u32 %s2572_s19, 4  ;;  %s26_s22 = sshll.u32 %s2573_s21, 4  ;;  %s59_s20 = int_to_ptr.vmem [resolvable:$true] %s58_s20  ;;  %s27_s22 = int_to_ptr.vmem [resolvable:$true] %s26_s22 }
  0x18   :  { %s2381_s25 = scalar_lea.hbm %s2824_s3, 32 }
  0x19   :  { %p2382_p8 = scmp.ne.s32.totalorder %s2824_s3, %s2381_s25  ;;  %p2385_p9 = scmp.lt.u32.totalorder %s2381_s25, %s2824_s3 }
  0x1b   :  { %p2387_p10 = pnand %p2385_p9, %p2382_p8 }
  0x1d   :  { %2390 = shalt.err (!%p2387_p10)
}
  0x1e   :  { %s2391_s1 = scalar_lea.vmem %s59_s20, 32  ;;  %p2396_p12 = scmp.lt.s32.totalorder %s59_s20, %s59_s20 }
  0x1f   :  { %p2392_p11 = scmp.ne.s32.totalorder %s59_s20, %s2391_s1  ;;  %p2397_p13 = scmp.lt.s32.totalorder %s2391_s1, %s2391_s1 }
  0x21   :  { %p2398_p0 = por %p2397_p13, %p2396_p12 }
  0x23   :  { %p2399_p1 = pnand %p2398_p0, %p2392_p11 }
  0x25   :  { %2402 = shalt.err (!%p2399_p1)
}
  0x26   :  { %61 = dma.hbm_to_vmem [thread:$0]  %s2824_s3, 32, %s59_s20, [#allocation9]  }
  0x27   :  { %s2403_s12 = scalar_lea.hbm %s2821_s0, 96 }
  0x28   :  { %p2404_p2 = scmp.ne.s32.totalorder %s2821_s0, %s2403_s12  ;;  %p2407_p3 = scmp.lt.u32.totalorder %s2403_s12, %s2821_s0 }
  0x2a   :  { %p2409_p4 = pnand %p2407_p3, %p2404_p2 }
  0x2c   :  { %2412 = shalt.err (!%p2409_p4)
}
  0x2d   :  { %s2413_s17 = scalar_lea.vmem %s27_s22, 96  ;;  %p2418_p6 = scmp.lt.s32.totalorder %s27_s22, %s27_s22 }
  0x2e   :  { %p2414_p5 = scmp.ne.s32.totalorder %s27_s22, %s2413_s17  ;;  %p2419_p7 = scmp.lt.s32.totalorder %s2413_s17, %s2413_s17 }
  0x30   :  { %p2420_p8 = por %p2419_p7, %p2418_p6 }
  0x32   :  { %p2421_p9 = pnand %p2420_p8, %p2414_p5 }
  0x34   :  { %2424 = shalt.err (!%p2421_p9)
}
  0x35   :  { %29 = dma.hbm_to_vmem [thread:$0]  %s2821_s0, 96, %s27_s22, [#allocation3]  }
  0x36   :  { %s2574_s19 = smov [#allocation7]   ;;  %s2575_s21 = smov [#allocation10]  }
  0x37   :  { %s48_s20 = sshll.u32 %s2574_s19, 4  ;;  %s67_s23 = sshll.u32 %s2575_s21, 4  ;;  %s49_s20 = int_to_ptr.vmem [resolvable:$true] %s48_s20  ;;  %s68_s23 = int_to_ptr.vmem [resolvable:$true] %s67_s23 }
  0x38   :  { %s2425_s26 = scalar_lea.hbm %s2823_s2, 32 }
  0x39   :  { %p2426_p10 = scmp.ne.s32.totalorder %s2823_s2, %s2425_s26  ;;  %p2429_p11 = scmp.lt.u32.totalorder %s2425_s26, %s2823_s2 }
  0x3b   :  { %p2431_p12 = pnand %p2429_p11, %p2426_p10 }
  0x3d   :  { %2434 = shalt.err (!%p2431_p12)
}
  0x3e   :  { %s2435_s0 = scalar_lea.vmem %s49_s20, 32  ;;  %p2440_p0 = scmp.lt.s32.totalorder %s49_s20, %s49_s20 }
  0x3f   :  { %p2436_p13 = scmp.ne.s32.totalorder %s49_s20, %s2435_s0  ;;  %p2441_p1 = scmp.lt.s32.totalorder %s2435_s0, %s2435_s0 }
  0x41   :  { %p2442_p2 = por %p2441_p1, %p2440_p0 }
  0x43   :  { %p2443_p3 = pnand %p2442_p2, %p2436_p13 }
  0x45   :  { %2446 = shalt.err (!%p2443_p3)
}
  0x46   :  { %51 = dma.hbm_to_vmem [thread:$0]  %s2823_s2, 32, %s49_s20, [#allocation6]  }
  0x47   :  { %s2447_s11 = scalar_lea.hbm %s2825_s4, 11264 }
  0x48   :  { %p2448_p4 = scmp.ne.s32.totalorder %s2825_s4, %s2447_s11  ;;  %p2451_p5 = scmp.lt.u32.totalorder %s2447_s11, %s2825_s4 }
  0x4a   :  { %p2453_p6 = pnand %p2451_p5, %p2448_p4 }
  0x4c   :  { %2456 = shalt.err (!%p2453_p6)
}
  0x4d   :  { %s2457_s16 = scalar_lea.vmem %s68_s23, 11264  ;;  %p2462_p8 = scmp.lt.s32.totalorder %s68_s23, %s68_s23 }
  0x4e   :  { %p2458_p7 = scmp.ne.s32.totalorder %s68_s23, %s2457_s16  ;;  %p2463_p9 = scmp.lt.s32.totalorder %s2457_s16, %s2457_s16 }
  0x50   :  { %p2464_p10 = por %p2463_p9, %p2462_p8 }
  0x52   :  { %p2465_p11 = pnand %p2464_p10, %p2458_p7 }
  0x54   :  { %2468 = shalt.err (!%p2465_p11)
}
  0x55   :  { %s2576_s2 = smov 704   ;;  %s2577_s17 = smov 44  }
  0x56   :  { %73 = dma.hbm_to_vmem [thread:$0]  %s2825_s4, 11264, %s68_s23, [#allocation9], %s2576_s2, %s2576_s2, %s2577_s17  }
  0x57   :  { %s2578_s19 = smov [#allocation11]   ;;  %s2469_s25 = scalar_lea.hbm %s2826_s5, 176 }
  0x58   :  { %s80_s20 = sshll.u32 %s2578_s19, 4  ;;  %p2470_p12 = scmp.ne.s32.totalorder %s2826_s5, %s2469_s25  ;;  %s81_s20 = int_to_ptr.vmem [resolvable:$true] %s80_s20 }
  0x59   :  { %p2473_p13 = scmp.lt.u32.totalorder %s2469_s25, %s2826_s5 }
  0x5b   :  { %p2475_p0 = pnand %p2473_p13, %p2470_p12 }
  0x5d   :  { %2478 = shalt.err (!%p2475_p0)
}
  0x5e   :  { %s2479_s1 = scalar_lea.vmem %s81_s20, 176  ;;  %s2483_s4 = scalar_lea.vmem %s81_s20, 192 }
  0x5f   :  { %p2480_p1 = scmp.ne.s32.totalorder %s81_s20, %s2479_s1  ;;  %p2484_p2 = scmp.lt.s32.totalorder %s81_s20, %s81_s20 }
  0x60   :  { %p2485_p3 = scmp.lt.s32.totalorder %s2483_s4, %s2479_s1 }
  0x62   :  { %p2486_p4 = por %p2485_p3, %p2484_p2 }
  0x64   :  { %p2487_p5 = pnand %p2486_p4, %p2480_p1 }
  0x66   :  { %2490 = shalt.err (!%p2487_p5)
}
  0x67   :  { %83 = dma.hbm_to_vmem [thread:$0]  %s2826_s5, 176, %s81_s20, [#allocation12]  }
  0x68   :  { %2557 = dma.done.wait [#allocation3], 96  }
  0x69   :  { %2558 = vsyncadd [#allocation3], 4294967200 }
  0x6a   :  { %2559 = dma.done.wait [#allocation6], 12320  }
  0x6b   :  { %2560 = vsyncadd [#allocation6], 4294954976 }
  0x6c   :  { %2561 = dma.done.wait [#allocation9], 11296  }
  0x6d   :  { %2562 = vsyncadd [#allocation9], 4294956000 }
  0x6e   :  { %2563 = dma.done.wait [#allocation12], 176  }
  0x6f   :  { %2564 = vsyncadd [#allocation12], 4294967120  ;;  %v2084_v0 = vld [vmem:[#allocation5 + $0x4] ss:$8 sps:$4 sm:$0xff]   ;;  %v2086_v1 = vld [vmem:[#allocation5] ss:$8 sps:$4 sm:$0xff]   ;;  %v202_v7 = vlaneseq }
  0x70   :  { %746 = vmatprep.subr.bf16.mxu0 %v2084_v0  ;;  %v2087_v2 = vld [vmem:[#allocation5 + $0x14] ss:$8 sps:$4 sm:$0xff]   ;;  %v2089_v3 = vld [vmem:[#allocation5 + $0x10] ss:$8 sps:$4 sm:$0xff]   ;;  %v2090_v4 = vld [vmem:[#allocation5 + $0x24] ss:$8 sps:$4 sm:$0xff]  }
  0x71   :  { %747 = vmatpush1.bf16.msra.mxu0 %v2086_v1  ;;  %v2092_v5 = vld [vmem:[#allocation5 + $0x20] ss:$8 sps:$4 sm:$0xff]   ;;  %v2093_v6 = vld [vmem:[#allocation5 + $0x34] ss:$8 sps:$4 sm:$0xff]   ;;  %v2579_v8 = vmov 1966171168  }
  0x72   :  { %748 = vmatprep.subr.bf16.mxu0 %v2087_v2  ;;  %v215_v9 = vunpack.c.l.s4 %v2579_v8  ;;  %v2095_v10 = vld [vmem:[#allocation5 + $0x30] ss:$8 sps:$4 sm:$0xff]   ;;  %v2096_v11 = vld [vmem:[#allocation5 + $0x44] ss:$8 sps:$4 sm:$0xff]   ;;  %v2704_v12 = vshrl.u32 %v202_v7, 7  ;;  %vm2582_vm0 = vmmov 0  }
  0x73   :  { %v2098_v14 = vld [vmem:[#allocation5 + $0x40] ss:$8 sps:$4 sm:$0xff]   ;;  %v2099_v15 = vld [vmem:[#allocation5 + $0x54] ss:$8 sps:$4 sm:$0xff]   ;;  %v2101_v17 = vld [vmem:[#allocation5 + $0x50] ss:$8 sps:$4 sm:$0xff]  }
  0x74   :  { %v216_v13 = vunpack.c.0.s8 %v215_v9  ;;  %v2102_v18 = vld [vmem:[#allocation5 + $0x64] ss:$8 sps:$4 sm:$0xff]   ;;  %v103_v19 = vld [vmem:[#allocation2] sm:$0x3f]  ;;  %v2104_v21 = vld [vmem:[#allocation5 + $0x60] ss:$8 sps:$4 sm:$0xff]  }
  0x75   :  { %749 = vmatpush1.bf16.msra.mxu0 %v2089_v3  ;;  %v2105_v22 = vld [vmem:[#allocation5 + $0x74] ss:$8 sps:$4 sm:$0xff]   ;;  %v2107_v25 = vld [vmem:[#allocation5 + $0x70] ss:$8 sps:$4 sm:$0xff]   ;;  %v2108_v26 = vld [vmem:[#allocation5 + $0x84] ss:$8 sps:$4 sm:$0xff]   ;;  %v213_v40 = vcombine.high %v103_v19, %v103_v19 }
  0x76   :  { %750 = vmatprep.subr.bf16.mxu0 %v2090_v4  ;;  %v2707_v16 = vsub.s32 %v216_v13, %v2704_v12  ;;  %v2110_v27 = vld [vmem:[#allocation5 + $0x80] ss:$8 sps:$4 sm:$0xff]   ;;  %v2111_v28 = vld [vmem:[#allocation5 + $0x94] ss:$8 sps:$4 sm:$0xff]   ;;  %v2113_v29 = vld [vmem:[#allocation5 + $0x90] ss:$8 sps:$4 sm:$0xff]  }
  0x77   :  { %v2114_v30 = vld [vmem:[#allocation5 + $0xa4] ss:$8 sps:$4 sm:$0xff]   ;;  %v2116_v31 = vld [vmem:[#allocation5 + $0xa0] ss:$8 sps:$4 sm:$0xff]   ;;  %v2117_v32 = vld [vmem:[#allocation5 + $0xb4] ss:$8 sps:$4 sm:$0xff]  }
  0x78   :  { %v220_v20 = vrot.slane %v103_v19, %v2707_v16  ;;  %v2119_v33 = vld [vmem:[#allocation5 + $0xb0] ss:$8 sps:$4 sm:$0xff]   ;;  %v2120_v34 = vld [vmem:[#allocation5 + $0xc4] ss:$8 sps:$4 sm:$0xff]   ;;  %v2122_v35 = vld [vmem:[#allocation5 + $0xc0] ss:$8 sps:$4 sm:$0xff]   ;;  %v2712_v43 = vrot.slane %v213_v40, %v2707_v16 }
  0x79   :  { %751 = vmatpush1.bf16.msra.mxu0 %v2092_v5  ;;  %v2123_v36 = vld [vmem:[#allocation5 + $0xd4] ss:$8 sps:$4 sm:$0xff]   ;;  %v2125_v37 = vld [vmem:[#allocation5 + $0xd0] ss:$8 sps:$4 sm:$0xff]   ;;  %v2126_v38 = vld [vmem:[#allocation5 + $0xe4] ss:$8 sps:$4 sm:$0xff]  }
  0x7a   :  { %752 = vmatprep.subr.bf16.mxu0 %v2093_v6  ;;  %v228_v23 = vcombine.high %v220_v20, %v220_v20  ;;  %v2128_v39 = vld [vmem:[#allocation5 + $0xe0] ss:$8 sps:$4 sm:$0xff]   ;;  %v2129_v41 = vld [vmem:[#allocation5 + $0xf4] ss:$8 sps:$4 sm:$0xff]   ;;  %v2131_v42 = vld [vmem:[#allocation5 + $0xf0] ss:$8 sps:$4 sm:$0xff]   ;;  %v229_v45 = vcombine.high %v2712_v43, %v2712_v43  ;;  %v2717_v46 = vrot.slane %v220_v20, %v2707_v16  ;;  %v243_v50 = vrot.slane %v2712_v43, %v2707_v16 }
  0x7b   :  { %v2135_v44 = vld [vmem:[#allocation5 + $0x104] ss:$8 sps:$4 sm:$0xff]   ;;  %v2133_v48 = vld [vmem:[#allocation5 + $0x100] ss:$8 sps:$4 sm:$0xff]   ;;  %v2138_v51 = vld [vmem:[#allocation5 + $0x114] ss:$8 sps:$4 sm:$0xff]  }
  0x7c   :  { %v250_v24 = vrot.slane %v228_v23, %v2707_v16  ;;  %v2720_v49 = vrot.slane %v229_v45, %v2707_v16  ;;  %v2136_v52 = vld [vmem:[#allocation5 + $0x110] ss:$8 sps:$4 sm:$0xff]   ;;  %v2229_v53 = vld [vmem:[#allocation10 + $0x4] ss:$44 sps:$4 sm:$0xff]   ;;  %v2232_v55 = vld [vmem:[#allocation10 + $0x5c] ss:$44 sps:$4 sm:$0xff]  }
  0x7d   :  { %753 = vmatpush1.bf16.msra.mxu0 %v2095_v10  ;;  %v2231_v54 = vld [vmem:[#allocation10] ss:$44 sps:$4 sm:$0xff]   ;;  %v2234_v57 = vld [vmem:[#allocation10 + $0x58] ss:$44 sps:$4 sm:$0xff]   ;;  %1481 = vmatprep.subr.bf16.mxu1 %v2229_v53  ;;  %v2252_v43 = vld [vmem:[#allocation10 + $0x268] ss:$44 sps:$4 sm:$0xff]  }
  0x7e   :  { %754 = vmatprep.subr.bf16.mxu0 %v2096_v11  ;;  %778 = vmatprep.mubr.bf16.mxu0 %v250_v24  ;;  %v259_v47 = vcombine.high %v250_v24, %v250_v24  ;;  %v2141_v56 = vld [vmem:[#allocation5 + $0x124] ss:$8 sps:$4 sm:$0xff]   ;;  %v2139_v58 = vld [vmem:[#allocation5 + $0x120] ss:$8 sps:$4 sm:$0xff]   ;;  %v2144_v59 = vld [vmem:[#allocation5 + $0x134] ss:$8 sps:$4 sm:$0xff]   ;;  %v258_v24 = vcombine.high %v2717_v46, %v2717_v46 }
  0x7f   :  { %1482 = vmatpush1.bf16.msra.mxu1 %v2231_v54  ;;  %v2142_v60 = vld [vmem:[#allocation5 + $0x130] ss:$8 sps:$4 sm:$0xff]   ;;  %v2147_v61 = vld [vmem:[#allocation5 + $0x144] ss:$8 sps:$4 sm:$0xff]   ;;  %v2145_v62 = vld [vmem:[#allocation5 + $0x140] ss:$8 sps:$4 sm:$0xff]  }
  0x80   :  { %1483 = vmatprep.subr.bf16.mxu1 %v2232_v55  ;;  %v2150_v63 = vld [vmem:[#allocation5 + $0x154] ss:$8 sps:$4 sm:$0xff]   ;;  %v2148_v0 = vld [vmem:[#allocation5 + $0x150] ss:$8 sps:$4 sm:$0xff]   ;;  %v2153_v1 = vld [vmem:[#allocation5 + $0x164] ss:$8 sps:$4 sm:$0xff]  }
  0x81   :  { %755 = vmatpush1.bf16.msra.mxu0 %v2098_v14  ;;  %v2151_v2 = vld [vmem:[#allocation5 + $0x160] ss:$8 sps:$4 sm:$0xff]   ;;  %v2156_v3 = vld [vmem:[#allocation5 + $0x174] ss:$8 sps:$4 sm:$0xff]   ;;  %v2154_v4 = vld [vmem:[#allocation5 + $0x170] ss:$8 sps:$4 sm:$0xff]  }
  0x82   :  { %756 = vmatprep.subr.bf16.mxu0 %v2099_v15  ;;  %v2159_v5 = vld [vmem:[#allocation5 + $0x184] ss:$8 sps:$4 sm:$0xff]   ;;  %v2157_v6 = vld [vmem:[#allocation5 + $0x180] ss:$8 sps:$4 sm:$0xff]   ;;  %v2162_v7 = vld [vmem:[#allocation5 + $0x194] ss:$8 sps:$4 sm:$0xff]  }
  0x83   :  { %1484 = vmatpush1.bf16.msra.mxu1 %v2234_v57  ;;  %v2160_v8 = vld [vmem:[#allocation5 + $0x190] ss:$8 sps:$4 sm:$0xff]   ;;  %v2165_v9 = vld [vmem:[#allocation5 + $0x1a4] ss:$8 sps:$4 sm:$0xff]   ;;  %v2163_v10 = vld [vmem:[#allocation5 + $0x1a0] ss:$8 sps:$4 sm:$0xff]  }
  0x84   :  { %v2168_v11 = vld [vmem:[#allocation5 + $0x1b4] ss:$8 sps:$4 sm:$0xff]   ;;  %v2166_v13 = vld [vmem:[#allocation5 + $0x1b0] ss:$8 sps:$4 sm:$0xff]   ;;  %v2171_v14 = vld [vmem:[#allocation5 + $0x1c4] ss:$8 sps:$4 sm:$0xff]  }
  0x85   :  { %757 = vmatpush1.bf16.msra.mxu0 %v2101_v17  ;;  %v2169_v15 = vld [vmem:[#allocation5 + $0x1c0] ss:$8 sps:$4 sm:$0xff]   ;;  %v2174_v17 = vld [vmem:[#allocation5 + $0x1d4] ss:$8 sps:$4 sm:$0xff]   ;;  %v2177_v19 = vld [vmem:[#allocation5 + $0x1e4] ss:$8 sps:$4 sm:$0xff]  }
  0x86   :  { %758 = vmatprep.subr.bf16.mxu0 %v2102_v18  ;;  %v2172_v18 = vld [vmem:[#allocation5 + $0x1d0] ss:$8 sps:$4 sm:$0xff]   ;;  %v2175_v20 = vld [vmem:[#allocation5 + $0x1e0] ss:$8 sps:$4 sm:$0xff]   ;;  %v2183_v23 = vld [vmem:[#allocation5 + $0x204] ss:$8 sps:$4 sm:$0xff]  }
  0x87   :  { %v2207_v40 = vld [vmem:[#allocation5 + $0x284] ss:$8 sps:$4 sm:$0xff]   ;;  %v2220_v53 = vld [vmem:[#allocation5 + $0x2d0] ss:$8 sps:$4 sm:$0xff]   ;;  %v2223_v55 = vld [vmem:[#allocation5 + $0x2e0] ss:$8 sps:$4 sm:$0xff]  }
  0x88   :  { %v2213_v45 = vld [vmem:[#allocation5 + $0x2a4] ss:$8 sps:$4 sm:$0xff]   ;;  %v2226_v57 = vld [vmem:[#allocation5 + $0x2f0] ss:$8 sps:$4 sm:$0xff]   ;;  %s2584_s5 = smov [#allocation14]   ;;  %s2585_s28 = smov [#allocation13]  }
  0x89   :  { %759 = vmatpush1.bf16.msra.mxu0 %v2104_v21  ;;  %v2180_v21 = vld [vmem:[#allocation5 + $0x1f4] ss:$8 sps:$4 sm:$0xff]   ;;  %v2225_v54 = vld [vmem:[#allocation5 + $0x2e4] ss:$8 sps:$4 sm:$0xff]   ;;  %s1814_s22 = sshll.u32 %s2584_s5, 4  ;;  %s1804_s9 = sshll.u32 %s2585_s28, 4  ;;  %s1815_s22 = int_to_ptr.vmem [resolvable:$true] %s1814_s22  ;;  %s1805_s9 = int_to_ptr.vmem [resolvable:$true] %s1804_s9 }
  0x8a   :  { %760 = vmatprep.subr.bf16.mxu0 %v2105_v22  ;;  %v2178_v22 = vld [vmem:[#allocation5 + $0x1f0] ss:$8 sps:$4 sm:$0xff]   ;;  %s2491_s10 = scalar_lea.vmem %s1815_s22, 32  ;;  %p2496_p7 = scmp.lt.s32.totalorder %s1815_s22, %s1815_s22 }
  0x8b   :  { %v2250_v16 = vld [vmem:[#allocation10 + $0x26c] ss:$44 sps:$4 sm:$0xff]   ;;  %p2492_p6 = scmp.ne.s32.totalorder %s1815_s22, %s2491_s10  ;;  %p2497_p8 = scmp.lt.s32.totalorder %s2491_s10, %s2491_s10 }
  0x8d   :  { %761 = vmatpush1.bf16.msra.mxu0 %v2107_v25  ;;  %v2181_v25 = vld [vmem:[#allocation5 + $0x200] ss:$8 sps:$4 sm:$0xff]   ;;  %p2498_p9 = por %p2497_p8, %p2496_p7 }
  0x8e   :  { %762 = vmatprep.subr.bf16.mxu0 %v2108_v26  ;;  %v2186_v26 = vld [vmem:[#allocation5 + $0x214] ss:$8 sps:$4 sm:$0xff]  }
  0x8f   :  { %p2499_p10 = pnand %p2498_p9, %p2492_p6 }
  0x91   :  { %763 = vmatpush1.bf16.msra.mxu0 %v2110_v27  ;;  %v2184_v27 = vld [vmem:[#allocation5 + $0x210] ss:$8 sps:$4 sm:$0xff]  }
  0x92   :  { %764 = vmatprep.subr.bf16.mxu0 %v2111_v28  ;;  %v2189_v28 = vld [vmem:[#allocation5 + $0x224] ss:$8 sps:$4 sm:$0xff]  }
  0x95   :  { %765 = vmatpush1.bf16.msra.mxu0 %v2113_v29  ;;  %v2187_v29 = vld [vmem:[#allocation5 + $0x220] ss:$8 sps:$4 sm:$0xff]  }
  0x96   :  { %766 = vmatprep.subr.bf16.mxu0 %v2114_v30  ;;  %v2192_v30 = vld [vmem:[#allocation5 + $0x234] ss:$8 sps:$4 sm:$0xff]  }
  0x99   :  { %767 = vmatpush1.bf16.msra.mxu0 %v2116_v31  ;;  %v2190_v31 = vld [vmem:[#allocation5 + $0x230] ss:$8 sps:$4 sm:$0xff]  }
  0x9a   :  { %768 = vmatprep.subr.bf16.mxu0 %v2117_v32  ;;  %v2195_v32 = vld [vmem:[#allocation5 + $0x244] ss:$8 sps:$4 sm:$0xff]  }
  0x9d   :  { %769 = vmatpush1.bf16.msra.mxu0 %v2119_v33  ;;  %v2193_v33 = vld [vmem:[#allocation5 + $0x240] ss:$8 sps:$4 sm:$0xff]  }
  0x9e   :  { %770 = vmatprep.subr.bf16.mxu0 %v2120_v34  ;;  %v2198_v34 = vld [vmem:[#allocation5 + $0x254] ss:$8 sps:$4 sm:$0xff]  }
  0xa1   :  { %771 = vmatpush1.bf16.msra.mxu0 %v2122_v35  ;;  %v2196_v35 = vld [vmem:[#allocation5 + $0x250] ss:$8 sps:$4 sm:$0xff]  }
  0xa2   :  { %772 = vmatprep.subr.bf16.mxu0 %v2123_v36  ;;  %v2201_v36 = vld [vmem:[#allocation5 + $0x264] ss:$8 sps:$4 sm:$0xff]  }
  0xa5   :  { %773 = vmatpush1.bf16.msra.mxu0 %v2125_v37  ;;  %v2199_v37 = vld [vmem:[#allocation5 + $0x260] ss:$8 sps:$4 sm:$0xff]  }
  0xa6   :  { %774 = vmatprep.subr.bf16.mxu0 %v2126_v38  ;;  %v2204_v38 = vld [vmem:[#allocation5 + $0x274] ss:$8 sps:$4 sm:$0xff]  }
  0xa9   :  { %775 = vmatpush1.bf16.msra.mxu0 %v2128_v39  ;;  %v2202_v39 = vld [vmem:[#allocation5 + $0x270] ss:$8 sps:$4 sm:$0xff]  }
  0xaa   :  { %776 = vmatprep.subr.bf16.mxu0 %v2129_v41  ;;  %v2205_v41 = vld [vmem:[#allocation5 + $0x280] ss:$8 sps:$4 sm:$0xff]  }
  0xad   :  { %777 = vmatpush1.bf16.msra.mxu0 %v2131_v42  ;;  %v2210_v42 = vld [vmem:[#allocation5 + $0x294] ss:$8 sps:$4 sm:$0xff]  }
  0xae   :  { %787 = vmatprep.subr.bf16.mxu0 %v2135_v44  ;;  %v2208_v44 = vld [vmem:[#allocation5 + $0x290] ss:$8 sps:$4 sm:$0xff]  }
  0xb0   :  { %779 = vmatmul.mubr.bf16.vlgmr.msra.gmra.mrb[0].mxu0 %v2717_v46  ;;  %v2211_v46 = vld [vmem:[#allocation5 + $0x2a0] ss:$8 sps:$4 sm:$0xff]  }
  0xb1   :  { %788 = vmatpush1.bf16.msra.mxu0 %v2133_v48  ;;  %819 = vmatprep.mubr.bf16.mxu0 %v259_v47  ;;  %v2216_v47 = vld [vmem:[#allocation5 + $0x2b4] ss:$8 sps:$4 sm:$0xff]   ;;  %v2214_v48 = vld [vmem:[#allocation5 + $0x2b0] ss:$8 sps:$4 sm:$0xff]  }
  0xb2   :  { %789 = vmatprep.subr.bf16.mxu0 %v2138_v51  ;;  %v2217_v51 = vld [vmem:[#allocation5 + $0x2c0] ss:$8 sps:$4 sm:$0xff]  }
  0xb5   :  { %790 = vmatpush1.bf16.msra.mxu0 %v2136_v52  ;;  %v2222_v52 = vld [vmem:[#allocation5 + $0x2d4] ss:$8 sps:$4 sm:$0xff]  }
  0xb6   :  { %791 = vmatprep.subr.bf16.mxu0 %v2141_v56  ;;  %v2228_v56 = vld [vmem:[#allocation5 + $0x2f4] ss:$8 sps:$4 sm:$0xff]  }
  0xb9   :  { %792 = vmatpush1.bf16.msra.mxu0 %v2139_v58  ;;  %v2235_v58 = vld [vmem:[#allocation10 + $0xb4] ss:$44 sps:$4 sm:$0xff]  }
  0xba   :  { %793 = vmatprep.subr.bf16.mxu0 %v2144_v59  ;;  %v2237_v59 = vld [vmem:[#allocation10 + $0xb0] ss:$44 sps:$4 sm:$0xff]   ;;  %1485 = vmatprep.subr.bf16.mxu1 %v2235_v58 }
  0xbb   :  { %1486 = vmatpush1.bf16.msra.mxu1 %v2237_v59  ;;  %v2303_v58 = vld [vmem:[#allocation10 + $0x1c] ss:$44 sps:$4 sm:$0xff]   ;;  %v2301_v59 = vld [vmem:[#allocation10 + $0x18] ss:$44 sps:$4 sm:$0xff]  }
  0xbd   :  { %794 = vmatpush1.bf16.msra.mxu0 %v2142_v60  ;;  %v2238_v60 = vld [vmem:[#allocation10 + $0x10c] ss:$44 sps:$4 sm:$0xff]  }
  0xbe   :  { %795 = vmatprep.subr.bf16.mxu0 %v2147_v61  ;;  %v2240_v61 = vld [vmem:[#allocation10 + $0x108] ss:$44 sps:$4 sm:$0xff]   ;;  %1487 = vmatprep.subr.bf16.mxu1 %v2238_v60 }
  0xbf   :  { %1488 = vmatpush1.bf16.msra.mxu1 %v2240_v61  ;;  %v2306_v60 = vld [vmem:[#allocation10 + $0x74] ss:$44 sps:$4 sm:$0xff]   ;;  %v2304_v61 = vld [vmem:[#allocation10 + $0x70] ss:$44 sps:$4 sm:$0xff]  }
  0xc1   :  { %796 = vmatpush1.bf16.msra.mxu0 %v2145_v62  ;;  %v2241_v62 = vld [vmem:[#allocation10 + $0x164] ss:$44 sps:$4 sm:$0xff]  }
  0xc2   :  { %797 = vmatprep.subr.bf16.mxu0 %v2150_v63  ;;  %v2243_v63 = vld [vmem:[#allocation10 + $0x160] ss:$44 sps:$4 sm:$0xff]   ;;  %1489 = vmatprep.subr.bf16.mxu1 %v2241_v62 }
  0xc3   :  { %1490 = vmatpush1.bf16.msra.mxu1 %v2243_v63  ;;  %v2309_v62 = vld [vmem:[#allocation10 + $0xcc] ss:$44 sps:$4 sm:$0xff]   ;;  %v2307_v63 = vld [vmem:[#allocation10 + $0xc8] ss:$44 sps:$4 sm:$0xff]  }
  0xc5   :  { %798 = vmatpush1.bf16.msra.mxu0 %v2148_v0  ;;  %v2244_v0 = vld [vmem:[#allocation10 + $0x1bc] ss:$44 sps:$4 sm:$0xff]  }
  0xc6   :  { %799 = vmatprep.subr.bf16.mxu0 %v2153_v1  ;;  %v2246_v1 = vld [vmem:[#allocation10 + $0x1b8] ss:$44 sps:$4 sm:$0xff]   ;;  %1491 = vmatprep.subr.bf16.mxu1 %v2244_v0 }
  0xc7   :  { %1492 = vmatpush1.bf16.msra.mxu1 %v2246_v1  ;;  %v2312_v0 = vld [vmem:[#allocation10 + $0x124] ss:$44 sps:$4 sm:$0xff]   ;;  %v2310_v1 = vld [vmem:[#allocation10 + $0x120] ss:$44 sps:$4 sm:$0xff]  }
  0xc9   :  { %800 = vmatpush1.bf16.msra.mxu0 %v2151_v2  ;;  %v2247_v2 = vld [vmem:[#allocation10 + $0x214] ss:$44 sps:$4 sm:$0xff]  }
  0xca   :  { %801 = vmatprep.subr.bf16.mxu0 %v2156_v3  ;;  %v2249_v3 = vld [vmem:[#allocation10 + $0x210] ss:$44 sps:$4 sm:$0xff]   ;;  %1493 = vmatprep.subr.bf16.mxu1 %v2247_v2 }
  0xcb   :  { %1494 = vmatpush1.bf16.msra.mxu1 %v2249_v3  ;;  %v2315_v2 = vld [vmem:[#allocation10 + $0x17c] ss:$44 sps:$4 sm:$0xff]   ;;  %v2313_v3 = vld [vmem:[#allocation10 + $0x178] ss:$44 sps:$4 sm:$0xff]  }
  0xcc   :  { %1495 = vmatprep.subr.bf16.mxu1 %v2250_v16  ;;  %v2318_v16 = vld [vmem:[#allocation10 + $0x1d4] ss:$44 sps:$4 sm:$0xff]  }
  0xcd   :  { %802 = vmatpush1.bf16.msra.mxu0 %v2154_v4  ;;  %v2580_v4 = vmov 0  }
  0xce   :  { %803 = vmatprep.subr.bf16.mxu0 %v2159_v5  ;;  %1513 = vmatprep.mubr.bf16.mxu1 %v2580_v4  ;;  %v2733_v5 = vsub.s32 0, %v2704_v12 }
  0xcf   :  { %1496 = vmatpush1.bf16.msra.mxu1 %v2252_v43  ;;  %v2316_v43 = vld [vmem:[#allocation10 + $0x1d0] ss:$44 sps:$4 sm:$0xff]  }
  0xd1   :  { %804 = vmatpush1.bf16.msra.mxu0 %v2157_v6  ;;  %v200_v6 = vld [vmem:[#allocation7] sm:$0x3] }
  0xd2   :  { %805 = vmatprep.subr.bf16.mxu0 %v2162_v7  ;;  %v2736_v7 = vsub.s32 1, %v2704_v12 }
  0xd5   :  { %806 = vmatpush1.bf16.msra.mxu0 %v2160_v8  ;;  %v205_v8 = vrot.slane %v200_v6, %v2733_v5 }
  0xd6   :  { %807 = vmatprep.subr.bf16.mxu0 %v2165_v9  ;;  %v209_v9 = vrot.slane %v200_v6, %v2736_v7  ;;  %v2319_v6 = vld [vmem:[#allocation10 + $0x228] ss:$44 sps:$4 sm:$0xff]  }
  0xd9   :  { %808 = vmatpush1.bf16.msra.mxu0 %v2163_v10 }
  0xda   :  { %809 = vmatprep.subr.bf16.mxu0 %v2168_v11 }
  0xdd   :  { %810 = vmatpush1.bf16.msra.mxu0 %v2166_v13 }
  0xde   :  { %811 = vmatprep.subr.bf16.mxu0 %v2171_v14 }
  0xe1   :  { %812 = vmatpush1.bf16.msra.mxu0 %v2169_v15 }
  0xe2   :  { %813 = vmatprep.subr.bf16.mxu0 %v2174_v17 }
  0xe5   :  { %814 = vmatpush1.bf16.msra.mxu0 %v2172_v18 }
  0xe6   :  { %815 = vmatprep.subr.bf16.mxu0 %v2177_v19 }
  0xe9   :  { %816 = vmatpush1.bf16.msra.mxu0 %v2175_v20  ;;  %v871_v20 = vld [vmem:[#allocation8] sm:$0x3] }
  0xea   :  { %817 = vmatprep.subr.bf16.mxu0 %v2180_v21 }
  0xed   :  { %818 = vmatpush1.bf16.msra.mxu0 %v2178_v22 }
  0xee   :  { %828 = vmatprep.subr.bf16.mxu0 %v2183_v23 }
  0xf0   :  { %820 = vmatmul.mubr.bf16.vlgmr.msra.gmra.mrb[0].mxu0 %v258_v24  ;;  %v2253_v24 = vld [vmem:[#allocation10 + $0x8] ss:$44 sps:$4 sm:$0xff]  }
  0xf1   :  { %829 = vmatpush1.bf16.msra.mxu0 %v2181_v25  ;;  %860 = vmatprep.mubr.bf16.mxu0 %v2720_v49  ;;  %v2219_v49 = vld [vmem:[#allocation5 + $0x2c4] ss:$8 sps:$4 sm:$0xff]  }
  0xf2   :  { %830 = vmatprep.subr.bf16.mxu0 %v2186_v26  ;;  %v2258_v26 = vld [vmem:[#allocation10 + $0x64] ss:$44 sps:$4 sm:$0xff]  }
  0xf5   :  { %831 = vmatpush1.bf16.msra.mxu0 %v2184_v27  ;;  %v2256_v27 = vld [vmem:[#allocation10 + $0x60] ss:$44 sps:$4 sm:$0xff]  }
  0xf6   :  { %832 = vmatprep.subr.bf16.mxu0 %v2189_v28  ;;  %v2261_v28 = vld [vmem:[#allocation10 + $0xbc] ss:$44 sps:$4 sm:$0xff]  }
  0xf9   :  { %833 = vmatpush1.bf16.msra.mxu0 %v2187_v29  ;;  %v2259_v29 = vld [vmem:[#allocation10 + $0xb8] ss:$44 sps:$4 sm:$0xff]  }
  0xfa   :  { %834 = vmatprep.subr.bf16.mxu0 %v2192_v30  ;;  %v2264_v30 = vld [vmem:[#allocation10 + $0x114] ss:$44 sps:$4 sm:$0xff]  }
  0xfd   :  { %835 = vmatpush1.bf16.msra.mxu0 %v2190_v31  ;;  %v2262_v31 = vld [vmem:[#allocation10 + $0x110] ss:$44 sps:$4 sm:$0xff]  }
  0xfe   :  { %836 = vmatprep.subr.bf16.mxu0 %v2195_v32  ;;  %v2267_v32 = vld [vmem:[#allocation10 + $0x16c] ss:$44 sps:$4 sm:$0xff]  }
 0x101   :  { %837 = vmatpush1.bf16.msra.mxu0 %v2193_v33  ;;  %v2265_v33 = vld [vmem:[#allocation10 + $0x168] ss:$44 sps:$4 sm:$0xff]  }
 0x102   :  { %838 = vmatprep.subr.bf16.mxu0 %v2198_v34  ;;  %v2270_v34 = vld [vmem:[#allocation10 + $0x1c4] ss:$44 sps:$4 sm:$0xff]  }
 0x105   :  { %839 = vmatpush1.bf16.msra.mxu0 %v2196_v35  ;;  %v2268_v35 = vld [vmem:[#allocation10 + $0x1c0] ss:$44 sps:$4 sm:$0xff]  }
 0x106   :  { %840 = vmatprep.subr.bf16.mxu0 %v2201_v36  ;;  %v2273_v36 = vld [vmem:[#allocation10 + $0x21c] ss:$44 sps:$4 sm:$0xff]  }
 0x109   :  { %841 = vmatpush1.bf16.msra.mxu0 %v2199_v37  ;;  %v2271_v37 = vld [vmem:[#allocation10 + $0x218] ss:$44 sps:$4 sm:$0xff]  }
 0x10a   :  { %842 = vmatprep.subr.bf16.mxu0 %v2204_v38  ;;  %v2276_v38 = vld [vmem:[#allocation10 + $0x274] ss:$44 sps:$4 sm:$0xff]  }
 0x10d   :  { %843 = vmatpush1.bf16.msra.mxu0 %v2202_v39  ;;  %v2274_v39 = vld [vmem:[#allocation10 + $0x270] ss:$44 sps:$4 sm:$0xff]  }
 0x10e   :  { %844 = vmatprep.subr.bf16.mxu0 %v2207_v40  ;;  %v2279_v40 = vld [vmem:[#allocation10 + $0x14] ss:$44 sps:$4 sm:$0xff]  }
 0x111   :  { %845 = vmatpush1.bf16.msra.mxu0 %v2205_v41  ;;  %v2277_v41 = vld [vmem:[#allocation10 + $0x10] ss:$44 sps:$4 sm:$0xff]  }
 0x112   :  { %846 = vmatprep.subr.bf16.mxu0 %v2210_v42  ;;  %v2282_v42 = vld [vmem:[#allocation10 + $0x6c] ss:$44 sps:$4 sm:$0xff]  }
 0x115   :  { %847 = vmatpush1.bf16.msra.mxu0 %v2208_v44  ;;  %v2280_v44 = vld [vmem:[#allocation10 + $0x68] ss:$44 sps:$4 sm:$0xff]  }
 0x116   :  { %848 = vmatprep.subr.bf16.mxu0 %v2213_v45  ;;  %v2285_v45 = vld [vmem:[#allocation10 + $0xc4] ss:$44 sps:$4 sm:$0xff]  }
 0x119   :  { %849 = vmatpush1.bf16.msra.mxu0 %v2211_v46  ;;  %v2283_v46 = vld [vmem:[#allocation10 + $0xc0] ss:$44 sps:$4 sm:$0xff]  }
 0x11a   :  { %850 = vmatprep.subr.bf16.mxu0 %v2216_v47  ;;  %v2288_v47 = vld [vmem:[#allocation10 + $0x11c] ss:$44 sps:$4 sm:$0xff]  }
 0x11d   :  { %851 = vmatpush1.bf16.msra.mxu0 %v2214_v48  ;;  %v2286_v48 = vld [vmem:[#allocation10 + $0x118] ss:$44 sps:$4 sm:$0xff]  }
 0x11e   :  { %852 = vmatprep.subr.bf16.mxu0 %v2219_v49  ;;  %v2291_v49 = vld [vmem:[#allocation10 + $0x174] ss:$44 sps:$4 sm:$0xff]  }
 0x121   :  { %853 = vmatpush1.bf16.msra.mxu0 %v2217_v51  ;;  %v2289_v51 = vld [vmem:[#allocation10 + $0x170] ss:$44 sps:$4 sm:$0xff]  }
 0x122   :  { %854 = vmatprep.subr.bf16.mxu0 %v2222_v52  ;;  %v2294_v52 = vld [vmem:[#allocation10 + $0x1cc] ss:$44 sps:$4 sm:$0xff]  }
 0x125   :  { %855 = vmatpush1.bf16.msra.mxu0 %v2220_v53  ;;  %v2292_v53 = vld [vmem:[#allocation10 + $0x1c8] ss:$44 sps:$4 sm:$0xff]  }
 0x126   :  { %856 = vmatprep.subr.bf16.mxu0 %v2225_v54  ;;  %v2297_v54 = vld [vmem:[#allocation10 + $0x224] ss:$44 sps:$4 sm:$0xff]  }
 0x129   :  { %857 = vmatpush1.bf16.msra.mxu0 %v2223_v55  ;;  %v2295_v55 = vld [vmem:[#allocation10 + $0x220] ss:$44 sps:$4 sm:$0xff]  }
 0x12a   :  { %858 = vmatprep.subr.bf16.mxu0 %v2228_v56  ;;  %v2300_v56 = vld [vmem:[#allocation10 + $0x27c] ss:$44 sps:$4 sm:$0xff]  }
 0x12d   :  { %859 = vmatpush1.bf16.msra.mxu0 %v2226_v57  ;;  %v2298_v57 = vld [vmem:[#allocation10 + $0x278] ss:$44 sps:$4 sm:$0xff]  }
 0x130   :  { %861 = vmatmul.mubr.bf16.vlgmr.msra.gmra.mrb[0].mxu0 %v243_v50  ;;  %v2255_v50 = vld [vmem:[#allocation10 + $0xc] ss:$44 sps:$4 sm:$0xff]  }
 0x131   :  { %1522 = vmatprep.subr.bf16.mxu1 %v2255_v50  ;;  %v2321_v50 = vld [vmem:[#allocation10 + $0x22c] ss:$44 sps:$4 sm:$0xff]  }
 0x203   :  { %v862_v10 = vpop.f32.mrb[0].mxu0 }
 0x204   :  { %v2056_v11 = vadd.f32 %v862_v10, %v205_v8  ;;  %v864_v13 = vpop.f32.mrb[1].mxu0  ;;  %v2324_v8 = vld [vmem:[#allocation10 + $0x284] ss:$44 sps:$4 sm:$0xff]  }
 0x205   :  { %v2057_v14 = vadd.f32 %v864_v13, %v209_v9  ;;  %v866_v15 = vpop.f32.mrb[2].mxu0  ;;  %v2322_v9 = vld [vmem:[#allocation10 + $0x280] ss:$44 sps:$4 sm:$0xff]   ;;  %v2327_v10 = vld [vmem:[#allocation10 + $0x24] ss:$44 sps:$4 sm:$0xff]  }
 0x206   :  { %869 = vst [vmem:[#allocation13] sm:$0x3] %v2056_v11  ;;  %v867_v17 = vpop.f32.mrb[3].mxu0  ;;  %v2330_v13 = vld [vmem:[#allocation10 + $0x7c] ss:$44 sps:$4 sm:$0xff]  }
 0x207   :  { %v872_v18 = vmul.f32 0.5, %v2057_v14  ;;  %870 = vst [vmem:[#allocation14] sm:$0x3] %v2057_v14  ;;  %v2328_v14 = vld [vmem:[#allocation10 + $0x78] ss:$44 sps:$4 sm:$0xff]  }
 0x208   :  { %v2333_v15 = vld [vmem:[#allocation10 + $0xd4] ss:$44 sps:$4 sm:$0xff]   ;;  %v2331_v17 = vld [vmem:[#allocation10 + $0xd0] ss:$44 sps:$4 sm:$0xff]  }
 0x209   :  { %v873_v19 = vmul.f32 1.442695, %v872_v18  ;;  %v2336_v18 = vld [vmem:[#allocation10 + $0x12c] ss:$44 sps:$4 sm:$0xff]  }
 0x20b   :  { %2357 = vpow2.f32 %v873_v19  ;;  %v2334_v19 = vld [vmem:[#allocation10 + $0x128] ss:$44 sps:$4 sm:$0xff]  }
 0x215   :  { %v2358_v21 = vpop.eup %2357 }
 0x216   :  { %v875_v22 = vmul.f32 %v2358_v21, %v871_v20  ;;  %v2339_v20 = vld [vmem:[#allocation10 + $0x184] ss:$44 sps:$4 sm:$0xff]   ;;  %v2337_v21 = vld [vmem:[#allocation10 + $0x180] ss:$44 sps:$4 sm:$0xff]  }
 0x218   :  { %v876_v23 = vadd.f32 %v2056_v11, %v875_v22  ;;  %v2325_v11 = vld [vmem:[#allocation10 + $0x20] ss:$44 sps:$4 sm:$0xff]   ;;  %v2342_v22 = vld [vmem:[#allocation10 + $0x1dc] ss:$44 sps:$4 sm:$0xff]  }
 0x21a   :  { %v2740_v25 = vpack.c.bf16 %v876_v23, %v876_v23  ;;  %v2340_v23 = vld [vmem:[#allocation10 + $0x1d8] ss:$44 sps:$4 sm:$0xff]  }
 0x21c   :  { %1514 = vmatmul.mubr.bf16.vlgmr.msra.gmra.mrb[0].mxu1 %v2740_v25 }
 0x21d   :  { %1523 = vmatpush1.bf16.msra.mxu1 %v2253_v24  ;;  %1554 = vmatprep.mubr.bf16.mxu1 %v2580_v4  ;;  %v2345_v24 = vld [vmem:[#allocation10 + $0x234] ss:$44 sps:$4 sm:$0xff]  }
 0x21e   :  { %1524 = vmatprep.subr.bf16.mxu1 %v2258_v26  ;;  %v2348_v26 = vld [vmem:[#allocation10 + $0x28c] ss:$44 sps:$4 sm:$0xff]  }
 0x221   :  { %1525 = vmatpush1.bf16.msra.mxu1 %v2256_v27  ;;  %v2346_v27 = vld [vmem:[#allocation10 + $0x288] ss:$44 sps:$4 sm:$0xff]  }
 0x222   :  { %1526 = vmatprep.subr.bf16.mxu1 %v2261_v28  ;;  %v2349_v28 = vld [vmem:[#allocation10 + $0x28] ss:$44 sps:$4 sm:$0xff]  }
 0x225   :  { %1527 = vmatpush1.bf16.msra.mxu1 %v2259_v29  ;;  %v2581_v29 = vmov 0.0  }
 0x226   :  { %1528 = vmatprep.subr.bf16.mxu1 %v2264_v30  ;;  %v2350_v30 = vld [vmem:[#allocation10 + $0x80] ss:$44 sps:$4 sm:$0xff]  }
 0x229   :  { %1529 = vmatpush1.bf16.msra.mxu1 %v2262_v31  ;;  %v2351_v31 = vld [vmem:[#allocation10 + $0xd8] ss:$44 sps:$4 sm:$0xff]  }
 0x22a   :  { %1530 = vmatprep.subr.bf16.mxu1 %v2267_v32  ;;  %v2352_v32 = vld [vmem:[#allocation10 + $0x130] ss:$44 sps:$4 sm:$0xff]  }
 0x22d   :  { %1531 = vmatpush1.bf16.msra.mxu1 %v2265_v33  ;;  %v2353_v33 = vld [vmem:[#allocation10 + $0x188] ss:$44 sps:$4 sm:$0xff]  }
 0x22e   :  { %1532 = vmatprep.subr.bf16.mxu1 %v2270_v34  ;;  %v2354_v34 = vld [vmem:[#allocation10 + $0x1e0] ss:$44 sps:$4 sm:$0xff]  }
 0x231   :  { %1533 = vmatpush1.bf16.msra.mxu1 %v2268_v35  ;;  %v2355_v35 = vld [vmem:[#allocation10 + $0x238] ss:$44 sps:$4 sm:$0xff]  }
 0x232   :  { %1534 = vmatprep.subr.bf16.mxu1 %v2273_v36  ;;  %v2356_v36 = vld [vmem:[#allocation10 + $0x290] ss:$44 sps:$4 sm:$0xff]  }
 0x235   :  { %1535 = vmatpush1.bf16.msra.mxu1 %v2271_v37  ;;  %v2752_v37 = vld [vmem:[#allocation11] sm:$0xff] }
 0x236   :  { %1536 = vmatprep.subr.bf16.mxu1 %v2276_v38  ;;  %v981_v38 = vrot.slane %v2752_v37, %v2733_v5 }
 0x239   :  { %1537 = vmatpush1.bf16.msra.mxu1 %v2274_v39  ;;  %v985_v39 = vrot.slane %v2752_v37, %v2736_v7 }
 0x23a   :  { %1563 = vmatprep.subr.bf16.mxu1 %v2279_v40 }
 0x23c   :  { %1555 = vmatmul.mubr.bf16.vlgmr.msra.gmra.mrb[4].mxu1 %v2740_v25 }
 0x23d   :  { %1564 = vmatpush1.bf16.msra.mxu1 %v2277_v41  ;;  %1595 = vmatprep.mubr.bf16.mxu1 %v2580_v4 }
 0x23e   :  { %1565 = vmatprep.subr.bf16.mxu1 %v2282_v42 }
 0x241   :  { %1566 = vmatpush1.bf16.msra.mxu1 %v2280_v44 }
 0x242   :  { %1567 = vmatprep.subr.bf16.mxu1 %v2285_v45 }
 0x245   :  { %1568 = vmatpush1.bf16.msra.mxu1 %v2283_v46 }
 0x246   :  { %1569 = vmatprep.subr.bf16.mxu1 %v2288_v47 }
 0x249   :  { %1570 = vmatpush1.bf16.msra.mxu1 %v2286_v48  ;;  %v988_v48 = vsub.s32 2, %v2704_v12 }
 0x24a   :  { %1571 = vmatprep.subr.bf16.mxu1 %v2291_v49  ;;  %v2583_v49 = vmov 1983009808  }
 0x24d   :  { %1572 = vmatpush1.bf16.msra.mxu1 %v2289_v51  ;;  %v1740_v51 = vunpack.c.l.s4 %v2583_v49 }
 0x24e   :  { %1573 = vmatprep.subr.bf16.mxu1 %v2294_v52  ;;  %v989_v52 = vrot.slane %v2752_v37, %v988_v48 }
 0x251   :  { %1574 = vmatpush1.bf16.msra.mxu1 %v2292_v53  ;;  %v1741_v53 = vunpack.c.0.s8 %v1740_v51 }
 0x252   :  { %1575 = vmatprep.subr.bf16.mxu1 %v2297_v54 }
 0x255   :  { %1576 = vmatpush1.bf16.msra.mxu1 %v2295_v55 }
 0x256   :  { %1577 = vmatprep.subr.bf16.mxu1 %v2300_v56 }
 0x259   :  { %1578 = vmatpush1.bf16.msra.mxu1 %v2298_v57 }
 0x25a   :  { %1604 = vmatprep.subr.bf16.mxu1 %v2303_v58  ;;  %v2765_v58 = vsub.s32 %v1741_v53, %v2704_v12 }
 0x25c   :  { %1596 = vmatmul.mubr.bf16.vlgmr.msra.gmra.mrb[8].mxu1 %v2740_v25 }
 0x25d   :  { %1605 = vmatpush1.bf16.msra.mxu1 %v2301_v59  ;;  %1636 = vmatprep.mubr.bf16.mxu1 %v2580_v4 }
 0x25e   :  { %1606 = vmatprep.subr.bf16.mxu1 %v2306_v60 }
 0x261   :  { %1607 = vmatpush1.bf16.msra.mxu1 %v2304_v61 }
 0x262   :  { %1608 = vmatprep.subr.bf16.mxu1 %v2309_v62 }
 0x265   :  { %1609 = vmatpush1.bf16.msra.mxu1 %v2307_v63 }
 0x266   :  { %1610 = vmatprep.subr.bf16.mxu1 %v2312_v0 }
 0x269   :  { %1611 = vmatpush1.bf16.msra.mxu1 %v2310_v1 }
 0x26a   :  { %1612 = vmatprep.subr.bf16.mxu1 %v2315_v2 }
 0x26d   :  { %1613 = vmatpush1.bf16.msra.mxu1 %v2313_v3 }
 0x26e   :  { %1614 = vmatprep.subr.bf16.mxu1 %v2318_v16 }
 0x271   :  { %1615 = vmatpush1.bf16.msra.mxu1 %v2316_v43 }
 0x272   :  { %1616 = vmatprep.subr.bf16.mxu1 %v2321_v50 }
 0x275   :  { %1617 = vmatpush1.bf16.msra.mxu1 %v2319_v6 }
 0x276   :  { %1618 = vmatprep.subr.bf16.mxu1 %v2324_v8 }
 0x279   :  { %1619 = vmatpush1.bf16.msra.mxu1 %v2322_v9 }
 0x27a   :  { %1645 = vmatprep.subr.bf16.mxu1 %v2327_v10 }
 0x27c   :  { %1637 = vmatmul.mubr.bf16.vlgmr.msra.gmra.mrb[12].mxu1 %v2740_v25 }
 0x27d   :  { %1646 = vmatpush1.bf16.msra.mxu1 %v2325_v11  ;;  %1677 = vmatprep.mubr.bf16.mxu1 %v2580_v4  ;;  %v2343_v4 = vld [vmem:[#allocation10 + $0x230] ss:$44 sps:$4 sm:$0xff]  }
 0x27e   :  { %1647 = vmatprep.subr.bf16.mxu1 %v2330_v13 }
 0x281   :  { %1648 = vmatpush1.bf16.msra.mxu1 %v2328_v14 }
 0x282   :  { %1649 = vmatprep.subr.bf16.mxu1 %v2333_v15 }
 0x285   :  { %1650 = vmatpush1.bf16.msra.mxu1 %v2331_v17 }
 0x286   :  { %1651 = vmatprep.subr.bf16.mxu1 %v2336_v18 }
 0x289   :  { %1652 = vmatpush1.bf16.msra.mxu1 %v2334_v19 }
 0x28a   :  { %1653 = vmatprep.subr.bf16.mxu1 %v2339_v20 }
 0x28d   :  { %1654 = vmatpush1.bf16.msra.mxu1 %v2337_v21 }
 0x28e   :  { %1655 = vmatprep.subr.bf16.mxu1 %v2342_v22 }
 0x291   :  { %1656 = vmatpush1.bf16.msra.mxu1 %v2340_v23 }
 0x292   :  { %1657 = vmatprep.subr.bf16.mxu1 %v2345_v24 }
 0x295   :  { %1658 = vmatpush1.bf16.msra.mxu1 %v2343_v4 }
 0x296   :  { %1659 = vmatprep.subr.bf16.mxu1 %v2348_v26 }
 0x299   :  { %1660 = vmatpush1.bf16.msra.mxu1 %v2346_v27 }
 0x29a   :  { %2036 = vmatprep.subr.bf16.mxu1 %v2581_v29 }
 0x29c   :  { %1678 = vmatmul.mubr.bf16.vlgmr.msra.gmra.mrb[16].mxu1 %v2740_v25 }
 0x29d   :  { %2037 = vmatpush3.bf16.msra.mxu1 %v2349_v28  ;;  %2052 = vmatprep.mubr.msk.bf16.mxu1 %vm2582_vm0, %v2581_v29 }
 0x29e   :  { %2038 = vmatprep.subr.bf16.mxu1 %v2581_v29 }
 0x2a1   :  { %2039 = vmatpush3.bf16.msra.mxu1 %v2350_v30 }
 0x2a2   :  { %2040 = vmatprep.subr.bf16.mxu1 %v2581_v29 }
 0x2a5   :  { %2041 = vmatpush3.bf16.msra.mxu1 %v2351_v31 }
 0x2a6   :  { %2042 = vmatprep.subr.bf16.mxu1 %v2581_v29 }
 0x2a9   :  { %2043 = vmatpush3.bf16.msra.mxu1 %v2352_v32 }
 0x2aa   :  { %2044 = vmatprep.subr.bf16.mxu1 %v2581_v29 }
 0x2ad   :  { %2045 = vmatpush3.bf16.msra.mxu1 %v2353_v33 }
 0x2ae   :  { %2046 = vmatprep.subr.bf16.mxu1 %v2581_v29 }
 0x2b1   :  { %2047 = vmatpush3.bf16.msra.mxu1 %v2354_v34 }
 0x2b2   :  { %2048 = vmatprep.subr.bf16.mxu1 %v2581_v29 }
 0x2b5   :  { %2049 = vmatpush3.bf16.msra.mxu1 %v2355_v35 }
 0x2b6   :  { %2050 = vmatprep.subr.bf16.mxu1 %v2581_v29 }
 0x2b9   :  { %2051 = vmatpush3.bf16.msra.mxu1 %v2356_v36 }
 0x2bc   :  { %2053 = vmatmul.mubr.bf16.vlgmr.msra.gmra.mrb[20].mxu1 %v2740_v25  ;;  %v992_v25 = vsub.s32 3, %v2704_v12 }
 0x2be   :  { %v993_v54 = vrot.slane %v2752_v37, %v992_v25 }
 0x2ef   :  { %v1515_v40 = vpop.f32.mrb[0].mxu1 }
 0x2f0   :  { %v1516_v41 = vadd.f32 %v1515_v40, %v981_v38  ;;  %v1517_v42 = vpop.f32.mrb[1].mxu1 }
 0x2f1   :  { %v1518_v44 = vadd.f32 %v1517_v42, %v985_v39  ;;  %v1519_v45 = vpop.f32.mrb[2].mxu1 }
 0x2f2   :  { %v1520_v46 = vpop.f32.mrb[3].mxu1 }
 0x2f3   :  { %v1737_v47 = vcombine.low %v1516_v41, %v1518_v44 }
 0x2f5   :  { %v1745_v63 = vrot.slane %v1737_v47, %v2765_v58 }
 0x30f   :  { %v1556_v55 = vpop.f32.mrb[4].mxu1 }
 0x310   :  { %v1557_v56 = vadd.f32 %v1556_v55, %v989_v52  ;;  %v1558_v57 = vpop.f32.mrb[5].mxu1 }
 0x311   :  { %v1559_v59 = vadd.f32 %v1558_v57, %v993_v54  ;;  %v1560_v60 = vpop.f32.mrb[6].mxu1 }
 0x312   :  { %v1561_v61 = vpop.f32.mrb[7].mxu1 }
 0x313   :  { %v1738_v62 = vcombine.low %v1557_v56, %v1559_v59 }
 0x315   :  { %v1752_v0 = vrot.slane %v1738_v62, %v2765_v58 }
 0x316   :  { %2502 = shalt.err (!%p2499_p10)
}
 0x317   :  { %s2503_s13 = scalar_lea.hbm %s2828_s7, 32 }
 0x318   :  { %p2504_p11 = scmp.ne.s32.totalorder %s2828_s7, %s2503_s13  ;;  %p2507_p12 = scmp.lt.u32.totalorder %s2503_s13, %s2828_s7 }
 0x31a   :  { %p2509_p13 = pnand %p2507_p12, %p2504_p11 }
 0x31c   :  { %2512 = shalt.err (!%p2509_p13)
}
 0x31d   :  { %1817 = dma.vmem_to_hbm [thread:$0]  %s1815_s22, 32, %s2828_s7, [#allocation15]   ;;  %v1753_v1 = vcombine.low %v1745_v63, %v1752_v0 }
 0x31e   :  { %s2513_s18 = scalar_lea.vmem %s1805_s9, 32  ;;  %p2518_p1 = scmp.lt.s32.totalorder %s1805_s9, %s1805_s9 }
 0x31f   :  { %p2514_p0 = scmp.ne.s32.totalorder %s1805_s9, %s2513_s18  ;;  %p2519_p2 = scmp.lt.s32.totalorder %s2513_s18, %s2513_s18 }
 0x321   :  { %p2520_p3 = por %p2519_p2, %p2518_p1 }
 0x323   :  { %p2521_p4 = pnand %p2520_p3, %p2514_p0 }
 0x325   :  { %2524 = shalt.err (!%p2521_p4)
}
 0x326   :  { %s2525_s21 = scalar_lea.hbm %s2827_s6, 32 }
 0x327   :  { %p2526_p5 = scmp.ne.s32.totalorder %s2827_s6, %s2525_s21  ;;  %p2529_p6 = scmp.lt.u32.totalorder %s2525_s21, %s2827_s6 }
 0x329   :  { %p2531_p7 = pnand %p2529_p6, %p2526_p5 }
 0x32b   :  { %2534 = shalt.err (!%p2531_p7)
}
 0x32c   :  { %1807 = dma.vmem_to_hbm [thread:$0]  %s1805_s9, 32, %s2827_s6, [#allocation4]   ;;  %1790 = vst [vmem:[#allocation16] sm:$0xff] %v1753_v1  ;;  %v996_v2 = vsub.s32 4, %v2704_v12  ;;  %v1000_v3 = vsub.s32 5, %v2704_v12  ;;  %v1004_v14 = vsub.s32 6, %v2704_v12 }
 0x32d   :  { %v1008_v15 = vsub.s32 7, %v2704_v12  ;;  %v975_v29 = vld [vmem:[#allocation11 + $0x8] sm:$0x7]  ;;  %vm1792_vm1 = vcmask 1041408   ;;  %vm1793_vm2 = vcmask 1043458   ;;  %vm1795_vm4 = vcmask 521220  }
 0x32e   :  { %v997_v16 = vrot.slane %v2752_v37, %v996_v2  ;;  %v1001_v43 = vrot.slane %v2752_v37, %v1000_v3  ;;  %v1005_v17 = vrot.slane %v2752_v37, %v1004_v14  ;;  %v1013_v30 = vrot.slane %v975_v29, %v2733_v5  ;;  %vm1794_vm3 = vmor %vm1793_vm2, %vm1792_vm1  ;;  %s2586_s6 = smov [#allocation16]  }
 0x32f   :  { %v1597_v50 = vpop.f32.mrb[8].mxu1  ;;  %v1009_v18 = vrot.slane %v2752_v37, %v1008_v15  ;;  %v1017_v31 = vrot.slane %v975_v29, %v2736_v7  ;;  %v1021_v39 = vrot.slane %v975_v29, %v988_v48  ;;  %s1824_s30 = sshll.u32 %s2586_s6, 4  ;;  %vm1796_vm5 = vmor %vm1795_vm4, %vm1794_vm3  ;;  %s1825_s30 = int_to_ptr.vmem [resolvable:$true] %s1824_s30 }
 0x330   :  { %v1598_v6 = vadd.f32 %v1597_v50, %v997_v16  ;;  %v1599_v8 = vpop.f32.mrb[9].mxu1  ;;  %s2535_s1 = scalar_lea.vmem %s1825_s30, 352  ;;  %p2540_p9 = scmp.lt.s32.totalorder %s1825_s30, %s1825_s30 }
 0x331   :  { %v1600_v9 = vadd.f32 %v1599_v8, %v1001_v43  ;;  %v1601_v10 = vpop.f32.mrb[10].mxu1  ;;  %p2536_p8 = scmp.ne.s32.totalorder %s1825_s30, %s2535_s1  ;;  %p2541_p10 = scmp.lt.s32.totalorder %s2535_s1, %s2535_s1 }
 0x332   :  { %v1602_v11 = vpop.f32.mrb[11].mxu1 }
 0x333   :  { %v1754_v13 = vcombine.low %v1598_v6, %v1600_v9  ;;  %p2542_p11 = por %p2541_p10, %p2540_p9 }
 0x335   :  { %v1762_v26 = vrot.slane %v1754_v13, %v2765_v58  ;;  %p2543_p12 = pnand %p2542_p11, %p2536_p8 }
 0x34f   :  { %v1638_v19 = vpop.f32.mrb[12].mxu1 }
 0x350   :  { %v1639_v20 = vadd.f32 %v1638_v19, %v1005_v17  ;;  %v1640_v21 = vpop.f32.mrb[13].mxu1 }
 0x351   :  { %v1641_v22 = vadd.f32 %v1640_v21, %v1009_v18  ;;  %v1642_v23 = vpop.f32.mrb[14].mxu1 }
 0x352   :  { %v1643_v24 = vpop.f32.mrb[15].mxu1 }
 0x353   :  { %v1755_v4 = vcombine.low %v1639_v20, %v1641_v22 }
 0x355   :  { %v1769_v27 = vrot.slane %v1755_v4, %v2765_v58 }
 0x357   :  { %v1770_v28 = vcombine.low %v1762_v26, %v1769_v27 }
 0x359   :  { %1791 = vst [vmem:[#allocation16 + $0x8] sm:$0xff] %v1770_v28 }
 0x36f   :  { %v1679_v32 = vpop.f32.mrb[16].mxu1 }
 0x370   :  { %v1680_v33 = vadd.f32 %v1679_v32, %v1013_v30  ;;  %v1681_v34 = vpop.f32.mrb[17].mxu1 }
 0x371   :  { %v1682_v35 = vadd.f32 %v1681_v34, %v1017_v31  ;;  %v1683_v36 = vpop.f32.mrb[18].mxu1 }
 0x372   :  { %v1684_v37 = vpop.f32.mrb[19].mxu1 }
 0x373   :  { %v1771_v38 = vcombine.low %v1680_v33, %v1682_v35 }
 0x375   :  { %v1778_v7 = vrot.slane %v1771_v38, %v2765_v58 }
 0x38f   :  { %v1720_v40 = vpop.f32.mrb[20].mxu1 }
 0x390   :  { %v1721_v41 = vadd.f32 %v1720_v40, %v1021_v39  ;;  %v2054_v42 = vpop.f32.mrb[21].mxu1 }
 0x391   :  { %v1723_v5 = vpop.f32.mrb[22].mxu1 }
 0x392   :  { %v1785_v44 = vrot.slane %v1721_v41, %v2765_v58  ;;  %v2055_v45 = vpop.f32.mrb[23].mxu1 }
 0x394   :  { %v1786_v46 = vcombine.low %v1778_v7, %v1785_v44 }
 0x396   :  { %1797 = vst.msk [vmem:[#allocation16 + $0x10] sm:$0x3f] %vm1796_vm5, %v1786_v46 }
 0x397   :  { %2546 = shalt.err (!%p2543_p12)
}
 0x398   :  { %s2547_s0 = scalar_lea.hbm %s2829_s8, 352 }
 0x399   :  { %p2548_p13 = scmp.ne.s32.totalorder %s2829_s8, %s2547_s0  ;;  %p2551_p0 = scmp.lt.u32.totalorder %s2547_s0, %s2829_s8 }
 0x39b   :  { %p2553_p1 = pnand %p2551_p0, %p2548_p13 }
 0x39d   :  { %2556 = shalt.err (!%p2553_p1)
}
 0x39e   :  { %1827 = dma.vmem_to_hbm [thread:$0]  %s1825_s30, 352, %s2829_s8, [#allocation15]  }
 0x39f   :  { %2565 = dma.done.wait [#allocation4], 32  }
 0x3a0   :  { %2566 = vsyncadd [#allocation4], 4294967264 }
 0x3a1   :  { %2567 = dma.done.wait [#allocation15], 384  }
 0x3a2   :  { %2568 = vsyncadd [#allocation15], 4294966912 }
 0x3a3   :  { %1837 = vsyncpa [#allocation3], 1 }
 0x3a4   :  { %1838 = vsyncpa [#allocation6], 1 }
 0x3a5   :  { %1839 = vsyncpa [#allocation9], 1 }
 0x3a6   :  { %1840 = vsyncpa [#allocation12], 1 }
 0x3a7   :  { %1841 = vsyncpa [#allocation4], 1 }
 0x3a8   :  { %1842 = vsyncpa [#allocation15], 1 }

// kernel: vae_forward.3
= control target key start
LH: loop header
LB: loop body
LE: loop exit
PB: predicated region body
PF: predicated region fallthrough
CT: control target
= control target key end

     0   :  { %10 = vsyncpa [#allocation4], 0  ;;  %s5877_s0 = inlined_call_operand.hbm [shape: f32[2,36,16], index: 0, kind: input, shape index: {}]   ;;  %s5878_s1 = inlined_call_operand.hbm [shape: bf16[16,16], index: 1, kind: input, shape index: {}]   ;;  %s5879_s2 = inlined_call_operand.hbm [shape: f32[1,16], index: 2, kind: input, shape index: {}]   ;;  %s5880_s3 = inlined_call_operand.hbm [shape: bf16[256,32], index: 3, kind: input, shape index: {}]   ;;  %s5881_s4 = inlined_call_operand.hbm [shape: f32[1,32], index: 4, kind: input, shape index: {}]   ;;  %s5882_s5 = inlined_call_operand.hbm [shape: bf16[2,24,32], index: 5, kind: output, shape index: {}]  }
   0x1   :  { %12 = vsyncpa [#allocation4 + $0x1], 0 }
   0x2   :  { %13 = vsyncpa [#allocation7], 0 }
   0x3   :  { %14 = vsyncpa [#allocation10], 0 }
   0x4   :  { %15 = vsyncpa [#allocation5], 0 }
   0x5   :  { %17 = vsyncpa [#allocation5 + $0x1], 0  ;;  %s4118_s18 = smov 0   ;;  %s4120_s19 = smov 0  }
   0x6   :  { %s4122_s20 = smov 0   ;;  %s4124_s21 = smov 0  }
   0x7 LB: > { %s4139_s22 = sadd.s32 4294967295, %s4056_s21   ;;  %s3254_s23 = sadd.s32 4294967294, %s4056_s21   ;;  %s4056_s21 = sphi %s4124_s21, %s6209_s21   ;;  %s4052_s20 = sphi %s4122_s20, %s6208_s20   ;;  %s4048_s19 = sphi %s4120_s19, %s6207_s19   ;;  %s4044_s18 = sphi %s4118_s18, %s6206_s18  }
   0x8   : > { %p43_p0 = scmp.ne.s32.totalorder %s4048_s19, %s4044_s18  ;;  %p5883_p1 = scmp.eq.s32.totalorder %s4139_s22, 0 }
   0x9   : > { %p157_p3 = scmp.eq.s32.totalorder %s3254_s23, 1  ;;  %p3255_p5 = scmp.ge.s32.totalorder %s4056_s21, 1 }
   0xa   : > { %p4148_p4 = por %p5883_p1, %p43_p0  ;;  %p164_p7 = scmp.lt.s32.totalorder %s4056_s21, 3 }
   0xb   : > { %p4153_p6 = por %p157_p3, %p43_p0  ;;  %s4058_s27 = smov [#allocation6]  }
   0xc   : > { %s5970_s24 = scalar_select %p4148_p4, 1, 0 }
   0xd   : > { %s5971_s25 = scalar_select %p4153_p6, 1, 0 }
   0xe   : > { %p4158_p8 = pnand %p3255_p5, %p164_p7  ;;  %s176_s28 = sshll.u32 %s4058_s27, 4  ;;  %s4162_s28 = int_to_ptr.vmem [resolvable:$true] %s176_s28 }
   0xf   : > { %s4059_s30 = smov [#allocation9]   ;;  %s4060_s7 = smov [#allocation8]  }
  0x10   : > { %s5972_s26 = scalar_select %p4158_p8, 1, 0 }
  0x11   : > { %p3613_p9 = pneg %p4158_p8  ;;  %s200_s6 = sshll.u32 %s4059_s30, 4  ;;  %s4173_s6 = int_to_ptr.vmem [resolvable:$true] %s200_s6 }
  0x12   : > { %s4175_s8 = sshll.u32 %s4060_s7, 4  ;;  %s3840_s11 = scalar_lea.hbm %s5878_s1, 128  ;;  %s191_s8 = int_to_ptr.vmem [resolvable:$true] %s4175_s8 }
  0x13   : > { %p4169_p11 = pnand %p3613_p9, %p5883_p1  ;;  %p3841_p12 = scmp.ne.s32.totalorder %s5878_s1, %s3840_s11 }
  0x14   : > { %p3847_p5 = scmp.lt.u32.totalorder %s3840_s11, %s5878_s1 }
  0x15   : > { %p4185_p13 = pneg %p4169_p11 }
  0x17   : > { %p3843_p0 = pnand %p4185_p13, %p3841_p12 }
  0x19   : > { %p3844_p3 = pneg %p3843_p0 }
  0x1b   : > { %p3849_p7 = pnand %p3847_p5, %p3844_p3 }
  0x1d   : > { %3852 = shalt.err (!%p3849_p7)
}
  0x1e   : > { %s3853_s17 = scalar_lea.vmem %s4162_s28, 128  ;;  %p3861_p2 = scmp.lt.s32.totalorder %s4162_s28, %s4162_s28 }
  0x1f   : > { %p3854_p9 = scmp.ne.s32.totalorder %s4162_s28, %s3853_s17  ;;  %p3862_p6 = scmp.lt.s32.totalorder %s3853_s17, %s3853_s17 }
  0x21   : > { %p3856_p10 = pnand %p3854_p9, %p4185_p13  ;;  %p3863_p12 = por %p3862_p6, %p3861_p2 }
  0x23   : > { %p3857_p1 = pneg %p3856_p10 }
  0x25   : > { %p3864_p0 = pnand %p3863_p12, %p3857_p1 }
  0x27   : > { %3867 = shalt.err (!%p3864_p0)
}
  0x28   : > { %s4061_s23 = smov 64   ;;  %s4062_s27 = smov 4  }
  0x29   : > { %3616 = dma.hbm_to_vmem [thread:$0]  (!%p4169_p11), %s5878_s1, 128, %s4162_s28, [#allocation7], %s4061_s23, %s4061_s23, %s4062_s27  }
  0x2a   : > { %s3868_s11 = scalar_lea.hbm %s5880_s3, 2048 }
  0x2b   : > { %p3869_p2 = scmp.ne.s32.totalorder %s5880_s3, %s3868_s11  ;;  %p3875_p10 = scmp.lt.u32.totalorder %s3868_s11, %s5880_s3 }
  0x2d   : > { %p3871_p1 = pnand %p3869_p2, %p4185_p13 }
  0x2f   : > { %p3872_p6 = pneg %p3871_p1 }
  0x31   : > { %p3877_p3 = pnand %p3875_p10, %p3872_p6 }
  0x33   : > { %3880 = shalt.err (!%p3877_p3)
}
  0x34   : > { %s3881_s28 = scalar_lea.vmem %s4173_s6, 2048  ;;  %p3889_p12 = scmp.lt.s32.totalorder %s4173_s6, %s4173_s6 }
  0x35   : > { %p3882_p5 = scmp.ne.s32.totalorder %s4173_s6, %s3881_s28  ;;  %p3890_p0 = scmp.lt.s32.totalorder %s3881_s28, %s3881_s28 }
  0x37   : > { %p3884_p7 = pnand %p3882_p5, %p4185_p13  ;;  %p3891_p2 = por %p3890_p0, %p3889_p12 }
  0x39   : > { %p3885_p9 = pneg %p3884_p7 }
  0x3b   : > { %p3892_p1 = pnand %p3891_p2, %p3885_p9 }
  0x3d   : > { %3895 = shalt.err (!%p3892_p1)
}
  0x3e   : > { %3622 = dma.hbm_to_vmem [thread:$0]  (!%p4169_p11), %s5880_s3, 2048, %s4173_s6, [#allocation10], %s4061_s23, %s4061_s23, %s4062_s27  }
  0x3f   : > { %s3896_s10 = scalar_lea.hbm %s5879_s2, 16 }
  0x40   : > { %p3897_p6 = scmp.ne.s32.totalorder %s5879_s2, %s3896_s10  ;;  %p3903_p5 = scmp.lt.u32.totalorder %s3896_s10, %s5879_s2 }
  0x42   : > { %p3899_p10 = pnand %p3897_p6, %p4185_p13 }
  0x44   : > { %p3900_p3 = pneg %p3899_p10 }
  0x46   : > { %p3905_p7 = pnand %p3903_p5, %p3900_p3 }
  0x48   : > { %3908 = shalt.err (!%p3905_p7)
}
  0x49   : > { %s3909_s16 = scalar_lea.vmem %s191_s8, 16  ;;  %s3916_s6 = scalar_lea.vmem %s191_s8, 32 }
  0x4a   : > { %p3910_p9 = scmp.ne.s32.totalorder %s191_s8, %s3909_s16  ;;  %p3917_p2 = scmp.lt.s32.totalorder %s191_s8, %s191_s8 }
  0x4b   : > { %p3918_p1 = scmp.lt.s32.totalorder %s3916_s6, %s3909_s16 }
  0x4c   : > { %p3912_p12 = pnand %p3910_p9, %p4185_p13 }
  0x4d   : > { %p3919_p4 = por %p3918_p1, %p3917_p2 }
  0x4e   : > { %p3913_p0 = pneg %p3912_p12 }
  0x50   : > { %p3920_p8 = pnand %p3919_p4, %p3913_p0 }
  0x52   : > { %3923 = shalt.err (!%p3920_p8)
}
  0x53   : > { %3619 = dma.hbm_to_vmem [thread:$0]  (!%p4169_p11), %s5879_s2, 16, %s191_s8, [#allocation7]  }
  0x54   : > { %s4063_s28 = smov [#allocation11]   ;;  %s3924_s9 = scalar_lea.hbm %s5881_s4, 16 }
  0x55   : > { %s214_s17 = sshll.u32 %s4063_s28, 4  ;;  %p3925_p6 = scmp.ne.s32.totalorder %s5881_s4, %s3924_s9  ;;  %s215_s17 = int_to_ptr.vmem [resolvable:$true] %s214_s17 }
  0x56   : > { %p3931_p10 = scmp.lt.u32.totalorder %s3924_s9, %s5881_s4 }
  0x57   : > { %p3927_p4 = pnand %p3925_p6, %p4185_p13 }
  0x59   : > { %p3928_p8 = pneg %p3927_p4 }
  0x5b   : > { %p3933_p3 = pnand %p3931_p10, %p3928_p8 }
  0x5d   : > { %3936 = shalt.err (!%p3933_p3)
}
  0x5e   : > { %s3937_s8 = scalar_lea.vmem %s215_s17, 16  ;;  %s3944_s15 = scalar_lea.vmem %s215_s17, 32 }
  0x5f   : > { %p3938_p5 = scmp.ne.s32.totalorder %s215_s17, %s3937_s8  ;;  %p3945_p12 = scmp.lt.s32.totalorder %s215_s17, %s215_s17 }
  0x60   : > { %p3946_p0 = scmp.lt.s32.totalorder %s3944_s15, %s3937_s8 }
  0x61   : > { %p3940_p7 = pnand %p3938_p5, %p4185_p13 }
  0x62   : > { %p3947_p2 = por %p3946_p0, %p3945_p12 }
  0x63   : > { %p3941_p9 = pneg %p3940_p7 }
  0x65   : > { %p3948_p1 = pnand %p3947_p2, %p3941_p9 }
  0x67   : > { %3951 = shalt.err (!%p3948_p1)
}
  0x68   : > { %3625 = dma.hbm_to_vmem [thread:$0]  (!%p4169_p11), %s5881_s4, 16, %s215_s17, [#allocation10]  }
  0x69   : > { %s4267_s14 = sadd.s32 1, %s4056_s21   ;;  %s30_s23 = sadd.s32 1, %s4052_s20 }
  0x6a   : > { %s27_s29 = ssub.s32 %s4056_s21, %s4267_s14  ;;  %p37_p13 = scmp.ne.s32.totalorder %s4052_s20, %s4048_s19 }
  0x6b   : > { %p28_p6 = scmp.eq.s32.totalorder %s27_s29, 0  ;;  %p38_p4 = scmp.eq.s32.totalorder %s4056_s21, 0 }
  0x6c   : > { %p5975_p8 = scmp.eq.s32.totalorder %s4139_s22, 1  ;;  %p3638_p3 = scmp.lt.s32.totalorder %s4056_s21, 2 }
  0x6d   : > { %s4283_s28 = scalar_select %p28_p6, %s4052_s20, %s30_s23  }
  0x6e   : > { %p4277_p10 = por %p5975_p8, %p37_p13  ;;  %p39_p5 = por %p38_p4, %p37_p13 }
  0x6f   : > { %s225_s30 = sand.u32 1, %s4052_s20   ;;  %s3583_s17 = smul.u32 640, %s4056_s21 }
  0x70   : > { %s3582_s7 = smul.u32 40, %s225_s30  ;;  %p4287_p11 = pnand %p3638_p3, %p39_p5 }
  0x71   : > { %s4294_s12 = scalar_lea.hbm %s5877_s0, %s3583_s17  ;;  %s4298_s15 = scalar_lea.sflag [#allocation4], %s225_s30 }
  0x72   : > { %s229_s13 = scalar_lea.vmem [#allocation3], %s3582_s7  ;;  %s3952_s16 = scalar_lea.hbm %s4294_s12, 640 }
  0x73   : > { %s236_s8 = sshll.u32 %s229_s13, 4  ;;  %p3953_p7 = scmp.ne.s32.totalorder %s4294_s12, %s3952_s16  ;;  %s4296_s8 = int_to_ptr.vmem [resolvable:$true] %s236_s8 }
  0x74   : > { %p3954_p9 = pneg %p4287_p11  ;;  %s3957_s29 = scalar_lea.hbm %s5877_s0, 1280 }
  0x75   : > { %p3958_p2 = scmp.lt.u32.totalorder %s4294_s12, %s5877_s0  ;;  %p3959_p1 = scmp.lt.u32.totalorder %s3957_s29, %s3952_s16 }
  0x76   : > { %p3955_p12 = pnand %p3954_p9, %p3953_p7  ;;  %p3961_p6 = scmp.lt.u32.totalorder %s3952_s16, %s4294_s12 }
  0x77   : > { %p3960_p13 = por %p3959_p1, %p3958_p2 }
  0x78   : > { %p3956_p0 = pneg %p3955_p12 }
  0x79   : > { %p3962_p4 = por %p3961_p6, %p3960_p13 }
  0x7b   : > { %p3963_p8 = pnand %p3962_p4, %p3956_p0 }
  0x7d   : > { %3966 = shalt.err (!%p3963_p8)
}
  0x7e   : > { %s3967_s30 = scalar_lea.vmem %s4296_s8, 640  ;;  %s4064_s7 = smov [#allocation3]  }
  0x7f   : > { %p3968_p3 = scmp.ne.s32.totalorder %s4296_s8, %s3967_s30  ;;  %s3972_s11 = sshll.u32 %s4064_s7, 4  ;;  %s3973_s11 = int_to_ptr.vmem [resolvable:$false] %s3972_s11 }
  0x80   : > { %s3974_s13 = scalar_lea.vmem %s3973_s11, 1280  ;;  %p3975_p12 = scmp.lt.s32.totalorder %s4296_s8, %s3973_s11 }
  0x81   : > { %p3970_p5 = pnand %p3968_p3, %p3954_p9  ;;  %p3976_p2 = scmp.lt.s32.totalorder %s3974_s13, %s3967_s30 }
  0x83   : > { %p3971_p7 = pneg %p3970_p5  ;;  %p3977_p1 = por %p3976_p2, %p3975_p12 }
  0x85   : > { %p3978_p13 = pnand %p3977_p1, %p3971_p7 }
  0x87   : > { %3981 = shalt.err (!%p3978_p13)
}
  0x88   : > { %s4065_s16 = smov 128   ;;  %s4066_s6 = smov 8  }
  0x89   : > { %3629 = dma.hbm_to_vmem [thread:$0]  (!%p4287_p11), %s4294_s12, 640, %s4296_s8, %s4298_s15, %s4065_s16, %s4065_s16, %s4066_s6  }
  0x8a   : > { %p5978_p9 = scmp.ne.s32.totalorder %s5972_s26, 0 }
  0x8c   : > { %248 = sbr.rel (%p5978_p9) target bundleno = 1185 (0x4a1), region = 40 }
  0x93   : > { %s4329_s23 = sand.u32 1, %s4048_s19   ;;  %p5979_p0 = scmp.ne.s32.totalorder %s5970_s24, 0 }
  0x94   : > { %s3584_s29 = smul.u32 40, %s4329_s23  ;;  %s251_s17 = scalar_lea.sflag [#allocation4], %s4329_s23 }
  0x96   : > { %s4333_s10 = scalar_lea.vmem [#allocation3], %s3584_s29 }
  0x97   : > { %4027 = dma.done.wait (%p5979_p0), %s251_s17, 640  }
  0x98   : > { %4029 = vsyncadd (%p5979_p0), %s251_s17, 4294966656  ;;  %p5980_p11 = scmp.eq.s32.totalorder %s4139_s22, 0 }
  0x9a   : > { %4031 = dma.done.wait (%p5980_p11), [#allocation7], 144   ;;  %p5981_p6 = pmov %p5980_p11 }
  0x9c   : > { %4033 = vsyncadd (%p5981_p6), [#allocation7], 4294967152  ;;  %p5982_p4 = pmov %p5981_p6 }
  0x9e   : > { %4035 = dma.done.wait (%p5982_p4), [#allocation10], 2064   ;;  %p5983_p8 = pmov %p5982_p4 }
  0x9f   : > { %vm298_vm0 = vcmask 130048   ;;  %v5886_v0 = vmov 0.0   ;;  %v5892_v1 = vmov 3   ;;  %v5894_v2 = vmov 0   ;;  %v4388_v3 = vld [vmem:[%s4333_s10 + $0x10] sm:$0xff]  ;;  %v4391_v4 = vld [vmem:[%s4333_s10 + $0x8] sm:$0xff] }
  0xa0   : > { %4037 = vsyncadd (%p5983_p8), [#allocation10], 4294965232  ;;  %299 = vst.msk [vmem:[#allocation2] sm:$0xff] %vm298_vm0, %v5886_v0  ;;  %3708 = vset.pattern.permute.xlu0 %v5892_v1  ;;  %3406 = vmatprep.subr.bf16.mxu0 %v5886_v0  ;;  %v4396_v5 = vld [vmem:[%s4333_s10] sm:$0xff]  ;;  %v5890_v6 = vmov 1   ;;  %v5902_v7 = vmov 10   ;;  %v324_v63 = vlaneseq }
  0xa1   : > { %300 = vst.msk [vmem:[#allocation2 + $0x8] sm:$0xff] %vm298_vm0, %v5886_v0  ;;  %301 = vst.msk [vmem:[#allocation2 + $0x10] sm:$0xff] %vm298_vm0, %v5886_v0  ;;  %3704 = vset.pattern.permute.xlu1 %v5894_v2  ;;  %3417 = vmatprep.subr.bf16.mxu1 %v5886_v0  ;;  %v4072_v8 = vmov 2   ;;  %v5913_v9 = vmov 8   ;;  %v4414_v10 = vld [vmem:[%s4333_s10 + $0x9] sm:$0xff]  ;;  %v5908_v11 = vmov 4  }
  0xa2   : > { %302 = vst.msk [vmem:[#allocation2 + $0x18] sm:$0xff] %vm298_vm0, %v5886_v0  ;;  %303 = vst.msk [vmem:[#allocation2 + $0x20] sm:$0xff] %vm298_vm0, %v5886_v0  ;;  %397 = vperm.xlu1 %3704, %v4388_v3   ;;  %461 = vperm.xlu0 %3708, %v4391_v4   ;;  %v4421_v12 = vld [vmem:[%s4333_s10 + $0x1] sm:$0xff]  ;;  %v5911_v13 = vmov 9   ;;  %v5904_v14 = vmov 5   ;;  %v5888_v15 = vmov 6  }
  0xa3   : > { %306 = vst.msk [vmem:[#allocation2 + $0x30] sm:$0xff] %vm298_vm0, %v5886_v0  ;;  %307 = vst.msk [vmem:[#allocation2 + $0x38] sm:$0xff] %vm298_vm0, %v5886_v0  ;;  %v5906_v16 = vmov 14   ;;  %v5915_v17 = vmov 7   ;;  %v5916_v18 = vmov 11   ;;  %v5896_v19 = vmov 15  }
  0xa4   : > { %308 = vst.msk [vmem:[#allocation2 + $0x40] sm:$0xff] %vm298_vm0, %v5886_v0  ;;  %309 = vst.msk [vmem:[#allocation2 + $0x48] sm:$0xff] %vm298_vm0, %v5886_v0  ;;  %v5900_v20 = vmov 12   ;;  %v5898_v21 = vmov 13   ;;  %v4481_v22 = vld [vmem:[%s4333_s10 + $0x6] sm:$0xff]  ;;  %v4506_v29 = vld [vmem:[%s4333_s10 + $0x11] sm:$0xff] }
  0xa5   : > { %310 = vst.msk [vmem:[#allocation2 + $0x50] sm:$0xff] %vm298_vm0, %v5886_v0  ;;  %312 = vst.msk [vmem:[#allocation2 + $0x60] sm:$0xff] %vm298_vm0, %v5886_v0  ;;  %v4536_v38 = vld [vmem:[%s4333_s10 + $0xe] sm:$0xff]  ;;  %v4546_v41 = vld [vmem:[%s4333_s10 + $0x16] sm:$0xff]  ;;  %vm4084_vm13 = vmmov 0   ;;  %s3585_s24 = smul.u32 12, %s4329_s23 }
  0xa6   : > { %313 = vst.msk [vmem:[#allocation2 + $0x68] sm:$0xff] %vm298_vm0, %v5886_v0  ;;  %314 = vst.msk [vmem:[#allocation2 + $0x70] sm:$0xff] %vm298_vm0, %v5886_v0  ;;  %3705 = vset.pattern.permute.xlu1 %v5890_v6  ;;  %813 = vperm.xlu0 %3708, %v4391_v4   ;;  %vm3125_vm14 = vcmask 257024   ;;  %s3592_s9 = smul.u32 192, %s4139_s22  ;;  %s3130_s22 = scalar_lea.sflag [#allocation5], %s4329_s23 }
  0xa7   : > { %315 = vst.msk [vmem:[#allocation2 + $0x78] sm:$0xff] %vm298_vm0, %v5886_v0  ;;  %318 = vst.msk [vmem:[#allocation2 + $0x90] sm:$0xff] %vm298_vm0, %v5886_v0  ;;  %411 = vperm.xlu1 %3705, %v4396_v5   ;;  %s296_s26 = scalar_lea.vmem [#allocation12], %s3585_s24  ;;  %s4085_s11 = smov [#allocation12]  }
  0xa8   : > { %319 = vst.msk [vmem:[#allocation2 + $0x98] sm:$0xff] %vm298_vm0, %v5886_v0  ;;  %320 = vst.msk [vmem:[#allocation2 + $0xa0] sm:$0xff] %vm298_vm0, %v5886_v0  ;;  %s3143_s12 = sshll.u32 %s296_s26, 4  ;;  %s5830_s30 = scalar_lea.hbm %s5882_s5, %s3592_s9  ;;  %s5832_s12 = int_to_ptr.vmem [resolvable:$true] %s3143_s12 }
  0xa9   : > { %321 = vst.msk [vmem:[#allocation2 + $0xa8] sm:$0xff] %vm298_vm0, %v5886_v0  ;;  %5984 = vst [vmem:[#allocation17_spill] sm:$0xff] %v4388_v3  ;;  %s3982_s7 = scalar_lea.vmem %s5832_s12, 192  ;;  %s3986_s13 = sshll.u32 %s4085_s11, 4  ;;  %s3987_s13 = int_to_ptr.vmem [resolvable:$false] %s3986_s13 }
  0xaa   : > { %3723 = vset.pattern.permute.xlu0 %v5902_v7  ;;  %5985 = vst [vmem:[#allocation18_spill] sm:$0xff] %v4481_v22  ;;  %5993 = vst [vmem:[#allocation26_spill] sm:$0xff] %v4536_v38  ;;  %p3983_p3 = scmp.ne.s32.totalorder %s5832_s12, %s3982_s7  ;;  %s3988_s16 = scalar_lea.vmem %s3987_s13, 384 }
  0xab   : > { %623 = vperm.xlu0 %3723, %v4391_v4   ;;  %419 = vperm.xlu1 %3705, %v4388_v3   ;;  %5995 = vst [vmem:[#allocation28_spill] sm:$0xff] %v4546_v41  ;;  %p3989_p12 = scmp.lt.s32.totalorder %s5832_s12, %s3987_s13  ;;  %p3990_p2 = scmp.lt.s32.totalorder %s3988_s16, %s3982_s7 }
  0xac   : > { %p3984_p5 = pnand %p3983_p3, %p4277_p10 }
  0xad   : > { %p3991_p1 = por %p3990_p2, %p3989_p12 }
  0xae   : > { %p3985_p7 = pneg %p3984_p5 }
  0xaf   : > { %981 = vperm.xlu0 %3723, %v4391_v4   ;;  %3706 = vset.pattern.permute.xlu1 %v4072_v8 }
  0xb0   : > { %435 = vperm.xlu1 %3706, %v4396_v5   ;;  %p3992_p13 = pnand %p3991_p1, %p3985_p7 }
  0xb3   : > { %1226 = vperm.xlu0 %3723, %v4396_v5  }
  0xb4   : > { %443 = vperm.xlu1 %3706, %v4388_v3  }
  0xb7   : > { %3737 = vset.pattern.permute.xlu0 %v5913_v9 }
  0xb8   : > { %577 = vperm.xlu0 %3737, %v4391_v4   ;;  %3707 = vset.pattern.permute.xlu1 %v5892_v1 }
  0xb9   : > { %457 = vperm.xlu1 %3707, %v4396_v5  }
  0xbc   : > { %1027 = vperm.xlu0 %3737, %v4414_v10  }
  0xbd   : > { %465 = vperm.xlu1 %3707, %v4388_v3  }
  0xc0   : > { %1183 = vperm.xlu0 %3737, %v4391_v4  }
  0xc1   : > { %3709 = vset.pattern.permute.xlu1 %v5908_v11 }
  0xc2   : > { %481 = vperm.xlu1 %3709, %v4396_v5  }
  0xc4   : > { %1623 = vperm.xlu0 %3737, %v4421_v12  }
  0xc6   : > { %489 = vperm.xlu1 %3709, %v4388_v3  }
  0xc8   : > { %3742 = vset.pattern.permute.xlu0 %v5911_v13 }
  0xc9   : > { %599 = vperm.xlu0 %3742, %v4391_v4  }
  0xca   : > { %3710 = vset.pattern.permute.xlu1 %v5904_v14 }
  0xcb   : > { %503 = vperm.xlu1 %3710, %v4396_v5  }
  0xcd   : > { %1049 = vperm.xlu0 %3742, %v4414_v10  }
  0xcf   : > { %511 = vperm.xlu1 %3710, %v4388_v3  }
  0xd1   : > { %1647 = vperm.xlu0 %3742, %v4421_v12  }
  0xd3   : > { %3711 = vset.pattern.permute.xlu1 %v5888_v15 }
  0xd4   : > { %527 = vperm.xlu1 %3711, %v4396_v5  }
  0xd5   : > { %3745 = vset.pattern.permute.xlu0 %v5906_v16 }
  0xd6   : > { %715 = vperm.xlu0 %3745, %v4391_v4  }
  0xd8   : > { %535 = vperm.xlu1 %3711, %v4388_v3  }
  0xda   : > { %1073 = vperm.xlu0 %3745, %v4391_v4  }
  0xdc   : > { %3712 = vset.pattern.permute.xlu1 %v5915_v17 }
  0xdd   : > { %549 = vperm.xlu1 %3712, %v4396_v5  }
  0xde   : > { %1671 = vperm.xlu0 %3745, %v4396_v5  }
  0xe1   : > { %557 = vperm.xlu1 %3712, %v4388_v3  }
  0xe2   : > { %1318 = vperm.xlu0 %3745, %v4396_v5  }
  0xe5   : > { %3713 = vset.pattern.permute.xlu1 %v5913_v9 }
  0xe6   : > { %3752 = vset.pattern.permute.xlu0 %v5916_v18  ;;  %573 = vperm.xlu1 %3713, %v4396_v5  }
  0xe7   : > { %645 = vperm.xlu0 %3752, %v4391_v4  }
  0xea   : > { %581 = vperm.xlu1 %3713, %v4388_v3  }
  0xeb   : > { %1003 = vperm.xlu0 %3752, %v4391_v4  }
  0xee   : > { %3714 = vset.pattern.permute.xlu1 %v5911_v13 }
  0xef   : > { %1252 = vperm.xlu0 %3752, %v4391_v4   ;;  %595 = vperm.xlu1 %3714, %v4396_v5  }
  0xf3   : > { %1603 = vperm.xlu0 %3752, %v4388_v3   ;;  %603 = vperm.xlu1 %3714, %v4388_v3  }
  0xf7   : > { %1256 = vperm.xlu0 %3752, %v4388_v3   ;;  %3715 = vset.pattern.permute.xlu1 %v5902_v7 }
  0xf8   : > { %619 = vperm.xlu1 %3715, %v4396_v5  }
  0xfb   : > { %3756 = vset.pattern.permute.xlu0 %v5896_v19 }
  0xfc   : > { %737 = vperm.xlu0 %3756, %v4391_v4   ;;  %627 = vperm.xlu1 %3715, %v4388_v3  }
 0x100   : > { %1340 = vperm.xlu0 %3756, %v4396_v5   ;;  %3716 = vset.pattern.permute.xlu1 %v5916_v18 }
 0x101   : > { %641 = vperm.xlu1 %3716, %v4396_v5  }
 0x104   : > { %3758 = vset.pattern.permute.xlu0 %v5900_v20 }
 0x105   : > { %669 = vperm.xlu0 %3758, %v4391_v4   ;;  %649 = vperm.xlu1 %3716, %v4388_v3  }
 0x109   : > { %1272 = vperm.xlu0 %3758, %v4396_v5   ;;  %3717 = vset.pattern.permute.xlu1 %v5900_v20 }
 0x10a   : > { %665 = vperm.xlu1 %3717, %v4396_v5  }
 0x10d   : > { %1717 = vperm.xlu0 %3758, %v4421_v12  }
 0x10e   : > { %673 = vperm.xlu1 %3717, %v4388_v3  }
 0x111   : > { %3761 = vset.pattern.permute.xlu0 %v5894_v2 }
 0x112   : > { %387 = vperm.xlu0 %3761, %v4396_v5   ;;  %3718 = vset.pattern.permute.xlu1 %v5898_v21 }
 0x113   : > { %687 = vperm.xlu1 %3718, %v4396_v5  }
 0x116   : > { %392 = vperm.xlu0 %3761, %v4391_v4  }
 0x117   : > { %695 = vperm.xlu1 %3718, %v4388_v3  }
 0x11a   : > { %842 = vperm.xlu0 %3761, %v4414_v10  }
 0x11b   : > { %3719 = vset.pattern.permute.xlu1 %v5906_v16  ;;  %v4651_v16 = vld [vmem:[#allocation6 + $0x4] sm:$0x4] }
 0x11c   : > { %711 = vperm.xlu1 %3719, %v4396_v5  }
 0x11e   : > { %1368 = vperm.xlu0 %3761, %v4481_v22  }
 0x120   : > { %719 = vperm.xlu1 %3719, %v4388_v3  }
 0x121   : > { %v4486_v23 = vpop.permute.xlu1 %397  ;;  %v4488_v24 = vpop.permute.xlu0 %461 }
 0x122   : > { %5986 = vst [vmem:[#allocation19_spill] sm:$0xff] %v4488_v24  ;;  %3764 = vset.pattern.permute.xlu0 %v5898_v21 }
 0x123   : > { %691 = vperm.xlu0 %3764, %v4391_v4  }
 0x124   : > { %3720 = vset.pattern.permute.xlu1 %v5896_v19 }
 0x125   : > { %733 = vperm.xlu1 %3720, %v4396_v5   ;;  %v4494_v25 = vpop.permute.xlu0 %813 }
 0x126   : > { %5987 = vst [vmem:[#allocation20_spill] sm:$0xff] %v4494_v25  ;;  %v4496_v26 = vpop.permute.xlu1 %411 }
 0x127   : > { %1739 = vperm.xlu0 %3764, %v4421_v12  }
 0x129   : > { %741 = vperm.xlu1 %3720, %v4388_v3  }
 0x12a   : > { %v4500_v27 = vpop.permute.xlu1 %419  ;;  %v4502_v28 = vpop.permute.xlu0 %623 }
 0x12b   : > { %5988 = vst [vmem:[#allocation21_spill] sm:$0xff] %v4502_v28  ;;  %1743 = vperm.xlu0 %3764, %v4414_v10   ;;  %v6022_v28 = vmov 9  }
 0x12d   : > { %3721 = vset.pattern.permute.xlu1 %v4072_v8 }
 0x12e   : > { %785 = vperm.xlu1 %3721, %v4396_v5   ;;  %v4510_v30 = vpop.permute.xlu0 %981 }
 0x12f   : > { %5989 = vst [vmem:[#allocation22_spill] sm:$0xff] %v4510_v30  ;;  %1747 = vperm.xlu0 %3764, %v4506_v29   ;;  %v4513_v31 = vpop.permute.xlu1 %435 }
 0x132   : > { %795 = vperm.xlu1 %3721, %v4388_v3   ;;  %v4516_v32 = vpop.permute.xlu0 %1226 }
 0x133   : > { %5990 = vst [vmem:[#allocation23_spill] sm:$0xff] %v4516_v32  ;;  %3780 = vset.pattern.permute.xlu0 %v5890_v6  ;;  %v4519_v33 = vpop.permute.xlu1 %443 }
 0x134   : > { %415 = vperm.xlu0 %3780, %v4391_v4  }
 0x136   : > { %3722 = vset.pattern.permute.xlu1 %v5892_v1 }
 0x137   : > { %809 = vperm.xlu1 %3722, %v4396_v5   ;;  %v4524_v34 = vpop.permute.xlu0 %577 }
 0x138   : > { %5991 = vst [vmem:[#allocation24_spill] sm:$0xff] %v4524_v34  ;;  %865 = vperm.xlu0 %3780, %v4414_v10   ;;  %v4527_v35 = vpop.permute.xlu1 %457 }
 0x13b   : > { %817 = vperm.xlu1 %3722, %v4388_v3   ;;  %v4530_v36 = vpop.permute.xlu0 %1027 }
 0x13c   : > { %5992 = vst [vmem:[#allocation25_spill] sm:$0xff] %v4530_v36  ;;  %1392 = vperm.xlu0 %3780, %v4481_v22   ;;  %v4533_v37 = vpop.permute.xlu1 %465 }
 0x13f   : > { %3724 = vset.pattern.permute.xlu1 %v5894_v2  ;;  %v4539_v39 = vpop.permute.xlu0 %1183 }
 0x140   : > { %5994 = vst [vmem:[#allocation27_spill] sm:$0xff] %v4539_v39  ;;  %1396 = vperm.xlu0 %3780, %v4536_v38   ;;  %837 = vperm.xlu1 %3724, %v4421_v12  }
 0x141   : > { %v4543_v40 = vpop.permute.xlu1 %481 }
 0x143   : > { %v4548_v42 = vpop.permute.xlu0 %1623 }
 0x144   : > { %5996 = vst [vmem:[#allocation29_spill] sm:$0xff] %v4548_v42  ;;  %1400 = vperm.xlu0 %3780, %v4546_v41   ;;  %847 = vperm.xlu1 %3724, %v4506_v29  }
 0x145   : > { %v4552_v43 = vpop.permute.xlu1 %489 }
 0x148   : > { %3783 = vset.pattern.permute.xlu0 %v4072_v8  ;;  %3725 = vset.pattern.permute.xlu1 %v5890_v6  ;;  %v4556_v44 = vpop.permute.xlu0 %599  ;;  %v4627_v6 = vshrl.u32 %v324_v63, 7 }
 0x149   : > { %5997 = vst [vmem:[#allocation30_spill] sm:$0xff] %v4556_v44  ;;  %439 = vperm.xlu0 %3783, %v4391_v4   ;;  %861 = vperm.xlu1 %3725, %v4421_v12  }
 0x14a   : > { %v4560_v45 = vpop.permute.xlu1 %503  ;;  %v4637_v21 = vsub.s32 7, %v4627_v6  ;;  %v4663_v9 = vsub.s32 4, %v4627_v6  ;;  %v4678_v30 = vsub.s32 1, %v4627_v6 }
 0x14c   : > { %v4562_v46 = vpop.permute.xlu0 %1049  ;;  %6009 = vst [vmem:[#allocation42_spill] sm:$0xff] %v4637_v21  ;;  %6012 = vst [vmem:[#allocation45_spill] sm:$0xff] %v4663_v9 }
 0x14d   : > { %5998 = vst [vmem:[#allocation31_spill] sm:$0xff] %v4562_v46  ;;  %790 = vperm.xlu0 %3783, %v4391_v4   ;;  %869 = vperm.xlu1 %3725, %v4506_v29  }
 0x14e   : > { %v4566_v47 = vpop.permute.xlu1 %511 }
 0x150   : > { %v4568_v48 = vpop.permute.xlu0 %1647 }
 0x151   : > { %5999 = vst [vmem:[#allocation32_spill] sm:$0xff] %v4568_v48  ;;  %1767 = vperm.xlu0 %3783, %v4481_v22   ;;  %3726 = vset.pattern.permute.xlu1 %v5888_v15 }
 0x152   : > { %885 = vperm.xlu1 %3726, %v4396_v5  }
 0x153   : > { %v4573_v49 = vpop.permute.xlu1 %527 }
 0x155   : > { %1416 = vperm.xlu0 %3783, %v4481_v22   ;;  %v4576_v50 = vpop.permute.xlu0 %715 }
 0x156   : > { %6000 = vst [vmem:[#allocation33_spill] sm:$0xff] %v4576_v50  ;;  %893 = vperm.xlu1 %3726, %v4388_v3  }
 0x157   : > { %v4579_v51 = vpop.permute.xlu1 %535 }
 0x159   : > { %1772 = vperm.xlu0 %3783, %v4536_v38   ;;  %v4582_v52 = vpop.permute.xlu0 %1073 }
 0x15a   : > { %6001 = vst [vmem:[#allocation34_spill] sm:$0xff] %v4582_v52  ;;  %3727 = vset.pattern.permute.xlu1 %v5915_v17 }
 0x15b   : > { %907 = vperm.xlu1 %3727, %v4396_v5  }
 0x15c   : > { %v4586_v53 = vpop.permute.xlu1 %549 }
 0x15d   : > { %1420 = vperm.xlu0 %3783, %v4536_v38   ;;  %v4589_v54 = vpop.permute.xlu0 %1671 }
 0x15e   : > { %6002 = vst [vmem:[#allocation35_spill] sm:$0xff] %v4589_v54  ;;  %v6016_v54 = vmov 8  }
 0x15f   : > { %915 = vperm.xlu1 %3727, %v4388_v3  }
 0x160   : > { %v4592_v55 = vpop.permute.xlu1 %557 }
 0x161   : > { %1777 = vperm.xlu0 %3783, %v4546_v41   ;;  %v4595_v56 = vpop.permute.xlu0 %1318 }
 0x162   : > { %6003 = vst [vmem:[#allocation36_spill] sm:$0xff] %v4595_v56  ;;  %v4709_v56 = vsub.s32 5, %v4627_v6 }
 0x163   : > { %3728 = vset.pattern.permute.xlu1 %v5908_v11 }
 0x164   : > { %931 = vperm.xlu1 %3728, %v4421_v12  }
 0x165   : > { %1424 = vperm.xlu0 %3783, %v4546_v41   ;;  %v4600_v57 = vpop.permute.xlu1 %573 }
 0x166   : > { %v4602_v58 = vpop.permute.xlu0 %645 }
 0x167   : > { %6004 = vst [vmem:[#allocation37_spill] sm:$0xff] %v4602_v58 }
 0x168   : > { %939 = vperm.xlu1 %3728, %v4506_v29  }
 0x169   : > { %3788 = vset.pattern.permute.xlu0 %v5888_v15  ;;  %v4606_v59 = vpop.permute.xlu1 %581  ;;  %v4624_v15 = vld [vmem:[#allocation6 + $0x4] sm:$0x8] }
 0x16a   : > { %531 = vperm.xlu0 %3788, %v4391_v4   ;;  %v4609_v60 = vpop.permute.xlu0 %1003  ;;  %v5910_v19 = vunpack.c.l.bf16 %v4624_v15 }
 0x16b   : > { %6005 = vst [vmem:[#allocation38_spill] sm:$0xff] %v4609_v60  ;;  %v4675_v60 = vsub.s32 0, %v4627_v6 }
 0x16c   : > { %3729 = vset.pattern.permute.xlu1 %v5904_v14  ;;  %v4644_v63 = vrot.slane %v5910_v19, %v4637_v21  ;;  %v5918_v19 = vunpack.c.l.bf16 %v4651_v16 }
 0x16d   : > { %953 = vperm.xlu1 %3729, %v4421_v12   ;;  %6013 = vst [vmem:[#allocation46_spill] sm:$0xff] %v4675_v60 }
 0x16e   : > { %889 = vperm.xlu0 %3788, %v4391_v4   ;;  %v4614_v61 = vpop.permute.xlu1 %595  ;;  %v4616_v62 = vpop.permute.xlu0 %1252 }
 0x16f   : > { %6006 = vst [vmem:[#allocation39_spill] sm:$0xff] %v4616_v62 }
 0x171   : > { %961 = vperm.xlu1 %3729, %v4506_v29  }
 0x172   : > { %1508 = vperm.xlu0 %3788, %v4481_v22   ;;  %v4620_v8 = vpop.permute.xlu1 %603  ;;  %v4622_v0 = vpop.permute.xlu0 %1603 }
 0x173   : > { %6007 = vst [vmem:[#allocation40_spill] sm:$0xff] %v4622_v0  ;;  %v4684_v0 = vsub.s32 2, %v4627_v6 }
 0x175   : > { %3730 = vset.pattern.permute.xlu1 %v5902_v7  ;;  %6015 = vst [vmem:[#allocation48_spill] sm:$0xff] %v4684_v0 }
 0x176   : > { %1871 = vperm.xlu0 %3788, %v4536_v38   ;;  %977 = vperm.xlu1 %3730, %v4396_v5   ;;  %v4631_v1 = vpop.permute.xlu0 %1256 }
 0x177   : > { %6008 = vst [vmem:[#allocation41_spill] sm:$0xff] %v4631_v1  ;;  %v4633_v2 = vpop.permute.xlu1 %619 }
 0x17a   : > { %1512 = vperm.xlu0 %3788, %v4536_v38   ;;  %985 = vperm.xlu1 %3730, %v4388_v3  }
 0x17b   : > { %v4646_v20 = vpop.permute.xlu1 %627  ;;  %v738_v7 = vpop.permute.xlu0 %737 }
 0x17c   : > { %v4649_v14 = vmul.f32 %v4644_v63, %v738_v7  ;;  %v383_v7 = vld [vmem:[#allocation6] sm:$0x1] }
 0x17d   : > { %v384_v36 = vunpack.c.l.bf16 %v383_v7 }
 0x17e   : > { %6010 = vst [vmem:[#allocation43_spill] sm:$0xff] %v4649_v14  ;;  %3796 = vset.pattern.permute.xlu0 %v5915_v17  ;;  %3731 = vset.pattern.permute.xlu1 %v5916_v18  ;;  %v4670_v17 = vrot.slane %v5918_v19, %v4663_v9  ;;  %v432_v18 = vld [vmem:[#allocation6] sm:$0x2]  ;;  %v478_v19 = vld [vmem:[#allocation6] sm:$0x4] }
 0x17f   : > { %553 = vperm.xlu0 %3796, %v4391_v4   ;;  %999 = vperm.xlu1 %3731, %v4396_v5   ;;  %v4657_v11 = vpop.permute.xlu0 %1340  ;;  %v433_v39 = vunpack.c.l.bf16 %v432_v18  ;;  %v4692_v48 = vrot.slane %v384_v36, %v4675_v60  ;;  %v4695_v42 = vrot.slane %v384_v36, %v4678_v30  ;;  %v4698_v18 = vsub.s32 3, %v4627_v6 }
 0x180   : > { %6011 = vst [vmem:[#allocation44_spill] sm:$0xff] %v4657_v11  ;;  %v4660_v13 = vpop.permute.xlu1 %641  ;;  %v479_v1 = vunpack.c.l.bf16 %v478_v19 }
 0x181   : > { %6018 = vst [vmem:[#allocation50_spill] sm:$0xff] %v4698_v18  ;;  %v428_v11 = vmul.f32 %v4695_v42, %v4500_v27  ;;  %v4705_v41 = vrot.slane %v433_v39, %v4684_v0  ;;  %v406_v32 = vmul.f32 %v4692_v48, %v4486_v23  ;;  %v4717_v19 = vrot.slane %v433_v39, %v4698_v18  ;;  %v570_v39 = vld [vmem:[#allocation6 + $0x4] sm:$0x1] }
 0x182   : > { %v4732_v23 = vsub.s32 6, %v4627_v6  ;;  %v571_v24 = vunpack.c.l.bf16 %v570_v39 }
 0x183   : > { %911 = vperm.xlu0 %3796, %v4391_v4   ;;  %1007 = vperm.xlu1 %3731, %v4388_v3   ;;  %6019 = vst [vmem:[#allocation51_spill] sm:$0xff] %v4705_v41  ;;  %v452_v27 = vmul.f32 %v4705_v41, %v4519_v33  ;;  %v431_v50 = vadd.f32 %v428_v11, %v406_v32 }
 0x184   : > { %v4672_v52 = vpop.permute.xlu1 %649  ;;  %v670_v46 = vpop.permute.xlu0 %669  ;;  %6021 = vst [vmem:[#allocation53_spill] sm:$0xff] %v4732_v23  ;;  %v4736_v33 = vrot.slane %v479_v1, %v4709_v56 }
 0x185   : > { %v4681_v62 = vmul.f32 %v4670_v17, %v670_v46  ;;  %v455_v44 = vadd.f32 %v452_v27, %v431_v50  ;;  %v450_v27 = vmul.f32 %v4705_v41, %v4513_v31 }
 0x186   : > { %v520_v50 = vmul.f32 %v4736_v33, %v4566_v47  ;;  %v4770_v31 = vmul.u32.u64.low 2863311531, %v4627_v6  ;;  %v4771_v41 = vmul.u32.u64.high 2863311531, %v4627_v6, %v4770_v31 }
 0x187   : > { %6014 = vst [vmem:[#allocation47_spill] sm:$0xff] %v4681_v62  ;;  %1889 = vperm.xlu0 %3796, %v4481_v22   ;;  %3732 = vset.pattern.permute.xlu1 %v6016_v54  ;;  %v4727_v62 = vrot.slane %v479_v1, %v4663_v9  ;;  %v6024_v31 = vmov 14  }
 0x188   : > { %1023 = vperm.xlu1 %3732, %v4421_v12   ;;  %v4689_v7 = vpop.permute.xlu0 %1272 }
 0x189   : > { %6017 = vst [vmem:[#allocation49_spill] sm:$0xff] %v4689_v7  ;;  %v4700_v46 = vpop.permute.xlu1 %665  ;;  %v524_v7 = vld [vmem:[#allocation6] sm:$0x8]  ;;  %v498_v34 = vmul.f32 %v4727_v62, %v4552_v43 }
 0x18a   : > { %v525_v58 = vunpack.c.l.bf16 %v524_v7  ;;  %v426_v7 = vmul.f32 %v4695_v42, %v4496_v26 }
 0x18b   : > { %1530 = vperm.xlu0 %3796, %v4481_v22   ;;  %v4724_v22 = vadd.s32 16, %v4627_v6 }
 0x18c   : > { %1031 = vperm.xlu1 %3732, %v4506_v29   ;;  %v4712_v36 = vpop.permute.xlu0 %1717  ;;  %v4754_v43 = vrot.slane %v525_v58, %v4732_v23 }
 0x18d   : > { %6020 = vst [vmem:[#allocation52_spill] sm:$0xff] %v4712_v36  ;;  %v4721_v14 = vpop.permute.xlu1 %673  ;;  %v474_v36 = vmul.f32 %v4717_v19, %v4533_v37  ;;  %v4743_v32 = vmul.u32.u64.low 2863311531, %v4724_v22  ;;  %v4744_v37 = vmul.u32.u64.high 2863311531, %v4724_v22, %v4743_v32 }
 0x18e   : > { %v616_v32 = vld [vmem:[#allocation6 + $0x4] sm:$0x2] }
 0x18f   : > { %1893 = vperm.xlu0 %3796, %v4536_v38   ;;  %v477_v25 = vadd.f32 %v474_v36, %v455_v44  ;;  %v4762_v44 = vrot.slane %v525_v58, %v4637_v21  ;;  %v472_v36 = vmul.f32 %v4717_v19, %v4527_v35  ;;  %v6023_v58 = vmov 4  }
 0x190   : > { %3733 = vset.pattern.permute.xlu1 %v6022_v28 }
 0x191   : > { %v388_v11 = vpop.permute.xlu0 %387  ;;  %1045 = vperm.xlu1 %3733, %v4421_v12   ;;  %v501_v26 = vadd.f32 %v498_v34, %v477_v25  ;;  %v4774_v25 = vrot.slane %v571_v24, %v4675_v60 }
 0x192   : > { %v404_v9 = vmul.f32 %v4692_v48, %v388_v11  ;;  %v4749_v1 = vpop.permute.xlu1 %687  ;;  %v544_v11 = vmul.f32 %v4754_v43, %v4579_v51  ;;  %v566_v51 = vmul.f32 %v4762_v44, %v4592_v55  ;;  %v356_v55 = vshrl.u32 %v4744_v37, 2 }
 0x193   : > { %1534 = vperm.xlu0 %3796, %v4536_v38   ;;  %v523_v34 = vadd.f32 %v520_v50, %v501_v26 }
 0x194   : > { %v429_v3 = vadd.f32 %v426_v7, %v404_v9  ;;  %v617_v9 = vunpack.c.l.bf16 %v616_v32  ;;  %v496_v7 = vmul.f32 %v4727_v62, %v4543_v40  ;;  %v590_v32 = vmul.f32 %v4774_v25, %v4606_v59 }
 0x195   : > { %1053 = vperm.xlu1 %3733, %v4506_v29   ;;  %v4765_v47 = vpop.permute.xlu0 %392  ;;  %v518_v40 = vmul.f32 %v4736_v33, %v4560_v45 }
 0x196   : > { %v453_v39 = vadd.f32 %v450_v27, %v429_v3  ;;  %v696_v38 = vpop.permute.xlu1 %695  ;;  %v4783_v3 = vrot.slane %v571_v24, %v4678_v30  ;;  %v547_v27 = vadd.f32 %v544_v11, %v523_v34  ;;  %v4795_v24 = vrot.slane %v617_v9, %v4684_v0 }
 0x197   : > { %3799 = vset.pattern.permute.xlu0 %v6023_v58  ;;  %v4805_v45 = vrot.slane %v617_v9, %v4698_v18 }
 0x198   : > { %v475_v35 = vadd.f32 %v472_v36, %v453_v39  ;;  %485 = vperm.xlu0 %3799, %v4391_v4   ;;  %v569_v11 = vadd.f32 %v566_v51, %v547_v27  ;;  %v612_v59 = vmul.f32 %v4783_v3, %v4620_v8  ;;  %v542_v39 = vmul.f32 %v4754_v43, %v4573_v49 }
 0x199   : > { %3734 = vset.pattern.permute.xlu1 %v6024_v31  ;;  %v4788_v50 = vpop.permute.xlu0 %842  ;;  %v357_v8 = vmul.u32 6, %v356_v55  ;;  %v564_v27 = vmul.f32 %v4762_v44, %v4586_v53  ;;  %v334_v49 = vshrl.u32 %v4771_v41, 2  ;;  %v658_v9 = vmul.f32 %v4805_v45, %v4672_v52 }
 0x19a   : > { %v499_v26 = vadd.f32 %v496_v7, %v475_v35  ;;  %1069 = vperm.xlu1 %3734, %v4396_v5   ;;  %v593_v37 = vadd.f32 %v590_v32, %v569_v11  ;;  %v636_v7 = vmul.f32 %v4795_v24, %v4646_v20  ;;  %v4810_v35 = vld [vmem:[%s4333_s10 + $0xf] sm:$0xff]  ;;  %v588_v32 = vmul.f32 %v4774_v25, %v4600_v57 }
 0x19b   : > { %v4799_v36 = vpop.permute.xlu1 %711  ;;  %v682_v53 = vmul.f32 %v4670_v17, %v4721_v14  ;;  %v6025_v41 = vunpack.c.l.bf16 %v4651_v16  ;;  %v610_v52 = vmul.f32 %v4783_v3, %v4614_v61  ;;  %v6026_v57 = vunpack.c.l.bf16 %v4624_v15 }
 0x19c   : > { %v521_v34 = vadd.f32 %v518_v40, %v499_v26  ;;  %935 = vperm.xlu0 %3799, %v4414_v10   ;;  %v615_v40 = vadd.f32 %v612_v59, %v593_v37  ;;  %v358_v59 = vsub.s32 %v4724_v22, %v357_v8  ;;  %v634_v16 = vmul.f32 %v4795_v24, %v4633_v2 }
 0x19d   : > { %v4812_v51 = vpop.permute.xlu0 %1368  ;;  %v701_v11 = vrot.slane %v6025_v41, %v4709_v56  ;;  %v6027_v8 = vmov 5   ;;  %v6028_v41 = vmov 10  }
 0x19e   : > { %v545_v58 = vadd.f32 %v542_v39, %v521_v34  ;;  %3735 = vset.pattern.permute.xlu1 %v6016_v54  ;;  %v639_v55 = vadd.f32 %v636_v7, %v615_v40  ;;  %v335_v34 = vmul.u32 6, %v334_v49  ;;  %vm363_vm1 = vcmp.ne.s32.totalorder %v358_v59, 0 }
 0x19f   : > { %1178 = vperm.xlu1 %3735, %v4396_v5   ;;  %v720_v20 = vpop.permute.xlu1 %719  ;;  %vm366_vm2 = vcmp.lt.s32.totalorder %v358_v59, 0 }
 0x1a0   : > { %v567_v26 = vadd.f32 %v564_v27, %v545_v58  ;;  %1917 = vperm.xlu0 %3799, %v4810_v35   ;;  %v4835_v58 = vrot.slane %v6026_v57, %v4732_v23  ;;  %v661_v7 = vadd.f32 %v658_v9, %v639_v55  ;;  %v704_v27 = vmul.f32 %v701_v11, %v696_v38  ;;  %vm4854_vm3 = vmand %vm366_vm2, %vm363_vm1 }
 0x1a1   : > { %v656_v38 = vmul.f32 %v4805_v45, %v4660_v13  ;;  %v336_v9 = vsub.s32 %v4627_v6, %v335_v34  ;;  %v680_v55 = vmul.f32 %v4670_v17, %v4700_v46  ;;  %v4862_v17 = vld [vmem:[#allocation8] ss:$0 sm:$0xff] }
 0x1a2   : > { %v591_v39 = vadd.f32 %v588_v32, %v567_v26  ;;  %v692_v37 = vpop.permute.xlu0 %691  ;;  %v685_v49 = vadd.f32 %v682_v53, %v661_v7  ;;  %v728_v15 = vmul.f32 %v4835_v58, %v720_v20  ;;  %v372_v26 = vadd.s32 6, %v358_v59 }
 0x1a3   : > { %3736 = vset.pattern.permute.xlu1 %v6022_v28  ;;  %v4838_v14 = vmul.f32 %v701_v11, %v692_v37  ;;  %v702_v37 = vmul.f32 %v701_v11, %v4749_v1  ;;  %vm361_vm4 = vcmp.ne.s32.totalorder %v336_v9, 0  ;;  %vm364_vm5 = vcmp.lt.s32.totalorder %v336_v9, 0 }
 0x1a4   : > { %v613_v22 = vadd.f32 %v610_v52, %v591_v39  ;;  %3801 = vset.pattern.permute.xlu0 %v6027_v8  ;;  %1202 = vperm.xlu1 %3736, %v4396_v5   ;;  %v734_v61 = vpop.permute.xlu1 %733  ;;  %v707_v32 = vadd.f32 %v704_v27, %v685_v49  ;;  %v375_v57 = vsel %vm4854_vm3, %v372_v26, %v358_v59  ;;  %vm4870_vm6 = vmand %vm364_vm5, %vm361_vm4  ;;  %v6033_v11 = vmov 11  }
 0x1a5   : > { %507 = vperm.xlu0 %3801, %v4391_v4   ;;  %v748_v59 = vmul.f32 %v4644_v63, %v734_v61  ;;  %vm4880_vm7 = vcmp.lt.s32.totalorder %v375_v57, 4  ;;  %v405_v61 = vmul.f32 %v4692_v48, %v4765_v47 }
 0x1a6   : > { %v637_v40 = vadd.f32 %v634_v16, %v613_v22  ;;  %v4849_v2 = vpop.permute.xlu0 %1739  ;;  %v731_v39 = vadd.f32 %v728_v15, %v707_v32  ;;  %v726_v16 = vmul.f32 %v4835_v58, %v4799_v36  ;;  %v370_v22 = vadd.s32 6, %v336_v9  ;;  %v4886_v36 = vld [vmem:[%s4333_s10 + $0x17] sm:$0xff] }
 0x1a8   : > { %v659_v53 = vadd.f32 %v656_v38, %v637_v40  ;;  %3738 = vset.pattern.permute.xlu1 %v6028_v41  ;;  %v742_v52 = vpop.permute.xlu1 %741  ;;  %v6035_v40 = vmov 0 }
 0x1a9   : > { %v750_v13 = vmul.f32 %v4644_v63, %v742_v52  ;;  %957 = vperm.xlu0 %3801, %v4414_v10   ;;  %1571 = vperm.xlu1 %3738, %v4396_v5   ;;  %v6036_v40 = vsel %vm4880_vm7, 4294967295, %v6035_v40 }
 0x1aa   : > { %v683_v34 = vadd.f32 %v680_v55, %v659_v53  ;;  %v4864_v46 = vpop.permute.xlu0 %1743  ;;  %6037 = vst [vmem:[#allocation55_spill] sm:$0xff] %v6036_v40  ;;  %v373_v55 = vsel %vm4870_vm6, %v370_v22, %v336_v9  ;;  %v4928_v22 = vld [vmem:[%s4333_s10 + $0x8] sm:$0xff] }
 0x1ab   : > { %v753_v7 = vadd.f32 %v750_v13, %v731_v39  ;;  %vm4902_vm8 = vcmp.lt.s32.totalorder %v373_v55, 4  ;;  %v6040_v39 = vmov 0  ;;  %v6055_v40 = vld [vmem:[#allocation20_spill] sm:$0xff] }
 0x1ac   : > { %v705_v27 = vadd.f32 %v702_v37, %v683_v34  ;;  %v6041_v39 = vsel %vm4902_vm8, 4294967295, %v6040_v39  ;;  %v6043_v37 = vmov 12  }
 0x1ad   : > { %v762_v1 = vadd.f32 %v4862_v17, %v753_v7  ;;  %1939 = vperm.xlu0 %3801, %v4810_v35   ;;  %3739 = vset.pattern.permute.xlu1 %v6033_v11  ;;  %v4877_v15 = vpop.permute.xlu1 %785  ;;  %6042 = vst [vmem:[#allocation58_spill] sm:$0xff] %v6041_v39 }
 0x1ae   : > { %6034 = vst [vmem:[#allocation54_spill] sm:$0xff] %v4877_v15  ;;  %v729_v38 = vadd.f32 %v726_v16, %v705_v27  ;;  %1595 = vperm.xlu1 %3739, %v4396_v5   ;;  %v4888_v32 = vpop.permute.xlu0 %1747  ;;  %v6046_v27 = vld [vmem:[#allocation17_spill] sm:$0xff] }
 0x1af   : > { %6038 = vst [vmem:[#allocation56_spill] sm:$0xff] %v4888_v32  ;;  %v765_v26 = vmax.f32 %v762_v1, 0.0 }
 0x1b0   : > { %v751_v53 = vadd.f32 %v748_v59, %v729_v38  ;;  %v6048_v38 = vmov 13  }
 0x1b1   : > { %v774_v20 = vsel %vm4880_vm7, %v765_v26, 0.0  ;;  %1943 = vperm.xlu0 %3801, %v4886_v36   ;;  %v4895_v63 = vpop.permute.xlu1 %795 }
 0x1b2   : > { %6039 = vst [vmem:[#allocation57_spill] sm:$0xff] %v4895_v63  ;;  %v760_v52 = vadd.f32 %v4862_v17, %v751_v53  ;;  %777 = vst.msk [vmem:[#allocation2 + $0x17] sm:$0xff] %vm298_vm0, %v774_v20  ;;  %3740 = vset.pattern.permute.xlu1 %v6022_v28  ;;  %v781_v53 = vld [vmem:[#allocation6] sm:$0x1]  ;;  %v833_v20 = vld [vmem:[#allocation6] sm:$0x2] }
 0x1b3   : > { %1206 = vperm.xlu1 %3740, %v4391_v4   ;;  %v416_v9 = vpop.permute.xlu0 %415  ;;  %v6054_v63 = vld [vmem:[#allocation51_spill] sm:$0xff] }
 0x1b4   : > { %v763_v13 = vmax.f32 %v760_v52, 0.0  ;;  %v427_v34 = vmul.f32 %v4695_v42, %v416_v9  ;;  %v782_v52 = vunpack.c.l.bf16 %v781_v53  ;;  %v834_v9 = vunpack.c.l.bf16 %v833_v20 }
 0x1b5   : > { %3805 = vset.pattern.permute.xlu0 %v6043_v37 }
 0x1b6   : > { %v772_v48 = vsel %vm4902_vm8, %v763_v13, 0.0  ;;  %1115 = vperm.xlu0 %3805, %v4421_v12   ;;  %v4912_v47 = vpop.permute.xlu1 %809  ;;  %v430_v57 = vadd.f32 %v427_v34, %v405_v61  ;;  %v4924_v12 = vld [vmem:[#allocation6 + $0x4] sm:$0x1]  ;;  %v4966_v53 = vrot.slane %v782_v52, %v4675_v60 }
 0x1b7   : > { %6044 = vst [vmem:[#allocation59_spill] sm:$0xff] %v4912_v47  ;;  %775 = vst.msk [vmem:[#allocation2 + $0x7] sm:$0xff] %vm298_vm0, %v772_v48  ;;  %3741 = vset.pattern.permute.xlu1 %v6033_v11  ;;  %v866_v7 = vpop.permute.xlu0 %865  ;;  %v5927_v59 = vunpack.c.l.bf16 %v4924_v12  ;;  %v6052_v48 = vld [vmem:[#allocation19_spill] sm:$0xff] }
 0x1b8   : > { %1248 = vperm.xlu1 %3741, %v4396_v5   ;;  %6057 = vst [vmem:[#allocation20_spill] sm:$0xff] %v4966_v53  ;;  %v5047_v47 = vld [vmem:[%s4333_s10] sm:$0xff] }
 0x1b9   : > { %v4941_v26 = vrot.slane %v5927_v59, %v4678_v30  ;;  %v473_v59 = vmul.f32 %v4717_v19, %v6052_v48 }
 0x1ba   : > { %3807 = vset.pattern.permute.xlu0 %v6024_v31  ;;  %v4918_v42 = vpop.permute.xlu1 %817 }
 0x1bb   : > { %6045 = vst [vmem:[#allocation60_spill] sm:$0xff] %v4918_v42  ;;  %1077 = vperm.xlu0 %3807, %v6046_v27   ;;  %v4921_v16 = vpop.permute.xlu0 %1392  ;;  %v4963_v42 = vrot.slane %v834_v9, %v4684_v0 }
 0x1bc   : > { %3743 = vset.pattern.permute.xlu1 %v6028_v41 }
 0x1bd   : > { %1230 = vperm.xlu1 %3743, %v4391_v4   ;;  %6056 = vst [vmem:[#allocation51_spill] sm:$0xff] %v4963_v42 }
 0x1bf   : > { %v4930_v49 = vpop.permute.xlu1 %837  ;;  %v4932_v1 = vpop.permute.xlu0 %1396  ;;  %3810 = vset.pattern.permute.xlu0 %v6048_v38 }
 0x1c0   : > { %6047 = vst [vmem:[#allocation17_spill] sm:$0xff] %v4930_v49  ;;  %1141 = vperm.xlu0 %3810, %v4414_v10  }
 0x1c1   : > { %1576 = vperm.xlu1 %3743, %v4928_v22  }
 0x1c3   : > { %v4943_v4 = vpop.permute.xlu1 %847  ;;  %v1401_v55 = vpop.permute.xlu0 %1400 }
 0x1c4   : > { %6049 = vst [vmem:[#allocation61_spill] sm:$0xff] %v4943_v4  ;;  %v4946_v61 = vmul.f32 %v4941_v26, %v1401_v55  ;;  %3813 = vset.pattern.permute.xlu0 %v6027_v8  ;;  %v4956_v4 = vrot.slane %v782_v52, %v4678_v30 }
 0x1c5   : > { %3744 = vset.pattern.permute.xlu1 %v6033_v11 }
 0x1c6   : > { %6050 = vst [vmem:[#allocation62_spill] sm:$0xff] %v4946_v61  ;;  %1599 = vperm.xlu1 %3744, %v4928_v22   ;;  %6053 = vst [vmem:[#allocation19_spill] sm:$0xff] %v4956_v4  ;;  %v825_v11 = vmul.f32 %v4956_v4, %v6055_v40  ;;  %v6076_v4 = vmov 15  }
 0x1c8   : > { %v4951_v13 = vpop.permute.xlu1 %861  ;;  %v440_v34 = vpop.permute.xlu0 %439 }
 0x1c9   : > { %6051 = vst [vmem:[#allocation63_spill] sm:$0xff] %v4951_v13  ;;  %v451_v55 = vmul.f32 %v6054_v63, %v440_v34  ;;  %v855_v63 = vmul.f32 %v4963_v42, %v4788_v50  ;;  %v4974_v34 = vrot.slane %v834_v9, %v4698_v18 }
 0x1ca   : > { %3746 = vset.pattern.permute.xlu1 %v6016_v54 }
 0x1cb   : > { %1188 = vperm.xlu1 %3746, %v6046_v27   ;;  %v454_v20 = vadd.f32 %v451_v55, %v430_v57  ;;  %6059 = vst [vmem:[#allocation65_spill] sm:$0xff] %v4974_v34  ;;  %v877_v49 = vmul.f32 %v4974_v34, %v866_v7  ;;  %v6071_v34 = vld [vmem:[#allocation45_spill] sm:$0xff] }
 0x1cc   : > { %v4969_v19 = vpop.permute.xlu1 %869  ;;  %v791_v48 = vpop.permute.xlu0 %790 }
 0x1cd   : > { %6058 = vst [vmem:[#allocation64_spill] sm:$0xff] %v4969_v19  ;;  %v803_v40 = vmul.f32 %v4966_v53, %v791_v48  ;;  %v4977_v13 = vadd.f32 %v473_v59, %v454_v20  ;;  %v4998_v20 = vld [vmem:[#allocation6 + $0x4] sm:$0x2] }
 0x1ce   : > { %6063 = vst [vmem:[#allocation69_spill] sm:$0xff] %v4998_v20 }
 0x1cf   : > { %3747 = vset.pattern.permute.xlu1 %v6022_v28  ;;  %v828_v52 = vadd.f32 %v825_v11, %v803_v40 }
 0x1d0   : > { %1210 = vperm.xlu1 %3747, %v6046_v27   ;;  %v4982_v57 = vpop.permute.xlu0 %1767 }
 0x1d1   : > { %v858_v55 = vadd.f32 %v855_v63, %v828_v52  ;;  %v4984_v19 = vpop.permute.xlu1 %885 }
 0x1d2   : > { %6060 = vst [vmem:[#allocation66_spill] sm:$0xff] %v4984_v19 }
 0x1d3   : > { %v880_v50 = vadd.f32 %v877_v49, %v858_v55  ;;  %v5018_v55 = vld [vmem:[%s4333_s10 + $0x8] sm:$0xff] }
 0x1d4   : > { %3748 = vset.pattern.permute.xlu1 %v6048_v38  ;;  %v4987_v9 = vpop.permute.xlu0 %1416  ;;  %6067 = vst [vmem:[#allocation73_spill] sm:$0xff] %v5018_v55 }
 0x1d5   : > { %1294 = vperm.xlu1 %3748, %v4396_v5   ;;  %v4990_v59 = vpop.permute.xlu1 %893  ;;  %v5930_v5 = vunpack.c.l.bf16 %v4998_v20 }
 0x1d6   : > { %6061 = vst [vmem:[#allocation67_spill] sm:$0xff] %v4990_v59  ;;  %v882_v59 = vld [vmem:[#allocation6] sm:$0x4] }
 0x1d7   : > { %v5012_v40 = vrot.slane %v5930_v5, %v4684_v0  ;;  %v883_v19 = vunpack.c.l.bf16 %v882_v59  ;;  %v5028_v5 = vld [vmem:[%s4333_s10 + $0x10] sm:$0xff] }
 0x1d8   : > { %v4992_v7 = vpop.permute.xlu0 %1772  ;;  %6070 = vst [vmem:[#allocation76_spill] sm:$0xff] %v5028_v5 }
 0x1d9   : > { %3749 = vset.pattern.permute.xlu1 %v6016_v54  ;;  %v5034_v42 = vrot.slane %v883_v19, %v6071_v34 }
 0x1da   : > { %1628 = vperm.xlu1 %3749, %v4414_v10   ;;  %v4996_v11 = vpop.permute.xlu1 %907 }
 0x1db   : > { %6062 = vst [vmem:[#allocation68_spill] sm:$0xff] %v4996_v11  ;;  %6072 = vst [vmem:[#allocation77_spill] sm:$0xff] %v5034_v42 }
 0x1dc   : > { %v5000_v49 = vpop.permute.xlu0 %1420 }
 0x1de   : > { %3750 = vset.pattern.permute.xlu1 %v6028_v41  ;;  %v5003_v48 = vpop.permute.xlu1 %915 }
 0x1df   : > { %6064 = vst [vmem:[#allocation70_spill] sm:$0xff] %v5003_v48  ;;  %1234 = vperm.xlu1 %3750, %v6046_v27  }
 0x1e0   : > { %v5007_v63 = vpop.permute.xlu0 %1777 }
 0x1e1   : > { %6065 = vst [vmem:[#allocation71_spill] sm:$0xff] %v5007_v63  ;;  %v6119_v63 = vmov 4  }
 0x1e3   : > { %3751 = vset.pattern.permute.xlu1 %v6043_v37  ;;  %v5015_v52 = vpop.permute.xlu1 %931 }
 0x1e4   : > { %6066 = vst [vmem:[#allocation72_spill] sm:$0xff] %v5015_v52  ;;  %1276 = vperm.xlu1 %3751, %v5018_v55   ;;  %v1425_v48 = vpop.permute.xlu0 %1424 }
 0x1e5   : > { %v5022_v11 = vmul.f32 %v5012_v40, %v1425_v48 }
 0x1e7   : > { %6068 = vst [vmem:[#allocation74_spill] sm:$0xff] %v5022_v11  ;;  %v5024_v27 = vpop.permute.xlu1 %939 }
 0x1e8   : > { %6069 = vst [vmem:[#allocation75_spill] sm:$0xff] %v5024_v27  ;;  %3753 = vset.pattern.permute.xlu1 %v6028_v41 }
 0x1e9   : > { %1581 = vperm.xlu1 %3753, %v5028_v5   ;;  %v5031_v52 = vpop.permute.xlu0 %531 }
 0x1ec   : > { %v5036_v53 = vpop.permute.xlu1 %953 }
 0x1ed   : > { %6073 = vst [vmem:[#allocation78_spill] sm:$0xff] %v5036_v53  ;;  %3754 = vset.pattern.permute.xlu1 %v6022_v28  ;;  %v890_v48 = vpop.permute.xlu0 %889 }
 0x1ee   : > { %1651 = vperm.xlu1 %3754, %v4414_v10   ;;  %v901_v59 = vmul.f32 %v5034_v42, %v890_v48 }
 0x1f0   : > { %v904_v27 = vadd.f32 %v901_v59, %v880_v50  ;;  %v5041_v41 = vpop.permute.xlu1 %961 }
 0x1f1   : > { %6074 = vst [vmem:[#allocation79_spill] sm:$0xff] %v5041_v41  ;;  %v5043_v15 = vpop.permute.xlu0 %1508  ;;  %v5065_v41 = vrot.slane %v883_v19, %v4709_v56 }
 0x1f2   : > { %6075 = vst [vmem:[#allocation80_spill] sm:$0xff] %v5043_v15  ;;  %3755 = vset.pattern.permute.xlu1 %v6076_v4 }
 0x1f3   : > { %1693 = vperm.xlu1 %3755, %v5047_v47   ;;  %6082 = vst [vmem:[#allocation86_spill] sm:$0xff] %v5065_v41 }
 0x1f5   : > { %v5050_v39 = vpop.permute.xlu1 %977  ;;  %v5052_v53 = vpop.permute.xlu0 %1871 }
 0x1f6   : > { %6077 = vst [vmem:[#allocation81_spill] sm:$0xff] %v5050_v39  ;;  %6078 = vst [vmem:[#allocation82_spill] sm:$0xff] %v5052_v53 }
 0x1f7   : > { %3757 = vset.pattern.permute.xlu1 %v6048_v38 }
 0x1f8   : > { %1298 = vperm.xlu1 %3757, %v5018_v55  }
 0x1f9   : > { %v5056_v10 = vpop.permute.xlu1 %985  ;;  %v5058_v50 = vpop.permute.xlu0 %1512 }
 0x1fa   : > { %6079 = vst [vmem:[#allocation83_spill] sm:$0xff] %v5056_v10  ;;  %6080 = vst [vmem:[#allocation84_spill] sm:$0xff] %v5058_v50 }
 0x1fc   : > { %3759 = vset.pattern.permute.xlu1 %v6016_v54 }
 0x1fd   : > { %1633 = vperm.xlu1 %3759, %v4506_v29  }
 0x1fe   : > { %v5062_v48 = vpop.permute.xlu1 %999  ;;  %v554_v59 = vpop.permute.xlu0 %553 }
 0x1ff   : > { %6081 = vst [vmem:[#allocation85_spill] sm:$0xff] %v5062_v48 }
 0x201   : > { %3760 = vset.pattern.permute.xlu1 %v6024_v31 }
 0x202   : > { %1675 = vperm.xlu1 %3760, %v4928_v22   ;;  %v5069_v39 = vpop.permute.xlu1 %1007  ;;  %v912_v42 = vpop.permute.xlu0 %911 }
 0x203   : > { %6083 = vst [vmem:[#allocation87_spill] sm:$0xff] %v5069_v39  ;;  %v923_v10 = vmul.f32 %v5065_v41, %v912_v42 }
 0x205   : > { %v926_v50 = vadd.f32 %v923_v10, %v904_v27  ;;  %v5092_v10 = vld [vmem:[#allocation6] sm:$0x8] }
 0x206   : > { %3762 = vset.pattern.permute.xlu1 %v6043_v37  ;;  %v5073_v54 = vpop.permute.xlu0 %1889  ;;  %6091 = vst [vmem:[#allocation95_spill] sm:$0xff] %v5092_v10 }
 0x207   : > { %6084 = vst [vmem:[#allocation88_spill] sm:$0xff] %v5073_v54  ;;  %1280 = vperm.xlu1 %3762, %v5028_v5   ;;  %v5076_v48 = vpop.permute.xlu1 %1023 }
 0x208   : > { %6085 = vst [vmem:[#allocation89_spill] sm:$0xff] %v5076_v48 }
 0x20a   : > { %v5078_v19 = vpop.permute.xlu0 %1530 }
 0x20b   : > { %6086 = vst [vmem:[#allocation90_spill] sm:$0xff] %v5078_v19  ;;  %3763 = vset.pattern.permute.xlu1 %v6024_v31  ;;  %v5081_v53 = vpop.permute.xlu1 %1031  ;;  %v5138_v19 = vld [vmem:[%s4333_s10 + $0x9] sm:$0xff] }
 0x20c   : > { %6087 = vst [vmem:[#allocation91_spill] sm:$0xff] %v5081_v53  ;;  %1322 = vperm.xlu1 %3763, %v5018_v55   ;;  %v5946_v53 = vunpack.c.l.bf16 %v5092_v10 }
 0x20e   : > { %v5084_v39 = vpop.permute.xlu0 %1893 }
 0x20f   : > { %6088 = vst [vmem:[#allocation92_spill] sm:$0xff] %v5084_v39 }
 0x210   : > { %3765 = vset.pattern.permute.xlu1 %v6022_v28  ;;  %v5087_v42 = vpop.permute.xlu1 %1045  ;;  %v5104_v28 = vrot.slane %v5946_v53, %v4732_v23 }
 0x211   : > { %6089 = vst [vmem:[#allocation93_spill] sm:$0xff] %v5087_v42  ;;  %1655 = vperm.xlu1 %3765, %v4506_v29   ;;  %v326_v42 = vadd.s32 8, %v4627_v6 }
 0x212   : > { %v5090_v27 = vpop.permute.xlu0 %1534  ;;  %6094 = vst [vmem:[#allocation98_spill] sm:$0xff] %v5104_v28 }
 0x213   : > { %6090 = vst [vmem:[#allocation94_spill] sm:$0xff] %v5090_v27  ;;  %v5119_v53 = vmul.u32.u64.low 2863311531, %v326_v42  ;;  %v5120_v54 = vmul.u32.u64.high 2863311531, %v326_v42, %v5119_v53 }
 0x214   : > { %v5094_v48 = vpop.permute.xlu1 %1053  ;;  %v6097_v53 = vld [vmem:[#allocation24_spill] sm:$0xff] }
 0x215   : > { %6092 = vst [vmem:[#allocation96_spill] sm:$0xff] %v5094_v48  ;;  %3766 = vset.pattern.permute.xlu1 %v6076_v4  ;;  %6098 = vst [vmem:[#allocation24_spill] sm:$0xff] %v5138_v19 }
 0x216   : > { %1697 = vperm.xlu1 %3766, %v4928_v22  }
 0x217   : > { %v486_v41 = vpop.permute.xlu0 %485 }
 0x219   : > { %v5099_v39 = vpop.permute.xlu1 %1069 }
 0x21a   : > { %6093 = vst [vmem:[#allocation97_spill] sm:$0xff] %v5099_v39  ;;  %3767 = vset.pattern.permute.xlu1 %v6048_v38  ;;  %v497_v39 = vmul.f32 %v4727_v62, %v486_v41  ;;  %v543_v62 = vmul.f32 %v4754_v43, %v5031_v52 }
 0x21b   : > { %1302 = vperm.xlu1 %3767, %v5028_v5   ;;  %v936_v29 = vpop.permute.xlu0 %935 }
 0x21c   : > { %v947_v48 = vmul.f32 %v5104_v28, %v936_v29  ;;  %v500_v29 = vadd.f32 %v497_v39, %v4977_v13  ;;  %v589_v39 = vmul.f32 %v4774_v25, %v6097_v53 }
 0x21e   : > { %v5110_v27 = vadd.f32 %v947_v48, %v926_v50  ;;  %v5112_v22 = vpop.permute.xlu1 %1178  ;;  %v565_v50 = vmul.f32 %v4762_v44, %v554_v59  ;;  %v6100_v44 = vld [vmem:[#allocation21_spill] sm:$0xff] }
 0x21f   : > { %3768 = vset.pattern.permute.xlu1 %v6076_v4  ;;  %v5116_v10 = vpop.permute.xlu0 %1917  ;;  %v635_v59 = vmul.f32 %v4795_v24, %v6100_v44  ;;  %v6103_v24 = vld [vmem:[#allocation26_spill] sm:$0xff] }
 0x220   : > { %6095 = vst [vmem:[#allocation99_spill] sm:$0xff] %v5110_v27  ;;  %6096 = vst [vmem:[#allocation100_spill] sm:$0xff] %v5116_v10  ;;  %1344 = vperm.xlu1 %3768, %v5018_v55   ;;  %v345_v10 = vshrl.u32 %v5120_v54, 2 }
 0x222   : > { %v346_v25 = vmul.u32 6, %v345_v10 }
 0x223   : > { %v5123_v28 = vpop.permute.xlu1 %1202 }
 0x224   : > { %v508_v6 = vpop.permute.xlu0 %507  ;;  %3769 = vset.pattern.permute.xlu1 %v6024_v31  ;;  %v347_v53 = vsub.s32 %v326_v42, %v346_v25  ;;  %v6107_v25 = vmov 3  }
 0x225   : > { %v519_v41 = vmul.f32 %v4736_v33, %v508_v6  ;;  %1679 = vperm.xlu1 %3769, %v5028_v5   ;;  %v6099_v33 = vld [vmem:[#allocation30_spill] sm:$0xff] }
 0x226   : > { %v611_v43 = vmul.f32 %v4783_v3, %v6099_v33  ;;  %vm362_vm9 = vcmp.ne.s32.totalorder %v347_v53, 0  ;;  %vm365_vm10 = vcmp.lt.s32.totalorder %v347_v53, 0 }
 0x227   : > { %v522_v48 = vadd.f32 %v519_v41, %v500_v29  ;;  %vm368_vm11 = vmand %vm365_vm10, %vm362_vm9 }
 0x228   : > { %v5131_v27 = vpop.permute.xlu1 %1571 }
 0x229   : > { %v546_v13 = vadd.f32 %v543_v62, %v522_v48  ;;  %3770 = vset.pattern.permute.xlu1 %v6043_v37  ;;  %v6101_v62 = vld [vmem:[#allocation37_spill] sm:$0xff] }
 0x22a   : > { %1721 = vperm.xlu1 %3770, %v5138_v19   ;;  %v657_v54 = vmul.f32 %v4805_v45, %v6101_v62  ;;  %v1174_v62 = vld [vmem:[#allocation6] sm:$0x1] }
 0x22b   : > { %v568_v52 = vadd.f32 %v565_v50, %v546_v13  ;;  %v6102_v50 = vmov 0   ;;  %v6105_v13 = vld [vmem:[#allocation47_spill] sm:$0xff] }
 0x22d   : > { %v592_v29 = vadd.f32 %v589_v39, %v568_v52  ;;  %v5145_v6 = vpop.permute.xlu1 %1595  ;;  %v6104_v39 = vld [vmem:[#allocation33_spill] sm:$0xff]  ;;  %v6106_v52 = vld [vmem:[#allocation43_spill] sm:$0xff] }
 0x22e   : > { %3771 = vset.pattern.permute.xlu1 %v6024_v31  ;;  %v727_v10 = vmul.f32 %v4835_v58, %v6104_v39 }
 0x22f   : > { %v614_v41 = vadd.f32 %v611_v43, %v592_v29  ;;  %1326 = vperm.xlu1 %3771, %v5028_v5   ;;  %v371_v43 = vadd.s32 6, %v347_v53 }
 0x231   : > { %v638_v48 = vadd.f32 %v635_v59, %v614_v41  ;;  %v374_v59 = vsel %vm368_vm11, %v371_v43, %v347_v53 }
 0x232   : > { %v5151_v15 = vpop.permute.xlu1 %1206  ;;  %vm5167_vm12 = vcmp.lt.s32.totalorder %v374_v59, 4 }
 0x233   : > { %v660_v3 = vadd.f32 %v657_v54, %v638_v48  ;;  %3772 = vset.pattern.permute.xlu1 %v6102_v50  ;;  %v6108_v54 = vld [vmem:[#allocation18_spill] sm:$0xff]  ;;  %v1223_v48 = vld [vmem:[#allocation6] sm:$0x2] }
 0x234   : > { %1373 = vperm.xlu1 %3772, %v6103_v24   ;;  %v1175_v24 = vunpack.c.l.bf16 %v1174_v62 }
 0x235   : > { %v684_v31 = vadd.f32 %v6105_v13, %v660_v3 }
 0x236   : > { %v5178_v39 = vrot.slane %v1175_v24, %v4678_v30 }
 0x237   : > { %v706_v45 = vadd.f32 %v4838_v14, %v684_v31  ;;  %v1249_v33 = vpop.permute.xlu1 %1248  ;;  %v6109_v14 = vmov 0  ;;  %v1269_v31 = vld [vmem:[#allocation6] sm:$0x4] }
 0x238   : > { %3773 = vset.pattern.permute.xlu1 %v6076_v4  ;;  %v6110_v14 = vsel %vm5167_vm12, 4294967295, %v6109_v14  ;;  %v1217_v43 = vmul.f32 %v5178_v39, %v5123_v28 }
 0x239   : > { %v730_v42 = vadd.f32 %v727_v10, %v706_v45  ;;  %1701 = vperm.xlu1 %3773, %v5028_v5   ;;  %6111 = vst [vmem:[#allocation30_spill] sm:$0xff] %v6110_v14  ;;  %v5182_v10 = vrot.slane %v1175_v24, %v4675_v60  ;;  %v5213_v14 = vld [vmem:[%s4333_s10 + $0x7] sm:$0xff] }
 0x23b   : > { %v752_v44 = vadd.f32 %v6106_v52, %v730_v42  ;;  %v5193_v42 = vld [vmem:[%s4333_s10 + $0x6] sm:$0xff]  ;;  %v1195_v59 = vmul.f32 %v5182_v10, %v5112_v22 }
 0x23c   : > { %v5162_v29 = vpop.permute.xlu1 %1230 }
 0x23d   : > { %v761_v58 = vadd.f32 %v4862_v17, %v752_v44  ;;  %3774 = vset.pattern.permute.xlu1 %v6107_v25  ;;  %v1224_v17 = vunpack.c.l.bf16 %v1223_v48  ;;  %v1270_v44 = vunpack.c.l.bf16 %v1269_v31  ;;  %v1220_v28 = vadd.f32 %v1217_v43, %v1195_v59  ;;  %v6114_v43 = vld [vmem:[#allocation49_spill] sm:$0xff] }
 0x23e   : > { %1791 = vperm.xlu1 %3774, %v6108_v54   ;;  %v6112_v54 = vld [vmem:[#allocation23_spill] sm:$0xff] }
 0x23f   : > { %v764_v41 = vmax.f32 %v761_v58, 0.0  ;;  %v5187_v45 = vrot.slane %v1224_v17, %v4684_v0  ;;  %v5197_v52 = vrot.slane %v1224_v17, %v4698_v18  ;;  %v1315_v58 = vld [vmem:[#allocation6] sm:$0x8]  ;;  %v5205_v24 = vrot.slane %v1270_v44, %v6071_v34 }
 0x240   : > { %v5171_v3 = vpop.permute.xlu1 %1576  ;;  %v1316_v48 = vunpack.c.l.bf16 %v1315_v58  ;;  %v5209_v17 = vld [vmem:[%s4333_s10 + $0x11] sm:$0xff] }
 0x241   : > { %v773_v53 = vsel %vm5167_vm12, %v764_v41, 0.0  ;;  %v1241_v41 = vmul.f32 %v5187_v45, %v6112_v54  ;;  %6113 = vst [vmem:[#allocation21_spill] sm:$0xff] %v5209_v17  ;;  %v1287_v59 = vmul.f32 %v5205_v24, %v6114_v43  ;;  %v5222_v54 = vrot.slane %v1270_v44, %v4709_v56  ;;  %v6117_v43 = vld [vmem:[#allocation28_spill] sm:$0xff] }
 0x242   : > { %3775 = vset.pattern.permute.xlu1 %v6076_v4  ;;  %776 = vst.msk [vmem:[#allocation2 + $0xf] sm:$0xff] %vm298_vm0, %v773_v53  ;;  %v1263_v53 = vmul.f32 %v5197_v52, %v1249_v33  ;;  %v5216_v20 = vrot.slane %v1316_v48, %v4732_v23  ;;  %v5226_v33 = vrot.slane %v1316_v48, %v4637_v21  ;;  %v6118_v44 = vld [vmem:[#allocation44_spill] sm:$0xff] }
 0x243   : > { %1348 = vperm.xlu1 %3775, %v5028_v5   ;;  %v1244_v31 = vadd.f32 %v1241_v41, %v1220_v28  ;;  %v6115_v28 = vld [vmem:[#allocation36_spill] sm:$0xff]  ;;  %v6116_v5 = vunpack.c.l.bf16 %v4924_v12 }
 0x244   : > { %v1355_v61 = vmul.f32 %v5226_v33, %v6118_v44  ;;  %v1567_v48 = vld [vmem:[#allocation6] sm:$0x1]  ;;  %v1619_v12 = vld [vmem:[#allocation6] sm:$0x2]  ;;  %v6120_v44 = vld [vmem:[#allocation41_spill] sm:$0xff] }
 0x245   : > { %v5184_v13 = vpop.permute.xlu1 %1599  ;;  %v1266_v58 = vadd.f32 %v1263_v53, %v1244_v31  ;;  %v5233_v11 = vrot.slane %v6116_v5, %v4675_v60  ;;  %v1407_v5 = vmul.f32 %v4941_v26, %v4921_v16  ;;  %v1265_v16 = vmul.f32 %v5197_v52, %v6120_v44 }
 0x247   : > { %3776 = vset.pattern.permute.xlu1 %v6107_v25  ;;  %v1290_v53 = vadd.f32 %v1287_v59, %v1266_v58 }
 0x248   : > { %1438 = vperm.xlu1 %3776, %v5193_v42  }
 0x24a   : > { %v1189_v62 = vpop.permute.xlu1 %1188 }
 0x24c   : > { %3777 = vset.pattern.permute.xlu1 %v6043_v37  ;;  %v1385_v37 = vmul.f32 %v5233_v11, %v4812_v51  ;;  %v1197_v51 = vmul.f32 %v5182_v10, %v1189_v62 }
 0x24d   : > { %1725 = vperm.xlu1 %3777, %v5209_v17   ;;  %v1333_v17 = vmul.f32 %v5216_v20, %v6115_v28 }
 0x24f   : > { %v1211_v22 = vpop.permute.xlu1 %1210 }
 0x250   : > { %v1219_v59 = vmul.f32 %v5178_v39, %v1211_v22  ;;  %v5259_v22 = vld [vmem:[%s4333_s10 + $0xe] sm:$0xff] }
 0x251   : > { %3778 = vset.pattern.permute.xlu1 %v6102_v50 }
 0x252   : > { %1819 = vperm.xlu1 %3778, %v5213_v14   ;;  %v1222_v32 = vadd.f32 %v1219_v59, %v1197_v51  ;;  %v6122_v51 = vmov 1  }
 0x254   : > { %v1295_v41 = vpop.permute.xlu1 %1294 }
 0x255   : > { %v1309_v31 = vmul.f32 %v5222_v54, %v1295_v41  ;;  %v1568_v41 = vunpack.c.l.bf16 %v1567_v48 }
 0x256   : > { %1378 = vperm.xlu1 %3778, %v6117_v43  }
 0x257   : > { %v1312_v19 = vadd.f32 %v1309_v31, %v1290_v53  ;;  %v1431_v53 = vmul.f32 %v5012_v40, %v4987_v9  ;;  %v5252_v31 = vrot.slane %v1568_v41, %v4678_v30 }
 0x259   : > { %v1336_v38 = vadd.f32 %v1333_v17, %v1312_v19  ;;  %v5241_v28 = vpop.permute.xlu1 %1628  ;;  %v1620_v17 = vunpack.c.l.bf16 %v1619_v12  ;;  %v1610_v12 = vmul.f32 %v5252_v31, %v5145_v6  ;;  %v1714_v6 = vld [vmem:[#allocation6] sm:$0x8] }
 0x25a   : > { %3779 = vset.pattern.permute.xlu1 %v6119_v63 }
 0x25b   : > { %v1358_v58 = vadd.f32 %v1355_v61, %v1336_v38  ;;  %1462 = vperm.xlu1 %3779, %v5193_v42   ;;  %v5268_v48 = vrot.slane %v1620_v17, %v4684_v0 }
 0x25d   : > { %v1388_v19 = vadd.f32 %v1385_v37, %v1358_v58  ;;  %v5263_v37 = vrot.slane %v1568_v41, %v4675_v60 }
 0x25e   : > { %v1235_v43 = vpop.permute.xlu1 %1234 }
 0x25f   : > { %v1243_v38 = vmul.f32 %v5187_v45, %v1235_v43  ;;  %3781 = vset.pattern.permute.xlu1 %v6107_v25  ;;  %v1410_v61 = vadd.f32 %v1407_v5, %v1388_v19  ;;  %v1668_v5 = vld [vmem:[#allocation6] sm:$0x4]  ;;  %v1588_v41 = vmul.f32 %v5263_v37, %v5131_v27  ;;  %v5283_v19 = vrot.slane %v1620_v17, %v4698_v18 }
 0x260   : > { %1795 = vperm.xlu1 %3781, %v5259_v22   ;;  %v1669_v43 = vunpack.c.l.bf16 %v1668_v5  ;;  %v6126_v18 = vld [vmem:[#allocation52_spill] sm:$0xff] }
 0x261   : > { %v1246_v9 = vadd.f32 %v1243_v38, %v1222_v32  ;;  %v5265_v62 = vadd.f32 %v1431_v53, %v1410_v61  ;;  %v6123_v32 = vld [vmem:[#allocation29_spill] sm:$0xff]  ;;  %v1613_v44 = vadd.f32 %v1610_v12, %v1588_v41  ;;  %v6124_v61 = vld [vmem:[#allocation32_spill] sm:$0xff]  ;;  %v6125_v12 = vld [vmem:[#allocation35_spill] sm:$0xff] }
 0x262   : > { %v1640_v53 = vmul.f32 %v5268_v48, %v6123_v32  ;;  %v1662_v27 = vmul.f32 %v5283_v19, %v6124_v61  ;;  %v5292_v32 = vld [vmem:[#allocation6 + $0x4] sm:$0x1] }
 0x263   : > { %6121 = vst [vmem:[#allocation37_spill] sm:$0xff] %v5265_v62  ;;  %v5272_v59 = vpop.permute.xlu1 %1276  ;;  %v5274_v58 = vadd.f32 %v1265_v16, %v1246_v9  ;;  %v1715_v16 = vunpack.c.l.bf16 %v1714_v6  ;;  %v5290_v9 = vrot.slane %v1669_v43, %v6071_v34  ;;  %v5968_v6 = vunpack.c.l.bf16 %v5292_v32 }
 0x264   : > { %3782 = vset.pattern.permute.xlu1 %v6122_v51  ;;  %v1643_v62 = vadd.f32 %v1640_v53, %v1613_v44  ;;  %v5303_v34 = vrot.slane %v1669_v43, %v4709_v56 }
 0x265   : > { %1843 = vperm.xlu1 %3782, %v5213_v14   ;;  %v5295_v5 = vrot.slane %v1715_v16, %v4732_v23  ;;  %v1686_v41 = vmul.f32 %v5290_v9, %v6125_v12  ;;  %v5306_v53 = vrot.slane %v1715_v16, %v4637_v21  ;;  %v5313_v0 = vrot.slane %v5968_v6, %v4675_v60  ;;  %v6128_v6 = vld [vmem:[#allocation40_spill] sm:$0xff] }
 0x266   : > { %v1665_v61 = vadd.f32 %v1662_v27, %v1643_v62  ;;  %v6127_v21 = vmov 6  }
 0x267   : > { %v1732_v23 = vmul.f32 %v5295_v5, %v6126_v18  ;;  %v1754_v62 = vmul.f32 %v5306_v53, %v4849_v2  ;;  %v1784_v16 = vmul.f32 %v5313_v0, %v4982_v57  ;;  %v3814_v57 = vld [vmem:[#allocation9 + $0x8] sm:$0xff]  }
 0x268   : > { %v1582_v38 = vpop.permute.xlu1 %1581  ;;  %v1689_v12 = vadd.f32 %v1686_v41, %v1665_v61  ;;  %v1612_v41 = vmul.f32 %v5252_v31, %v6128_v6  ;;  %3407 = vmatpush3.bf16.msra.mxu0 %v3814_v57 }
 0x269   : > { %3784 = vset.pattern.permute.xlu1 %v6107_v25  ;;  %v1590_v61 = vmul.f32 %v5263_v37, %v1582_v38  ;;  %v6129_v38 = vmov 0.0  }
 0x26a   : > { %1442 = vperm.xlu1 %3784, %v5259_v22   ;;  %3428 = vmatprep.subr.bf16.mxu0 %v6129_v38 }
 0x26b   : > { %3408 = vmatprep.mubr.msk.f32.mxu0 %vm4084_vm13, %v6129_v38  ;;  %3419 = vmatprep.mubr.msk.f32.mxu1 %vm4084_vm13, %v6129_v38 }
 0x26d   : > { %v1652_v17 = vpop.permute.xlu1 %1651 }
 0x26e   : > { %3785 = vset.pattern.permute.xlu1 %v6027_v8 }
 0x26f   : > { %1484 = vperm.xlu1 %3785, %v5193_v42  }
 0x272   : > { %v1694_v44 = vpop.permute.xlu1 %1693 }
 0x273   : > { %v1708_v55 = vmul.f32 %v5303_v34, %v1694_v44  ;;  %3786 = vset.pattern.permute.xlu1 %v6102_v50 }
 0x274   : > { %1824 = vperm.xlu1 %3786, %v4810_v35  }
 0x275   : > { %v1711_v43 = vadd.f32 %v1708_v55, %v1689_v12  ;;  %v1615_v55 = vadd.f32 %v1612_v41, %v1590_v61  ;;  %v1611_v41 = vmul.f32 %v5252_v31, %v5184_v13  ;;  %v1589_v61 = vmul.f32 %v5263_v37, %v5171_v3 }
 0x276   : > { %v1242_v3 = vmul.f32 %v5187_v45, %v5162_v29  ;;  %v1288_v29 = vmul.f32 %v5205_v24, %v5272_v59 }
 0x277   : > { %v1735_v18 = vadd.f32 %v1732_v23, %v1711_v43  ;;  %v1299_v27 = vpop.permute.xlu1 %1298 }
 0x278   : > { %3787 = vset.pattern.permute.xlu1 %v6127_v21 }
 0x279   : > { %1867 = vperm.xlu1 %3787, %v5193_v42   ;;  %v1757_v44 = vadd.f32 %v1754_v62, %v1735_v18  ;;  %v5335_v42 = vld [vmem:[%s4333_s10 + $0x16] sm:$0xff] }
 0x27b   : > { %v5327_v60 = vadd.f32 %v1784_v16, %v1757_v44  ;;  %v1641_v44 = vmul.f32 %v5268_v48, %v5241_v28 }
 0x27c   : > { %v1634_v2 = vpop.permute.xlu1 %1633 }
 0x27d   : > { %v1642_v12 = vmul.f32 %v5268_v48, %v1634_v2  ;;  %3789 = vset.pattern.permute.xlu1 %v6119_v63  ;;  %v6130_v2 = vld [vmem:[#allocation27_spill] sm:$0xff] }
 0x27e   : > { %1466 = vperm.xlu1 %3789, %v5259_v22  }
 0x27f   : > { %v1645_v23 = vadd.f32 %v1642_v12, %v1615_v55  ;;  %v1196_v55 = vmul.f32 %v5182_v10, %v6130_v2  ;;  %v1663_v12 = vmul.f32 %v5283_v19, %v1652_v17 }
 0x281   : > { %v1676_v43 = vpop.permute.xlu1 %1675 }
 0x282   : > { %3790 = vset.pattern.permute.xlu1 %v6107_v25  ;;  %v1687_v28 = vmul.f32 %v5290_v9, %v1676_v43 }
 0x283   : > { %1799 = vperm.xlu1 %3790, %v5335_v42  }
 0x286   : > { %v1281_v6 = vpop.permute.xlu1 %1280 }
 0x287   : > { %v1289_v62 = vmul.f32 %v5205_v24, %v1281_v6  ;;  %3791 = vset.pattern.permute.xlu1 %v6122_v51 }
 0x288   : > { %1847 = vperm.xlu1 %3791, %v4810_v35   ;;  %v1218_v35 = vmul.f32 %v5178_v39, %v5151_v15  ;;  %v6131_v39 = vld [vmem:[#allocation39_spill] sm:$0xff] }
 0x289   : > { %v1292_v16 = vadd.f32 %v1289_v62, %v5274_v58  ;;  %v1614_v58 = vadd.f32 %v1611_v41, %v1589_v61  ;;  %v1264_v17 = vmul.f32 %v5197_v52, %v6131_v39 }
 0x28a   : > { %v1221_v37 = vadd.f32 %v1218_v35, %v1196_v55 }
 0x28b   : > { %v1323_v18 = vpop.permute.xlu1 %1322  ;;  %v1644_v31 = vadd.f32 %v1641_v44, %v1614_v58  ;;  %v1785_v58 = vmul.f32 %v5313_v0, %v4992_v7 }
 0x28c   : > { %3792 = vset.pattern.permute.xlu1 %v6107_v25  ;;  %v1245_v57 = vadd.f32 %v1242_v3, %v1221_v37  ;;  %v1334_v41 = vmul.f32 %v5216_v20, %v1323_v18  ;;  %v1432_v3 = vmul.f32 %v5012_v40, %v5000_v49  ;;  %v6132_v37 = vunpack.c.l.bf16 %v5292_v32 }
 0x28d   : > { %1446 = vperm.xlu1 %3792, %v5335_v42   ;;  %v1666_v48 = vadd.f32 %v1663_v12, %v1644_v31  ;;  %v6133_v49 = vmov 7  }
 0x28f   : > { %v1690_v6 = vadd.f32 %v1687_v28, %v1666_v48  ;;  %v3815_v28 = vld [vmem:[#allocation9] sm:$0xff]  }
 0x290   : > { %v1656_v13 = vpop.permute.xlu1 %1655  ;;  %3418 = vmatpush3.bf16.msra.mxu1 %v3815_v28 }
 0x291   : > { %v1664_v25 = vmul.f32 %v5283_v19, %v1656_v13  ;;  %3793 = vset.pattern.permute.xlu1 %v6027_v8  ;;  %3439 = vmatprep.subr.bf16.mxu1 %v6129_v38 }
 0x292   : > { %1488 = vperm.xlu1 %3793, %v5259_v22   ;;  %v1267_v22 = vadd.f32 %v1264_v17, %v1245_v57 }
 0x293   : > { %v1667_v10 = vadd.f32 %v1664_v25, %v1645_v23  ;;  %v1310_v23 = vmul.f32 %v5222_v54, %v1299_v27 }
 0x294   : > { %v1291_v52 = vadd.f32 %v1288_v29, %v1267_v22 }
 0x295   : > { %v1698_v15 = vpop.permute.xlu1 %1697 }
 0x296   : > { %v1709_v19 = vmul.f32 %v5303_v34, %v1698_v15  ;;  %3794 = vset.pattern.permute.xlu1 %v6102_v50  ;;  %v1313_v61 = vadd.f32 %v1310_v23, %v1291_v52 }
 0x297   : > { %1829 = vperm.xlu1 %3794, %v4886_v36  }
 0x298   : > { %v1712_v45 = vadd.f32 %v1709_v19, %v1690_v6  ;;  %v1337_v2 = vadd.f32 %v1334_v41, %v1313_v61  ;;  %v1815_v6 = vld [vmem:[#allocation6 + $0x4] sm:$0x2]  ;;  %v6138_v41 = vmov 13  }
 0x299   : > { %v1816_v19 = vunpack.c.l.bf16 %v1815_v6 }
 0x29a   : > { %v1303_v43 = vpop.permute.xlu1 %1302 }
 0x29b   : > { %v1311_v62 = vmul.f32 %v5222_v54, %v1303_v43  ;;  %3795 = vset.pattern.permute.xlu1 %v6119_v63 }
 0x29c   : > { %1913 = vperm.xlu1 %3795, %v5213_v14  }
 0x29d   : > { %v1314_v50 = vadd.f32 %v1311_v62, %v1292_v16  ;;  %v1755_v16 = vmul.f32 %v5306_v53, %v4864_v46 }
 0x29f   : > { %v1345_v44 = vpop.permute.xlu1 %1344 }
 0x2a0   : > { %v1356_v24 = vmul.f32 %v5226_v33, %v1345_v44  ;;  %1470 = vperm.xlu1 %3795, %v5335_v42  }
 0x2a2   : > { %v1359_v59 = vadd.f32 %v1356_v24, %v1337_v2  ;;  %v6139_v24 = vmov 12  }
 0x2a4   : > { %3797 = vset.pattern.permute.xlu1 %v6122_v51  ;;  %v1680_v27 = vpop.permute.xlu1 %1679 }
 0x2a5   : > { %v1688_v54 = vmul.f32 %v5290_v9, %v1680_v27  ;;  %1851 = vperm.xlu1 %3797, %v4886_v36  }
 0x2a7   : > { %v1691_v55 = vadd.f32 %v1688_v54, %v1667_v10 }
 0x2a9   : > { %3798 = vset.pattern.permute.xlu1 %v6027_v8  ;;  %v1722_v18 = vpop.permute.xlu1 %1721 }
 0x2aa   : > { %v1733_v35 = vmul.f32 %v5295_v5, %v1722_v18  ;;  %1935 = vperm.xlu1 %3798, %v5213_v14   ;;  %v1408_v14 = vmul.f32 %v4941_v26, %v4932_v1  ;;  %v5406_v1 = vrot.slane %v6132_v37, %v4678_v30 }
 0x2ac   : > { %v1736_v51 = vadd.f32 %v1733_v35, %v1712_v45  ;;  %v6135_v45 = vld [vmem:[#allocation48_spill] sm:$0xff] }
 0x2ae   : > { %v1758_v12 = vadd.f32 %v1755_v16, %v1736_v51  ;;  %1492 = vperm.xlu1 %3798, %v5335_v42   ;;  %v1327_v9 = vpop.permute.xlu1 %1326  ;;  %v6143_v16 = vld [vmem:[#allocation76_spill] sm:$0xff] }
 0x2af   : > { %v1335_v13 = vmul.f32 %v5216_v20, %v1327_v9 }
 0x2b0   : > { %v5391_v25 = vadd.f32 %v1785_v58, %v1758_v12  ;;  %v1459_v58 = vld [vmem:[#allocation6 + $0x4] sm:$0x4]  ;;  %v1505_v12 = vld [vmem:[#allocation6 + $0x4] sm:$0x8] }
 0x2b1   : > { %v1338_v8 = vadd.f32 %v1335_v13, %v1314_v50  ;;  %v3838_v50 = vld [vmem:[%s4333_s10 + $0x1] sm:$0xff]  ;;  %v1460_v51 = vunpack.c.l.bf16 %v1459_v58  ;;  %v1910_v58 = vld [vmem:[#allocation6 + $0x4] sm:$0x8] }
 0x2b2   : > { %3800 = vset.pattern.permute.xlu1 %v6127_v21  ;;  %v6145_v13 = vld [vmem:[#allocation50_spill] sm:$0xff] }
 0x2b3   : > { %1875 = vperm.xlu1 %3800, %v5335_v42   ;;  %v1374_v46 = vpop.permute.xlu1 %1373  ;;  %v5461_v37 = vrot.slane %v1460_v51, %v4709_v56 }
 0x2b4   : > { %v1386_v7 = vmul.f32 %v5233_v11, %v1374_v46 }
 0x2b6   : > { %v1389_v31 = vadd.f32 %v1386_v7, %v1359_v59  ;;  %v6140_v59 = vld [vmem:[#allocation24_spill] sm:$0xff]  ;;  %v6148_v7 = vld [vmem:[#allocation45_spill] sm:$0xff] }
 0x2b7   : > { %1516 = vperm.xlu1 %3800, %v5335_v42  }
 0x2b8   : > { %v1411_v20 = vadd.f32 %v1408_v14, %v1389_v31  ;;  %v1702_v10 = vpop.permute.xlu1 %1701 }
 0x2b9   : > { %v1710_v21 = vmul.f32 %v5303_v34, %v1702_v10 }
 0x2ba   : > { %v5408_v26 = vadd.f32 %v1432_v3, %v1411_v20  ;;  %v5452_v3 = vrot.slane %v1460_v51, %v6148_v7  ;;  %v6149_v20 = vld [vmem:[#allocation53_spill] sm:$0xff] }
 0x2bb   : > { %v1713_v48 = vadd.f32 %v1710_v21, %v1691_v55  ;;  %3802 = vset.pattern.permute.xlu1 %v6133_v49  ;;  %v6142_v55 = vld [vmem:[#allocation74_spill] sm:$0xff] }
 0x2bc   : > { %1897 = vperm.xlu1 %3802, %v5335_v42  }
 0x2bd   : > { %v1792_v40 = vpop.permute.xlu1 %1791 }
 0x2be   : > { %v1806_v15 = vmul.f32 %v5406_v1, %v1792_v40  ;;  %v6151_v40 = vld [vmem:[#allocation37_spill] sm:$0xff] }
 0x2c0   : > { %v1809_v39 = vadd.f32 %v1806_v15, %v5327_v60  ;;  %1538 = vperm.xlu1 %3802, %v5335_v42   ;;  %v6134_v42 = vld [vmem:[#allocation73_spill] sm:$0xff] }
 0x2c2   : > { %v1349_v34 = vpop.permute.xlu1 %1348 }
 0x2c3   : > { %v1357_v17 = vmul.f32 %v5226_v33, %v1349_v34  ;;  %v5423_v33 = vrot.slane %v1816_v19, %v6135_v45 }
 0x2c4   : > { %3803 = vset.pattern.permute.xlu1 %v6119_v63  ;;  %v6136_v63 = vld [vmem:[#allocation56_spill] sm:$0xff] }
 0x2c5   : > { %v1360_v32 = vadd.f32 %v1357_v17, %v1338_v8  ;;  %1921 = vperm.xlu1 %3803, %v4886_v36   ;;  %v1756_v22 = vmul.f32 %v5306_v53, %v6136_v63  ;;  %v6137_v36 = vld [vmem:[#allocation71_spill] sm:$0xff]  ;;  %v6146_v8 = vld [vmem:[#allocation69_spill] sm:$0xff]  ;;  %v6152_v17 = vld [vmem:[#allocation80_spill] sm:$0xff]  ;;  %v5473_v63 = vrot.slane %v1816_v19, %v6145_v13 }
 0x2c6   : > { %v1786_v23 = vmul.f32 %v5313_v0, %v6137_v36  ;;  %v6141_v0 = vld [vmem:[#allocation62_spill] sm:$0xff]  ;;  %v6147_v46 = vunpack.c.l.bf16 %v6146_v8  ;;  %v1911_v8 = vunpack.c.l.bf16 %v1910_v58 }
 0x2c7   : > { %v1439_v57 = vpop.permute.xlu1 %1438 }
 0x2c8   : > { %v5448_v14 = vrot.slane %v6147_v46, %v6145_v13 }
 0x2c9   : > { %3804 = vset.pattern.permute.xlu1 %v6076_v4 }
 0x2ca   : > { %1091 = vperm.xlu1 %3804, %v5047_v47   ;;  %v1453_v31 = vmul.f32 %v5448_v14, %v1439_v57 }
 0x2cc   : > { %v1726_v29 = vpop.permute.xlu1 %1725  ;;  %v1456_v15 = vadd.f32 %v1453_v31, %v6151_v40  ;;  %v5505_v40 = vrot.slane %v1911_v8, %v6149_v20 }
 0x2cd   : > { %v1734_v60 = vmul.f32 %v5295_v5, %v1726_v29 }
 0x2ce   : > { %1095 = vperm.xlu1 %3804, %v6134_v42  }
 0x2cf   : > { %v1737_v43 = vadd.f32 %v1734_v60, %v1713_v48  ;;  %v6150_v48 = vld [vmem:[#allocation42_spill] sm:$0xff] }
 0x2d0   : > { %v6153_v60 = vld [vmem:[#allocation90_spill] sm:$0xff] }
 0x2d1   : > { %v1759_v62 = vadd.f32 %v1756_v22, %v1737_v43  ;;  %v1820_v52 = vpop.permute.xlu1 %1819 }
 0x2d2   : > { %v1836_v47 = vmul.f32 %v5423_v33, %v1820_v52  ;;  %3806 = vset.pattern.permute.xlu1 %v6138_v41 }
 0x2d3   : > { %1137 = vperm.xlu1 %3806, %v3838_v50   ;;  %v5432_v5 = vadd.f32 %v1786_v23, %v1759_v62 }
 0x2d4   : > { %v1839_v61 = vadd.f32 %v1836_v47, %v1809_v39  ;;  %v1864_v39 = vld [vmem:[#allocation6 + $0x4] sm:$0x4] }
 0x2d5   : > { %v1379_v44 = vpop.permute.xlu1 %1378  ;;  %v1865_v29 = vunpack.c.l.bf16 %v1864_v39 }
 0x2d6   : > { %v1387_v2 = vmul.f32 %v5233_v11, %v1379_v44  ;;  %v6144_v11 = vld [vmem:[#allocation21_spill] sm:$0xff] }
 0x2d7   : > { %3808 = vset.pattern.permute.xlu1 %v6139_v24  ;;  %v5476_v43 = vrot.slane %v1865_v29, %v6148_v7  ;;  %v5479_v62 = vrot.slane %v1865_v29, %v4709_v56 }
 0x2d8   : > { %v1390_v53 = vadd.f32 %v1387_v2, %v1360_v32  ;;  %1119 = vperm.xlu1 %3808, %v6140_v59   ;;  %v6154_v2 = vld [vmem:[#allocation88_spill] sm:$0xff] }
 0x2d9   : > { %v1904_v19 = vmul.f32 %v5479_v62, %v6154_v2 }
 0x2da   : > { %v1412_v27 = vadd.f32 %v6141_v0, %v1390_v53  ;;  %v1463_v54 = vpop.permute.xlu1 %1462 }
 0x2db   : > { %v1477_v21 = vmul.f32 %v5452_v3, %v1463_v54 }
 0x2dc   : > { %3809 = vset.pattern.permute.xlu1 %v6076_v4  ;;  %v5440_v18 = vadd.f32 %v6142_v55, %v1412_v27  ;;  %v1506_v4 = vunpack.c.l.bf16 %v1505_v12 }
 0x2dd   : > { %1099 = vperm.xlu1 %3809, %v6143_v16   ;;  %v1480_v57 = vadd.f32 %v1477_v21, %v1456_v15 }
 0x2de   : > { %v5457_v10 = vrot.slane %v1506_v4, %v6149_v20  ;;  %v5464_v49 = vrot.slane %v1506_v4, %v6150_v48  ;;  %v5500_v4 = vpop.permute.xlu0 %957 }
 0x2df   : > { %v1796_v35 = vpop.permute.xlu1 %1795 }
 0x2e0   : > { %v1523_v32 = vmul.f32 %v5457_v10, %v6152_v17  ;;  %v1545_v42 = vmul.f32 %v5464_v49, %v6153_v60  ;;  %v1807_v51 = vmul.f32 %v5406_v1, %v1796_v35  ;;  %v6156_v35 = vld [vmem:[#allocation82_spill] sm:$0xff] }
 0x2e1   : > { %3811 = vset.pattern.permute.xlu1 %v6139_v24  ;;  %v1883_v21 = vmul.f32 %v5476_v43, %v6156_v35 }
 0x2e2   : > { %1123 = vperm.xlu1 %3811, %v6144_v11   ;;  %v1810_v46 = vadd.f32 %v1807_v51, %v5391_v25 }
 0x2e4   : > { %v1844_v9 = vpop.permute.xlu1 %1843 }
 0x2e5   : > { %v1858_v52 = vmul.f32 %v5473_v63, %v1844_v9 }
 0x2e6   : > { %3812 = vset.pattern.permute.xlu1 %v6138_v41  ;;  %v5482_v41 = vld [vmem:[#allocation8] ss:$0 sm:$0xff] }
 0x2e7   : > { %1145 = vperm.xlu1 %3812, %v6144_v11   ;;  %v1861_v24 = vadd.f32 %v1858_v52, %v1839_v61  ;;  %v3816_v11 = vld [vmem:[#allocation9 + $0x10] sm:$0xff]  }
 0x2e9   : > { %v1443_v28 = vpop.permute.xlu1 %1442 }
 0x2ea   : > { %v1454_v29 = vmul.f32 %v5448_v14, %v1443_v28  ;;  %v6160_v28 = vld [vmem:[#allocation94_spill] sm:$0xff] }
 0x2ee   : > { %v1485_v34 = vpop.permute.xlu1 %1484 }
 0x2ef   : > { %v1499_v6 = vmul.f32 %v5461_v37, %v1485_v34  ;;  %v6157_v34 = vld [vmem:[#allocation92_spill] sm:$0xff] }
 0x2f0   : > { %v1905_v17 = vmul.f32 %v5479_v62, %v6157_v34 }
 0x2f1   : > { %v1502_v22 = vadd.f32 %v1499_v6, %v1480_v57  ;;  %v6158_v57 = vld [vmem:[#allocation100_spill] sm:$0xff] }
 0x2f2   : > { %v1929_v6 = vmul.f32 %v5505_v40, %v6158_v57 }
 0x2f3   : > { %v1526_v36 = vadd.f32 %v1523_v32, %v1502_v22  ;;  %v1825_v23 = vpop.permute.xlu1 %1824  ;;  %v5511_v32 = vrot.slane %v1911_v8, %v6150_v48  ;;  %v1940_v22 = vpop.permute.xlu0 %1939 }
 0x2f4   : > { %v1837_v61 = vmul.f32 %v5423_v33, %v1825_v23 }
 0x2f5   : > { %v1548_v47 = vadd.f32 %v1545_v42, %v1526_v36  ;;  %v1951_v36 = vmul.f32 %v5511_v32, %v1940_v22 }
 0x2f6   : > { %v1840_v15 = vadd.f32 %v1837_v61, %v1810_v46 }
 0x2f7   : > { %v1551_v50 = vadd.f32 %v5482_v41, %v1548_v47  ;;  %v1457_v47 = vadd.f32 %v1454_v29, %v5408_v26 }
 0x2f8   : > { %v1868_v44 = vpop.permute.xlu1 %1867 }
 0x2f9   : > { %v1554_v53 = vmax.f32 %v1551_v50, 0.0  ;;  %v1882_v59 = vmul.f32 %v5476_v43, %v1868_v44 }
 0x2fb   : > { %v1557_v27 = vsel %vm4902_vm8, %v1554_v53, 0.0  ;;  %v1885_v54 = vadd.f32 %v1882_v59, %v1861_v24  ;;  %v6159_v53 = vld [vmem:[#allocation84_spill] sm:$0xff] }
 0x2fc   : > { %1561 = vst.msk [vmem:[#allocation2 + $0x67] sm:$0xff] %vm298_vm0, %v1557_v27  ;;  %v1524_v59 = vmul.f32 %v5457_v10, %v6159_v53  ;;  %v1546_v27 = vmul.f32 %v5464_v49, %v6160_v28  ;;  %v6167_v28 = vld [vmem:[#allocation51_spill] sm:$0xff] }
 0x2fd   : > { %v1467_v55 = vpop.permute.xlu1 %1466  ;;  %v1907_v16 = vadd.f32 %v1904_v19, %v1885_v54 }
 0x2fe   : > { %v1478_v23 = vmul.f32 %v5452_v3, %v1467_v55 }
 0x300   : > { %v1481_v2 = vadd.f32 %v1478_v23, %v1457_v47 }
 0x302   : > { %v5492_v12 = vpop.permute.xlu1 %1799 }
 0x303   : > { %v1974_v9 = vld [vmem:[#allocation2 + $0x61] sm:$0xff] }
 0x304   : > { %3409 = vmatmul.mubr.msk.f32.vlgmr.msra.gmra.mrb[0].mxu0 %vm298_vm0, %v1974_v9  ;;  %v3821_v9 = vld [vmem:[#allocation9 + $0x38] sm:$0xff]  }
 0x305   : > { %3411 = vmatprep.mubr.msk.f32.mxu0 %vm4084_vm13, %v6129_v38  ;;  %3429 = vmatpush3.bf16.msra.mxu0 %v3816_v11 }
 0x306   : > { %3450 = vmatprep.subr.bf16.mxu0 %v6129_v38 }
 0x307   : > { %v1848_v31 = vpop.permute.xlu1 %1847 }
 0x308   : > { %v1859_v39 = vmul.f32 %v5473_v63, %v1848_v31 }
 0x30a   : > { %v1862_v25 = vadd.f32 %v1859_v39, %v1840_v15 }
 0x30c   : > { %v1886_v60 = vadd.f32 %v1883_v21, %v1862_v25  ;;  %v1447_v42 = vpop.permute.xlu1 %1446 }
 0x30e   : > { %v1908_v52 = vadd.f32 %v1905_v17, %v1886_v60  ;;  %v1455_v17 = vmul.f32 %v5448_v14, %v1447_v42  ;;  %v6162_v42 = vld [vmem:[#allocation59_spill] sm:$0xff] }
 0x310   : > { %v1932_v50 = vadd.f32 %v1929_v6, %v1908_v52  ;;  %v1458_v60 = vadd.f32 %v1455_v17, %v5440_v18  ;;  %v6164_v18 = vld [vmem:[#allocation54_spill] sm:$0xff]  ;;  %v6172_v17 = vld [vmem:[#allocation68_spill] sm:$0xff] }
 0x311   : > { %v1489_v44 = vpop.permute.xlu1 %1488 }
 0x312   : > { %v1954_v19 = vadd.f32 %v1951_v36, %v1932_v50  ;;  %v1500_v24 = vmul.f32 %v5461_v37, %v1489_v44  ;;  %v6163_v44 = vld [vmem:[#allocation19_spill] sm:$0xff] }
 0x314   : > { %v1957_v54 = vadd.f32 %v5482_v41, %v1954_v19  ;;  %v1503_v58 = vadd.f32 %v1500_v24, %v1481_v2  ;;  %v824_v2 = vmul.f32 %v6163_v44, %v6162_v42  ;;  %v974_v19 = vld [vmem:[#allocation6 + $0x4] sm:$0x1]  ;;  %v6165_v24 = vld [vmem:[#allocation20_spill] sm:$0xff]  ;;  %v6178_v42 = vld [vmem:[#allocation98_spill] sm:$0xff] }
 0x315   : > { %v802_v53 = vmul.f32 %v6165_v24, %v6164_v18 }
 0x316   : > { %v1960_v11 = vmax.f32 %v1957_v54, 0.0  ;;  %v1527_v55 = vadd.f32 %v1524_v59, %v1503_v58  ;;  %v1830_v51 = vpop.permute.xlu1 %1829  ;;  %v6166_v59 = vld [vmem:[#allocation17_spill] sm:$0xff] }
 0x317   : > { %v827_v54 = vadd.f32 %v824_v2, %v802_v53  ;;  %v6169_v58 = vld [vmem:[#allocation65_spill] sm:$0xff] }
 0x318   : > { %v1963_v26 = vsel %vm5167_vm12, %v1960_v11, 0.0  ;;  %v1549_v8 = vadd.f32 %v1546_v27, %v1527_v55  ;;  %v854_v27 = vmul.f32 %v6167_v28, %v6166_v59  ;;  %v6179_v59 = vld [vmem:[#allocation78_spill] sm:$0xff] }
 0x319   : > { %1967 = vst.msk [vmem:[#allocation2 + $0x9f] sm:$0xff] %vm298_vm0, %v1963_v26  ;;  %v975_v26 = vunpack.c.l.bf16 %v974_v19 }
 0x31a   : > { %v1552_v61 = vadd.f32 %v5482_v41, %v1549_v8  ;;  %v857_v8 = vadd.f32 %v854_v27, %v827_v54 }
 0x31b   : > { %v1914_v46 = vpop.permute.xlu1 %1913 }
 0x31c   : > { %v1555_v31 = vmax.f32 %v1552_v61, 0.0  ;;  %v1928_v39 = vmul.f32 %v5505_v40, %v1914_v46  ;;  %v6170_v61 = vld [vmem:[#allocation66_spill] sm:$0xff]  ;;  %v6171_v46 = vld [vmem:[#allocation77_spill] sm:$0xff] }
 0x31e   : > { %v1558_v35 = vsel %vm5167_vm12, %v1555_v31, 0.0  ;;  %v1931_v57 = vadd.f32 %v1928_v39, %v1907_v16  ;;  %v900_v31 = vmul.f32 %v6171_v46, %v6170_v61  ;;  %v1020_v39 = vld [vmem:[#allocation6 + $0x4] sm:$0x2]  ;;  %v6181_v61 = vld [vmem:[#allocation22_spill] sm:$0xff] }
 0x31f   : > { %1562 = vst.msk [vmem:[#allocation2 + $0x6f] sm:$0xff] %vm298_vm0, %v1558_v35  ;;  %v1471_v21 = vpop.permute.xlu1 %1470  ;;  %v3817_v35 = vld [vmem:[#allocation9 + $0x18] sm:$0xff]   ;;  %v1021_v19 = vunpack.c.l.bf16 %v1020_v39 }
 0x320   : > { %v1479_v6 = vmul.f32 %v5452_v3, %v1471_v21  ;;  %v1808_v21 = vmul.f32 %v5406_v1, %v5492_v12  ;;  %v1066_v1 = vld [vmem:[#allocation6 + $0x4] sm:$0x4] }
 0x322   : > { %v1482_v23 = vadd.f32 %v1479_v6, %v1458_v60  ;;  %v6174_v6 = vld [vmem:[#allocation95_spill] sm:$0xff]  ;;  %v1811_v18 = vadd.f32 %v1808_v21, %v5432_v5  ;;  %v6182_v21 = vld [vmem:[#allocation85_spill] sm:$0xff] }
 0x324   : > { %v1852_v15 = vpop.permute.xlu1 %1851 }
 0x325   : > { %v1860_v53 = vmul.f32 %v5473_v63, %v1852_v15  ;;  %v6180_v15 = vld [vmem:[#allocation81_spill] sm:$0xff] }
 0x326   : > { %v1975_v34 = vld [vmem:[#allocation2 + $0x69] sm:$0xff] }
 0x327   : > { %3412 = vmatmul.mubr.msk.f32.gmra.mrb[2].mxu0 %vm298_vm0, %v1975_v34 }
 0x328   : > { %3414 = vmatprep.mubr.msk.f32.mxu0 %vm4084_vm13, %v6129_v38 }
 0x329   : > { %v1936_v25 = vpop.permute.xlu1 %1935 }
 0x32a   : > { %v1950_v29 = vmul.f32 %v5511_v32, %v1936_v25  ;;  %v6173_v25 = vld [vmem:[#allocation86_spill] sm:$0xff] }
 0x32c   : > { %v1953_v22 = vadd.f32 %v1950_v29, %v1931_v57  ;;  %v922_v57 = vmul.f32 %v6173_v25, %v6172_v17  ;;  %v6175_v29 = vunpack.c.l.bf16 %v6174_v6 }
 0x32d   : > { %v1493_v36 = vpop.permute.xlu1 %1492 }
 0x32e   : > { %v1956_v52 = vadd.f32 %v5482_v41, %v1953_v22  ;;  %v1501_v47 = vmul.f32 %v5461_v37, %v1493_v36  ;;  %v6168_v37 = vld [vmem:[#allocation63_spill] sm:$0xff]  ;;  %v5562_v60 = vrot.slane %v6175_v29, %v6150_v48  ;;  %v6176_v36 = vld [vmem:[#allocation46_spill] sm:$0xff] }
 0x32f   : > { %v876_v11 = vmul.f32 %v6169_v58, %v6168_v37  ;;  %v1067_v37 = vunpack.c.l.bf16 %v1066_v1 }
 0x330   : > { %v1959_v50 = vmax.f32 %v1956_v52, 0.0  ;;  %v1504_v14 = vadd.f32 %v1501_v47, %v1482_v23  ;;  %v5565_v23 = vrot.slane %v975_v26, %v6176_v36  ;;  %v1838_v52 = vmul.f32 %v5423_v33, %v1830_v51 }
 0x331   : > { %v879_v34 = vadd.f32 %v876_v11, %v857_v8  ;;  %v5578_v33 = vrot.slane %v975_v26, %v4678_v30  ;;  %v968_v27 = vmul.f32 %v5562_v60, %v6179_v59  ;;  %v5604_v29 = vrot.slane %v1067_v37, %v6148_v7  ;;  %v6186_v7 = vld [vmem:[#allocation93_spill] sm:$0xff] }
 0x332   : > { %v1962_v16 = vsel %vm4902_vm8, %v1959_v50, 0.0  ;;  %v1876_v3 = vpop.permute.xlu1 %1875  ;;  %v6177_v50 = vld [vmem:[#allocation72_spill] sm:$0xff]  ;;  %v1841_v11 = vadd.f32 %v1838_v52, %v1811_v18  ;;  %v992_v30 = vmul.f32 %v5565_v23, %v6180_v15 }
 0x333   : > { %1966 = vst.msk [vmem:[#allocation2 + $0x97] sm:$0xff] %vm298_vm0, %v1962_v16  ;;  %v903_v12 = vadd.f32 %v900_v31, %v879_v34  ;;  %v946_v2 = vmul.f32 %v6178_v42, %v6177_v50  ;;  %v5594_v31 = vrot.slane %v1021_v19, %v6135_v45  ;;  %v1014_v39 = vmul.f32 %v5578_v33, %v6182_v21  ;;  %v6183_v34 = vld [vmem:[#allocation99_spill] sm:$0xff] }
 0x335   : > { %v925_v51 = vadd.f32 %v922_v57, %v903_v12  ;;  %v1112_v57 = vld [vmem:[#allocation6 + $0x4] sm:$0x8]  ;;  %v1944_v12 = vpop.permute.xlu0 %1943 }
 0x336   : > { %v1517_v55 = vpop.permute.xlu1 %1516 }
 0x337   : > { %v1525_v16 = vmul.f32 %v5457_v10, %v1517_v55  ;;  %v969_v10 = vmul.f32 %v5562_v60, %v5500_v4  ;;  %v1884_v55 = vmul.f32 %v5476_v43, %v1876_v3  ;;  %v949_v63 = vadd.f32 %v946_v2, %v925_v51 }
 0x338   : > { %v993_v4 = vmul.f32 %v5565_v23, %v6181_v61  ;;  %v1863_v43 = vadd.f32 %v1860_v53, %v1841_v11  ;;  %v1952_v51 = vmul.f32 %v5511_v32, %v1944_v12 }
 0x339   : > { %v1528_v26 = vadd.f32 %v1525_v16, %v1504_v14  ;;  %v972_v14 = vadd.f32 %v969_v10, %v6183_v34  ;;  %v6187_v10 = vld [vmem:[#allocation60_spill] sm:$0xff] }
 0x33a   : > { %v1969_v22 = vld [vmem:[#allocation2 + $0x90] sm:$0xff]  ;;  %v1970_v54 = vld [vmem:[#allocation2 + $0x98] sm:$0xff]  ;;  %v1887_v6 = vadd.f32 %v1884_v55, %v1863_v43 }
 0x33b   : > { %v1898_v47 = vpop.permute.xlu1 %1897  ;;  %3420 = vmatmul.mubr.msk.f32.vlgmr.msra.gmra.mrb[0].mxu1 %vm298_vm0, %v1969_v22  ;;  %v996_v16 = vadd.f32 %v993_v4, %v972_v14  ;;  %v6193_v34 = vld [vmem:[#allocation64_spill] sm:$0xff] }
 0x33c   : > { %3422 = vmatprep.mubr.msk.f32.mxu1 %vm4084_vm13, %v6129_v38  ;;  %3440 = vmatpush3.bf16.msra.mxu1 %v3817_v35  ;;  %v1906_v3 = vmul.f32 %v5479_v62, %v1898_v47  ;;  %v971_v35 = vadd.f32 %v968_v27, %v949_v63  ;;  %v6184_v62 = vld [vmem:[#allocation38_spill] sm:$0xff]  ;;  %v6185_v47 = vld [vmem:[#allocation89_spill] sm:$0xff]  ;;  %v5616_v27 = vrot.slane %v1067_v37, %v4709_v56 }
 0x33d   : > { %3461 = vmatprep.subr.bf16.mxu1 %v6129_v38  ;;  %v1015_v52 = vmul.f32 %v5578_v33, %v6184_v62  ;;  %v1038_v1 = vmul.f32 %v5594_v31, %v6185_v47  ;;  %v6192_v37 = vld [vmem:[#allocation61_spill] sm:$0xff]  ;;  %v878_v14 = vmul.f32 %v6169_v58, %v6193_v34  ;;  %v3819_v34 = vld [vmem:[#allocation9 + $0x28] sm:$0xff]  }
 0x33e   : > { %v995_v45 = vadd.f32 %v992_v30, %v971_v35  ;;  %v1909_v50 = vadd.f32 %v1906_v3, %v1887_v6  ;;  %v1116_v3 = vpop.permute.xlu0 %1115  ;;  %v6194_v6 = vld [vmem:[#allocation31_spill] sm:$0xff] }
 0x33f   : > { %v1539_v5 = vpop.permute.xlu1 %1538  ;;  %3423 = vmatmul.mubr.msk.f32.gmra.mrb[2].mxu1 %vm298_vm0, %v1970_v54  ;;  %v826_v54 = vmul.f32 %v6163_v44, %v6187_v10  ;;  %v856_v44 = vmul.f32 %v6167_v28, %v6192_v37  ;;  %v1018_v61 = vadd.f32 %v1015_v52, %v996_v16 }
 0x340   : > { %v1547_v8 = vmul.f32 %v5464_v49, %v1539_v5  ;;  %3425 = vmatprep.mubr.msk.f32.mxu1 %vm4084_vm13, %v6129_v38  ;;  %v5601_v49 = vrot.slane %v1021_v19, %v6145_v13  ;;  %v1017_v2 = vadd.f32 %v1014_v39, %v995_v45  ;;  %v1113_v19 = vunpack.c.l.bf16 %v1112_v57  ;;  %v6189_v5 = vld [vmem:[#allocation97_spill] sm:$0xff] }
 0x341   : > { %v1084_v63 = vmul.f32 %v5604_v29, %v6189_v5 }
 0x342   : > { %v1550_v17 = vadd.f32 %v1547_v8, %v1528_v26  ;;  %v1060_v53 = vmul.f32 %v5601_v49, %v6186_v7  ;;  %v6190_v26 = vld [vmem:[#allocation25_spill] sm:$0xff]  ;;  %v5632_v43 = vrot.slane %v1113_v19, %v6149_v20  ;;  %v1061_v28 = vmul.f32 %v5601_v49, %v6194_v6  ;;  %v2176_v6 = vld [vmem:[#allocation2 + $0x62] sm:$0xff] }
 0x343   : > { %v1039_v32 = vmul.f32 %v5594_v31, %v6190_v26  ;;  %v6191_v8 = vld [vmem:[#allocation57_spill] sm:$0xff]  ;;  %v6200_v26 = vld [vmem:[#allocation83_spill] sm:$0xff] }
 0x344   : > { %v1553_v22 = vadd.f32 %v5482_v41, %v1550_v17  ;;  %v1922_v36 = vpop.permute.xlu1 %1921  ;;  %v804_v56 = vmul.f32 %v6165_v24, %v6191_v8  ;;  %v1130_v62 = vmul.f32 %v5632_v43, %v1116_v3 }
 0x345   : > { %v1930_v13 = vmul.f32 %v5505_v40, %v1922_v36  ;;  %v1041_v40 = vadd.f32 %v1038_v1, %v1017_v2  ;;  %v1042_v36 = vadd.f32 %v1039_v32, %v1018_v61  ;;  %v5646_v1 = vrot.slane %v1113_v19, %v6150_v48  ;;  %v1078_v2 = vpop.permute.xlu0 %1077  ;;  %v3818_v48 = vld [vmem:[#allocation9 + $0x20] sm:$0xff]  }
 0x346   : > { %v1556_v18 = vmax.f32 %v1553_v22, 0.0  ;;  %v829_v39 = vadd.f32 %v826_v54, %v804_v56  ;;  %v6195_v22 = vld [vmem:[#allocation67_spill] sm:$0xff]  ;;  %v2105_v54 = vld [vmem:[#allocation2 + $0x91] sm:$0xff]  ;;  %v994_v32 = vmul.f32 %v5565_v23, %v6200_v26 }
 0x347   : > { %v1933_v59 = vadd.f32 %v1930_v13, %v1909_v50  ;;  %v1063_v4 = vadd.f32 %v1060_v53, %v1041_v40  ;;  %v902_v20 = vmul.f32 %v6171_v46, %v6195_v22  ;;  %v6196_v50 = vld [vmem:[#allocation70_spill] sm:$0xff]  ;;  %v6198_v53 = vld [vmem:[#allocation75_spill] sm:$0xff] }
 0x348   : > { %v1559_v55 = vsel %vm4880_vm7, %v1556_v18, 0.0  ;;  %v859_v45 = vadd.f32 %v856_v44, %v829_v39  ;;  %v924_v13 = vmul.f32 %v6173_v25, %v6196_v50  ;;  %v6197_v46 = vld [vmem:[#allocation34_spill] sm:$0xff]  ;;  %v1064_v18 = vadd.f32 %v1061_v28, %v1042_v36  ;;  %v6199_v40 = vld [vmem:[#allocation79_spill] sm:$0xff] }
 0x349   : > { %1563 = vst.msk [vmem:[#allocation2 + $0x77] sm:$0xff] %vm298_vm0, %v1559_v55  ;;  %v1955_v15 = vadd.f32 %v1952_v51, %v1933_v59  ;;  %v1092_v30 = vpop.permute.xlu1 %1091  ;;  %v1087_v17 = vadd.f32 %v1084_v63, %v1063_v4  ;;  %v1085_v16 = vmul.f32 %v5604_v29, %v6197_v46  ;;  %v948_v51 = vmul.f32 %v6178_v42, %v6198_v53  ;;  %v2106_v4 = vld [vmem:[#allocation2 + $0x99] sm:$0xff] }
 0x34a   : > { %v1106_v21 = vmul.f32 %v5616_v27, %v1092_v30  ;;  %v881_v12 = vadd.f32 %v878_v14, %v859_v45  ;;  %v970_v5 = vmul.f32 %v5562_v60, %v6199_v40  ;;  %v3822_v40 = vld [vmem:[#allocation9 + $0x40] sm:$0xff]  }
 0x34b   : > { %v1958_v35 = vadd.f32 %v5482_v41, %v1955_v15  ;;  %v1142_v15 = vpop.permute.xlu0 %1141  ;;  %v1088_v30 = vadd.f32 %v1085_v16, %v1064_v18 }
 0x34c   : > { %v1109_v47 = vadd.f32 %v1106_v21, %v1087_v17  ;;  %v905_v19 = vadd.f32 %v902_v20, %v881_v12  ;;  %v1153_v61 = vmul.f32 %v5646_v1, %v1142_v15  ;;  %v6202_v17 = vld [vmem:[#allocation91_spill] sm:$0xff]  ;;  %v6203_v20 = vld [vmem:[#allocation96_spill] sm:$0xff] }
 0x34d   : > { %v1961_v57 = vmax.f32 %v1958_v35, 0.0  ;;  %v1096_v24 = vpop.permute.xlu1 %1095  ;;  %v6201_v35 = vld [vmem:[#allocation87_spill] sm:$0xff]  ;;  %v1062_v36 = vmul.f32 %v5601_v49, %v6203_v20  ;;  %v3825_v15 = vld [vmem:[#allocation9 + $0x58] sm:$0xff]  }
 0x34e   : > { %v1133_v59 = vadd.f32 %v1130_v62, %v1109_v47  ;;  %v1107_v25 = vmul.f32 %v5616_v27, %v1096_v24  ;;  %v927_v55 = vadd.f32 %v924_v13, %v905_v19  ;;  %v1016_v21 = vmul.f32 %v5578_v33, %v6201_v35  ;;  %v3820_v13 = vld [vmem:[#allocation9 + $0x30] sm:$0xff]   ;;  %v3826_v35 = vld [vmem:[#allocation9 + $0x60] sm:$0xff]  }
 0x34f   : > { %v1964_v52 = vsel %vm4880_vm7, %v1961_v57, 0.0  ;;  %v1040_v57 = vmul.f32 %v5594_v31, %v6202_v17  ;;  %v1086_v62 = vmul.f32 %v5604_v29, %v1078_v2  ;;  %v3029_v20 = vld [vmem:[#allocation2 + $0x16] sm:$0xff] }
 0x350   : > { %1968 = vst.msk [vmem:[#allocation2 + $0xa7] sm:$0xff] %vm298_vm0, %v1964_v52  ;;  %v1976_v58 = vld [vmem:[#allocation2 + $0x71] sm:$0xff]  ;;  %v951_v42 = vadd.f32 %v948_v51, %v927_v55  ;;  %v1110_v60 = vadd.f32 %v1107_v25, %v1088_v30 }
 0x351   : > { %3415 = vmatmul.mubr.msk.f32.gmra.mrb[4].mxu0 %vm298_vm0, %v1976_v58  ;;  %v2177_v52 = vld [vmem:[#allocation2 + $0x6a] sm:$0xff]  ;;  %v2178_v2 = vld [vmem:[#allocation2 + $0x72] sm:$0xff] }
 0x352   : > { %v1138_v7 = vpop.permute.xlu1 %1137  ;;  %3430 = vmatprep.mubr.msk.f32.mxu0 %vm4084_vm13, %v6129_v38  ;;  %v973_v3 = vadd.f32 %v970_v5, %v951_v42  ;;  %v2320_v25 = vld [vmem:[#allocation2 + $0x17] sm:$0xff]  ;;  %v2602_v42 = vld [vmem:[#allocation2 + $0x67] sm:$0xff] }
 0x353   : > { %v1152_v10 = vmul.f32 %v5646_v1, %v1138_v7  ;;  %v2461_v55 = vld [vmem:[#allocation2 + $0x10] sm:$0xff] }
 0x354   : > { %v997_v14 = vadd.f32 %v994_v32, %v973_v3  ;;  %v2603_v32 = vld [vmem:[#allocation2 + $0x6f] sm:$0xff] }
 0x355   : > { %v1155_v63 = vadd.f32 %v1152_v10, %v1133_v59  ;;  %3431 = vmatmul.mubr.msk.f32.vlgmr.msra.gmra.mrb[6].mxu0 %vm298_vm0, %v2105_v54  ;;  %v2319_v59 = vld [vmem:[#allocation2 + $0xf] sm:$0xff] }
 0x356   : > { %3433 = vmatprep.mubr.msk.f32.mxu0 %vm4084_vm13, %v6129_v38  ;;  %3451 = vmatpush3.bf16.msra.mxu0 %v3818_v48  ;;  %v1019_v22 = vadd.f32 %v1016_v21, %v997_v14  ;;  %v2460_v54 = vld [vmem:[#allocation2 + $0x8] sm:$0xff]  ;;  %v2745_v3 = vld [vmem:[#allocation2 + $0x70] sm:$0xff] }
 0x357   : > { %v1158_v8 = vadd.f32 %v5482_v41, %v1155_v63  ;;  %v1120_v56 = vpop.permute.xlu1 %1119  ;;  %v1971_v37 = vld [vmem:[#allocation2 + $0xa0] sm:$0xff]  ;;  %3472 = vmatprep.subr.bf16.mxu0 %v6129_v38  ;;  %v2462_v63 = vld [vmem:[#allocation2 + $0x18] sm:$0xff]  ;;  %v2886_v14 = vld [vmem:[#allocation2 + $0xd] sm:$0xff] }
 0x358   : > { %v1131_v44 = vmul.f32 %v5632_v43, %v1120_v56  ;;  %3426 = vmatmul.mubr.msk.f32.gmra.mrb[4].mxu1 %vm298_vm0, %v1971_v37  ;;  %v2107_v45 = vld [vmem:[#allocation2 + $0xa1] sm:$0xff]  ;;  %v1043_v31 = vadd.f32 %v1040_v57, %v1019_v22  ;;  %v2531_v56 = vld [vmem:[#allocation2 + $0x96] sm:$0xff] }
 0x359   : > { %v1161_v39 = vmax.f32 %v1158_v8, 0.0  ;;  %3434 = vmatmul.mubr.msk.f32.gmra.mrb[8].mxu0 %vm298_vm0, %v2106_v4  ;;  %3441 = vmatprep.mubr.msk.f32.mxu1 %vm4084_vm13, %v6129_v38  ;;  %v3824_v8 = vld [vmem:[#allocation9 + $0x50] sm:$0xff]   ;;  %v2604_v37 = vld [vmem:[#allocation2 + $0x77] sm:$0xff] }
 0x35a   : > { %v1134_v23 = vadd.f32 %v1131_v44, %v1110_v60  ;;  %3436 = vmatprep.mubr.msk.f32.mxu0 %vm4084_vm13, %v6129_v38  ;;  %v1065_v49 = vadd.f32 %v1062_v36, %v1043_v31  ;;  %v3827_v60 = vld [vmem:[#allocation9 + $0x68] sm:$0xff]   ;;  %v2673_v21 = vld [vmem:[#allocation2 + $0x97] sm:$0xff] }
 0x35b   : > { %v1164_v24 = vsel %vm4902_vm8, %v1161_v39, 0.0  ;;  %v2532_v44 = vld [vmem:[#allocation2 + $0x9e] sm:$0xff]  ;;  %v2533_v4 = vld [vmem:[#allocation2 + $0xa6] sm:$0xff]  ;;  %v2887_v57 = vld [vmem:[#allocation2 + $0x15] sm:$0xff] }
 0x35c   : > { %1168 = vst.msk [vmem:[#allocation2 + $0x37] sm:$0xff] %vm298_vm0, %v1164_v24  ;;  %v1156_v33 = vadd.f32 %v1153_v61, %v1134_v23  ;;  %v1100_v28 = vpop.permute.xlu1 %1099  ;;  %3442 = vmatmul.mubr.msk.f32.vlgmr.msra.gmra.mrb[6].mxu1 %vm298_vm0, %v2176_v6  ;;  %v1089_v46 = vadd.f32 %v1086_v62, %v1065_v49  ;;  %v2744_v61 = vld [vmem:[#allocation2 + $0x68] sm:$0xff]  ;;  %v2746_v39 = vld [vmem:[#allocation2 + $0x78] sm:$0xff] }
 0x35d   : > { %3437 = vmatmul.mubr.msk.f32.gmra.mrb[10].mxu0 %vm298_vm0, %v2107_v45  ;;  %3444 = vmatprep.mubr.msk.f32.mxu1 %vm4084_vm13, %v6129_v38  ;;  %v1108_v58 = vmul.f32 %v5616_v27, %v1100_v28  ;;  %v3829_v23 = vld [vmem:[#allocation9 + $0x78] sm:$0xff]   ;;  %v2675_v17 = vld [vmem:[#allocation2 + $0xa7] sm:$0xff] }
 0x35e   : > { %v1159_v0 = vadd.f32 %v5482_v41, %v1156_v33  ;;  %3452 = vmatprep.mubr.msk.f32.mxu0 %vm4084_vm13, %v6129_v38  ;;  %3462 = vmatpush3.bf16.msra.mxu1 %v3819_v34  ;;  %v2674_v34 = vld [vmem:[#allocation2 + $0x9f] sm:$0xff]  ;;  %v3828_v24 = vld [vmem:[#allocation9 + $0x70] sm:$0xff]  }
 0x35f   : > { %3483 = vmatprep.subr.bf16.mxu1 %v6129_v38  ;;  %v1111_v27 = vadd.f32 %v1108_v58, %v1089_v46  ;;  %v2888_v33 = vld [vmem:[#allocation2 + $0x1d] sm:$0xff]  ;;  %v3028_v45 = vld [vmem:[#allocation2 + $0xe] sm:$0xff] }
 0x360   : > { %v1162_v47 = vmax.f32 %v1159_v0, 0.0  ;;  %3445 = vmatmul.mubr.msk.f32.gmra.mrb[8].mxu1 %vm298_vm0, %v2177_v52  ;;  %v3030_v0 = vld [vmem:[#allocation2 + $0x1e] sm:$0xff] }
 0x361   : > { %v1124_v12 = vpop.permute.xlu1 %1123  ;;  %3447 = vmatprep.mubr.msk.f32.mxu1 %vm4084_vm13, %v6129_v38 }
 0x362   : > { %v1165_v50 = vsel %vm5167_vm12, %v1162_v47, 0.0  ;;  %v1132_v29 = vmul.f32 %v5632_v43, %v1124_v12  ;;  %v2318_v43 = vld [vmem:[#allocation2 + $0x7] sm:$0xff] }
 0x363   : > { %1169 = vst.msk [vmem:[#allocation2 + $0x3f] sm:$0xff] %vm298_vm0, %v1165_v50  ;;  %v2247_v16 = vld [vmem:[#allocation2 + $0x36] sm:$0xff] }
 0x364   : > { %3448 = vmatmul.mubr.msk.f32.gmra.mrb[10].mxu1 %vm298_vm0, %v2178_v2  ;;  %3453 = vmatmul.mubr.msk.f32.vlgmr.msra.gmra.mrb[12].mxu0 %vm298_vm0, %v2247_v16  ;;  %v1135_v7 = vadd.f32 %v1132_v29, %v1111_v27  ;;  %v2389_v5 = vld [vmem:[#allocation2 + $0x37] sm:$0xff] }
 0x365   : > { %3463 = vmatprep.mubr.msk.f32.mxu1 %vm4084_vm13, %v6129_v38  ;;  %3455 = vmatprep.mubr.msk.f32.mxu0 %vm4084_vm13, %v6129_v38 }
 0x366   : > { %v1146_v18 = vpop.permute.xlu1 %1145  ;;  %3473 = vmatpush3.bf16.msra.mxu0 %v3820_v13 }
 0x367   : > { %v1154_v48 = vmul.f32 %v5646_v1, %v1146_v18  ;;  %3494 = vmatprep.subr.bf16.mxu0 %v6129_v38 }
 0x368   : > { %3464 = vmatmul.mubr.msk.f32.vlgmr.msra.gmra.mrb[12].mxu1 %vm298_vm0, %v2318_v43 }
 0x369   : > { %v1157_v19 = vadd.f32 %v1154_v48, %v1135_v7  ;;  %3466 = vmatprep.mubr.msk.f32.mxu1 %vm4084_vm13, %v6129_v38  ;;  %3484 = vmatpush3.bf16.msra.mxu1 %v3821_v9 }
 0x36a   : > { %v2248_v53 = vld [vmem:[#allocation2 + $0x3e] sm:$0xff]  ;;  %3505 = vmatprep.subr.bf16.mxu1 %v6129_v38 }
 0x36b   : > { %v1160_v51 = vadd.f32 %v5482_v41, %v1157_v19  ;;  %3456 = vmatmul.mubr.msk.f32.gmra.mrb[14].mxu0 %vm298_vm0, %v2248_v53  ;;  %v3823_v41 = vld [vmem:[#allocation9 + $0x48] sm:$0xff]  }
 0x36c   : > { %3467 = vmatmul.mubr.msk.f32.gmra.mrb[14].mxu1 %vm298_vm0, %v2319_v59  ;;  %3458 = vmatprep.mubr.msk.f32.mxu0 %vm4084_vm13, %v6129_v38  ;;  %v2390_v30 = vld [vmem:[#allocation2 + $0x3f] sm:$0xff] }
 0x36d   : > { %v1163_v1 = vmax.f32 %v1160_v51, 0.0  ;;  %3469 = vmatprep.mubr.msk.f32.mxu1 %vm4084_vm13, %v6129_v38  ;;  %v2815_v6 = vld [vmem:[#allocation2 + $0x3c] sm:$0xff] }
 0x36e   : > { %v2957_v36 = vld [vmem:[#allocation2 + $0x3d] sm:$0xff] }
 0x36f   : > { %v1166_v10 = vsel %vm4880_vm7, %v1163_v1, 0.0 }
 0x370   : > { %1170 = vst.msk [vmem:[#allocation2 + $0x47] sm:$0xff] %vm298_vm0, %v1166_v10  ;;  %3470 = vmatmul.mubr.msk.f32.gmra.mrb[16].mxu1 %vm298_vm0, %v2320_v25 }
 0x371   : > { %3485 = vmatprep.mubr.msk.f32.mxu1 %vm4084_vm13, %v6129_v38 }
 0x374   : > { %3486 = vmatmul.mubr.msk.f32.vlgmr.msra.gmra.mrb[18].mxu1 %vm298_vm0, %v2460_v54 }
 0x375   : > { %3488 = vmatprep.mubr.msk.f32.mxu1 %vm4084_vm13, %v6129_v38  ;;  %3506 = vmatpush3.bf16.msra.mxu1 %v3823_v41 }
 0x376   : > { %3527 = vmatprep.subr.bf16.mxu1 %v6129_v38 }
 0x377   : > { %v2249_v11 = vld [vmem:[#allocation2 + $0x46] sm:$0xff] }
 0x378   : > { %3459 = vmatmul.mubr.msk.f32.gmra.mrb[16].mxu0 %vm298_vm0, %v2249_v11  ;;  %3489 = vmatmul.mubr.msk.f32.gmra.mrb[20].mxu1 %vm298_vm0, %v2461_v55  ;;  %v2391_v26 = vld [vmem:[#allocation2 + $0x47] sm:$0xff] }
 0x379   : > { %3474 = vmatprep.mubr.msk.f32.mxu0 %vm4084_vm13, %v6129_v38  ;;  %3491 = vmatprep.mubr.msk.f32.mxu1 %vm4084_vm13, %v6129_v38  ;;  %v2816_v28 = vld [vmem:[#allocation2 + $0x44] sm:$0xff]  ;;  %v2817_v22 = vld [vmem:[#allocation2 + $0x4c] sm:$0xff] }
 0x37a   : > { %v2958_v31 = vld [vmem:[#allocation2 + $0x45] sm:$0xff]  ;;  %v2959_v62 = vld [vmem:[#allocation2 + $0x4d] sm:$0xff] }
 0x37c   : > { %3475 = vmatmul.mubr.msk.f32.vlgmr.msra.gmra.mrb[18].mxu0 %vm298_vm0, %v2389_v5  ;;  %3492 = vmatmul.mubr.msk.f32.gmra.mrb[22].mxu1 %vm298_vm0, %v2462_v63 }
 0x37d   : > { %3495 = vmatpush3.bf16.msra.mxu0 %v3822_v40  ;;  %3477 = vmatprep.mubr.msk.f32.mxu0 %vm4084_vm13, %v6129_v38 }
 0x37e   : > { %3507 = vmatprep.mubr.msk.f32.mxu1 %vm4084_vm13, %v6129_v38  ;;  %3516 = vmatprep.subr.bf16.mxu0 %v6129_v38 }
 0x380   : > { %3478 = vmatmul.mubr.msk.f32.gmra.mrb[20].mxu0 %vm298_vm0, %v2390_v30  ;;  %3508 = vmatmul.mubr.msk.f32.vlgmr.msra.gmra.mrb[24].mxu1 %vm298_vm0, %v2602_v42 }
 0x381   : > { %3480 = vmatprep.mubr.msk.f32.mxu0 %vm4084_vm13, %v6129_v38  ;;  %3510 = vmatprep.mubr.msk.f32.mxu1 %vm4084_vm13, %v6129_v38 }
 0x382   : > { %3528 = vmatpush3.bf16.msra.mxu1 %v3825_v15 }
 0x383   : > { %3549 = vmatprep.subr.bf16.mxu1 %v6129_v38 }
 0x384   : > { %3481 = vmatmul.mubr.msk.f32.gmra.mrb[22].mxu0 %vm298_vm0, %v2391_v26  ;;  %3511 = vmatmul.mubr.msk.f32.gmra.mrb[26].mxu1 %vm298_vm0, %v2603_v32 }
 0x385   : > { %3496 = vmatprep.mubr.msk.f32.mxu0 %vm4084_vm13, %v6129_v38  ;;  %3513 = vmatprep.mubr.msk.f32.mxu1 %vm4084_vm13, %v6129_v38 }
 0x388   : > { %3497 = vmatmul.mubr.msk.f32.vlgmr.msra.gmra.mrb[24].mxu0 %vm298_vm0, %v2531_v56  ;;  %3514 = vmatmul.mubr.msk.f32.gmra.mrb[28].mxu1 %vm298_vm0, %v2604_v37 }
 0x389   : > { %3517 = vmatpush3.bf16.msra.mxu0 %v3824_v8  ;;  %3499 = vmatprep.mubr.msk.f32.mxu0 %vm4084_vm13, %v6129_v38 }
 0x38a   : > { %3529 = vmatprep.mubr.msk.f32.mxu1 %vm4084_vm13, %v6129_v38  ;;  %3538 = vmatprep.subr.bf16.mxu0 %v6129_v38 }
 0x38c   : > { %3500 = vmatmul.mubr.msk.f32.gmra.mrb[26].mxu0 %vm298_vm0, %v2532_v44  ;;  %3530 = vmatmul.mubr.msk.f32.vlgmr.msra.gmra.mrb[30].mxu1 %vm298_vm0, %v2744_v61 }
 0x38d   : > { %3502 = vmatprep.mubr.msk.f32.mxu0 %vm4084_vm13, %v6129_v38  ;;  %3532 = vmatprep.mubr.msk.f32.mxu1 %vm4084_vm13, %v6129_v38 }
 0x38e   : > { %3550 = vmatpush3.bf16.msra.mxu1 %v3827_v60 }
 0x38f   : > { %3571 = vmatprep.subr.bf16.mxu1 %v6129_v38 }
 0x390   : > { %3503 = vmatmul.mubr.msk.f32.gmra.mrb[28].mxu0 %vm298_vm0, %v2533_v4  ;;  %3533 = vmatmul.mubr.msk.f32.gmra.mrb[32].mxu1 %vm298_vm0, %v2745_v3 }
 0x391   : > { %3518 = vmatprep.mubr.msk.f32.mxu0 %vm4084_vm13, %v6129_v38  ;;  %3535 = vmatprep.mubr.msk.f32.mxu1 %vm4084_vm13, %v6129_v38 }
 0x394   : > { %3519 = vmatmul.mubr.msk.f32.vlgmr.msra.gmra.mrb[30].mxu0 %vm298_vm0, %v2673_v21  ;;  %3536 = vmatmul.mubr.msk.f32.gmra.mrb[34].mxu1 %vm298_vm0, %v2746_v39 }
 0x395   : > { %3539 = vmatpush3.bf16.msra.mxu0 %v3826_v35  ;;  %3521 = vmatprep.mubr.msk.f32.mxu0 %vm4084_vm13, %v6129_v38 }
 0x396   : > { %3551 = vmatprep.mubr.msk.f32.mxu1 %vm4084_vm13, %v6129_v38  ;;  %3560 = vmatprep.subr.bf16.mxu0 %v6129_v38 }
 0x398   : > { %3522 = vmatmul.mubr.msk.f32.gmra.mrb[32].mxu0 %vm298_vm0, %v2674_v34  ;;  %3552 = vmatmul.mubr.msk.f32.vlgmr.msra.gmra.mrb[36].mxu1 %vm298_vm0, %v2886_v14 }
 0x399   : > { %3524 = vmatprep.mubr.msk.f32.mxu0 %vm4084_vm13, %v6129_v38  ;;  %3554 = vmatprep.mubr.msk.f32.mxu1 %vm4084_vm13, %v6129_v38 }
 0x39a   : > { %3572 = vmatpush3.bf16.msra.mxu1 %v3829_v23 }
 0x39c   : > { %3525 = vmatmul.mubr.msk.f32.gmra.mrb[34].mxu0 %vm298_vm0, %v2675_v17  ;;  %3555 = vmatmul.mubr.msk.f32.gmra.mrb[38].mxu1 %vm298_vm0, %v2887_v57 }
 0x39d   : > { %3540 = vmatprep.mubr.msk.f32.mxu0 %vm4084_vm13, %v6129_v38  ;;  %3557 = vmatprep.mubr.msk.f32.mxu1 %vm4084_vm13, %v6129_v38 }
 0x3a0   : > { %3541 = vmatmul.mubr.msk.f32.vlgmr.msra.gmra.mrb[36].mxu0 %vm298_vm0, %v2815_v6  ;;  %3558 = vmatmul.mubr.msk.f32.gmra.mrb[40].mxu1 %vm298_vm0, %v2888_v33 }
 0x3a1   : > { %3561 = vmatpush3.bf16.msra.mxu0 %v3828_v24  ;;  %3543 = vmatprep.mubr.msk.f32.mxu0 %vm4084_vm13, %v6129_v38 }
 0x3a2   : > { %3573 = vmatprep.mubr.msk.f32.mxu1 %vm4084_vm13, %v6129_v38 }
 0x3a4   : > { %3544 = vmatmul.mubr.msk.f32.gmra.mrb[38].mxu0 %vm298_vm0, %v2816_v28  ;;  %3574 = vmatmul.mubr.msk.f32.vlgmr.msra.gmra.mrb[42].mxu1 %vm298_vm0, %v3028_v45 }
 0x3a5   : > { %3546 = vmatprep.mubr.msk.f32.mxu0 %vm4084_vm13, %v6129_v38  ;;  %3576 = vmatprep.mubr.msk.f32.mxu1 %vm4084_vm13, %v6129_v38 }
 0x3a8   : > { %3547 = vmatmul.mubr.msk.f32.gmra.mrb[40].mxu0 %vm298_vm0, %v2817_v22  ;;  %3577 = vmatmul.mubr.msk.f32.gmra.mrb[44].mxu1 %vm298_vm0, %v3029_v20 }
 0x3a9   : > { %3562 = vmatprep.mubr.msk.f32.mxu0 %vm4084_vm13, %v6129_v38  ;;  %3579 = vmatprep.mubr.msk.f32.mxu1 %vm4084_vm13, %v6129_v38 }
 0x3ac   : > { %3563 = vmatmul.mubr.msk.f32.vlgmr.msra.gmra.mrb[42].mxu0 %vm298_vm0, %v2957_v36  ;;  %3580 = vmatmul.mubr.msk.f32.gmra.mrb[46].mxu1 %vm298_vm0, %v3030_v0 }
 0x3ad   : > { %3565 = vmatprep.mubr.msk.f32.mxu0 %vm4084_vm13, %v6129_v38 }
 0x3b0   : > { %3566 = vmatmul.mubr.msk.f32.gmra.mrb[44].mxu0 %vm298_vm0, %v2958_v31 }
 0x3b1   : > { %3568 = vmatprep.mubr.msk.f32.mxu0 %vm4084_vm13, %v6129_v38 }
 0x3b4   : > { %3569 = vmatmul.mubr.msk.f32.gmra.mrb[46].mxu0 %vm298_vm0, %v2959_v62 }
 0x3d7   : > { %v2028_v52 = vpop.f32.mrb[0].mxu0 }
 0x3d8   : > { %v3410_v47 = vpop.f32.mrb[1].mxu0 }
 0x3fa   : > { %v2033_v49 = vpop.f32.mrb[2].mxu0 }
 0x3fb   : > { %v3413_v58 = vpop.f32.mrb[3].mxu0 }
 0x40e   : > { %v2091_v12 = vpop.f32.mrb[0].mxu1 }
 0x40f   : > { %v2092_v50 = vadd.f32 %v2091_v12, %v2028_v52  ;;  %v3421_v13 = vpop.f32.mrb[1].mxu1 }
 0x412   : > { %v2096_v46 = vpop.f32.mrb[2].mxu1 }
 0x413   : > { %v2097_v29 = vadd.f32 %v2096_v46, %v2033_v49  ;;  %v3424_v2 = vpop.f32.mrb[3].mxu1 }
 0x424   : > { %v2038_v16 = vpop.f32.mrb[4].mxu0 }
 0x425   : > { %v3416_v27 = vpop.f32.mrb[5].mxu0 }
 0x428   : > { %v2159_v9 = vpop.f32.mrb[6].mxu0 }
 0x429   : > { %v2173_v18 = vadd.f32 %v2159_v9, %v2092_v50  ;;  %v3432_v7 = vpop.f32.mrb[7].mxu0 }
 0x42b   : > { %v2101_v48 = vpop.f32.mrb[4].mxu1 }
 0x42c   : > { %v2102_v38 = vadd.f32 %v2101_v48, %v2038_v16  ;;  %v3427_v43 = vpop.f32.mrb[5].mxu1  ;;  %v2164_v19 = vpop.f32.mrb[8].mxu0 }
 0x42d   : > { %v2174_v53 = vadd.f32 %v2164_v19, %v2097_v29  ;;  %v3435_v51 = vpop.f32.mrb[9].mxu0 }
 0x42f   : > { %v2230_v59 = vpop.f32.mrb[6].mxu1 }
 0x430   : > { %v2244_v1 = vadd.f32 %v2230_v59, %v2173_v18  ;;  %v2169_v10 = vpop.f32.mrb[10].mxu0  ;;  %v3443_v25 = vpop.f32.mrb[7].mxu1 }
 0x431   : > { %v2175_v41 = vadd.f32 %v2169_v10, %v2102_v38  ;;  %v3438_v54 = vpop.f32.mrb[11].mxu0 }
 0x433   : > { %v2235_v11 = vpop.f32.mrb[8].mxu1 }
 0x434   : > { %v2245_v55 = vadd.f32 %v2235_v11, %v2174_v53  ;;  %v3446_v40 = vpop.f32.mrb[9].mxu1 }
 0x437   : > { %v2240_v5 = vpop.f32.mrb[10].mxu1  ;;  %v2301_v63 = vpop.f32.mrb[12].mxu0 }
 0x438   : > { %v2246_v15 = vadd.f32 %v2240_v5, %v2175_v41  ;;  %v2315_v30 = vadd.f32 %v2301_v63, %v2244_v1  ;;  %v3449_v42 = vpop.f32.mrb[11].mxu1  ;;  %v3454_v26 = vpop.f32.mrb[13].mxu0 }
 0x43b   : > { %v2372_v32 = vpop.f32.mrb[12].mxu1 }
 0x43c   : > { %v2386_v8 = vadd.f32 %v2372_v32, %v2315_v30  ;;  %v3465_v56 = vpop.f32.mrb[13].mxu1 }
 0x43e   : > { %v2306_v37 = vpop.f32.mrb[14].mxu0 }
 0x43f   : > { %v2316_v60 = vadd.f32 %v2306_v37, %v2245_v55  ;;  %v3457_v44 = vpop.f32.mrb[15].mxu0  ;;  %v2377_v61 = vpop.f32.mrb[14].mxu1 }
 0x440   : > { %v3468_v4 = vpop.f32.mrb[15].mxu1 }
 0x441   : > { %v2387_v3 = vadd.f32 %v2377_v61, %v2316_v60 }
 0x443   : > { %v2382_v35 = vpop.f32.mrb[16].mxu1 }
 0x444   : > { %v3471_v21 = vpop.f32.mrb[17].mxu1 }
 0x447   : > { %v2514_v39 = vpop.f32.mrb[18].mxu1 }
 0x448   : > { %v3487_v23 = vpop.f32.mrb[19].mxu1 }
 0x44b   : > { %v2311_v34 = vpop.f32.mrb[16].mxu0  ;;  %v2519_v14 = vpop.f32.mrb[20].mxu1 }
 0x44c   : > { %v2317_v17 = vadd.f32 %v2311_v34, %v2246_v15  ;;  %v3460_v57 = vpop.f32.mrb[17].mxu0  ;;  %v3490_v24 = vpop.f32.mrb[21].mxu1 }
 0x44e   : > { %v2388_v6 = vadd.f32 %v2382_v35, %v2317_v17 }
 0x44f   : > { %v2443_v33 = vpop.f32.mrb[18].mxu0  ;;  %v2524_v28 = vpop.f32.mrb[22].mxu1 }
 0x450   : > { %v2457_v45 = vadd.f32 %v2443_v33, %v2386_v8  ;;  %v3476_v22 = vpop.f32.mrb[19].mxu0  ;;  %v3493_v20 = vpop.f32.mrb[23].mxu1 }
 0x452   : > { %v2528_v36 = vadd.f32 %v2514_v39, %v2457_v45 }
 0x453   : > { %v2448_v0 = vpop.f32.mrb[20].mxu0  ;;  %v2656_v31 = vpop.f32.mrb[24].mxu1 }
 0x454   : > { %v2458_v62 = vadd.f32 %v2448_v0, %v2387_v3  ;;  %v3479_v52 = vpop.f32.mrb[21].mxu0  ;;  %v3509_v47 = vpop.f32.mrb[25].mxu1 }
 0x456   : > { %v2529_v49 = vadd.f32 %v2519_v14, %v2458_v62 }
 0x457   : > { %v2453_v58 = vpop.f32.mrb[22].mxu0  ;;  %v2661_v12 = vpop.f32.mrb[26].mxu1 }
 0x458   : > { %v2459_v50 = vadd.f32 %v2453_v58, %v2388_v6  ;;  %v3482_v13 = vpop.f32.mrb[23].mxu0  ;;  %v3512_v46 = vpop.f32.mrb[27].mxu1 }
 0x45a   : > { %v2530_v29 = vadd.f32 %v2524_v28, %v2459_v50 }
 0x45b   : > { %v2585_v2 = vpop.f32.mrb[24].mxu0  ;;  %v2666_v16 = vpop.f32.mrb[28].mxu1 }
 0x45c   : > { %v2599_v27 = vadd.f32 %v2585_v2, %v2528_v36  ;;  %v3498_v9 = vpop.f32.mrb[25].mxu0  ;;  %v3515_v18 = vpop.f32.mrb[29].mxu1 }
 0x45e   : > { %v2670_v7 = vadd.f32 %v2656_v31, %v2599_v27 }
 0x45f   : > { %v2590_v48 = vpop.f32.mrb[26].mxu0  ;;  %v2798_v38 = vpop.f32.mrb[30].mxu1 }
 0x460   : > { %v2600_v43 = vadd.f32 %v2590_v48, %v2529_v49  ;;  %v3501_v19 = vpop.f32.mrb[27].mxu0  ;;  %v3531_v53 = vpop.f32.mrb[31].mxu1 }
 0x462   : > { %v2671_v51 = vadd.f32 %v2661_v12, %v2600_v43  ;;  %v3332_v12 = vld [vmem:[#allocation11] ss:$0 sm:$0xff] }
 0x463   : > { %v2595_v59 = vpop.f32.mrb[28].mxu0  ;;  %v2803_v1 = vpop.f32.mrb[32].mxu1 }
 0x464   : > { %v2601_v10 = vadd.f32 %v2595_v59, %v2530_v29  ;;  %v3504_v25 = vpop.f32.mrb[29].mxu0  ;;  %v3534_v41 = vpop.f32.mrb[33].mxu1 }
 0x466   : > { %v2672_v54 = vadd.f32 %v2666_v16, %v2601_v10 }
 0x467   : > { %v2727_v11 = vpop.f32.mrb[30].mxu0  ;;  %v2808_v55 = vpop.f32.mrb[34].mxu1 }
 0x468   : > { %v2741_v40 = vadd.f32 %v2727_v11, %v2670_v7  ;;  %v3520_v5 = vpop.f32.mrb[31].mxu0  ;;  %v3537_v63 = vpop.f32.mrb[35].mxu1 }
 0x46a   : > { %v2812_v15 = vadd.f32 %v2798_v38, %v2741_v40 }
 0x46b   : > { %v2732_v30 = vpop.f32.mrb[32].mxu0  ;;  %v2940_v42 = vpop.f32.mrb[36].mxu1 }
 0x46c   : > { %v2742_v26 = vadd.f32 %v2732_v30, %v2671_v51  ;;  %v3523_v32 = vpop.f32.mrb[33].mxu0  ;;  %v3553_v8 = vpop.f32.mrb[37].mxu1 }
 0x46e   : > { %v2813_v56 = vadd.f32 %v2803_v1, %v2742_v26 }
 0x46f   : > { %v2737_v37 = vpop.f32.mrb[34].mxu0  ;;  %v2945_v60 = vpop.f32.mrb[38].mxu1 }
 0x470   : > { %v2743_v44 = vadd.f32 %v2737_v37, %v2672_v54  ;;  %v3526_v61 = vpop.f32.mrb[35].mxu0  ;;  %v3556_v4 = vpop.f32.mrb[39].mxu1 }
 0x472   : > { %v2814_v3 = vadd.f32 %v2808_v55, %v2743_v44 }
 0x473   : > { %v2869_v35 = vpop.f32.mrb[36].mxu0  ;;  %v2950_v21 = vpop.f32.mrb[40].mxu1 }
 0x474   : > { %v2883_v39 = vadd.f32 %v2869_v35, %v2812_v15  ;;  %v3542_v23 = vpop.f32.mrb[37].mxu0  ;;  %v3559_v34 = vpop.f32.mrb[41].mxu1 }
 0x476   : > { %v2954_v14 = vadd.f32 %v2940_v42, %v2883_v39 }
 0x477   : > { %v2874_v17 = vpop.f32.mrb[38].mxu0  ;;  %v3082_v57 = vpop.f32.mrb[42].mxu1 }
 0x478   : > { %v2884_v24 = vadd.f32 %v2874_v17, %v2813_v56  ;;  %v3545_v6 = vpop.f32.mrb[39].mxu0  ;;  %v3575_v33 = vpop.f32.mrb[43].mxu1 }
 0x47a   : > { %v2955_v28 = vadd.f32 %v2945_v60, %v2884_v24 }
 0x47b   : > { %v2879_v45 = vpop.f32.mrb[40].mxu0  ;;  %v3087_v22 = vpop.f32.mrb[44].mxu1 }
 0x47c   : > { %v2885_v20 = vadd.f32 %v2879_v45, %v2814_v3  ;;  %v3548_v36 = vpop.f32.mrb[41].mxu0  ;;  %v3578_v0 = vpop.f32.mrb[45].mxu1 }
 0x47e   : > { %v2956_v31 = vadd.f32 %v2950_v21, %v2885_v20 }
 0x47f   : > { %v3011_v62 = vpop.f32.mrb[42].mxu0  ;;  %v3092_v52 = vpop.f32.mrb[46].mxu1 }
 0x480   : > { %v3025_v47 = vadd.f32 %v3011_v62, %v2954_v14  ;;  %v3564_v49 = vpop.f32.mrb[43].mxu0  ;;  %v3581_v58 = vpop.f32.mrb[47].mxu1 }
 0x482   : > { %v3096_v50 = vadd.f32 %v3082_v57, %v3025_v47 }
 0x483   : > { %v3016_v13 = vpop.f32.mrb[44].mxu0 }
 0x484   : > { %v3106_v46 = vadd.f32 %v3332_v12, %v3096_v50  ;;  %v3026_v29 = vadd.f32 %v3016_v13, %v2955_v28  ;;  %v3567_v2 = vpop.f32.mrb[45].mxu0 }
 0x486   : > { %v3109_v16 = vmax.f32 %v3106_v46, 0.0  ;;  %v3097_v27 = vadd.f32 %v3087_v22, %v3026_v29 }
 0x487   : > { %v3021_v9 = vpop.f32.mrb[46].mxu0 }
 0x488   : > { %v3339_v18 = vpack.c.bf16 %v3109_v16, %v3109_v16  ;;  %v3107_v7 = vadd.f32 %v3332_v12, %v3097_v27  ;;  %v3027_v48 = vadd.f32 %v3021_v9, %v2956_v31  ;;  %v3570_v38 = vpop.f32.mrb[47].mxu0 }
 0x48a   : > { %3126 = vst.msk [vmem:[%s296_s26] sm:$0xf] %vm3125_vm14, %v3339_v18  ;;  %v3110_v43 = vmax.f32 %v3107_v7, 0.0  ;;  %v3098_v19 = vadd.f32 %v3092_v52, %v3027_v48 }
 0x48c   : > { %v3340_v53 = vpack.c.bf16 %v3110_v43, %v3110_v43  ;;  %v3108_v51 = vadd.f32 %v3332_v12, %v3098_v19 }
 0x48e   : > { %3127 = vst.msk [vmem:[%s296_s26 + $0x4] sm:$0xf] %vm3125_vm14, %v3340_v53  ;;  %v3111_v59 = vmax.f32 %v3108_v51, 0.0 }
 0x490   : > { %v3341_v1 = vpack.c.bf16 %v3111_v59, %v3111_v59 }
 0x492   : > { %3128 = vst.msk [vmem:[%s296_s26 + $0x8] sm:$0xf] %vm3125_vm14, %v3341_v1 }
 0x493   : > { %3995 = shalt.err (!%p3992_p13)
}
 0x494   : > { %s3996_s6 = scalar_lea.hbm %s5830_s30, 192  ;;  %s4000_s10 = scalar_lea.hbm %s5882_s5, 384 }
 0x495   : > { %p3997_p9 = scmp.ne.s32.totalorder %s5830_s30, %s3996_s6  ;;  %p4001_p6 = scmp.lt.u32.totalorder %s5830_s30, %s5882_s5 }
 0x496   : > { %p4002_p4 = scmp.lt.u32.totalorder %s4000_s10, %s3996_s6  ;;  %p4004_p3 = scmp.lt.u32.totalorder %s3996_s6, %s5830_s30 }
 0x497   : > { %p3998_p0 = pnand %p3997_p9, %p4277_p10 }
 0x498   : > { %p4003_p8 = por %p4002_p4, %p4001_p6 }
 0x499   : > { %p3999_p11 = pneg %p3998_p0 }
 0x49a   : > { %p4005_p5 = por %p4004_p3, %p4003_p8 }
 0x49c   : > { %p4006_p7 = pnand %p4005_p5, %p3999_p11 }
 0x49e   : > { %4009 = shalt.err (!%p4006_p7)
}
 0x49f   : > { %s4086_s9 = smov 64   ;;  %s4087_s8 = smov 4  }
 0x4a0   : > { %3611 = dma.vmem_to_hbm [thread:$0]  (%p4277_p10), %s5832_s12, 192, %s5830_s30, %s3130_s22, %s4086_s9, %s4086_s9, %s4087_s8  }
 0x4a1 PF: > { %s3158_s15 = sand.u32 1, %s4044_s18   ;;  %p6204_p12 = scmp.ne.s32.totalorder %s5971_s25, 0 }
 0x4a2   : > { %p6205_p2 = scmp.ge.s32.totalorder %s4056_s21, 2  ;;  %s3159_s7 = scalar_lea.sflag [#allocation5], %s3158_s15 }
 0x4a4   : > { %p3631_p1 = pnand %p6205_p2, %p6204_p12 }
 0x4a6   : > { %4039 = dma.done.wait (!%p3631_p1), %s3159_s7, 192  }
 0x4a7   : > { %4041 = vsyncadd (!%p3631_p1), %s3159_s7, 4294967104  ;;  %p20_p13 = scmp.ge.s32.totalorder %s4267_s14, 4   ;;  %s6206_s18 = smov %s4048_s19 }
 0x4a8   : > { %s6207_s19 = smov %s4052_s20  ;;  %s6208_s20 = smov %s4283_s28 }
 0x4a9   : > { %s6209_s21 = smov %s4267_s14  ;;  %22 = sbr.rel (!%p20_p13) target bundleno = 7 (0x7), region = 104 }
 0x4b0   :  { %3164 = vsyncpa [#allocation4], 1 }
 0x4b1   :  { %3166 = vsyncpa [#allocation4 + $0x1], 1 }
 0x4b2   :  { %3167 = vsyncpa [#allocation7], 1 }
 0x4b3   :  { %3168 = vsyncpa [#allocation10], 1 }
 0x4b4   :  { %3169 = vsyncpa [#allocation5], 1 }
 0x4b5   :  { %3171 = vsyncpa [#allocation5 + $0x1], 1 }

// kernel: vae_forward.5
= control target key start
LH: loop header
LB: loop body
LE: loop exit
PB: predicated region body
PF: predicated region fallthrough
CT: control target
= control target key end

     0   :  { %10 = vsyncpa [#allocation4], 0  ;;  %s7329_s0 = inlined_call_operand.hbm [shape: f32[2,42,32], index: 0, kind: input, shape index: {}]   ;;  %s7330_s1 = inlined_call_operand.hbm [shape: bf16[512,16], index: 1, kind: input, shape index: {}]   ;;  %s7331_s2 = inlined_call_operand.hbm [shape: f32[1,16], index: 2, kind: input, shape index: {}]   ;;  %s7332_s3 = inlined_call_operand.hbm [shape: bf16[144,4], index: 3, kind: input, shape index: {}]   ;;  %s7333_s4 = inlined_call_operand.hbm [shape: f32[1,4], index: 4, kind: input, shape index: {}]   ;;  %s7334_s5 = inlined_call_operand.hbm [shape: f32[2,2,2,24,4], index: 5, kind: output, shape index: {}]  }
   0x1   :  { %12 = vsyncpa [#allocation4 + $0x1], 0 }
   0x2   :  { %13 = vsyncpa [#allocation7], 0 }
   0x3   :  { %14 = vsyncpa [#allocation10], 0 }
   0x4   :  { %15 = vsyncpa [#allocation5], 0 }
   0x5   :  { %17 = vsyncpa [#allocation5 + $0x1], 0  ;;  %s6059_s18 = smov 0   ;;  %s6061_s19 = smov 0  }
   0x6   :  { %s6063_s20 = smov 0   ;;  %s6065_s21 = smov 0  }
   0x7 LB: > { %s6080_s22 = sadd.s32 4294967295, %s6013_s21   ;;  %s4496_s23 = sadd.s32 4294967294, %s6013_s21   ;;  %s6013_s21 = sphi %s6065_s21, %s7369_s21   ;;  %s6009_s20 = sphi %s6063_s20, %s7368_s20   ;;  %s6005_s19 = sphi %s6061_s19, %s7367_s19   ;;  %s6001_s18 = sphi %s6059_s18, %s7366_s18  }
   0x8   : > { %p43_p0 = scmp.ne.s32.totalorder %s6005_s19, %s6001_s18  ;;  %p7335_p1 = scmp.eq.s32.totalorder %s6080_s22, 0 }
   0x9   : > { %p157_p3 = scmp.eq.s32.totalorder %s4496_s23, 1  ;;  %p4497_p5 = scmp.ge.s32.totalorder %s6013_s21, 1 }
   0xa   : > { %p6089_p4 = por %p7335_p1, %p43_p0  ;;  %p164_p7 = scmp.lt.s32.totalorder %s6013_s21, 3 }
   0xb   : > { %p6094_p6 = por %p157_p3, %p43_p0  ;;  %s6015_s27 = smov [#allocation6]  }
   0xc   : > { %s7338_s24 = scalar_select %p6089_p4, 1, 0 }
   0xd   : > { %s7339_s25 = scalar_select %p6094_p6, 1, 0 }
   0xe   : > { %p6099_p8 = pnand %p4497_p5, %p164_p7  ;;  %s176_s28 = sshll.u32 %s6015_s27, 4  ;;  %s6103_s28 = int_to_ptr.vmem [resolvable:$true] %s176_s28 }
   0xf   : > { %s6016_s30 = smov [#allocation9]   ;;  %s6017_s7 = smov [#allocation8]  }
  0x10   : > { %s7340_s26 = scalar_select %p6099_p8, 1, 0 }
  0x11   : > { %p5606_p9 = pneg %p6099_p8  ;;  %s200_s6 = sshll.u32 %s6016_s30, 4  ;;  %s6114_s6 = int_to_ptr.vmem [resolvable:$true] %s200_s6 }
  0x12   : > { %s6116_s8 = sshll.u32 %s6017_s7, 4  ;;  %s5797_s11 = scalar_lea.hbm %s7330_s1, 4096  ;;  %s191_s8 = int_to_ptr.vmem [resolvable:$true] %s6116_s8 }
  0x13   : > { %p6110_p11 = pnand %p5606_p9, %p7335_p1  ;;  %p5798_p12 = scmp.ne.s32.totalorder %s7330_s1, %s5797_s11 }
  0x14   : > { %p5804_p5 = scmp.lt.u32.totalorder %s5797_s11, %s7330_s1 }
  0x15   : > { %p6126_p13 = pneg %p6110_p11 }
  0x17   : > { %p5800_p0 = pnand %p6126_p13, %p5798_p12 }
  0x19   : > { %p5801_p3 = pneg %p5800_p0 }
  0x1b   : > { %p5806_p7 = pnand %p5804_p5, %p5801_p3 }
  0x1d   : > { %5809 = shalt.err (!%p5806_p7)
}
  0x1e   : > { %s5810_s17 = scalar_lea.vmem %s6103_s28, 4096  ;;  %p5818_p2 = scmp.lt.s32.totalorder %s6103_s28, %s6103_s28 }
  0x1f   : > { %p5811_p9 = scmp.ne.s32.totalorder %s6103_s28, %s5810_s17  ;;  %p5819_p6 = scmp.lt.s32.totalorder %s5810_s17, %s5810_s17 }
  0x21   : > { %p5813_p10 = pnand %p5811_p9, %p6126_p13  ;;  %p5820_p12 = por %p5819_p6, %p5818_p2 }
  0x23   : > { %p5814_p1 = pneg %p5813_p10 }
  0x25   : > { %p5821_p0 = pnand %p5820_p12, %p5814_p1 }
  0x27   : > { %5824 = shalt.err (!%p5821_p0)
}
  0x28   : > { %s6018_s23 = smov 64   ;;  %s6019_s27 = smov 4  }
  0x29   : > { %5609 = dma.hbm_to_vmem [thread:$0]  (!%p6110_p11), %s7330_s1, 4096, %s6103_s28, [#allocation7], %s6018_s23, %s6018_s23, %s6019_s27  }
  0x2a   : > { %s5825_s11 = scalar_lea.hbm %s7332_s3, 1152 }
  0x2b   : > { %p5826_p2 = scmp.ne.s32.totalorder %s7332_s3, %s5825_s11  ;;  %p5832_p10 = scmp.lt.u32.totalorder %s5825_s11, %s7332_s3 }
  0x2d   : > { %p5828_p1 = pnand %p5826_p2, %p6126_p13 }
  0x2f   : > { %p5829_p6 = pneg %p5828_p1 }
  0x31   : > { %p5834_p3 = pnand %p5832_p10, %p5829_p6 }
  0x33   : > { %5837 = shalt.err (!%p5834_p3)
}
  0x34   : > { %s5838_s28 = scalar_lea.vmem %s6114_s6, 1152  ;;  %p5846_p12 = scmp.lt.s32.totalorder %s6114_s6, %s6114_s6 }
  0x35   : > { %p5839_p5 = scmp.ne.s32.totalorder %s6114_s6, %s5838_s28  ;;  %p5847_p0 = scmp.lt.s32.totalorder %s5838_s28, %s5838_s28 }
  0x37   : > { %p5841_p7 = pnand %p5839_p5, %p6126_p13  ;;  %p5848_p2 = por %p5847_p0, %p5846_p12 }
  0x39   : > { %p5842_p9 = pneg %p5841_p7 }
  0x3b   : > { %p5849_p1 = pnand %p5848_p2, %p5842_p9 }
  0x3d   : > { %5852 = shalt.err (!%p5849_p1)
}
  0x3e   : > { %5615 = dma.hbm_to_vmem [thread:$0]  (!%p6110_p11), %s7332_s3, 1152, %s6114_s6, [#allocation10], %s6018_s23, %s6018_s23, %s6019_s27  }
  0x3f   : > { %s5853_s10 = scalar_lea.hbm %s7331_s2, 16 }
  0x40   : > { %p5854_p6 = scmp.ne.s32.totalorder %s7331_s2, %s5853_s10  ;;  %p5860_p5 = scmp.lt.u32.totalorder %s5853_s10, %s7331_s2 }
  0x42   : > { %p5856_p10 = pnand %p5854_p6, %p6126_p13 }
  0x44   : > { %p5857_p3 = pneg %p5856_p10 }
  0x46   : > { %p5862_p7 = pnand %p5860_p5, %p5857_p3 }
  0x48   : > { %5865 = shalt.err (!%p5862_p7)
}
  0x49   : > { %s5866_s16 = scalar_lea.vmem %s191_s8, 16  ;;  %s5873_s6 = scalar_lea.vmem %s191_s8, 32 }
  0x4a   : > { %p5867_p9 = scmp.ne.s32.totalorder %s191_s8, %s5866_s16  ;;  %p5874_p2 = scmp.lt.s32.totalorder %s191_s8, %s191_s8 }
  0x4b   : > { %p5875_p1 = scmp.lt.s32.totalorder %s5873_s6, %s5866_s16 }
  0x4c   : > { %p5869_p12 = pnand %p5867_p9, %p6126_p13 }
  0x4d   : > { %p5876_p4 = por %p5875_p1, %p5874_p2 }
  0x4e   : > { %p5870_p0 = pneg %p5869_p12 }
  0x50   : > { %p5877_p8 = pnand %p5876_p4, %p5870_p0 }
  0x52   : > { %5880 = shalt.err (!%p5877_p8)
}
  0x53   : > { %5612 = dma.hbm_to_vmem [thread:$0]  (!%p6110_p11), %s7331_s2, 16, %s191_s8, [#allocation7]  }
  0x54   : > { %s6020_s28 = smov [#allocation11]   ;;  %s5881_s9 = scalar_lea.hbm %s7333_s4, 16 }
  0x55   : > { %s214_s17 = sshll.u32 %s6020_s28, 4  ;;  %p5882_p6 = scmp.ne.s32.totalorder %s7333_s4, %s5881_s9  ;;  %s215_s17 = int_to_ptr.vmem [resolvable:$true] %s214_s17 }
  0x56   : > { %p5888_p10 = scmp.lt.u32.totalorder %s5881_s9, %s7333_s4 }
  0x57   : > { %p5884_p4 = pnand %p5882_p6, %p6126_p13 }
  0x59   : > { %p5885_p8 = pneg %p5884_p4 }
  0x5b   : > { %p5890_p3 = pnand %p5888_p10, %p5885_p8 }
  0x5d   : > { %5893 = shalt.err (!%p5890_p3)
}
  0x5e   : > { %s5894_s8 = scalar_lea.vmem %s215_s17, 16  ;;  %s5901_s15 = scalar_lea.vmem %s215_s17, 32 }
  0x5f   : > { %p5895_p5 = scmp.ne.s32.totalorder %s215_s17, %s5894_s8  ;;  %p5902_p12 = scmp.lt.s32.totalorder %s215_s17, %s215_s17 }
  0x60   : > { %p5903_p0 = scmp.lt.s32.totalorder %s5901_s15, %s5894_s8 }
  0x61   : > { %p5897_p7 = pnand %p5895_p5, %p6126_p13 }
  0x62   : > { %p5904_p2 = por %p5903_p0, %p5902_p12 }
  0x63   : > { %p5898_p9 = pneg %p5897_p7 }
  0x65   : > { %p5905_p1 = pnand %p5904_p2, %p5898_p9 }
  0x67   : > { %5908 = shalt.err (!%p5905_p1)
}
  0x68   : > { %5618 = dma.hbm_to_vmem [thread:$0]  (!%p6110_p11), %s7333_s4, 16, %s215_s17, [#allocation10]  }
  0x69   : > { %s6208_s14 = sadd.s32 1, %s6013_s21   ;;  %s30_s23 = sadd.s32 1, %s6009_s20 }
  0x6a   : > { %s27_s29 = ssub.s32 %s6013_s21, %s6208_s14  ;;  %p37_p13 = scmp.ne.s32.totalorder %s6009_s20, %s6005_s19 }
  0x6b   : > { %p28_p6 = scmp.eq.s32.totalorder %s27_s29, 0  ;;  %p38_p4 = scmp.eq.s32.totalorder %s6013_s21, 0 }
  0x6c   : > { %p7343_p8 = scmp.eq.s32.totalorder %s6080_s22, 1  ;;  %p5631_p3 = scmp.lt.s32.totalorder %s6013_s21, 2 }
  0x6d   : > { %s6224_s28 = scalar_select %p28_p6, %s6009_s20, %s30_s23  }
  0x6e   : > { %p6218_p10 = por %p7343_p8, %p37_p13  ;;  %p39_p5 = por %p38_p4, %p37_p13 }
  0x6f   : > { %s225_s30 = sand.u32 1, %s6009_s20   ;;  %s5576_s17 = smul.u32 768, %s6013_s21 }
  0x70   : > { %s5575_s7 = smul.u32 48, %s225_s30  ;;  %p6228_p11 = pnand %p5631_p3, %p39_p5 }
  0x71   : > { %s6235_s12 = scalar_lea.hbm %s7329_s0, %s5576_s17  ;;  %s6239_s15 = scalar_lea.sflag [#allocation4], %s225_s30 }
  0x72   : > { %s229_s13 = scalar_lea.vmem [#allocation3], %s5575_s7  ;;  %s5909_s16 = scalar_lea.hbm %s6235_s12, 768 }
  0x73   : > { %s236_s8 = sshll.u32 %s229_s13, 4  ;;  %p5910_p7 = scmp.ne.s32.totalorder %s6235_s12, %s5909_s16  ;;  %s6237_s8 = int_to_ptr.vmem [resolvable:$true] %s236_s8 }
  0x74   : > { %p5911_p9 = pneg %p6228_p11  ;;  %s5914_s29 = scalar_lea.hbm %s7329_s0, 1536 }
  0x75   : > { %p5915_p2 = scmp.lt.u32.totalorder %s6235_s12, %s7329_s0  ;;  %p5916_p1 = scmp.lt.u32.totalorder %s5914_s29, %s5909_s16 }
  0x76   : > { %p5912_p12 = pnand %p5911_p9, %p5910_p7  ;;  %p5918_p6 = scmp.lt.u32.totalorder %s5909_s16, %s6235_s12 }
  0x77   : > { %p5917_p13 = por %p5916_p1, %p5915_p2 }
  0x78   : > { %p5913_p0 = pneg %p5912_p12 }
  0x79   : > { %p5919_p4 = por %p5918_p6, %p5917_p13 }
  0x7b   : > { %p5920_p8 = pnand %p5919_p4, %p5913_p0 }
  0x7d   : > { %5923 = shalt.err (!%p5920_p8)
}
  0x7e   : > { %s5924_s30 = scalar_lea.vmem %s6237_s8, 768  ;;  %s6021_s7 = smov [#allocation3]  }
  0x7f   : > { %p5925_p3 = scmp.ne.s32.totalorder %s6237_s8, %s5924_s30  ;;  %s5929_s11 = sshll.u32 %s6021_s7, 4  ;;  %s5930_s11 = int_to_ptr.vmem [resolvable:$false] %s5929_s11 }
  0x80   : > { %s5931_s13 = scalar_lea.vmem %s5930_s11, 1536  ;;  %p5932_p12 = scmp.lt.s32.totalorder %s6237_s8, %s5930_s11 }
  0x81   : > { %p5927_p5 = pnand %p5925_p3, %p5911_p9  ;;  %p5933_p2 = scmp.lt.s32.totalorder %s5931_s13, %s5924_s30 }
  0x83   : > { %p5928_p7 = pneg %p5927_p5  ;;  %p5934_p1 = por %p5933_p2, %p5932_p12 }
  0x85   : > { %p5935_p13 = pnand %p5934_p1, %p5928_p7 }
  0x87   : > { %5938 = shalt.err (!%p5935_p13)
}
  0x88   : > { %s6022_s16 = smov 128   ;;  %s6023_s6 = smov 8  }
  0x89   : > { %5622 = dma.hbm_to_vmem [thread:$0]  (!%p6228_p11), %s6235_s12, 768, %s6237_s8, %s6239_s15, %s6022_s16, %s6022_s16, %s6023_s6  }
  0x8a   : > { %p7346_p9 = scmp.ne.s32.totalorder %s7340_s26, 0 }
  0x8b   : > { %s6270_s23 = sand.u32 (!%p7346_p9), 1, %s6005_s19   ;;  %p7347_p0 = scmp.ne.s32.totalorder (!%p7346_p9), %s7338_s24, 0 }
  0x8c   : > { %248 = sbr.rel (%p7346_p9) target bundleno = 954 (0x3ba), region = 40  ;;  %s251_s17 = scalar_lea.sflag (!%p7346_p9), [#allocation4], %s6270_s23 }
  0x8d   : > { %s5577_s29 = smul.u32 (!%p7346_p9), 48, %s6270_s23 }
  0x8f   : > { %s6274_s10 = scalar_lea.vmem (!%p7346_p9), [#allocation3], %s5577_s29 }
  0x93   : > { %5984 = dma.done.wait (%p7347_p0), %s251_s17, 768  }
  0x94   : > { %5986 = vsyncadd (%p7347_p0), %s251_s17, 4294966528  ;;  %p7348_p11 = scmp.eq.s32.totalorder %s6080_s22, 0 }
  0x96   : > { %5988 = dma.done.wait (%p7348_p11), [#allocation7], 4112   ;;  %p7349_p6 = pmov %p7348_p11 }
  0x98   : > { %5990 = vsyncadd (%p7349_p6), [#allocation7], 4294963184  ;;  %p7350_p4 = pmov %p7349_p6 }
  0x9a   : > { %5992 = dma.done.wait (%p7350_p4), [#allocation10], 1168   ;;  %p7351_p8 = pmov %p7350_p4 }
  0x9b   : > { %vm298_vm0 = vcmask 130048   ;;  %v6024_v0 = vmov 0.0   ;;  %vm6025_vm1 = vmmov 0   ;;  %v5681_v1 = vld [vmem:[#allocation6 + $0xd0] sm:$0xff]   ;;  %v5683_v3 = vld [vmem:[#allocation6 + $0xd8] sm:$0xff]   ;;  %vm406_vm2 = vcmask 261120  }
  0x9c   : > { %5994 = vsyncadd (%p7351_p8), [#allocation10], 4294966128  ;;  %299 = vst.msk [vmem:[#allocation2] sm:$0xff] %vm298_vm0, %v6024_v0  ;;  %4971 = vmatprep.subr.bf16.mxu0 %v6024_v0  ;;  %4984 = vmatprep.subr.bf16.mxu1 %v6024_v0  ;;  %v5682_v2 = vld [vmem:[#allocation6 + $0xf0] sm:$0xff]   ;;  %v5684_v4 = vld [vmem:[#allocation6 + $0xf8] sm:$0xff]   ;;  %v324_v58 = vlaneseq  ;;  %s5578_s24 = smul.u32 96, %s6270_s23 }
  0x9d   : > { %300 = vst.msk [vmem:[#allocation2 + $0x8] sm:$0xff] %vm298_vm0, %v6024_v0  ;;  %301 = vst.msk [vmem:[#allocation2 + $0x10] sm:$0xff] %vm298_vm0, %v6024_v0  ;;  %4975 = vmatprep.mubr.msk.f32.mxu0 %vm6025_vm1, %v6024_v0  ;;  %4988 = vmatprep.mubr.msk.f32.mxu1 %vm6025_vm1, %v6024_v0  ;;  %v6333_v5 = vld [vmem:[%s6274_s10 + $0x1] sm:$0xff]  ;;  %v6342_v9 = vld [vmem:[%s6274_s10 + $0x9] sm:$0xff]  ;;  %vm2357_vm15 = vcmask 31744   ;;  %s5585_s9 = smul.u32 1536, %s6080_s22 }
  0x9e   : > { %302 = vst.msk [vmem:[#allocation2 + $0x18] sm:$0xff] %vm298_vm0, %v6024_v0  ;;  %303 = vst.msk [vmem:[#allocation2 + $0x20] sm:$0xff] %vm298_vm0, %v6024_v0  ;;  %4972 = vmatpush3.bf16.msra.mxu0 %v5681_v1  ;;  %4985 = vmatpush3.bf16.msra.mxu1 %v5682_v2  ;;  %v380_v6 = vld [vmem:[%s6274_s10] sm:$0xff]  ;;  %v6345_v10 = vld [vmem:[%s6274_s10 + $0x8] sm:$0xff]  ;;  %v325_v59 = vshrl.u32 %v324_v58, 7  ;;  %s7217_s26 = scalar_lea.vmem [#allocation12], %s5578_s24 }
  0x9f   : > { %306 = vst.msk [vmem:[#allocation2 + $0x30] sm:$0xff] %vm298_vm0, %v6024_v0  ;;  %307 = vst.msk [vmem:[#allocation2 + $0x38] sm:$0xff] %vm298_vm0, %v6024_v0  ;;  %4973 = vmatprep.subr.bf16.mxu0 %v6024_v0  ;;  %4986 = vmatprep.subr.bf16.mxu1 %v6024_v0  ;;  %v5685_v7 = vld [vmem:[#allocation6 + $0x70] sm:$0xff]   ;;  %v5687_v11 = vld [vmem:[#allocation6 + $0x78] sm:$0xff]   ;;  %s4385_s12 = sshll.u32 %s7217_s26, 4  ;;  %s7281_s30 = scalar_lea.hbm %s7334_s5, %s5585_s9  ;;  %s7283_s12 = int_to_ptr.vmem [resolvable:$true] %s4385_s12 }
  0xa0   : > { %308 = vst.msk [vmem:[#allocation2 + $0x40] sm:$0xff] %vm298_vm0, %v6024_v0  ;;  %309 = vst.msk [vmem:[#allocation2 + $0x48] sm:$0xff] %vm298_vm0, %v6024_v0  ;;  %v5686_v8 = vld [vmem:[#allocation6 + $0x50] sm:$0xff]   ;;  %v5688_v12 = vld [vmem:[#allocation6 + $0x58] sm:$0xff]   ;;  %v6589_v60 = vmul.u32.u64.low 2863311531, %v325_v59  ;;  %v6590_v61 = vmul.u32.u64.high 2863311531, %v325_v59, %v6589_v60 }
  0xa1   : > { %310 = vst.msk [vmem:[#allocation2 + $0x50] sm:$0xff] %vm298_vm0, %v6024_v0  ;;  %312 = vst.msk [vmem:[#allocation2 + $0x60] sm:$0xff] %vm298_vm0, %v6024_v0  ;;  %v6360_v13 = vld [vmem:[%s6274_s10 + $0x11] sm:$0xff]  ;;  %v6376_v15 = vld [vmem:[%s6274_s10 + $0x6] sm:$0xff]  ;;  %v326_v62 = vadd.s32 8, %v325_v59  ;;  %v327_v2 = vadd.s32 16, %v325_v59 }
  0xa2   : > { %313 = vst.msk [vmem:[#allocation2 + $0x68] sm:$0xff] %vm298_vm0, %v6024_v0  ;;  %314 = vst.msk [vmem:[#allocation2 + $0x70] sm:$0xff] %vm298_vm0, %v6024_v0  ;;  %4974 = vmatpush3.bf16.msra.mxu0 %v5683_v3  ;;  %4987 = vmatpush3.bf16.msra.mxu1 %v5684_v4  ;;  %v6365_v14 = vld [vmem:[%s6274_s10 + $0x10] sm:$0xff]  ;;  %v6381_v17 = vld [vmem:[%s6274_s10 + $0x7] sm:$0xff]  ;;  %v334_v3 = vshrl.u32 %v6590_v61, 2  ;;  %s4372_s22 = scalar_lea.sflag [#allocation5], %s6270_s23 }
  0xa3   : > { %315 = vst.msk [vmem:[#allocation2 + $0x78] sm:$0xff] %vm298_vm0, %v6024_v0  ;;  %318 = vst.msk [vmem:[#allocation2 + $0x90] sm:$0xff] %vm298_vm0, %v6024_v0  ;;  %4997 = vmatprep.subr.bf16.mxu0 %v6024_v0  ;;  %5010 = vmatprep.subr.bf16.mxu1 %v6024_v0  ;;  %v5689_v16 = vld [vmem:[#allocation6 + $0xc0] sm:$0xff]   ;;  %v5691_v21 = vld [vmem:[#allocation6 + $0xc8] sm:$0xff]   ;;  %v6592_v63 = vmul.u32.u64.low 2863311531, %v326_v62  ;;  %v6593_v1 = vmul.u32.u64.high 2863311531, %v326_v62, %v6592_v63 }
  0xa4   : > { %319 = vst.msk [vmem:[#allocation2 + $0x98] sm:$0xff] %vm298_vm0, %v6024_v0  ;;  %320 = vst.msk [vmem:[#allocation2 + $0xa0] sm:$0xff] %vm298_vm0, %v6024_v0  ;;  %v5690_v18 = vld [vmem:[#allocation6 + $0xe0] sm:$0xff]   ;;  %v5692_v22 = vld [vmem:[#allocation6 + $0xe8] sm:$0xff]   ;;  %s5939_s7 = scalar_lea.vmem %s7283_s12, 1536  ;;  %s6026_s11 = smov [#allocation12]  }
  0xa5   : > { %321 = vst.msk [vmem:[#allocation2 + $0xa8] sm:$0xff] %vm298_vm0, %v6024_v0  ;;  %4976 = vmatmul.mubr.msk.f32.vlgmr.msra.gmra.mrb[0].mxu0 %vm406_vm2, %v6333_v5  ;;  %4989 = vmatmul.mubr.msk.f32.vlgmr.msra.gmra.mrb[0].mxu1 %vm406_vm2, %v380_v6  ;;  %v6386_v19 = vld [vmem:[%s6274_s10 + $0xe] sm:$0xff]  ;;  %v6406_v23 = vld [vmem:[%s6274_s10 + $0x16] sm:$0xff]  ;;  %v722_v25 = vld [vmem:[%s6274_s10 + $0x2] sm:$0xff]  ;;  %p5940_p3 = scmp.ne.s32.totalorder %s7283_s12, %s5939_s7  ;;  %s5943_s13 = sshll.u32 %s6026_s11, 4  ;;  %s5944_s13 = int_to_ptr.vmem [resolvable:$false] %s5943_s13 }
  0xa6   : > { %4998 = vmatpush3.bf16.msra.mxu0 %v5685_v7  ;;  %4978 = vmatprep.mubr.msk.f32.mxu0 %vm6025_vm1, %v6024_v0  ;;  %v6391_v20 = vld [vmem:[%s6274_s10 + $0xf] sm:$0xff]  ;;  %v6411_v24 = vld [vmem:[%s6274_s10 + $0x17] sm:$0xff]  ;;  %s5945_s16 = scalar_lea.vmem %s5944_s13, 3072  ;;  %p5946_p12 = scmp.lt.s32.totalorder %s7283_s12, %s5944_s13 }
  0xa7   : > { %5011 = vmatpush3.bf16.msra.mxu1 %v5686_v8  ;;  %4991 = vmatprep.mubr.msk.f32.mxu1 %vm6025_vm1, %v6024_v0  ;;  %v5693_v26 = vld [vmem:[#allocation6 + $0x60] sm:$0xff]   ;;  %v5695_v29 = vld [vmem:[#allocation6 + $0x68] sm:$0xff]   ;;  %v5697_v32 = vld [vmem:[#allocation6 + $0x90] sm:$0xff]   ;;  %p5941_p5 = pnand %p5940_p3, %p6218_p10  ;;  %p5947_p2 = scmp.lt.s32.totalorder %s5945_s16, %s5939_s7 }
  0xa8   : > { %4999 = vmatprep.subr.bf16.mxu0 %v6024_v0  ;;  %5012 = vmatprep.subr.bf16.mxu1 %v6024_v0  ;;  %v5694_v27 = vld [vmem:[#allocation6 + $0x40] sm:$0xff]   ;;  %v5696_v30 = vld [vmem:[#allocation6 + $0x48] sm:$0xff]   ;;  %v5698_v33 = vld [vmem:[#allocation6 + $0xb0] sm:$0xff]  }
  0xa9   : > { %4979 = vmatmul.mubr.msk.f32.gmra.mrb[2].mxu0 %vm406_vm2, %v6342_v9  ;;  %4992 = vmatmul.mubr.msk.f32.gmra.mrb[2].mxu1 %vm406_vm2, %v6345_v10  ;;  %v723_v28 = vld [vmem:[%s6274_s10 + $0xa] sm:$0xff]  ;;  %v724_v31 = vld [vmem:[%s6274_s10 + $0x12] sm:$0xff]  ;;  %v1192_v49 = vld [vmem:[%s6274_s10 + $0x1c] sm:$0xff]  ;;  %p5942_p7 = pneg %p5941_p5  ;;  %p5948_p1 = por %p5947_p2, %p5946_p12 }
  0xaa   : > { %4981 = vmatprep.mubr.msk.f32.mxu0 %vm6025_vm1, %v6024_v0  ;;  %5000 = vmatpush3.bf16.msra.mxu0 %v5687_v11  ;;  %v5699_v34 = vld [vmem:[#allocation6 + $0x98] sm:$0xff]   ;;  %v5701_v37 = vld [vmem:[#allocation6 + $0x30] sm:$0xff]   ;;  %v5705_v42 = vld [vmem:[#allocation6 + $0x80] sm:$0xff]  }
  0xab   : > { %4994 = vmatprep.mubr.msk.f32.mxu1 %vm6025_vm1, %v6024_v0  ;;  %5013 = vmatpush3.bf16.msra.mxu1 %v5688_v12  ;;  %v5700_v35 = vld [vmem:[#allocation6 + $0xb8] sm:$0xff]   ;;  %v5702_v38 = vld [vmem:[#allocation6 + $0x10] sm:$0xff]   ;;  %v5706_v44 = vld [vmem:[#allocation6 + $0xa0] sm:$0xff]   ;;  %p5949_p13 = pnand %p5948_p1, %p5942_p7 }
  0xac   : > { %5023 = vmatprep.subr.bf16.mxu0 %v6024_v0  ;;  %5036 = vmatprep.subr.bf16.mxu1 %v6024_v0  ;;  %v6464_v36 = vld [vmem:[%s6274_s10 + $0x18] sm:$0xff]  ;;  %v1190_v41 = vld [vmem:[%s6274_s10 + $0xc] sm:$0xff] }
  0xad   : > { %4982 = vmatmul.mubr.msk.f32.gmra.mrb[4].mxu0 %vm406_vm2, %v6360_v13  ;;  %4995 = vmatmul.mubr.msk.f32.gmra.mrb[4].mxu1 %vm406_vm2, %v6365_v14  ;;  %v5703_v39 = vld [vmem:[#allocation6 + $0x38] sm:$0xff]   ;;  %v5707_v47 = vld [vmem:[#allocation6 + $0x88] sm:$0xff]   ;;  %v5709_v51 = vld [vmem:[#allocation6 + $0x20] sm:$0xff]  }
  0xae   : > { %5001 = vmatprep.mubr.msk.f32.mxu0 %vm6025_vm1, %v6024_v0  ;;  %5014 = vmatprep.mubr.msk.f32.mxu1 %vm6025_vm1, %v6024_v0  ;;  %v5704_v40 = vld [vmem:[#allocation6 + $0x18] sm:$0xff]   ;;  %v5708_v48 = vld [vmem:[#allocation6 + $0xa8] sm:$0xff]   ;;  %v5710_v52 = vld [vmem:[#allocation6] sm:$0xff]  }
  0xaf   : > { %v1269_v43 = vld [vmem:[%s6274_s10 + $0xd] sm:$0xff]  ;;  %v1270_v46 = vld [vmem:[%s6274_s10 + $0x15] sm:$0xff]  ;;  %v1271_v50 = vld [vmem:[%s6274_s10 + $0x1d] sm:$0xff] }
  0xb0   : > { %v1191_v45 = vld [vmem:[%s6274_s10 + $0x14] sm:$0xff]  ;;  %v1594_v55 = vld [vmem:[%s6274_s10 + $0x1e] sm:$0xff] }
  0xb1   : > { %5002 = vmatmul.mubr.msk.f32.vlgmr.msra.gmra.mrb[6].mxu0 %vm406_vm2, %v6376_v15  ;;  %5015 = vmatmul.mubr.msk.f32.vlgmr.msra.gmra.mrb[6].mxu1 %vm406_vm2, %v6381_v17  ;;  %v5711_v53 = vld [vmem:[#allocation6 + $0x28] sm:$0xff]  }
  0xb2   : > { %5024 = vmatpush3.bf16.msra.mxu0 %v5689_v16  ;;  %5004 = vmatprep.mubr.msk.f32.mxu0 %vm6025_vm1, %v6024_v0  ;;  %v5712_v54 = vld [vmem:[#allocation6 + $0x8] sm:$0xff]  }
  0xb3   : > { %5037 = vmatpush3.bf16.msra.mxu1 %v5690_v18  ;;  %5017 = vmatprep.mubr.msk.f32.mxu1 %vm6025_vm1, %v6024_v0  ;;  %v5713_v56 = vld [vmem:[#allocation9 + $0x8] sm:$0xff]   ;;  %v5714_v57 = vld [vmem:[#allocation9] sm:$0xff]  }
  0xb4   : > { %5025 = vmatprep.subr.bf16.mxu0 %v6024_v0  ;;  %5038 = vmatprep.subr.bf16.mxu1 %v6024_v0 }
  0xb5   : > { %5005 = vmatmul.mubr.msk.f32.gmra.mrb[8].mxu0 %vm406_vm2, %v6386_v19  ;;  %5018 = vmatmul.mubr.msk.f32.gmra.mrb[8].mxu1 %vm406_vm2, %v6391_v20 }
  0xb6   : > { %5007 = vmatprep.mubr.msk.f32.mxu0 %vm6025_vm1, %v6024_v0  ;;  %5026 = vmatpush3.bf16.msra.mxu0 %v5691_v21 }
  0xb7   : > { %5020 = vmatprep.mubr.msk.f32.mxu1 %vm6025_vm1, %v6024_v0  ;;  %5039 = vmatpush3.bf16.msra.mxu1 %v5692_v22 }
  0xb8   : > { %5049 = vmatprep.subr.bf16.mxu0 %v6024_v0  ;;  %5062 = vmatprep.subr.bf16.mxu1 %v6024_v0 }
  0xb9   : > { %5008 = vmatmul.mubr.msk.f32.gmra.mrb[10].mxu0 %vm406_vm2, %v6406_v23  ;;  %5021 = vmatmul.mubr.msk.f32.gmra.mrb[10].mxu1 %vm406_vm2, %v6411_v24 }
  0xba   : > { %5027 = vmatprep.mubr.msk.f32.mxu0 %vm6025_vm1, %v6024_v0  ;;  %5040 = vmatprep.mubr.msk.f32.mxu1 %vm6025_vm1, %v6024_v0 }
  0xbd   : > { %5028 = vmatmul.mubr.msk.f32.vlgmr.msra.gmra.mrb[12].mxu0 %vm406_vm2, %v722_v25  ;;  %5041 = vmatmul.mubr.msk.f32.vlgmr.msra.gmra.mrb[12].mxu1 %vm406_vm2, %v6333_v5  ;;  %v6596_v4 = vmul.u32.u64.low 2863311531, %v327_v2  ;;  %v6597_v5 = vmul.u32.u64.high 2863311531, %v327_v2, %v6596_v4 }
  0xbe   : > { %5050 = vmatpush3.bf16.msra.mxu0 %v5693_v26  ;;  %5030 = vmatprep.mubr.msk.f32.mxu0 %vm6025_vm1, %v6024_v0 }
  0xbf   : > { %5063 = vmatpush3.bf16.msra.mxu1 %v5694_v27  ;;  %5043 = vmatprep.mubr.msk.f32.mxu1 %vm6025_vm1, %v6024_v0  ;;  %v356_v18 = vshrl.u32 %v6597_v5, 2 }
  0xc0   : > { %5051 = vmatprep.subr.bf16.mxu0 %v6024_v0  ;;  %5064 = vmatprep.subr.bf16.mxu1 %v6024_v0 }
  0xc1   : > { %5031 = vmatmul.mubr.msk.f32.gmra.mrb[14].mxu0 %vm406_vm2, %v723_v28  ;;  %5044 = vmatmul.mubr.msk.f32.gmra.mrb[14].mxu1 %vm406_vm2, %v6342_v9  ;;  %v335_v9 = vmul.u32 6, %v334_v3  ;;  %v357_v25 = vmul.u32 6, %v356_v18 }
  0xc2   : > { %5033 = vmatprep.mubr.msk.f32.mxu0 %vm6025_vm1, %v6024_v0  ;;  %5052 = vmatpush3.bf16.msra.mxu0 %v5695_v29 }
  0xc3   : > { %5046 = vmatprep.mubr.msk.f32.mxu1 %vm6025_vm1, %v6024_v0  ;;  %5065 = vmatpush3.bf16.msra.mxu1 %v5696_v30  ;;  %v336_v16 = vsub.s32 %v325_v59, %v335_v9 }
  0xc4   : > { %5075 = vmatprep.subr.bf16.mxu0 %v6024_v0  ;;  %5088 = vmatprep.subr.bf16.mxu1 %v6024_v0 }
  0xc5   : > { %5034 = vmatmul.mubr.msk.f32.gmra.mrb[16].mxu0 %vm406_vm2, %v724_v31  ;;  %5047 = vmatmul.mubr.msk.f32.gmra.mrb[16].mxu1 %vm406_vm2, %v6360_v13  ;;  %vm361_vm3 = vcmp.ne.s32.totalorder %v336_v16, 0  ;;  %vm364_vm4 = vcmp.lt.s32.totalorder %v336_v16, 0  ;;  %v370_v28 = vadd.s32 6, %v336_v16 }
  0xc6   : > { %5053 = vmatprep.mubr.msk.f32.mxu0 %vm6025_vm1, %v6024_v0  ;;  %5066 = vmatprep.mubr.msk.f32.mxu1 %vm6025_vm1, %v6024_v0  ;;  %vm6601_vm5 = vmand %vm364_vm4, %vm361_vm3 }
  0xc9   : > { %5054 = vmatmul.mubr.msk.f32.vlgmr.msra.gmra.mrb[18].mxu0 %vm406_vm2, %v6381_v17  ;;  %5067 = vmatmul.mubr.msk.f32.vlgmr.msra.gmra.mrb[18].mxu1 %vm406_vm2, %v6345_v10 }
  0xca   : > { %5076 = vmatpush3.bf16.msra.mxu0 %v5697_v32  ;;  %5056 = vmatprep.mubr.msk.f32.mxu0 %vm6025_vm1, %v6024_v0 }
  0xcb   : > { %5089 = vmatpush3.bf16.msra.mxu1 %v5698_v33  ;;  %5069 = vmatprep.mubr.msk.f32.mxu1 %vm6025_vm1, %v6024_v0 }
  0xcc   : > { %5077 = vmatprep.subr.bf16.mxu0 %v6024_v0  ;;  %5090 = vmatprep.subr.bf16.mxu1 %v6024_v0 }
  0xcd   : > { %5057 = vmatmul.mubr.msk.f32.gmra.mrb[20].mxu0 %vm406_vm2, %v6391_v20  ;;  %5070 = vmatmul.mubr.msk.f32.gmra.mrb[20].mxu1 %vm406_vm2, %v6365_v14 }
  0xce   : > { %5059 = vmatprep.mubr.msk.f32.mxu0 %vm6025_vm1, %v6024_v0  ;;  %5078 = vmatpush3.bf16.msra.mxu0 %v5699_v34  ;;  %v358_v34 = vsub.s32 %v327_v2, %v357_v25 }
  0xcf   : > { %5072 = vmatprep.mubr.msk.f32.mxu1 %vm6025_vm1, %v6024_v0  ;;  %5091 = vmatpush3.bf16.msra.mxu1 %v5700_v35  ;;  %v6605_v35 = vld [vmem:[#allocation8] ss:$0 sm:$0xff] }
  0xd0   : > { %5101 = vmatprep.subr.bf16.mxu0 %v6024_v0  ;;  %5114 = vmatprep.subr.bf16.mxu1 %v6024_v0  ;;  %vm363_vm9 = vcmp.ne.s32.totalorder %v358_v34, 0  ;;  %vm366_vm10 = vcmp.lt.s32.totalorder %v358_v34, 0 }
  0xd1   : > { %5060 = vmatmul.mubr.msk.f32.gmra.mrb[22].mxu0 %vm406_vm2, %v6411_v24  ;;  %5073 = vmatmul.mubr.msk.f32.gmra.mrb[22].mxu1 %vm406_vm2, %v6464_v36  ;;  %vm6620_vm12 = vmand %vm366_vm10, %vm363_vm9 }
  0xd2   : > { %5079 = vmatprep.mubr.msk.f32.mxu0 %vm6025_vm1, %v6024_v0  ;;  %5092 = vmatprep.mubr.msk.f32.mxu1 %vm6025_vm1, %v6024_v0 }
  0xd5   : > { %5080 = vmatmul.mubr.msk.f32.vlgmr.msra.gmra.mrb[24].mxu0 %vm406_vm2, %v6381_v17  ;;  %5093 = vmatmul.mubr.msk.f32.vlgmr.msra.gmra.mrb[24].mxu1 %vm406_vm2, %v6376_v15 }
  0xd6   : > { %5102 = vmatpush3.bf16.msra.mxu0 %v5701_v37  ;;  %5082 = vmatprep.mubr.msk.f32.mxu0 %vm6025_vm1, %v6024_v0  ;;  %v373_v37 = vsel %vm6601_vm5, %v370_v28, %v336_v16 }
  0xd7   : > { %5115 = vmatpush3.bf16.msra.mxu1 %v5702_v38  ;;  %5095 = vmatprep.mubr.msk.f32.mxu1 %vm6025_vm1, %v6024_v0  ;;  %vm6614_vm11 = vcmp.lt.s32.totalorder %v373_v37, 4 }
  0xd8   : > { %5103 = vmatprep.subr.bf16.mxu0 %v6024_v0  ;;  %5116 = vmatprep.subr.bf16.mxu1 %v6024_v0 }
  0xd9   : > { %5083 = vmatmul.mubr.msk.f32.gmra.mrb[26].mxu0 %vm406_vm2, %v6391_v20  ;;  %5096 = vmatmul.mubr.msk.f32.gmra.mrb[26].mxu1 %vm406_vm2, %v6386_v19 }
  0xda   : > { %5085 = vmatprep.mubr.msk.f32.mxu0 %vm6025_vm1, %v6024_v0  ;;  %5104 = vmatpush3.bf16.msra.mxu0 %v5703_v39 }
  0xdb   : > { %5098 = vmatprep.mubr.msk.f32.mxu1 %vm6025_vm1, %v6024_v0  ;;  %5117 = vmatpush3.bf16.msra.mxu1 %v5704_v40 }
  0xdc   : > { %5127 = vmatprep.subr.bf16.mxu0 %v6024_v0  ;;  %5140 = vmatprep.subr.bf16.mxu1 %v6024_v0 }
  0xdd   : > { %5086 = vmatmul.mubr.msk.f32.gmra.mrb[28].mxu0 %vm406_vm2, %v6411_v24  ;;  %5099 = vmatmul.mubr.msk.f32.gmra.mrb[28].mxu1 %vm406_vm2, %v6406_v23 }
  0xde   : > { %5105 = vmatprep.mubr.msk.f32.mxu0 %vm6025_vm1, %v6024_v0  ;;  %5118 = vmatprep.mubr.msk.f32.mxu1 %vm6025_vm1, %v6024_v0 }
  0xe1   : > { %5106 = vmatmul.mubr.msk.f32.vlgmr.msra.gmra.mrb[30].mxu0 %vm406_vm2, %v1190_v41  ;;  %5119 = vmatmul.mubr.msk.f32.vlgmr.msra.gmra.mrb[30].mxu1 %vm406_vm2, %v1269_v43 }
  0xe2   : > { %5128 = vmatpush3.bf16.msra.mxu0 %v5705_v42  ;;  %5108 = vmatprep.mubr.msk.f32.mxu0 %vm6025_vm1, %v6024_v0 }
  0xe3   : > { %5141 = vmatpush3.bf16.msra.mxu1 %v5706_v44  ;;  %5121 = vmatprep.mubr.msk.f32.mxu1 %vm6025_vm1, %v6024_v0 }
  0xe4   : > { %5129 = vmatprep.subr.bf16.mxu0 %v6024_v0  ;;  %5142 = vmatprep.subr.bf16.mxu1 %v6024_v0 }
  0xe5   : > { %5109 = vmatmul.mubr.msk.f32.gmra.mrb[32].mxu0 %vm406_vm2, %v1191_v45  ;;  %5122 = vmatmul.mubr.msk.f32.gmra.mrb[32].mxu1 %vm406_vm2, %v1270_v46 }
  0xe6   : > { %5111 = vmatprep.mubr.msk.f32.mxu0 %vm6025_vm1, %v6024_v0  ;;  %5130 = vmatpush3.bf16.msra.mxu0 %v5707_v47 }
  0xe7   : > { %5124 = vmatprep.mubr.msk.f32.mxu1 %vm6025_vm1, %v6024_v0  ;;  %5143 = vmatpush3.bf16.msra.mxu1 %v5708_v48 }
  0xe8   : > { %5153 = vmatprep.subr.bf16.mxu0 %v6024_v0  ;;  %5166 = vmatprep.subr.bf16.mxu1 %v6024_v0 }
  0xe9   : > { %5112 = vmatmul.mubr.msk.f32.gmra.mrb[34].mxu0 %vm406_vm2, %v1192_v49  ;;  %5125 = vmatmul.mubr.msk.f32.gmra.mrb[34].mxu1 %vm406_vm2, %v1271_v50 }
  0xea   : > { %5131 = vmatprep.mubr.msk.f32.mxu0 %vm6025_vm1, %v6024_v0  ;;  %5144 = vmatprep.mubr.msk.f32.mxu1 %vm6025_vm1, %v6024_v0 }
  0xed   : > { %5132 = vmatmul.mubr.msk.f32.vlgmr.msra.gmra.mrb[36].mxu0 %vm406_vm2, %v6345_v10  ;;  %5145 = vmatmul.mubr.msk.f32.vlgmr.msra.gmra.mrb[36].mxu1 %vm406_vm2, %v6381_v17  ;;  %v345_v10 = vshrl.u32 %v6593_v1, 2 }
  0xee   : > { %5154 = vmatpush3.bf16.msra.mxu0 %v5709_v51  ;;  %5134 = vmatprep.mubr.msk.f32.mxu0 %vm6025_vm1, %v6024_v0  ;;  %v372_v51 = vadd.s32 6, %v358_v34 }
  0xef   : > { %5167 = vmatpush3.bf16.msra.mxu1 %v5710_v52  ;;  %5147 = vmatprep.mubr.msk.f32.mxu1 %vm6025_vm1, %v6024_v0  ;;  %v346_v17 = vmul.u32 6, %v345_v10 }
  0xf0   : > { %5155 = vmatprep.subr.bf16.mxu0 %v6024_v0  ;;  %5168 = vmatprep.subr.bf16.mxu1 %v6024_v0 }
  0xf1   : > { %5135 = vmatmul.mubr.msk.f32.gmra.mrb[38].mxu0 %vm406_vm2, %v6365_v14  ;;  %5148 = vmatmul.mubr.msk.f32.gmra.mrb[38].mxu1 %vm406_vm2, %v6391_v20 }
  0xf2   : > { %5137 = vmatprep.mubr.msk.f32.mxu0 %vm6025_vm1, %v6024_v0  ;;  %5156 = vmatpush3.bf16.msra.mxu0 %v5711_v53 }
  0xf3   : > { %5150 = vmatprep.mubr.msk.f32.mxu1 %vm6025_vm1, %v6024_v0  ;;  %5169 = vmatpush3.bf16.msra.mxu1 %v5712_v54 }
  0xf4   : > { %5179 = vmatprep.subr.bf16.mxu0 %v6024_v0  ;;  %5190 = vmatprep.subr.bf16.mxu1 %v6024_v0 }
  0xf5   : > { %5138 = vmatmul.mubr.msk.f32.gmra.mrb[40].mxu0 %vm406_vm2, %v6464_v36  ;;  %5151 = vmatmul.mubr.msk.f32.gmra.mrb[40].mxu1 %vm406_vm2, %v6411_v24  ;;  %v347_v24 = vsub.s32 %v326_v62, %v346_v17  ;;  %v375_v62 = vsel %vm6620_vm12, %v372_v51, %v358_v34 }
  0xf6   : > { %5157 = vmatprep.mubr.msk.f32.mxu0 %vm6025_vm1, %v6024_v0  ;;  %5170 = vmatprep.mubr.msk.f32.mxu1 %vm6025_vm1, %v6024_v0  ;;  %vm6638_vm14 = vcmp.lt.s32.totalorder %v375_v62, 4 }
  0xf7   : > { %vm362_vm6 = vcmp.ne.s32.totalorder %v347_v24, 0  ;;  %vm365_vm7 = vcmp.lt.s32.totalorder %v347_v24, 0  ;;  %v371_v39 = vadd.s32 6, %v347_v24 }
  0xf8   : > { %vm6609_vm8 = vmand %vm365_vm7, %vm362_vm6 }
  0xf9   : > { %5158 = vmatmul.mubr.msk.f32.vlgmr.msra.gmra.mrb[42].mxu0 %vm406_vm2, %v1269_v43  ;;  %5171 = vmatmul.mubr.msk.f32.vlgmr.msra.gmra.mrb[42].mxu1 %vm406_vm2, %v6386_v19  ;;  %v374_v49 = vsel %vm6609_vm8, %v371_v39, %v347_v24 }
  0xfa   : > { %5160 = vmatprep.mubr.msk.f32.mxu0 %vm6025_vm1, %v6024_v0  ;;  %5173 = vmatprep.mubr.msk.f32.mxu1 %vm6025_vm1, %v6024_v0  ;;  %vm6628_vm13 = vcmp.lt.s32.totalorder %v374_v49, 4 }
  0xfb   : > { %5180 = vmatpush3.bf16.msra.mxu0 %v5713_v56  ;;  %5191 = vmatpush3.bf16.msra.mxu1 %v5714_v57 }
  0xfc   : > { %5201 = vmatprep.subr.bf16.mxu0 %v6024_v0  ;;  %5212 = vmatprep.subr.bf16.mxu1 %v6024_v0 }
  0xfd   : > { %5161 = vmatmul.mubr.msk.f32.gmra.mrb[44].mxu0 %vm406_vm2, %v1270_v46  ;;  %5174 = vmatmul.mubr.msk.f32.gmra.mrb[44].mxu1 %vm406_vm2, %v6406_v23  ;;  %v5716_v46 = vld [vmem:[#allocation9 + $0x18] sm:$0xff]  }
  0xfe   : > { %5163 = vmatprep.mubr.msk.f32.mxu0 %vm6025_vm1, %v6024_v0  ;;  %5176 = vmatprep.mubr.msk.f32.mxu1 %vm6025_vm1, %v6024_v0 }
 0x101   : > { %5164 = vmatmul.mubr.msk.f32.gmra.mrb[46].mxu0 %vm406_vm2, %v1271_v50  ;;  %5177 = vmatmul.mubr.msk.f32.gmra.mrb[46].mxu1 %vm406_vm2, %v1594_v55 }
 0x102   : > { %5181 = vmatprep.mubr.msk.f32.mxu0 %vm6025_vm1, %v6024_v0  ;;  %5192 = vmatprep.mubr.msk.f32.mxu1 %vm6025_vm1, %v6024_v0 }
 0x178   : > { %v450_v6 = vpop.f32.mrb[0].mxu0  ;;  %v519_v8 = vpop.f32.mrb[0].mxu1 }
 0x179   : > { %v4977_v7 = vpop.f32.mrb[1].mxu0  ;;  %v520_v11 = vadd.f32 %v519_v8, %v450_v6  ;;  %v4990_v12 = vpop.f32.mrb[1].mxu1 }
 0x17c   : > { %v455_v13 = vpop.f32.mrb[2].mxu0  ;;  %v524_v15 = vpop.f32.mrb[2].mxu1 }
 0x17d   : > { %v4980_v14 = vpop.f32.mrb[3].mxu0  ;;  %v525_v19 = vadd.f32 %v524_v15, %v455_v13  ;;  %v4993_v20 = vpop.f32.mrb[3].mxu1 }
 0x180   : > { %v460_v21 = vpop.f32.mrb[4].mxu0  ;;  %v529_v23 = vpop.f32.mrb[4].mxu1 }
 0x181   : > { %v4983_v22 = vpop.f32.mrb[5].mxu0  ;;  %v530_v26 = vadd.f32 %v529_v23, %v460_v21  ;;  %v4996_v27 = vpop.f32.mrb[5].mxu1 }
 0x184   : > { %v595_v29 = vpop.f32.mrb[6].mxu0  ;;  %v674_v33 = vpop.f32.mrb[6].mxu1 }
 0x185   : > { %v609_v31 = vadd.f32 %v595_v29, %v520_v11  ;;  %v5003_v32 = vpop.f32.mrb[7].mxu0  ;;  %v5016_v36 = vpop.f32.mrb[7].mxu1 }
 0x187   : > { %v688_v38 = vadd.f32 %v674_v33, %v609_v31 }
 0x188   : > { %v600_v40 = vpop.f32.mrb[8].mxu0  ;;  %v679_v45 = vpop.f32.mrb[8].mxu1 }
 0x189   : > { %v697_v42 = vadd.f32 %v6605_v35, %v688_v38  ;;  %v610_v43 = vadd.f32 %v600_v40, %v525_v19  ;;  %v5006_v44 = vpop.f32.mrb[9].mxu0  ;;  %v5019_v47 = vpop.f32.mrb[9].mxu1 }
 0x18b   : > { %v700_v48 = vmax.f32 %v697_v42, 0.0  ;;  %v689_v50 = vadd.f32 %v679_v45, %v610_v43 }
 0x18c   : > { %v605_v52 = vpop.f32.mrb[10].mxu0  ;;  %v684_v58 = vpop.f32.mrb[10].mxu1 }
 0x18d   : > { %v709_v54 = vsel %vm6614_vm11, %v700_v48, 0.0  ;;  %v698_v55 = vadd.f32 %v6605_v35, %v689_v50  ;;  %v611_v56 = vadd.f32 %v605_v52, %v530_v26  ;;  %v5009_v57 = vpop.f32.mrb[11].mxu0  ;;  %v5022_v60 = vpop.f32.mrb[11].mxu1 }
 0x18e   : > { %712 = vst.msk [vmem:[#allocation2 + $0x7] sm:$0xff] %vm298_vm0, %v709_v54 }
 0x18f   : > { %v701_v61 = vmax.f32 %v698_v55, 0.0  ;;  %v690_v63 = vadd.f32 %v684_v58, %v611_v56 }
 0x190   : > { %v784_v1 = vpop.f32.mrb[12].mxu0  ;;  %v853_v5 = vpop.f32.mrb[12].mxu1 }
 0x191   : > { %v710_v2 = vsel %vm6628_vm13, %v701_v61, 0.0  ;;  %v699_v3 = vadd.f32 %v6605_v35, %v690_v63  ;;  %v5029_v4 = vpop.f32.mrb[13].mxu0  ;;  %v854_v7 = vadd.f32 %v853_v5, %v784_v1  ;;  %v5042_v8 = vpop.f32.mrb[13].mxu1 }
 0x192   : > { %713 = vst.msk [vmem:[#allocation2 + $0xf] sm:$0xff] %vm298_vm0, %v710_v2 }
 0x193   : > { %v702_v9 = vmax.f32 %v699_v3, 0.0 }
 0x194   : > { %v789_v10 = vpop.f32.mrb[14].mxu0  ;;  %v858_v13 = vpop.f32.mrb[14].mxu1 }
 0x195   : > { %v711_v11 = vsel %vm6638_vm14, %v702_v9, 0.0  ;;  %v5032_v12 = vpop.f32.mrb[15].mxu0  ;;  %v859_v14 = vadd.f32 %v858_v13, %v789_v10  ;;  %v5045_v15 = vpop.f32.mrb[15].mxu1 }
 0x196   : > { %714 = vst.msk [vmem:[#allocation2 + $0x17] sm:$0xff] %vm298_vm0, %v711_v11 }
 0x198   : > { %v794_v16 = vpop.f32.mrb[16].mxu0  ;;  %v863_v18 = vpop.f32.mrb[16].mxu1 }
 0x199   : > { %v5035_v17 = vpop.f32.mrb[17].mxu0  ;;  %v864_v19 = vadd.f32 %v863_v18, %v794_v16  ;;  %v5048_v20 = vpop.f32.mrb[17].mxu1 }
 0x19c   : > { %v929_v21 = vpop.f32.mrb[18].mxu0  ;;  %v1008_v24 = vpop.f32.mrb[18].mxu1 }
 0x19d   : > { %v943_v22 = vadd.f32 %v929_v21, %v854_v7  ;;  %v5055_v23 = vpop.f32.mrb[19].mxu0  ;;  %v5068_v25 = vpop.f32.mrb[19].mxu1 }
 0x19f   : > { %v1022_v26 = vadd.f32 %v1008_v24, %v943_v22 }
 0x1a0   : > { %v934_v27 = vpop.f32.mrb[20].mxu0  ;;  %v1013_v31 = vpop.f32.mrb[20].mxu1 }
 0x1a1   : > { %v1025_v28 = vadd.f32 %v6605_v35, %v1022_v26  ;;  %v944_v29 = vadd.f32 %v934_v27, %v859_v14  ;;  %v5058_v30 = vpop.f32.mrb[21].mxu0  ;;  %v5071_v32 = vpop.f32.mrb[21].mxu1 }
 0x1a3   : > { %v1028_v33 = vmax.f32 %v1025_v28, 0.0  ;;  %v1023_v34 = vadd.f32 %v1013_v31, %v944_v29 }
 0x1a4   : > { %v939_v36 = vpop.f32.mrb[22].mxu0  ;;  %v1018_v41 = vpop.f32.mrb[22].mxu1 }
 0x1a5   : > { %v1031_v37 = vsel %vm6614_vm11, %v1028_v33, 0.0  ;;  %v1026_v38 = vadd.f32 %v6605_v35, %v1023_v34  ;;  %v945_v39 = vadd.f32 %v939_v36, %v864_v19  ;;  %v5061_v40 = vpop.f32.mrb[23].mxu0  ;;  %v5074_v42 = vpop.f32.mrb[23].mxu1  ;;  %v5715_v36 = vld [vmem:[#allocation9 + $0x10] sm:$0xff]  }
 0x1a6   : > { %1035 = vst.msk [vmem:[#allocation2 + $0x37] sm:$0xff] %vm298_vm0, %v1031_v37 }
 0x1a7   : > { %v1029_v43 = vmax.f32 %v1026_v38, 0.0  ;;  %v1024_v44 = vadd.f32 %v1018_v41, %v945_v39 }
 0x1a8   : > { %v1107_v45 = vpop.f32.mrb[24].mxu0  ;;  %v1176_v50 = vpop.f32.mrb[24].mxu1 }
 0x1a9   : > { %v1032_v47 = vsel %vm6628_vm13, %v1029_v43, 0.0  ;;  %v1027_v48 = vadd.f32 %v6605_v35, %v1024_v44  ;;  %v5081_v49 = vpop.f32.mrb[25].mxu0  ;;  %v1177_v51 = vadd.f32 %v1176_v50, %v1107_v45  ;;  %v5094_v52 = vpop.f32.mrb[25].mxu1 }
 0x1aa   : > { %1036 = vst.msk [vmem:[#allocation2 + $0x3f] sm:$0xff] %vm298_vm0, %v1032_v47 }
 0x1ab   : > { %v1030_v53 = vmax.f32 %v1027_v48, 0.0 }
 0x1ac   : > { %v1112_v54 = vpop.f32.mrb[26].mxu0  ;;  %v1181_v57 = vpop.f32.mrb[26].mxu1 }
 0x1ad   : > { %v1033_v55 = vsel %vm6638_vm14, %v1030_v53, 0.0  ;;  %v5084_v56 = vpop.f32.mrb[27].mxu0  ;;  %v1182_v58 = vadd.f32 %v1181_v57, %v1112_v54  ;;  %v5097_v60 = vpop.f32.mrb[27].mxu1 }
 0x1ae   : > { %1037 = vst.msk [vmem:[#allocation2 + $0x47] sm:$0xff] %vm298_vm0, %v1033_v55 }
 0x1b0   : > { %v1117_v61 = vpop.f32.mrb[28].mxu0  ;;  %v1186_v63 = vpop.f32.mrb[28].mxu1 }
 0x1b1   : > { %v5087_v62 = vpop.f32.mrb[29].mxu0  ;;  %v1187_v1 = vadd.f32 %v1186_v63, %v1117_v61  ;;  %v5100_v2 = vpop.f32.mrb[29].mxu1 }
 0x1b4   : > { %v1252_v3 = vpop.f32.mrb[30].mxu0  ;;  %v1331_v7 = vpop.f32.mrb[30].mxu1 }
 0x1b5   : > { %v1266_v4 = vadd.f32 %v1252_v3, %v1177_v51  ;;  %v5107_v5 = vpop.f32.mrb[31].mxu0  ;;  %v5120_v8 = vpop.f32.mrb[31].mxu1 }
 0x1b7   : > { %v1345_v9 = vadd.f32 %v1331_v7, %v1266_v4 }
 0x1b8   : > { %v1257_v10 = vpop.f32.mrb[32].mxu0  ;;  %v1336_v14 = vpop.f32.mrb[32].mxu1 }
 0x1b9   : > { %v1348_v11 = vadd.f32 %v6605_v35, %v1345_v9  ;;  %v1267_v12 = vadd.f32 %v1257_v10, %v1182_v58  ;;  %v5110_v13 = vpop.f32.mrb[33].mxu0  ;;  %v5123_v15 = vpop.f32.mrb[33].mxu1 }
 0x1bb   : > { %v1351_v16 = vmax.f32 %v1348_v11, 0.0  ;;  %v1346_v17 = vadd.f32 %v1336_v14, %v1267_v12 }
 0x1bc   : > { %v1262_v18 = vpop.f32.mrb[34].mxu0  ;;  %v1341_v23 = vpop.f32.mrb[34].mxu1 }
 0x1bd   : > { %v1354_v19 = vsel %vm6614_vm11, %v1351_v16, 0.0  ;;  %v1349_v20 = vadd.f32 %v6605_v35, %v1346_v17  ;;  %v1268_v21 = vadd.f32 %v1262_v18, %v1187_v1  ;;  %v5113_v22 = vpop.f32.mrb[35].mxu0  ;;  %v5126_v24 = vpop.f32.mrb[35].mxu1  ;;  %v5717_v17 = vld [vmem:[#allocation9 + $0x20] sm:$0xff]  }
 0x1be   : > { %1358 = vst.msk [vmem:[#allocation2 + $0x67] sm:$0xff] %vm298_vm0, %v1354_v19  ;;  %v5718_v22 = vld [vmem:[#allocation9 + $0x28] sm:$0xff]   ;;  %v6729_v24 = vld [vmem:[#allocation2 + $0x36] sm:$0xff] }
 0x1bf   : > { %v1352_v25 = vmax.f32 %v1349_v20, 0.0  ;;  %v1347_v26 = vadd.f32 %v1341_v23, %v1268_v21  ;;  %v5719_v23 = vld [vmem:[#allocation9 + $0x30] sm:$0xff]  }
 0x1c0   : > { %v1430_v27 = vpop.f32.mrb[36].mxu0  ;;  %v1499_v31 = vpop.f32.mrb[36].mxu1 }
 0x1c1   : > { %v1355_v28 = vsel %vm6628_vm13, %v1352_v25, 0.0  ;;  %v1350_v29 = vadd.f32 %v6605_v35, %v1347_v26  ;;  %v5133_v30 = vpop.f32.mrb[37].mxu0  ;;  %v1500_v32 = vadd.f32 %v1499_v31, %v1430_v27  ;;  %v5146_v33 = vpop.f32.mrb[37].mxu1  ;;  %v6731_v25 = vld [vmem:[#allocation2 + $0x7] sm:$0xff]  ;;  %v6741_v26 = vld [vmem:[#allocation2 + $0x3e] sm:$0xff]  ;;  %v6743_v27 = vld [vmem:[#allocation2 + $0xf] sm:$0xff] }
 0x1c2   : > { %1359 = vst.msk [vmem:[#allocation2 + $0x6f] sm:$0xff] %vm298_vm0, %v1355_v28  ;;  %v6755_v28 = vld [vmem:[#allocation2 + $0x46] sm:$0xff]  ;;  %v5720_v30 = vld [vmem:[#allocation9 + $0x38] sm:$0xff]  }
 0x1c3   : > { %v1353_v34 = vmax.f32 %v1350_v29, 0.0  ;;  %v6757_v29 = vld [vmem:[#allocation2 + $0x17] sm:$0xff]  ;;  %v5721_v31 = vld [vmem:[#allocation9 + $0x40] sm:$0xff]  }
 0x1c4   : > { %v1435_v37 = vpop.f32.mrb[38].mxu0  ;;  %v1504_v40 = vpop.f32.mrb[38].mxu1 }
 0x1c5   : > { %v1356_v38 = vsel %vm6638_vm14, %v1353_v34, 0.0  ;;  %v5136_v39 = vpop.f32.mrb[39].mxu0  ;;  %v6668_v41 = vld [vmem:[#allocation2 + $0x61] sm:$0xff]  ;;  %v1505_v42 = vadd.f32 %v1504_v40, %v1435_v37  ;;  %v5149_v43 = vpop.f32.mrb[39].mxu1 }
 0x1c6   : > { %1360 = vst.msk [vmem:[#allocation2 + $0x77] sm:$0xff] %vm298_vm0, %v1356_v38  ;;  %5182 = vmatmul.mubr.msk.f32.vlgmr.msra.gmra.mrb[48].mxu0 %vm298_vm0, %v6668_v41  ;;  %v6779_v34 = vld [vmem:[#allocation2 + $0x3f] sm:$0xff]  ;;  %v6793_v37 = vld [vmem:[#allocation2 + $0x47] sm:$0xff] }
 0x1c7   : > { %5184 = vmatprep.mubr.msk.f32.mxu0 %vm6025_vm1, %v6024_v0  ;;  %5202 = vmatpush3.bf16.msra.mxu0 %v5715_v36  ;;  %v5722_v39 = vld [vmem:[#allocation9 + $0x8] sm:$0xff]   ;;  %v5723_v40 = vld [vmem:[#allocation9] sm:$0xff]  }
 0x1c8   : > { %v1440_v44 = vpop.f32.mrb[40].mxu0  ;;  %5223 = vmatprep.subr.bf16.mxu0 %v6024_v0  ;;  %v1509_v47 = vpop.f32.mrb[40].mxu1 }
 0x1c9   : > { %v5139_v45 = vpop.f32.mrb[41].mxu0  ;;  %v6676_v48 = vld [vmem:[#allocation2 + $0x69] sm:$0xff]  ;;  %v1510_v49 = vadd.f32 %v1509_v47, %v1440_v44  ;;  %v5152_v50 = vpop.f32.mrb[41].mxu1 }
 0x1ca   : > { %5185 = vmatmul.mubr.msk.f32.gmra.mrb[50].mxu0 %vm298_vm0, %v6676_v48  ;;  %v6817_v44 = vld [vmem:[#allocation2 + $0x6f] sm:$0xff] }
 0x1cb   : > { %5187 = vmatprep.mubr.msk.f32.mxu0 %vm6025_vm1, %v6024_v0  ;;  %v5724_v50 = vld [vmem:[#allocation9 + $0x10] sm:$0xff]  }
 0x1cc   : > { %v1575_v51 = vpop.f32.mrb[42].mxu0  ;;  %v1654_v54 = vpop.f32.mrb[42].mxu1 }
 0x1cd   : > { %v1589_v52 = vadd.f32 %v1575_v51, %v1500_v32  ;;  %v5159_v53 = vpop.f32.mrb[43].mxu0  ;;  %v6682_v55 = vld [vmem:[#allocation2 + $0x71] sm:$0xff]  ;;  %v5172_v56 = vpop.f32.mrb[43].mxu1  ;;  %v5725_v51 = vld [vmem:[#allocation9 + $0x18] sm:$0xff]  }
 0x1ce   : > { %5188 = vmatmul.mubr.msk.f32.gmra.mrb[52].mxu0 %vm298_vm0, %v6682_v55  ;;  %v6767_v32 = vld [vmem:[#allocation2 + $0x37] sm:$0xff]  ;;  %v2498_v53 = vld [vmem:[#allocation2 + $0x6a] sm:$0xff] }
 0x1cf   : > { %v1668_v57 = vadd.f32 %v1654_v54, %v1589_v52  ;;  %5203 = vmatprep.mubr.msk.f32.mxu0 %vm6025_vm1, %v6024_v0  ;;  %v6831_v47 = vld [vmem:[#allocation2 + $0x77] sm:$0xff]  ;;  %v2497_v52 = vld [vmem:[#allocation2 + $0x62] sm:$0xff] }
 0x1d0   : > { %v1580_v58 = vpop.f32.mrb[44].mxu0  ;;  %v1659_v63 = vpop.f32.mrb[44].mxu1  ;;  %v2499_v54 = vld [vmem:[#allocation2 + $0x72] sm:$0xff]  ;;  %v5729_v56 = vld [vmem:[#allocation9 + $0x38] sm:$0xff]  }
 0x1d1   : > { %v1671_v60 = vadd.f32 %v6605_v35, %v1668_v57  ;;  %v1590_v61 = vadd.f32 %v1580_v58, %v1505_v42  ;;  %v5162_v62 = vpop.f32.mrb[45].mxu0  ;;  %v5175_v1 = vpop.f32.mrb[45].mxu1  ;;  %v6805_v42 = vld [vmem:[#allocation2 + $0x67] sm:$0xff]  ;;  %v6902_v58 = vld [vmem:[#allocation2 + $0x10] sm:$0xff] }
 0x1d2   : > { %v6892_v57 = vld [vmem:[#allocation2 + $0x8] sm:$0xff]  ;;  %v5733_v1 = vld [vmem:[#allocation9 + $0x10] sm:$0xff]  }
 0x1d3   : > { %v1674_v2 = vmax.f32 %v1671_v60, 0.0  ;;  %v1669_v3 = vadd.f32 %v1659_v63, %v1590_v61  ;;  %v6914_v60 = vld [vmem:[#allocation2 + $0x18] sm:$0xff]  ;;  %v5730_v61 = vld [vmem:[#allocation9 + $0x40] sm:$0xff]   ;;  %v5731_v62 = vld [vmem:[#allocation9 + $0x8] sm:$0xff]  }
 0x1d4   : > { %v1585_v4 = vpop.f32.mrb[46].mxu0  ;;  %v1664_v10 = vpop.f32.mrb[46].mxu1  ;;  %v5732_v63 = vld [vmem:[#allocation9] sm:$0xff]  }
 0x1d5   : > { %v1677_v5 = vsel %vm6614_vm11, %v1674_v2, 0.0  ;;  %v1672_v7 = vadd.f32 %v6605_v35, %v1669_v3  ;;  %v1591_v8 = vadd.f32 %v1585_v4, %v1510_v49  ;;  %v5165_v9 = vpop.f32.mrb[47].mxu0  ;;  %v5178_v11 = vpop.f32.mrb[47].mxu1  ;;  %v6950_v2 = vld [vmem:[#allocation2 + $0x68] sm:$0xff]  ;;  %v6960_v3 = vld [vmem:[#allocation2 + $0x70] sm:$0xff]  ;;  %v6972_v4 = vld [vmem:[#allocation2 + $0x78] sm:$0xff] }
 0x1d6   : > { %1681 = vst.msk [vmem:[#allocation2 + $0x97] sm:$0xff] %vm298_vm0, %v1677_v5  ;;  %v5734_v5 = vld [vmem:[#allocation9 + $0x18] sm:$0xff]   ;;  %v5737_v9 = vld [vmem:[#allocation9 + $0x30] sm:$0xff]   ;;  %v5739_v11 = vld [vmem:[#allocation9 + $0x40] sm:$0xff]  }
 0x1d7   : > { %v1675_v12 = vmax.f32 %v1672_v7, 0.0  ;;  %v1670_v13 = vadd.f32 %v1664_v10, %v1591_v8  ;;  %v5735_v7 = vld [vmem:[#allocation9 + $0x20] sm:$0xff]   ;;  %v5736_v8 = vld [vmem:[#allocation9 + $0x28] sm:$0xff]   ;;  %v5738_v10 = vld [vmem:[#allocation9 + $0x38] sm:$0xff]  }
 0x1d9   : > { %v1678_v14 = vsel %vm6628_vm13, %v1675_v12, 0.0  ;;  %v1673_v15 = vadd.f32 %v6605_v35, %v1670_v13  ;;  %v3451_v12 = vld [vmem:[#allocation2 + $0x3c] sm:$0xff]  ;;  %v3452_v13 = vld [vmem:[#allocation2 + $0x44] sm:$0xff] }
 0x1da   : > { %1682 = vst.msk [vmem:[#allocation2 + $0x9f] sm:$0xff] %vm298_vm0, %v1678_v14  ;;  %v3453_v14 = vld [vmem:[#allocation2 + $0x4c] sm:$0xff] }
 0x1db   : > { %v1676_v16 = vmax.f32 %v1673_v15, 0.0  ;;  %v5740_v15 = vld [vmem:[#allocation9 + $0x8] sm:$0xff]  }
 0x1dd   : > { %v1679_v18 = vsel %vm6638_vm14, %v1676_v16, 0.0  ;;  %v1685_v19 = vld [vmem:[#allocation2 + $0x90] sm:$0xff]  ;;  %v5741_v16 = vld [vmem:[#allocation9] sm:$0xff]  }
 0x1de   : > { %v6699_v20 = vld [vmem:[#allocation2 + $0x91] sm:$0xff]  ;;  %1683 = vst.msk [vmem:[#allocation2 + $0xa7] sm:$0xff] %vm298_vm0, %v1679_v18  ;;  %5193 = vmatmul.mubr.msk.f32.vlgmr.msra.gmra.mrb[48].mxu1 %vm298_vm0, %v1685_v19  ;;  %v7071_v19 = vld [vmem:[#allocation2 + $0x45] sm:$0xff] }
 0x1df   : > { %5204 = vmatmul.mubr.msk.f32.vlgmr.msra.gmra.mrb[54].mxu0 %vm298_vm0, %v6699_v20  ;;  %5213 = vmatpush3.bf16.msra.mxu1 %v5716_v46  ;;  %v6769_v33 = vld [vmem:[#allocation2 + $0x96] sm:$0xff]  ;;  %v7057_v46 = vld [vmem:[#allocation2 + $0xd] sm:$0xff] }
 0x1e0   : > { %5195 = vmatprep.mubr.msk.f32.mxu1 %vm6025_vm1, %v6024_v0  ;;  %5206 = vmatprep.mubr.msk.f32.mxu0 %vm6025_vm1, %v6024_v0  ;;  %v6807_v43 = vld [vmem:[#allocation2 + $0x97] sm:$0xff] }
 0x1e1   : > { %5224 = vmatpush3.bf16.msra.mxu0 %v5717_v17  ;;  %v1686_v35 = vld [vmem:[#allocation2 + $0x98] sm:$0xff]  ;;  %5234 = vmatprep.subr.bf16.mxu1 %v6024_v0 }
 0x1e2   : > { %v6709_v59 = vld [vmem:[#allocation2 + $0x99] sm:$0xff]  ;;  %5245 = vmatprep.subr.bf16.mxu0 %v6024_v0  ;;  %5196 = vmatmul.mubr.msk.f32.gmra.mrb[50].mxu1 %vm298_vm0, %v1686_v35  ;;  %v7085_v35 = vld [vmem:[#allocation2 + $0x4d] sm:$0xff] }
 0x1e3   : > { %5207 = vmatmul.mubr.msk.f32.gmra.mrb[56].mxu0 %vm298_vm0, %v6709_v59  ;;  %5198 = vmatprep.mubr.msk.f32.mxu1 %vm6025_vm1, %v6024_v0  ;;  %v6781_v36 = vld [vmem:[#allocation2 + $0x9e] sm:$0xff]  ;;  %v7069_v18 = vld [vmem:[#allocation2 + $0x15] sm:$0xff] }
 0x1e4   : > { %5209 = vmatprep.mubr.msk.f32.mxu0 %vm6025_vm1, %v6024_v0  ;;  %v6819_v45 = vld [vmem:[#allocation2 + $0x9f] sm:$0xff] }
 0x1e5   : > { %v1687_v6 = vld [vmem:[#allocation2 + $0xa0] sm:$0xff] }
 0x1e6   : > { %v6720_v21 = vld [vmem:[#allocation2 + $0xa1] sm:$0xff]  ;;  %5199 = vmatmul.mubr.msk.f32.gmra.mrb[52].mxu1 %vm298_vm0, %v1687_v6 }
 0x1e7   : > { %5210 = vmatmul.mubr.msk.f32.gmra.mrb[58].mxu0 %vm298_vm0, %v6720_v21  ;;  %5214 = vmatprep.mubr.msk.f32.mxu1 %vm6025_vm1, %v6024_v0  ;;  %v6795_v38 = vld [vmem:[#allocation2 + $0xa6] sm:$0xff]  ;;  %v7059_v17 = vld [vmem:[#allocation2 + $0x3d] sm:$0xff] }
 0x1e8   : > { %5225 = vmatprep.mubr.msk.f32.mxu0 %vm6025_vm1, %v6024_v0  ;;  %v6833_v49 = vld [vmem:[#allocation2 + $0xa7] sm:$0xff]  ;;  %v5743_v6 = vld [vmem:[#allocation9 + $0x18] sm:$0xff]  }
 0x1ea   : > { %5215 = vmatmul.mubr.msk.f32.vlgmr.msra.gmra.mrb[54].mxu1 %vm298_vm0, %v6729_v24 }
 0x1eb   : > { %5226 = vmatmul.mubr.msk.f32.vlgmr.msra.gmra.mrb[60].mxu0 %vm298_vm0, %v6731_v25  ;;  %5235 = vmatpush3.bf16.msra.mxu1 %v5718_v22  ;;  %v5745_v22 = vld [vmem:[#allocation9 + $0x28] sm:$0xff]  }
 0x1ec   : > { %5217 = vmatprep.mubr.msk.f32.mxu1 %vm6025_vm1, %v6024_v0  ;;  %5228 = vmatprep.mubr.msk.f32.mxu0 %vm6025_vm1, %v6024_v0 }
 0x1ed   : > { %5246 = vmatpush3.bf16.msra.mxu0 %v5719_v23  ;;  %5256 = vmatprep.subr.bf16.mxu1 %v6024_v0  ;;  %v5746_v23 = vld [vmem:[#allocation9 + $0x30] sm:$0xff]  }
 0x1ee   : > { %5267 = vmatprep.subr.bf16.mxu0 %v6024_v0  ;;  %5218 = vmatmul.mubr.msk.f32.gmra.mrb[56].mxu1 %vm298_vm0, %v6741_v26 }
 0x1ef   : > { %5229 = vmatmul.mubr.msk.f32.gmra.mrb[62].mxu0 %vm298_vm0, %v6743_v27  ;;  %5220 = vmatprep.mubr.msk.f32.mxu1 %vm6025_vm1, %v6024_v0 }
 0x1f0   : > { %5231 = vmatprep.mubr.msk.f32.mxu0 %vm6025_vm1, %v6024_v0 }
 0x1f2   : > { %5221 = vmatmul.mubr.msk.f32.gmra.mrb[58].mxu1 %vm298_vm0, %v6755_v28 }
 0x1f3   : > { %5232 = vmatmul.mubr.msk.f32.gmra.mrb[64].mxu0 %vm298_vm0, %v6757_v29  ;;  %5236 = vmatprep.mubr.msk.f32.mxu1 %vm6025_vm1, %v6024_v0 }
 0x1f4   : > { %5247 = vmatprep.mubr.msk.f32.mxu0 %vm6025_vm1, %v6024_v0 }
 0x1f6   : > { %5237 = vmatmul.mubr.msk.f32.vlgmr.msra.gmra.mrb[60].mxu1 %vm298_vm0, %v6767_v32 }
 0x1f7   : > { %5248 = vmatmul.mubr.msk.f32.vlgmr.msra.gmra.mrb[66].mxu0 %vm298_vm0, %v6769_v33  ;;  %5257 = vmatpush3.bf16.msra.mxu1 %v5720_v30 }
 0x1f8   : > { %5239 = vmatprep.mubr.msk.f32.mxu1 %vm6025_vm1, %v6024_v0  ;;  %5250 = vmatprep.mubr.msk.f32.mxu0 %vm6025_vm1, %v6024_v0 }
 0x1f9   : > { %5268 = vmatpush3.bf16.msra.mxu0 %v5721_v31  ;;  %5278 = vmatprep.subr.bf16.mxu1 %v6024_v0 }
 0x1fa   : > { %5289 = vmatprep.subr.bf16.mxu0 %v6024_v0  ;;  %5240 = vmatmul.mubr.msk.f32.gmra.mrb[62].mxu1 %vm298_vm0, %v6779_v34 }
 0x1fb   : > { %5251 = vmatmul.mubr.msk.f32.gmra.mrb[68].mxu0 %vm298_vm0, %v6781_v36  ;;  %5242 = vmatprep.mubr.msk.f32.mxu1 %vm6025_vm1, %v6024_v0 }
 0x1fc   : > { %5253 = vmatprep.mubr.msk.f32.mxu0 %vm6025_vm1, %v6024_v0 }
 0x1fe   : > { %5243 = vmatmul.mubr.msk.f32.gmra.mrb[64].mxu1 %vm298_vm0, %v6793_v37 }
 0x1ff   : > { %5254 = vmatmul.mubr.msk.f32.gmra.mrb[70].mxu0 %vm298_vm0, %v6795_v38  ;;  %5258 = vmatprep.mubr.msk.f32.mxu1 %vm6025_vm1, %v6024_v0 }
 0x200   : > { %5269 = vmatprep.mubr.msk.f32.mxu0 %vm6025_vm1, %v6024_v0 }
 0x202   : > { %5259 = vmatmul.mubr.msk.f32.vlgmr.msra.gmra.mrb[66].mxu1 %vm298_vm0, %v6805_v42 }
 0x203   : > { %5270 = vmatmul.mubr.msk.f32.vlgmr.msra.gmra.mrb[72].mxu0 %vm298_vm0, %v6807_v43  ;;  %5279 = vmatpush3.bf16.msra.mxu1 %v5722_v39 }
 0x204   : > { %5261 = vmatprep.mubr.msk.f32.mxu1 %vm6025_vm1, %v6024_v0  ;;  %5272 = vmatprep.mubr.msk.f32.mxu0 %vm6025_vm1, %v6024_v0 }
 0x205   : > { %5290 = vmatpush3.bf16.msra.mxu0 %v5723_v40  ;;  %5300 = vmatprep.subr.bf16.mxu1 %v6024_v0 }
 0x206   : > { %5311 = vmatprep.subr.bf16.mxu0 %v6024_v0  ;;  %5262 = vmatmul.mubr.msk.f32.gmra.mrb[68].mxu1 %vm298_vm0, %v6817_v44 }
 0x207   : > { %5273 = vmatmul.mubr.msk.f32.gmra.mrb[74].mxu0 %vm298_vm0, %v6819_v45  ;;  %5264 = vmatprep.mubr.msk.f32.mxu1 %vm6025_vm1, %v6024_v0 }
 0x208   : > { %5275 = vmatprep.mubr.msk.f32.mxu0 %vm6025_vm1, %v6024_v0 }
 0x20a   : > { %5265 = vmatmul.mubr.msk.f32.gmra.mrb[70].mxu1 %vm298_vm0, %v6831_v47 }
 0x20b   : > { %5276 = vmatmul.mubr.msk.f32.gmra.mrb[76].mxu0 %vm298_vm0, %v6833_v49  ;;  %5280 = vmatprep.mubr.msk.f32.mxu1 %vm6025_vm1, %v6024_v0 }
 0x20c   : > { %5291 = vmatprep.mubr.msk.f32.mxu0 %vm6025_vm1, %v6024_v0 }
 0x20e   : > { %5281 = vmatmul.mubr.msk.f32.vlgmr.msra.gmra.mrb[72].mxu1 %vm298_vm0, %v6699_v20  ;;  %v7083_v20 = vld [vmem:[#allocation2 + $0x1d] sm:$0xff] }
 0x20f   : > { %5292 = vmatmul.mubr.msk.f32.vlgmr.msra.gmra.mrb[78].mxu0 %vm298_vm0, %v6668_v41  ;;  %5301 = vmatpush3.bf16.msra.mxu1 %v5724_v50  ;;  %v5726_v41 = vld [vmem:[#allocation9 + $0x20] sm:$0xff]  }
 0x210   : > { %5283 = vmatprep.mubr.msk.f32.mxu1 %vm6025_vm1, %v6024_v0  ;;  %5294 = vmatprep.mubr.msk.f32.mxu0 %vm6025_vm1, %v6024_v0 }
 0x211   : > { %5312 = vmatpush3.bf16.msra.mxu0 %v5725_v51  ;;  %5322 = vmatprep.subr.bf16.mxu1 %v6024_v0 }
 0x212   : > { %5333 = vmatprep.subr.bf16.mxu0 %v6024_v0  ;;  %5284 = vmatmul.mubr.msk.f32.gmra.mrb[74].mxu1 %vm298_vm0, %v6709_v59  ;;  %v5742_v59 = vld [vmem:[#allocation9 + $0x10] sm:$0xff]  }
 0x213   : > { %5295 = vmatmul.mubr.msk.f32.gmra.mrb[80].mxu0 %vm298_vm0, %v6676_v48  ;;  %5286 = vmatprep.mubr.msk.f32.mxu1 %vm6025_vm1, %v6024_v0  ;;  %v5727_v48 = vld [vmem:[#allocation9 + $0x28] sm:$0xff]  }
 0x214   : > { %5297 = vmatprep.mubr.msk.f32.mxu0 %vm6025_vm1, %v6024_v0 }
 0x216   : > { %5287 = vmatmul.mubr.msk.f32.gmra.mrb[76].mxu1 %vm298_vm0, %v6720_v21  ;;  %v5744_v21 = vld [vmem:[#allocation9 + $0x20] sm:$0xff]  }
 0x217   : > { %5298 = vmatmul.mubr.msk.f32.gmra.mrb[82].mxu0 %vm298_vm0, %v6682_v55  ;;  %5302 = vmatprep.mubr.msk.f32.mxu1 %vm6025_vm1, %v6024_v0  ;;  %v5728_v55 = vld [vmem:[#allocation9 + $0x30] sm:$0xff]  }
 0x218   : > { %5313 = vmatprep.mubr.msk.f32.mxu0 %vm6025_vm1, %v6024_v0 }
 0x21a   : > { %5303 = vmatmul.mubr.msk.f32.vlgmr.msra.gmra.mrb[78].mxu1 %vm298_vm0, %v2497_v52 }
 0x21b   : > { %5314 = vmatmul.mubr.msk.f32.vlgmr.msra.gmra.mrb[84].mxu0 %vm298_vm0, %v6731_v25  ;;  %5323 = vmatpush3.bf16.msra.mxu1 %v5726_v41 }
 0x21c   : > { %5305 = vmatprep.mubr.msk.f32.mxu1 %vm6025_vm1, %v6024_v0  ;;  %5316 = vmatprep.mubr.msk.f32.mxu0 %vm6025_vm1, %v6024_v0 }
 0x21d   : > { %5334 = vmatpush3.bf16.msra.mxu0 %v5727_v48  ;;  %5344 = vmatprep.subr.bf16.mxu1 %v6024_v0 }
 0x21e   : > { %5355 = vmatprep.subr.bf16.mxu0 %v6024_v0  ;;  %5306 = vmatmul.mubr.msk.f32.gmra.mrb[80].mxu1 %vm298_vm0, %v2498_v53 }
 0x21f   : > { %5317 = vmatmul.mubr.msk.f32.gmra.mrb[86].mxu0 %vm298_vm0, %v6743_v27  ;;  %5308 = vmatprep.mubr.msk.f32.mxu1 %vm6025_vm1, %v6024_v0 }
 0x220   : > { %5319 = vmatprep.mubr.msk.f32.mxu0 %vm6025_vm1, %v6024_v0 }
 0x222   : > { %5309 = vmatmul.mubr.msk.f32.gmra.mrb[82].mxu1 %vm298_vm0, %v2499_v54 }
 0x223   : > { %5320 = vmatmul.mubr.msk.f32.gmra.mrb[88].mxu0 %vm298_vm0, %v6757_v29  ;;  %5324 = vmatprep.mubr.msk.f32.mxu1 %vm6025_vm1, %v6024_v0 }
 0x224   : > { %5335 = vmatprep.mubr.msk.f32.mxu0 %vm6025_vm1, %v6024_v0 }
 0x226   : > { %5325 = vmatmul.mubr.msk.f32.vlgmr.msra.gmra.mrb[84].mxu1 %vm298_vm0, %v6767_v32 }
 0x227   : > { %5336 = vmatmul.mubr.msk.f32.vlgmr.msra.gmra.mrb[90].mxu0 %vm298_vm0, %v6892_v57  ;;  %5345 = vmatpush3.bf16.msra.mxu1 %v5728_v55 }
 0x228   : > { %5327 = vmatprep.mubr.msk.f32.mxu1 %vm6025_vm1, %v6024_v0  ;;  %5338 = vmatprep.mubr.msk.f32.mxu0 %vm6025_vm1, %v6024_v0 }
 0x229   : > { %5356 = vmatpush3.bf16.msra.mxu0 %v5729_v56  ;;  %5366 = vmatprep.subr.bf16.mxu1 %v6024_v0 }
 0x22a   : > { %5377 = vmatprep.subr.bf16.mxu0 %v6024_v0  ;;  %5328 = vmatmul.mubr.msk.f32.gmra.mrb[86].mxu1 %vm298_vm0, %v6779_v34 }
 0x22b   : > { %5339 = vmatmul.mubr.msk.f32.gmra.mrb[92].mxu0 %vm298_vm0, %v6902_v58  ;;  %5330 = vmatprep.mubr.msk.f32.mxu1 %vm6025_vm1, %v6024_v0 }
 0x22c   : > { %5341 = vmatprep.mubr.msk.f32.mxu0 %vm6025_vm1, %v6024_v0 }
 0x22e   : > { %5331 = vmatmul.mubr.msk.f32.gmra.mrb[88].mxu1 %vm298_vm0, %v6793_v37 }
 0x22f   : > { %5342 = vmatmul.mubr.msk.f32.gmra.mrb[94].mxu0 %vm298_vm0, %v6914_v60  ;;  %5346 = vmatprep.mubr.msk.f32.mxu1 %vm6025_vm1, %v6024_v0 }
 0x230   : > { %5357 = vmatprep.mubr.msk.f32.mxu0 %vm6025_vm1, %v6024_v0 }
 0x232   : > { %5347 = vmatmul.mubr.msk.f32.vlgmr.msra.gmra.mrb[90].mxu1 %vm298_vm0, %v6805_v42 }
 0x233   : > { %5358 = vmatmul.mubr.msk.f32.vlgmr.msra.gmra.mrb[96].mxu0 %vm298_vm0, %v6807_v43  ;;  %5367 = vmatpush3.bf16.msra.mxu1 %v5730_v61 }
 0x234   : > { %5349 = vmatprep.mubr.msk.f32.mxu1 %vm6025_vm1, %v6024_v0  ;;  %5360 = vmatprep.mubr.msk.f32.mxu0 %vm6025_vm1, %v6024_v0 }
 0x235   : > { %5378 = vmatpush3.bf16.msra.mxu0 %v5731_v62  ;;  %5388 = vmatprep.subr.bf16.mxu1 %v6024_v0 }
 0x236   : > { %5399 = vmatprep.subr.bf16.mxu0 %v6024_v0  ;;  %5350 = vmatmul.mubr.msk.f32.gmra.mrb[92].mxu1 %vm298_vm0, %v6817_v44 }
 0x237   : > { %5361 = vmatmul.mubr.msk.f32.gmra.mrb[98].mxu0 %vm298_vm0, %v6819_v45  ;;  %5352 = vmatprep.mubr.msk.f32.mxu1 %vm6025_vm1, %v6024_v0 }
 0x238   : > { %5363 = vmatprep.mubr.msk.f32.mxu0 %vm6025_vm1, %v6024_v0 }
 0x23a   : > { %5353 = vmatmul.mubr.msk.f32.gmra.mrb[94].mxu1 %vm298_vm0, %v6831_v47 }
 0x23b   : > { %5364 = vmatmul.mubr.msk.f32.gmra.mrb[100].mxu0 %vm298_vm0, %v6833_v49  ;;  %5368 = vmatprep.mubr.msk.f32.mxu1 %vm6025_vm1, %v6024_v0 }
 0x23c   : > { %5379 = vmatprep.mubr.msk.f32.mxu0 %vm6025_vm1, %v6024_v0 }
 0x23e   : > { %5369 = vmatmul.mubr.msk.f32.vlgmr.msra.gmra.mrb[96].mxu1 %vm298_vm0, %v6950_v2 }
 0x23f   : > { %5380 = vmatmul.mubr.msk.f32.vlgmr.msra.gmra.mrb[102].mxu0 %vm298_vm0, %v6731_v25  ;;  %5389 = vmatpush3.bf16.msra.mxu1 %v5732_v63 }
 0x240   : > { %5371 = vmatprep.mubr.msk.f32.mxu1 %vm6025_vm1, %v6024_v0  ;;  %5382 = vmatprep.mubr.msk.f32.mxu0 %vm6025_vm1, %v6024_v0 }
 0x241   : > { %5400 = vmatpush3.bf16.msra.mxu0 %v5733_v1  ;;  %5410 = vmatprep.subr.bf16.mxu1 %v6024_v0 }
 0x242   : > { %5421 = vmatprep.subr.bf16.mxu0 %v6024_v0  ;;  %5372 = vmatmul.mubr.msk.f32.gmra.mrb[98].mxu1 %vm298_vm0, %v6960_v3 }
 0x243   : > { %5383 = vmatmul.mubr.msk.f32.gmra.mrb[104].mxu0 %vm298_vm0, %v6743_v27  ;;  %5374 = vmatprep.mubr.msk.f32.mxu1 %vm6025_vm1, %v6024_v0 }
 0x244   : > { %5385 = vmatprep.mubr.msk.f32.mxu0 %vm6025_vm1, %v6024_v0 }
 0x246   : > { %5375 = vmatmul.mubr.msk.f32.gmra.mrb[100].mxu1 %vm298_vm0, %v6972_v4 }
 0x247   : > { %5386 = vmatmul.mubr.msk.f32.gmra.mrb[106].mxu0 %vm298_vm0, %v6757_v29  ;;  %5390 = vmatprep.mubr.msk.f32.mxu1 %vm6025_vm1, %v6024_v0 }
 0x248   : > { %5401 = vmatprep.mubr.msk.f32.mxu0 %vm6025_vm1, %v6024_v0 }
 0x24a   : > { %5391 = vmatmul.mubr.msk.f32.vlgmr.msra.gmra.mrb[102].mxu1 %vm298_vm0, %v6729_v24  ;;  %v5747_v24 = vld [vmem:[#allocation9 + $0x38] sm:$0xff]  }
 0x24b   : > { %5402 = vmatmul.mubr.msk.f32.vlgmr.msra.gmra.mrb[108].mxu0 %vm298_vm0, %v6767_v32  ;;  %5411 = vmatpush3.bf16.msra.mxu1 %v5734_v5 }
 0x24c   : > { %5393 = vmatprep.mubr.msk.f32.mxu1 %vm6025_vm1, %v6024_v0  ;;  %5404 = vmatprep.mubr.msk.f32.mxu0 %vm6025_vm1, %v6024_v0 }
 0x24d   : > { %5422 = vmatpush3.bf16.msra.mxu0 %v5735_v7  ;;  %5432 = vmatprep.subr.bf16.mxu1 %v6024_v0 }
 0x24e   : > { %5443 = vmatprep.subr.bf16.mxu0 %v6024_v0  ;;  %5394 = vmatmul.mubr.msk.f32.gmra.mrb[104].mxu1 %vm298_vm0, %v6741_v26 }
 0x24f   : > { %5405 = vmatmul.mubr.msk.f32.gmra.mrb[110].mxu0 %vm298_vm0, %v6779_v34  ;;  %5396 = vmatprep.mubr.msk.f32.mxu1 %vm6025_vm1, %v6024_v0 }
 0x250   : > { %5407 = vmatprep.mubr.msk.f32.mxu0 %vm6025_vm1, %v6024_v0 }
 0x252   : > { %5397 = vmatmul.mubr.msk.f32.gmra.mrb[106].mxu1 %vm298_vm0, %v6755_v28 }
 0x253   : > { %5408 = vmatmul.mubr.msk.f32.gmra.mrb[112].mxu0 %vm298_vm0, %v6793_v37  ;;  %5412 = vmatprep.mubr.msk.f32.mxu1 %vm6025_vm1, %v6024_v0 }
 0x254   : > { %5423 = vmatprep.mubr.msk.f32.mxu0 %vm6025_vm1, %v6024_v0 }
 0x256   : > { %5413 = vmatmul.mubr.msk.f32.vlgmr.msra.gmra.mrb[108].mxu1 %vm298_vm0, %v6769_v33  ;;  %v4264_v33 = vld [vmem:[#allocation2 + $0x16] sm:$0xff] }
 0x257   : > { %5424 = vmatmul.mubr.msk.f32.vlgmr.msra.gmra.mrb[114].mxu0 %vm298_vm0, %v6805_v42  ;;  %5433 = vmatpush3.bf16.msra.mxu1 %v5736_v8 }
 0x258   : > { %5415 = vmatprep.mubr.msk.f32.mxu1 %vm6025_vm1, %v6024_v0  ;;  %5426 = vmatprep.mubr.msk.f32.mxu0 %vm6025_vm1, %v6024_v0 }
 0x259   : > { %5444 = vmatpush3.bf16.msra.mxu0 %v5737_v9  ;;  %5454 = vmatprep.subr.bf16.mxu1 %v6024_v0 }
 0x25a   : > { %5465 = vmatprep.subr.bf16.mxu0 %v6024_v0  ;;  %5416 = vmatmul.mubr.msk.f32.gmra.mrb[110].mxu1 %vm298_vm0, %v6781_v36 }
 0x25b   : > { %5427 = vmatmul.mubr.msk.f32.gmra.mrb[116].mxu0 %vm298_vm0, %v6817_v44  ;;  %5418 = vmatprep.mubr.msk.f32.mxu1 %vm6025_vm1, %v6024_v0 }
 0x25c   : > { %5429 = vmatprep.mubr.msk.f32.mxu0 %vm6025_vm1, %v6024_v0 }
 0x25e   : > { %5419 = vmatmul.mubr.msk.f32.gmra.mrb[112].mxu1 %vm298_vm0, %v6795_v38 }
 0x25f   : > { %5430 = vmatmul.mubr.msk.f32.gmra.mrb[118].mxu0 %vm298_vm0, %v6831_v47  ;;  %5434 = vmatprep.mubr.msk.f32.mxu1 %vm6025_vm1, %v6024_v0 }
 0x260   : > { %5445 = vmatprep.mubr.msk.f32.mxu0 %vm6025_vm1, %v6024_v0 }
 0x262   : > { %5435 = vmatmul.mubr.msk.f32.vlgmr.msra.gmra.mrb[114].mxu1 %vm298_vm0, %v6807_v43 }
 0x263   : > { %5446 = vmatmul.mubr.msk.f32.vlgmr.msra.gmra.mrb[120].mxu0 %vm298_vm0, %v3451_v12  ;;  %5455 = vmatpush3.bf16.msra.mxu1 %v5738_v10 }
 0x264   : > { %5437 = vmatprep.mubr.msk.f32.mxu1 %vm6025_vm1, %v6024_v0  ;;  %5448 = vmatprep.mubr.msk.f32.mxu0 %vm6025_vm1, %v6024_v0 }
 0x265   : > { %5466 = vmatpush3.bf16.msra.mxu0 %v5739_v11  ;;  %5476 = vmatprep.subr.bf16.mxu1 %v6024_v0 }
 0x266   : > { %5487 = vmatprep.subr.bf16.mxu0 %v6024_v0  ;;  %5438 = vmatmul.mubr.msk.f32.gmra.mrb[116].mxu1 %vm298_vm0, %v6819_v45 }
 0x267   : > { %5449 = vmatmul.mubr.msk.f32.gmra.mrb[122].mxu0 %vm298_vm0, %v3452_v13  ;;  %5440 = vmatprep.mubr.msk.f32.mxu1 %vm6025_vm1, %v6024_v0 }
 0x268   : > { %5451 = vmatprep.mubr.msk.f32.mxu0 %vm6025_vm1, %v6024_v0 }
 0x26a   : > { %5441 = vmatmul.mubr.msk.f32.gmra.mrb[118].mxu1 %vm298_vm0, %v6833_v49 }
 0x26b   : > { %5452 = vmatmul.mubr.msk.f32.gmra.mrb[124].mxu0 %vm298_vm0, %v3453_v14  ;;  %5456 = vmatprep.mubr.msk.f32.mxu1 %vm6025_vm1, %v6024_v0 }
 0x26c   : > { %5467 = vmatprep.mubr.msk.f32.mxu0 %vm6025_vm1, %v6024_v0 }
 0x26e   : > { %5457 = vmatmul.mubr.msk.f32.vlgmr.msra.gmra.mrb[120].mxu1 %vm298_vm0, %v7057_v46 }
 0x26f   : > { %5468 = vmatmul.mubr.msk.f32.vlgmr.msra.gmra.mrb[126].mxu0 %vm298_vm0, %v7059_v17  ;;  %5477 = vmatpush3.bf16.msra.mxu1 %v5740_v15 }
 0x270   : > { %5459 = vmatprep.mubr.msk.f32.mxu1 %vm6025_vm1, %v6024_v0  ;;  %5470 = vmatprep.mubr.msk.f32.mxu0 %vm6025_vm1, %v6024_v0 }
 0x271   : > { %5488 = vmatpush3.bf16.msra.mxu0 %v5741_v16  ;;  %5498 = vmatprep.subr.bf16.mxu1 %v6024_v0 }
 0x272   : > { %5509 = vmatprep.subr.bf16.mxu0 %v6024_v0  ;;  %5460 = vmatmul.mubr.msk.f32.gmra.mrb[122].mxu1 %vm298_vm0, %v7069_v18 }
 0x273   : > { %5471 = vmatmul.mubr.msk.f32.gmra.mrb[128].mxu0 %vm298_vm0, %v7071_v19  ;;  %5462 = vmatprep.mubr.msk.f32.mxu1 %vm6025_vm1, %v6024_v0 }
 0x274   : > { %5473 = vmatprep.mubr.msk.f32.mxu0 %vm6025_vm1, %v6024_v0 }
 0x276   : > { %5463 = vmatmul.mubr.msk.f32.gmra.mrb[124].mxu1 %vm298_vm0, %v7083_v20 }
 0x277   : > { %5474 = vmatmul.mubr.msk.f32.gmra.mrb[130].mxu0 %vm298_vm0, %v7085_v35  ;;  %5478 = vmatprep.mubr.msk.f32.mxu1 %vm6025_vm1, %v6024_v0 }
 0x278   : > { %5489 = vmatprep.mubr.msk.f32.mxu0 %vm6025_vm1, %v6024_v0 }
 0x27a   : > { %5479 = vmatmul.mubr.msk.f32.vlgmr.msra.gmra.mrb[126].mxu1 %vm298_vm0, %v6767_v32  ;;  %v4263_v32 = vld [vmem:[#allocation2 + $0xe] sm:$0xff] }
 0x27b   : > { %5490 = vmatmul.mubr.msk.f32.vlgmr.msra.gmra.mrb[132].mxu0 %vm298_vm0, %v6731_v25  ;;  %5499 = vmatpush3.bf16.msra.mxu1 %v5742_v59 }
 0x27c   : > { %5481 = vmatprep.mubr.msk.f32.mxu1 %vm6025_vm1, %v6024_v0  ;;  %5492 = vmatprep.mubr.msk.f32.mxu0 %vm6025_vm1, %v6024_v0 }
 0x27d   : > { %5510 = vmatpush3.bf16.msra.mxu0 %v5743_v6  ;;  %5520 = vmatprep.subr.bf16.mxu1 %v6024_v0 }
 0x27e   : > { %5531 = vmatprep.subr.bf16.mxu0 %v6024_v0  ;;  %5482 = vmatmul.mubr.msk.f32.gmra.mrb[128].mxu1 %vm298_vm0, %v6779_v34 }
 0x27f   : > { %5493 = vmatmul.mubr.msk.f32.gmra.mrb[134].mxu0 %vm298_vm0, %v6743_v27  ;;  %5484 = vmatprep.mubr.msk.f32.mxu1 %vm6025_vm1, %v6024_v0  ;;  %v5748_v27 = vld [vmem:[#allocation9 + $0x40] sm:$0xff]  }
 0x280   : > { %5495 = vmatprep.mubr.msk.f32.mxu0 %vm6025_vm1, %v6024_v0 }
 0x282   : > { %5485 = vmatmul.mubr.msk.f32.gmra.mrb[130].mxu1 %vm298_vm0, %v6793_v37  ;;  %v4265_v37 = vld [vmem:[#allocation2 + $0x1e] sm:$0xff] }
 0x283   : > { %5496 = vmatmul.mubr.msk.f32.gmra.mrb[136].mxu0 %vm298_vm0, %v6757_v29  ;;  %5500 = vmatprep.mubr.msk.f32.mxu1 %vm6025_vm1, %v6024_v0 }
 0x284   : > { %5511 = vmatprep.mubr.msk.f32.mxu0 %vm6025_vm1, %v6024_v0 }
 0x286   : > { %5501 = vmatmul.mubr.msk.f32.vlgmr.msra.gmra.mrb[132].mxu1 %vm298_vm0, %v6892_v57 }
 0x287   : > { %5512 = vmatmul.mubr.msk.f32.vlgmr.msra.gmra.mrb[138].mxu0 %vm298_vm0, %v6805_v42  ;;  %5521 = vmatpush3.bf16.msra.mxu1 %v5744_v21 }
 0x288   : > { %5503 = vmatprep.mubr.msk.f32.mxu1 %vm6025_vm1, %v6024_v0  ;;  %5514 = vmatprep.mubr.msk.f32.mxu0 %vm6025_vm1, %v6024_v0 }
 0x289   : > { %5532 = vmatpush3.bf16.msra.mxu0 %v5745_v22  ;;  %5542 = vmatprep.subr.bf16.mxu1 %v6024_v0 }
 0x28a   : > { %5553 = vmatprep.subr.bf16.mxu0 %v6024_v0  ;;  %5504 = vmatmul.mubr.msk.f32.gmra.mrb[134].mxu1 %vm298_vm0, %v6902_v58 }
 0x28b   : > { %5515 = vmatmul.mubr.msk.f32.gmra.mrb[140].mxu0 %vm298_vm0, %v6817_v44  ;;  %5506 = vmatprep.mubr.msk.f32.mxu1 %vm6025_vm1, %v6024_v0 }
 0x28c   : > { %5517 = vmatprep.mubr.msk.f32.mxu0 %vm6025_vm1, %v6024_v0 }
 0x28e   : > { %5507 = vmatmul.mubr.msk.f32.gmra.mrb[136].mxu1 %vm298_vm0, %v6914_v60 }
 0x28f   : > { %5518 = vmatmul.mubr.msk.f32.gmra.mrb[142].mxu0 %vm298_vm0, %v6831_v47  ;;  %5522 = vmatprep.mubr.msk.f32.mxu1 %vm6025_vm1, %v6024_v0 }
 0x290   : > { %5533 = vmatprep.mubr.msk.f32.mxu0 %vm6025_vm1, %v6024_v0 }
 0x292   : > { %5523 = vmatmul.mubr.msk.f32.vlgmr.msra.gmra.mrb[138].mxu1 %vm298_vm0, %v6807_v43 }
 0x293   : > { %5534 = vmatmul.mubr.msk.f32.vlgmr.msra.gmra.mrb[144].mxu0 %vm298_vm0, %v6950_v2  ;;  %5543 = vmatpush3.bf16.msra.mxu1 %v5746_v23 }
 0x294   : > { %5525 = vmatprep.mubr.msk.f32.mxu1 %vm6025_vm1, %v6024_v0  ;;  %5536 = vmatprep.mubr.msk.f32.mxu0 %vm6025_vm1, %v6024_v0 }
 0x295   : > { %5554 = vmatpush3.bf16.msra.mxu0 %v5747_v24  ;;  %5564 = vmatprep.subr.bf16.mxu1 %v6024_v0 }
 0x296   : > { %5526 = vmatmul.mubr.msk.f32.gmra.mrb[140].mxu1 %vm298_vm0, %v6819_v45 }
 0x297   : > { %5537 = vmatmul.mubr.msk.f32.gmra.mrb[146].mxu0 %vm298_vm0, %v6960_v3  ;;  %5528 = vmatprep.mubr.msk.f32.mxu1 %vm6025_vm1, %v6024_v0 }
 0x298   : > { %5539 = vmatprep.mubr.msk.f32.mxu0 %vm6025_vm1, %v6024_v0 }
 0x299   : > { %v1744_v25 = vpop.f32.mrb[48].mxu0 }
 0x29a   : > { %v5183_v26 = vpop.f32.mrb[49].mxu0  ;;  %5529 = vmatmul.mubr.msk.f32.gmra.mrb[142].mxu1 %vm298_vm0, %v6833_v49 }
 0x29b   : > { %5540 = vmatmul.mubr.msk.f32.gmra.mrb[148].mxu0 %vm298_vm0, %v6972_v4  ;;  %5544 = vmatprep.mubr.msk.f32.mxu1 %vm6025_vm1, %v6024_v0 }
 0x29c   : > { %5555 = vmatprep.mubr.msk.f32.mxu0 %vm6025_vm1, %v6024_v0 }
 0x29d   : > { %v1749_v28 = vpop.f32.mrb[50].mxu0 }
 0x29e   : > { %v5186_v29 = vpop.f32.mrb[51].mxu0  ;;  %5545 = vmatmul.mubr.msk.f32.vlgmr.msra.gmra.mrb[144].mxu1 %vm298_vm0, %v7057_v46 }
 0x29f   : > { %5556 = vmatmul.mubr.msk.f32.vlgmr.msra.gmra.mrb[150].mxu0 %vm298_vm0, %v7059_v17  ;;  %5565 = vmatpush3.bf16.msra.mxu1 %v5748_v27 }
 0x2a0   : > { %5547 = vmatprep.mubr.msk.f32.mxu1 %vm6025_vm1, %v6024_v0  ;;  %5558 = vmatprep.mubr.msk.f32.mxu0 %vm6025_vm1, %v6024_v0 }
 0x2a1   : > { %v1754_v30 = vpop.f32.mrb[52].mxu0 }
 0x2a2   : > { %v5189_v31 = vpop.f32.mrb[53].mxu0  ;;  %5548 = vmatmul.mubr.msk.f32.gmra.mrb[146].mxu1 %vm298_vm0, %v7069_v18 }
 0x2a3   : > { %5559 = vmatmul.mubr.msk.f32.gmra.mrb[152].mxu0 %vm298_vm0, %v7071_v19  ;;  %5550 = vmatprep.mubr.msk.f32.mxu1 %vm6025_vm1, %v6024_v0 }
 0x2a4   : > { %5561 = vmatprep.mubr.msk.f32.mxu0 %vm6025_vm1, %v6024_v0 }
 0x2a6   : > { %5551 = vmatmul.mubr.msk.f32.gmra.mrb[148].mxu1 %vm298_vm0, %v7083_v20 }
 0x2a7   : > { %5562 = vmatmul.mubr.msk.f32.gmra.mrb[154].mxu0 %vm298_vm0, %v7085_v35  ;;  %5566 = vmatprep.mubr.msk.f32.mxu1 %vm6025_vm1, %v6024_v0 }
 0x2aa   : > { %5567 = vmatmul.mubr.msk.f32.vlgmr.msra.gmra.mrb[150].mxu1 %vm298_vm0, %v4263_v32 }
 0x2ab   : > { %5569 = vmatprep.mubr.msk.f32.mxu1 %vm6025_vm1, %v6024_v0 }
 0x2ae   : > { %5570 = vmatmul.mubr.msk.f32.gmra.mrb[152].mxu1 %vm298_vm0, %v4264_v33 }
 0x2af   : > { %5572 = vmatprep.mubr.msk.f32.mxu1 %vm6025_vm1, %v6024_v0 }
 0x2b1   : > { %v1807_v34 = vpop.f32.mrb[48].mxu1 }
 0x2b2   : > { %v1875_v36 = vpop.f32.mrb[54].mxu0  ;;  %v1808_v38 = vadd.f32 %v1807_v34, %v1744_v25  ;;  %v5194_v39 = vpop.f32.mrb[49].mxu1  ;;  %5573 = vmatmul.mubr.msk.f32.gmra.mrb[154].mxu1 %vm298_vm0, %v4265_v37 }
 0x2b3   : > { %v5205_v40 = vpop.f32.mrb[55].mxu0 }
 0x2b4   : > { %v1889_v42 = vadd.f32 %v1875_v36, %v1808_v38 }
 0x2b5   : > { %v1812_v43 = vpop.f32.mrb[50].mxu1 }
 0x2b6   : > { %v1880_v44 = vpop.f32.mrb[56].mxu0  ;;  %v1813_v45 = vadd.f32 %v1812_v43, %v1749_v28  ;;  %v5197_v47 = vpop.f32.mrb[51].mxu1 }
 0x2b7   : > { %v5208_v49 = vpop.f32.mrb[57].mxu0 }
 0x2b8   : > { %v1890_v50 = vadd.f32 %v1880_v44, %v1813_v45 }
 0x2b9   : > { %v1817_v51 = vpop.f32.mrb[52].mxu1 }
 0x2ba   : > { %v1885_v41 = vpop.f32.mrb[58].mxu0  ;;  %v1818_v48 = vadd.f32 %v1817_v51, %v1754_v30  ;;  %v5200_v52 = vpop.f32.mrb[53].mxu1  ;;  %v7201_v30 = vld [vmem:[#allocation11] ss:$0 sm:$0xff] }
 0x2bb   : > { %v5211_v0 = vpop.f32.mrb[59].mxu0 }
 0x2bc   : > { %v1891_v53 = vadd.f32 %v1885_v41, %v1818_v48 }
 0x2bd   : > { %v1946_v54 = vpop.f32.mrb[54].mxu1 }
 0x2be   : > { %v2017_v55 = vpop.f32.mrb[60].mxu0  ;;  %v1960_v56 = vadd.f32 %v1946_v54, %v1889_v42  ;;  %v5216_v57 = vpop.f32.mrb[55].mxu1 }
 0x2bf   : > { %v5227_v58 = vpop.f32.mrb[61].mxu0 }
 0x2c0   : > { %v2031_v60 = vadd.f32 %v2017_v55, %v1960_v56 }
 0x2c1   : > { %v1951_v61 = vpop.f32.mrb[56].mxu1 }
 0x2c2   : > { %v2022_v62 = vpop.f32.mrb[62].mxu0  ;;  %v1961_v63 = vadd.f32 %v1951_v61, %v1890_v50  ;;  %v5219_v1 = vpop.f32.mrb[57].mxu1 }
 0x2c3   : > { %v5230_v2 = vpop.f32.mrb[63].mxu0 }
 0x2c4   : > { %v2032_v3 = vadd.f32 %v2022_v62, %v1961_v63 }
 0x2c5   : > { %v1956_v4 = vpop.f32.mrb[58].mxu1 }
 0x2c6   : > { %v2027_v5 = vpop.f32.mrb[64].mxu0  ;;  %v1962_v7 = vadd.f32 %v1956_v4, %v1891_v53  ;;  %v5222_v8 = vpop.f32.mrb[59].mxu1 }
 0x2c7   : > { %v5233_v9 = vpop.f32.mrb[65].mxu0 }
 0x2c8   : > { %v2033_v10 = vadd.f32 %v2027_v5, %v1962_v7 }
 0x2c9   : > { %v2088_v11 = vpop.f32.mrb[60].mxu1 }
 0x2ca   : > { %v2159_v12 = vpop.f32.mrb[66].mxu0  ;;  %v2102_v13 = vadd.f32 %v2088_v11, %v2031_v60  ;;  %v5238_v14 = vpop.f32.mrb[61].mxu1 }
 0x2cb   : > { %v5249_v15 = vpop.f32.mrb[67].mxu0 }
 0x2cc   : > { %v2173_v16 = vadd.f32 %v2159_v12, %v2102_v13 }
 0x2cd   : > { %v2093_v46 = vpop.f32.mrb[62].mxu1 }
 0x2ce   : > { %v2164_v17 = vpop.f32.mrb[68].mxu0  ;;  %v2103_v18 = vadd.f32 %v2093_v46, %v2032_v3  ;;  %v5241_v19 = vpop.f32.mrb[63].mxu1 }
 0x2cf   : > { %v5252_v20 = vpop.f32.mrb[69].mxu0 }
 0x2d0   : > { %v2174_v35 = vadd.f32 %v2164_v17, %v2103_v18 }
 0x2d1   : > { %v2098_v59 = vpop.f32.mrb[64].mxu1 }
 0x2d2   : > { %v2169_v6 = vpop.f32.mrb[70].mxu0  ;;  %v2104_v21 = vadd.f32 %v2098_v59, %v2033_v10  ;;  %v5244_v22 = vpop.f32.mrb[65].mxu1 }
 0x2d3   : > { %v5255_v23 = vpop.f32.mrb[71].mxu0 }
 0x2d4   : > { %v2175_v24 = vadd.f32 %v2169_v6, %v2104_v21 }
 0x2d5   : > { %v2230_v25 = vpop.f32.mrb[66].mxu1 }
 0x2d6   : > { %v2301_v26 = vpop.f32.mrb[72].mxu0  ;;  %v2244_v27 = vadd.f32 %v2230_v25, %v2173_v16  ;;  %v5260_v28 = vpop.f32.mrb[67].mxu1 }
 0x2d7   : > { %v5271_v29 = vpop.f32.mrb[73].mxu0 }
 0x2d8   : > { %v2315_v31 = vadd.f32 %v2301_v26, %v2244_v27 }
 0x2d9   : > { %v2235_v32 = vpop.f32.mrb[68].mxu1 }
 0x2da   : > { %v2306_v33 = vpop.f32.mrb[74].mxu0  ;;  %v7204_v34 = vadd.f32 %v7201_v30, %v2315_v31  ;;  %v2245_v36 = vadd.f32 %v2235_v32, %v2174_v35  ;;  %v5263_v37 = vpop.f32.mrb[69].mxu1 }
 0x2db   : > { %v5274_v38 = vpop.f32.mrb[75].mxu0 }
 0x2dc   : > { %v2327_v39 = vand.u32 2147483647, %v7204_v34  ;;  %v2316_v40 = vadd.f32 %v2306_v33, %v2245_v36  ;;  %vm2348_vm0 = vcmp.ge.f32.partialorder %v7204_v34, 0.0 }
 0x2dd   : > { %v2240_v42 = vpop.f32.mrb[70].mxu1 }
 0x2de   : > { %v2311_v43 = vpop.f32.mrb[76].mxu0  ;;  %v2330_v44 = vsub.f32 0.0, %v2327_v39  ;;  %v7208_v45 = vadd.f32 %v7201_v30, %v2316_v40  ;;  %v2246_v47 = vadd.f32 %v2240_v42, %v2175_v24  ;;  %v5266_v49 = vpop.f32.mrb[71].mxu1 }
 0x2df   : > { %v5277_v50 = vpop.f32.mrb[77].mxu0 }
 0x2e0   : > { %v2333_v51 = vmul.f32 1.442695, %v2330_v44  ;;  %v2328_v41 = vand.u32 2147483647, %v7208_v45  ;;  %v2317_v48 = vadd.f32 %v2311_v43, %v2246_v47  ;;  %vm2349_vm1 = vcmp.ge.f32.partialorder %v7208_v45, 0.0 }
 0x2e1   : > { %v2420_v52 = vpop.f32.mrb[72].mxu1 }
 0x2e2   : > { %v2483_v0 = vpop.f32.mrb[78].mxu0  ;;  %5749 = vpow2.f32 %v2333_v51  ;;  %v2331_v53 = vsub.f32 0.0, %v2328_v41  ;;  %v7212_v54 = vadd.f32 %v7201_v30, %v2317_v48  ;;  %v5282_v56 = vpop.f32.mrb[73].mxu1 }
 0x2e3   : > { %v2484_v55 = vadd.f32 %v2483_v0, %v2420_v52  ;;  %v5293_v57 = vpop.f32.mrb[79].mxu0 }
 0x2e4   : > { %v2335_v58 = vmul.f32 1.442695, %v2331_v53  ;;  %v2329_v60 = vand.u32 2147483647, %v7212_v54  ;;  %vm2350_vm2 = vcmp.ge.f32.partialorder %v7212_v54, 0.0 }
 0x2e5   : > { %v2425_v61 = vpop.f32.mrb[74].mxu1 }
 0x2e6   : > { %v2488_v62 = vpop.f32.mrb[80].mxu0  ;;  %5751 = vpow2.f32 %v2335_v58  ;;  %v2332_v63 = vsub.f32 0.0, %v2329_v60  ;;  %v5285_v2 = vpop.f32.mrb[75].mxu1 }
 0x2e7   : > { %v2489_v1 = vadd.f32 %v2488_v62, %v2425_v61  ;;  %v5296_v3 = vpop.f32.mrb[81].mxu0 }
 0x2e8   : > { %v2337_v4 = vmul.f32 1.442695, %v2332_v63 }
 0x2e9   : > { %v2430_v5 = vpop.f32.mrb[76].mxu1 }
 0x2ea   : > { %v2493_v7 = vpop.f32.mrb[82].mxu0  ;;  %5753 = vpow2.f32 %v2337_v4  ;;  %v5288_v9 = vpop.f32.mrb[77].mxu1 }
 0x2eb   : > { %v2494_v8 = vadd.f32 %v2493_v7, %v2430_v5  ;;  %v5299_v10 = vpop.f32.mrb[83].mxu0 }
 0x2ec   : > { %v5750_v11 = vpop.eup %5749 }
 0x2ed   : > { %v2339_v12 = vadd.f32 1.0, %v5750_v11  ;;  %v2551_v13 = vpop.f32.mrb[78].mxu1 }
 0x2ee   : > { %v2622_v14 = vpop.f32.mrb[84].mxu0  ;;  %v2565_v15 = vadd.f32 %v2551_v13, %v2484_v55  ;;  %v5304_v16 = vpop.f32.mrb[79].mxu1 }
 0x2ef   : > { %v5315_v46 = vpop.f32.mrb[85].mxu0  ;;  %5755 = vrcp.f32 %v2339_v12 }
 0x2f0   : > { %v5752_v17 = vpop.eup %5751  ;;  %v2636_v18 = vadd.f32 %v2622_v14, %v2565_v15 }
 0x2f1   : > { %v2340_v19 = vadd.f32 1.0, %v5752_v17  ;;  %v2556_v20 = vpop.f32.mrb[80].mxu1 }
 0x2f2   : > { %v2627_v35 = vpop.f32.mrb[86].mxu0  ;;  %v2566_v59 = vadd.f32 %v2556_v20, %v2489_v1  ;;  %v5307_v6 = vpop.f32.mrb[81].mxu1 }
 0x2f3   : > { %v5318_v21 = vpop.f32.mrb[87].mxu0  ;;  %5757 = vrcp.f32 %v2340_v19 }
 0x2f4   : > { %v5754_v22 = vpop.eup %5753  ;;  %v2637_v23 = vadd.f32 %v2627_v35, %v2566_v59 }
 0x2f5   : > { %v2341_v24 = vadd.f32 1.0, %v5754_v22  ;;  %v2561_v25 = vpop.f32.mrb[82].mxu1 }
 0x2f6   : > { %v2632_v26 = vpop.f32.mrb[88].mxu0  ;;  %v2567_v27 = vadd.f32 %v2561_v25, %v2494_v8  ;;  %v5310_v28 = vpop.f32.mrb[83].mxu1 }
 0x2f7   : > { %v5321_v29 = vpop.f32.mrb[89].mxu0  ;;  %5759 = vrcp.f32 %v2341_v24 }
 0x2f8   : > { %v2638_v31 = vadd.f32 %v2632_v26, %v2567_v27 }
 0x2f9   : > { %v5756_v32 = vpop.eup %5755  ;;  %v2693_v33 = vpop.f32.mrb[84].mxu1 }
 0x2fa   : > { %v2764_v36 = vpop.f32.mrb[90].mxu0  ;;  %v2351_v37 = vmul.f32 %v5756_v32, %v5750_v11  ;;  %v2707_v38 = vadd.f32 %v2693_v33, %v2636_v18  ;;  %v5326_v39 = vpop.f32.mrb[85].mxu1 }
 0x2fb   : > { %v5337_v40 = vpop.f32.mrb[91].mxu0 }
 0x2fc   : > { %v2354_v42 = vsel %vm2348_vm0, %v5756_v32, %v2351_v37  ;;  %v2778_v43 = vadd.f32 %v2764_v36, %v2707_v38 }
 0x2fd   : > { %v5758_v44 = vpop.eup %5757  ;;  %2358 = vst.msk [vmem:[%s7217_s26] sm:$0xff] %vm2357_vm15, %v2354_v42  ;;  %v2698_v47 = vpop.f32.mrb[86].mxu1 }
 0x2fe   : > { %v2769_v49 = vpop.f32.mrb[92].mxu0  ;;  %v2352_v50 = vmul.f32 %v5758_v44, %v5752_v17  ;;  %v2708_v51 = vadd.f32 %v2698_v47, %v2637_v23  ;;  %v5329_v41 = vpop.f32.mrb[87].mxu1 }
 0x2ff   : > { %v5340_v48 = vpop.f32.mrb[93].mxu0 }
 0x300   : > { %v2355_v52 = vsel %vm2349_vm1, %v5758_v44, %v2352_v50  ;;  %v2779_v34 = vadd.f32 %v2769_v49, %v2708_v51 }
 0x301   : > { %v5760_v0 = vpop.eup %5759  ;;  %2359 = vst.msk [vmem:[%s7217_s26 + $0x8] sm:$0xff] %vm2357_vm15, %v2355_v52  ;;  %v2703_v53 = vpop.f32.mrb[88].mxu1 }
 0x302   : > { %v2774_v55 = vpop.f32.mrb[94].mxu0  ;;  %v2353_v56 = vmul.f32 %v5760_v0, %v5754_v22  ;;  %v2709_v57 = vadd.f32 %v2703_v53, %v2638_v31  ;;  %v5332_v58 = vpop.f32.mrb[89].mxu1 }
 0x303   : > { %v5343_v60 = vpop.f32.mrb[95].mxu0 }
 0x304   : > { %v2356_v61 = vsel %vm2350_vm2, %v5760_v0, %v2353_v56  ;;  %v2780_v62 = vadd.f32 %v2774_v55, %v2709_v57 }
 0x305   : > { %2360 = vst.msk [vmem:[%s7217_s26 + $0x10] sm:$0xff] %vm2357_vm15, %v2356_v61  ;;  %v2835_v63 = vpop.f32.mrb[90].mxu1 }
 0x306   : > { %v2906_v1 = vpop.f32.mrb[96].mxu0  ;;  %v2849_v45 = vadd.f32 %v2835_v63, %v2778_v43  ;;  %v5348_v2 = vpop.f32.mrb[91].mxu1 }
 0x307   : > { %v5359_v3 = vpop.f32.mrb[97].mxu0 }
 0x308   : > { %v2920_v4 = vadd.f32 %v2906_v1, %v2849_v45 }
 0x309   : > { %v2840_v5 = vpop.f32.mrb[92].mxu1 }
 0x30a   : > { %v2911_v7 = vpop.f32.mrb[98].mxu0  ;;  %v2850_v8 = vadd.f32 %v2840_v5, %v2779_v34  ;;  %v5351_v9 = vpop.f32.mrb[93].mxu1 }
 0x30b   : > { %v5362_v10 = vpop.f32.mrb[99].mxu0 }
 0x30c   : > { %v2921_v11 = vadd.f32 %v2911_v7, %v2850_v8 }
 0x30d   : > { %v2845_v12 = vpop.f32.mrb[94].mxu1 }
 0x30e   : > { %v2916_v13 = vpop.f32.mrb[100].mxu0  ;;  %v2851_v14 = vadd.f32 %v2845_v12, %v2780_v62  ;;  %v5354_v54 = vpop.f32.mrb[95].mxu1 }
 0x30f   : > { %v5365_v15 = vpop.f32.mrb[101].mxu0 }
 0x310   : > { %v2922_v16 = vadd.f32 %v2916_v13, %v2851_v14 }
 0x311   : > { %v2977_v46 = vpop.f32.mrb[96].mxu1 }
 0x312   : > { %v3090_v17 = vpop.f32.mrb[102].mxu0  ;;  %v2991_v18 = vadd.f32 %v2977_v46, %v2920_v4  ;;  %v5370_v19 = vpop.f32.mrb[97].mxu1 }
 0x313   : > { %v5381_v20 = vpop.f32.mrb[103].mxu0 }
 0x314   : > { %v7228_v35 = vadd.f32 %v7201_v30, %v2991_v18 }
 0x315   : > { %v2982_v59 = vpop.f32.mrb[98].mxu1 }
 0x316   : > { %v3095_v6 = vpop.f32.mrb[104].mxu0  ;;  %v2997_v21 = vand.u32 2147483647, %v7228_v35  ;;  %v2992_v22 = vadd.f32 %v2982_v59, %v2921_v11  ;;  %v5373_v23 = vpop.f32.mrb[99].mxu1  ;;  %vm3018_vm3 = vcmp.ge.f32.partialorder %v7228_v35, 0.0 }
 0x317   : > { %v5384_v24 = vpop.f32.mrb[105].mxu0 }
 0x318   : > { %v3000_v25 = vsub.f32 0.0, %v2997_v21  ;;  %v7232_v26 = vadd.f32 %v7201_v30, %v2992_v22 }
 0x319   : > { %v2987_v27 = vpop.f32.mrb[100].mxu1 }
 0x31a   : > { %v3100_v28 = vpop.f32.mrb[106].mxu0  ;;  %v3003_v29 = vmul.f32 1.442695, %v3000_v25  ;;  %v2998_v31 = vand.u32 2147483647, %v7232_v26  ;;  %v2993_v32 = vadd.f32 %v2987_v27, %v2922_v16  ;;  %v5376_v33 = vpop.f32.mrb[101].mxu1 }
 0x31b   : > { %v5387_v36 = vpop.f32.mrb[107].mxu0  ;;  %vm3019_vm4 = vcmp.ge.f32.partialorder %v7232_v26, 0.0 }
 0x31c   : > { %5761 = vpow2.f32 %v3003_v29  ;;  %v3001_v37 = vsub.f32 0.0, %v2998_v31  ;;  %v7236_v38 = vadd.f32 %v7201_v30, %v2993_v32 }
 0x31d   : > { %v3153_v39 = vpop.f32.mrb[102].mxu1 }
 0x31e   : > { %v3221_v40 = vpop.f32.mrb[108].mxu0  ;;  %v3005_v42 = vmul.f32 1.442695, %v3001_v37  ;;  %v2999_v43 = vand.u32 2147483647, %v7236_v38  ;;  %v3154_v44 = vadd.f32 %v3153_v39, %v3090_v17  ;;  %v5392_v47 = vpop.f32.mrb[103].mxu1 }
 0x31f   : > { %v5403_v49 = vpop.f32.mrb[109].mxu0  ;;  %vm3020_vm5 = vcmp.ge.f32.partialorder %v7236_v38, 0.0 }
 0x320   : > { %5763 = vpow2.f32 %v3005_v42  ;;  %v3002_v50 = vsub.f32 0.0, %v2999_v43  ;;  %v3235_v51 = vadd.f32 %v3221_v40, %v3154_v44 }
 0x321   : > { %v3158_v41 = vpop.f32.mrb[104].mxu1 }
 0x322   : > { %v3226_v48 = vpop.f32.mrb[110].mxu0  ;;  %v3007_v52 = vmul.f32 1.442695, %v3002_v50  ;;  %v3159_v34 = vadd.f32 %v3158_v41, %v3095_v6  ;;  %v5395_v0 = vpop.f32.mrb[105].mxu1 }
 0x323   : > { %v5406_v53 = vpop.f32.mrb[111].mxu0 }
 0x324   : > { %5765 = vpow2.f32 %v3007_v52  ;;  %v3236_v55 = vadd.f32 %v3226_v48, %v3159_v34 }
 0x325   : > { %v3163_v56 = vpop.f32.mrb[106].mxu1 }
 0x326   : > { %v3231_v57 = vpop.f32.mrb[112].mxu0  ;;  %v5762_v58 = vpop.eup %5761  ;;  %v3164_v60 = vadd.f32 %v3163_v56, %v3100_v28 }
 0x327   : > { %v5398_v61 = vpop.f32.mrb[107].mxu1  ;;  %v5409_v62 = vpop.f32.mrb[113].mxu0  ;;  %v3009_v63 = vadd.f32 1.0, %v5762_v58 }
 0x328   : > { %v3237_v1 = vadd.f32 %v3231_v57, %v3164_v60 }
 0x329   : > { %5767 = vrcp.f32 %v3009_v63  ;;  %v3292_v45 = vpop.f32.mrb[108].mxu1 }
 0x32a   : > { %v3363_v2 = vpop.f32.mrb[114].mxu0  ;;  %v5764_v3 = vpop.eup %5763  ;;  %v3306_v4 = vadd.f32 %v3292_v45, %v3235_v51 }
 0x32b   : > { %v5414_v5 = vpop.f32.mrb[109].mxu1  ;;  %v5425_v7 = vpop.f32.mrb[115].mxu0  ;;  %v3010_v8 = vadd.f32 1.0, %v5764_v3 }
 0x32c   : > { %v3377_v9 = vadd.f32 %v3363_v2, %v3306_v4 }
 0x32d   : > { %5769 = vrcp.f32 %v3010_v8  ;;  %v3297_v10 = vpop.f32.mrb[110].mxu1 }
 0x32e   : > { %v3368_v11 = vpop.f32.mrb[116].mxu0  ;;  %v5766_v12 = vpop.eup %5765  ;;  %v3307_v13 = vadd.f32 %v3297_v10, %v3236_v55 }
 0x32f   : > { %v5417_v14 = vpop.f32.mrb[111].mxu1  ;;  %v5428_v54 = vpop.f32.mrb[117].mxu0  ;;  %v3011_v15 = vadd.f32 1.0, %v5766_v12 }
 0x330   : > { %v3378_v16 = vadd.f32 %v3368_v11, %v3307_v13 }
 0x331   : > { %5771 = vrcp.f32 %v3011_v15  ;;  %v3302_v46 = vpop.f32.mrb[112].mxu1 }
 0x332   : > { %v3373_v17 = vpop.f32.mrb[118].mxu0  ;;  %v3308_v18 = vadd.f32 %v3302_v46, %v3237_v1  ;;  %v5420_v19 = vpop.f32.mrb[113].mxu1 }
 0x333   : > { %v5431_v20 = vpop.f32.mrb[119].mxu0  ;;  %v5768_v59 = vpop.eup %5767 }
 0x334   : > { %v3021_v6 = vmul.f32 %v5768_v59, %v5762_v58  ;;  %v3379_v21 = vadd.f32 %v3373_v17, %v3308_v18 }
 0x335   : > { %v3434_v22 = vpop.f32.mrb[114].mxu1 }
 0x336   : > { %v3505_v23 = vpop.f32.mrb[120].mxu0  ;;  %v3024_v24 = vsel %vm3018_vm3, %v5768_v59, %v3021_v6  ;;  %v3448_v25 = vadd.f32 %v3434_v22, %v3377_v9  ;;  %v5436_v27 = vpop.f32.mrb[115].mxu1 }
 0x337   : > { %v5447_v28 = vpop.f32.mrb[121].mxu0  ;;  %v5770_v29 = vpop.eup %5769  ;;  %4663 = vst.msk [vmem:[%s7217_s26 + $0x18] sm:$0xff] %vm2357_vm15, %v3024_v24 }
 0x338   : > { %v3022_v31 = vmul.f32 %v5770_v29, %v5764_v3  ;;  %v3519_v32 = vadd.f32 %v3505_v23, %v3448_v25 }
 0x339   : > { %v3439_v33 = vpop.f32.mrb[116].mxu1 }
 0x33a   : > { %v3510_v36 = vpop.f32.mrb[122].mxu0  ;;  %v3025_v37 = vsel %vm3019_vm4, %v5770_v29, %v3022_v31  ;;  %v3449_v39 = vadd.f32 %v3439_v33, %v3378_v16  ;;  %v5439_v35 = vpop.f32.mrb[117].mxu1 }
 0x33b   : > { %v5450_v40 = vpop.f32.mrb[123].mxu0  ;;  %v5772_v42 = vpop.eup %5771  ;;  %4664 = vst.msk [vmem:[%s7217_s26 + $0x20] sm:$0xff] %vm2357_vm15, %v3025_v37 }
 0x33c   : > { %v3023_v43 = vmul.f32 %v5772_v42, %v5766_v12  ;;  %v3520_v44 = vadd.f32 %v3510_v36, %v3449_v39 }
 0x33d   : > { %v3444_v47 = vpop.f32.mrb[118].mxu1 }
 0x33e   : > { %v3515_v49 = vpop.f32.mrb[124].mxu0  ;;  %v3026_v50 = vsel %vm3020_vm5, %v5772_v42, %v3023_v43  ;;  %v3450_v51 = vadd.f32 %v3444_v47, %v3379_v21  ;;  %v5442_v41 = vpop.f32.mrb[119].mxu1 }
 0x33f   : > { %v5453_v26 = vpop.f32.mrb[125].mxu0  ;;  %4665 = vst.msk [vmem:[%s7217_s26 + $0x28] sm:$0xff] %vm2357_vm15, %v3026_v50 }
 0x340   : > { %v3521_v48 = vadd.f32 %v3515_v49, %v3450_v51 }
 0x341   : > { %v3576_v52 = vpop.f32.mrb[120].mxu1 }
 0x342   : > { %v3647_v34 = vpop.f32.mrb[126].mxu0  ;;  %v3590_v0 = vadd.f32 %v3576_v52, %v3519_v32  ;;  %v5458_v53 = vpop.f32.mrb[121].mxu1 }
 0x343   : > { %v5469_v55 = vpop.f32.mrb[127].mxu0 }
 0x344   : > { %v3661_v56 = vadd.f32 %v3647_v34, %v3590_v0 }
 0x345   : > { %v3581_v57 = vpop.f32.mrb[122].mxu1 }
 0x346   : > { %v3652_v58 = vpop.f32.mrb[128].mxu0  ;;  %v7249_v60 = vadd.f32 %v7201_v30, %v3661_v56  ;;  %v3591_v38 = vadd.f32 %v3581_v57, %v3520_v44  ;;  %v5461_v61 = vpop.f32.mrb[123].mxu1 }
 0x347   : > { %v5472_v62 = vpop.f32.mrb[129].mxu0 }
 0x348   : > { %v3667_v63 = vand.u32 2147483647, %v7249_v60  ;;  %v3662_v1 = vadd.f32 %v3652_v58, %v3591_v38  ;;  %vm3688_vm6 = vcmp.ge.f32.partialorder %v7249_v60, 0.0 }
 0x349   : > { %v3586_v45 = vpop.f32.mrb[124].mxu1 }
 0x34a   : > { %v3657_v2 = vpop.f32.mrb[130].mxu0  ;;  %v3670_v3 = vsub.f32 0.0, %v3667_v63  ;;  %v7253_v4 = vadd.f32 %v7201_v30, %v3662_v1  ;;  %v3592_v5 = vadd.f32 %v3586_v45, %v3521_v48  ;;  %v5464_v7 = vpop.f32.mrb[125].mxu1 }
 0x34b   : > { %v5475_v8 = vpop.f32.mrb[131].mxu0 }
 0x34c   : > { %v3673_v9 = vmul.f32 1.442695, %v3670_v3  ;;  %v3668_v10 = vand.u32 2147483647, %v7253_v4  ;;  %v3663_v11 = vadd.f32 %v3657_v2, %v3592_v5  ;;  %vm3689_vm7 = vcmp.ge.f32.partialorder %v7253_v4, 0.0 }
 0x34d   : > { %v3760_v12 = vpop.f32.mrb[126].mxu1 }
 0x34e   : > { %v3823_v13 = vpop.f32.mrb[132].mxu0  ;;  %5773 = vpow2.f32 %v3673_v9  ;;  %v3671_v14 = vsub.f32 0.0, %v3668_v10  ;;  %v7257_v54 = vadd.f32 %v7201_v30, %v3663_v11  ;;  %v5480_v16 = vpop.f32.mrb[127].mxu1 }
 0x34f   : > { %v3824_v15 = vadd.f32 %v3823_v13, %v3760_v12  ;;  %v5491_v46 = vpop.f32.mrb[133].mxu0 }
 0x350   : > { %v3675_v17 = vmul.f32 1.442695, %v3671_v14  ;;  %v3669_v18 = vand.u32 2147483647, %v7257_v54  ;;  %vm3690_vm8 = vcmp.ge.f32.partialorder %v7257_v54, 0.0 }
 0x351   : > { %v3765_v19 = vpop.f32.mrb[128].mxu1 }
 0x352   : > { %v3828_v20 = vpop.f32.mrb[134].mxu0  ;;  %5775 = vpow2.f32 %v3675_v17  ;;  %v3672_v59 = vsub.f32 0.0, %v3669_v18  ;;  %v5483_v21 = vpop.f32.mrb[129].mxu1 }
 0x353   : > { %v3829_v6 = vadd.f32 %v3828_v20, %v3765_v19  ;;  %v5494_v22 = vpop.f32.mrb[135].mxu0 }
 0x354   : > { %v3677_v23 = vmul.f32 1.442695, %v3672_v59 }
 0x355   : > { %v3770_v24 = vpop.f32.mrb[130].mxu1 }
 0x356   : > { %v3833_v25 = vpop.f32.mrb[136].mxu0  ;;  %5777 = vpow2.f32 %v3677_v23  ;;  %v5486_v28 = vpop.f32.mrb[131].mxu1 }
 0x357   : > { %v3834_v27 = vadd.f32 %v3833_v25, %v3770_v24  ;;  %v5497_v29 = vpop.f32.mrb[137].mxu0 }
 0x358   : > { %v5774_v31 = vpop.eup %5773 }
 0x359   : > { %v3679_v32 = vadd.f32 1.0, %v5774_v31  ;;  %v3891_v33 = vpop.f32.mrb[132].mxu1 }
 0x35a   : > { %v3962_v36 = vpop.f32.mrb[138].mxu0  ;;  %v3905_v37 = vadd.f32 %v3891_v33, %v3824_v15  ;;  %v5502_v39 = vpop.f32.mrb[133].mxu1 }
 0x35b   : > { %v5513_v35 = vpop.f32.mrb[139].mxu0  ;;  %5779 = vrcp.f32 %v3679_v32 }
 0x35c   : > { %v5776_v40 = vpop.eup %5775  ;;  %v3976_v42 = vadd.f32 %v3962_v36, %v3905_v37 }
 0x35d   : > { %v3680_v43 = vadd.f32 1.0, %v5776_v40  ;;  %v3896_v44 = vpop.f32.mrb[134].mxu1 }
 0x35e   : > { %v3967_v47 = vpop.f32.mrb[140].mxu0  ;;  %v3906_v49 = vadd.f32 %v3896_v44, %v3829_v6  ;;  %v5505_v50 = vpop.f32.mrb[135].mxu1 }
 0x35f   : > { %v5516_v51 = vpop.f32.mrb[141].mxu0  ;;  %5781 = vrcp.f32 %v3680_v43 }
 0x360   : > { %v5778_v41 = vpop.eup %5777  ;;  %v3977_v26 = vadd.f32 %v3967_v47, %v3906_v49 }
 0x361   : > { %v3681_v48 = vadd.f32 1.0, %v5778_v41  ;;  %v3901_v52 = vpop.f32.mrb[136].mxu1 }
 0x362   : > { %v3972_v34 = vpop.f32.mrb[142].mxu0  ;;  %v3907_v0 = vadd.f32 %v3901_v52, %v3834_v27  ;;  %v5508_v53 = vpop.f32.mrb[137].mxu1 }
 0x363   : > { %v5519_v55 = vpop.f32.mrb[143].mxu0  ;;  %5783 = vrcp.f32 %v3681_v48 }
 0x364   : > { %v3978_v56 = vadd.f32 %v3972_v34, %v3907_v0 }
 0x365   : > { %v5780_v57 = vpop.eup %5779  ;;  %v4033_v58 = vpop.f32.mrb[138].mxu1 }
 0x366   : > { %v4104_v38 = vpop.f32.mrb[144].mxu0  ;;  %v3691_v61 = vmul.f32 %v5780_v57, %v5774_v31  ;;  %v4047_v62 = vadd.f32 %v4033_v58, %v3976_v42  ;;  %v5524_v63 = vpop.f32.mrb[139].mxu1 }
 0x367   : > { %v5535_v1 = vpop.f32.mrb[145].mxu0 }
 0x368   : > { %v3694_v45 = vsel %vm3688_vm6, %v5780_v57, %v3691_v61  ;;  %v4118_v2 = vadd.f32 %v4104_v38, %v4047_v62 }
 0x369   : > { %v5782_v3 = vpop.eup %5781  ;;  %4702 = vst.msk [vmem:[%s7217_s26 + $0x30] sm:$0xff] %vm2357_vm15, %v3694_v45  ;;  %v4038_v5 = vpop.f32.mrb[140].mxu1 }
 0x36a   : > { %v4109_v7 = vpop.f32.mrb[146].mxu0  ;;  %v3692_v8 = vmul.f32 %v5782_v3, %v5776_v40  ;;  %v4048_v9 = vadd.f32 %v4038_v5, %v3977_v26  ;;  %v5527_v10 = vpop.f32.mrb[141].mxu1 }
 0x36b   : > { %v5538_v11 = vpop.f32.mrb[147].mxu0 }
 0x36c   : > { %v3695_v12 = vsel %vm3689_vm7, %v5782_v3, %v3692_v8  ;;  %v4119_v13 = vadd.f32 %v4109_v7, %v4048_v9 }
 0x36d   : > { %v5784_v14 = vpop.eup %5783  ;;  %4703 = vst.msk [vmem:[%s7217_s26 + $0x38] sm:$0xff] %vm2357_vm15, %v3695_v12  ;;  %v4043_v60 = vpop.f32.mrb[142].mxu1 }
 0x36e   : > { %v4114_v15 = vpop.f32.mrb[148].mxu0  ;;  %v3693_v16 = vmul.f32 %v5784_v14, %v5778_v41  ;;  %v4049_v46 = vadd.f32 %v4043_v60, %v3978_v56  ;;  %v5530_v17 = vpop.f32.mrb[143].mxu1 }
 0x36f   : > { %v5541_v18 = vpop.f32.mrb[149].mxu0 }
 0x370   : > { %v3696_v19 = vsel %vm3690_vm8, %v5784_v14, %v3693_v16  ;;  %v4120_v20 = vadd.f32 %v4114_v15, %v4049_v46 }
 0x371   : > { %4704 = vst.msk [vmem:[%s7217_s26 + $0x40] sm:$0xff] %vm2357_vm15, %v3696_v19  ;;  %v4175_v59 = vpop.f32.mrb[144].mxu1 }
 0x372   : > { %v4246_v6 = vpop.f32.mrb[150].mxu0  ;;  %v4189_v4 = vadd.f32 %v4175_v59, %v4118_v2  ;;  %v5546_v21 = vpop.f32.mrb[145].mxu1 }
 0x373   : > { %v5557_v22 = vpop.f32.mrb[151].mxu0 }
 0x374   : > { %v4260_v23 = vadd.f32 %v4246_v6, %v4189_v4 }
 0x375   : > { %v4180_v24 = vpop.f32.mrb[146].mxu1 }
 0x376   : > { %v4251_v25 = vpop.f32.mrb[152].mxu0  ;;  %v4190_v27 = vadd.f32 %v4180_v24, %v4119_v13  ;;  %v5549_v28 = vpop.f32.mrb[147].mxu1 }
 0x377   : > { %v5560_v29 = vpop.f32.mrb[153].mxu0 }
 0x378   : > { %v4261_v31 = vadd.f32 %v4251_v25, %v4190_v27 }
 0x379   : > { %v4185_v32 = vpop.f32.mrb[148].mxu1 }
 0x37a   : > { %v4256_v33 = vpop.f32.mrb[154].mxu0  ;;  %v4191_v36 = vadd.f32 %v4185_v32, %v4120_v20  ;;  %v5552_v54 = vpop.f32.mrb[149].mxu1 }
 0x37b   : > { %v5563_v37 = vpop.f32.mrb[155].mxu0 }
 0x37c   : > { %v4262_v39 = vadd.f32 %v4256_v33, %v4191_v36 }
 0x37d   : > { %v4317_v35 = vpop.f32.mrb[150].mxu1 }
 0x37e   : > { %v4331_v40 = vadd.f32 %v4317_v35, %v4260_v23  ;;  %v5568_v42 = vpop.f32.mrb[151].mxu1 }
 0x380   : > { %v4334_v43 = vadd.f32 %v7201_v30, %v4331_v40 }
 0x381   : > { %v4322_v44 = vpop.f32.mrb[152].mxu1 }
 0x382   : > { %v4337_v47 = vand.u32 2147483647, %v4334_v43  ;;  %v4332_v49 = vadd.f32 %v4322_v44, %v4261_v31  ;;  %v5571_v50 = vpop.f32.mrb[153].mxu1  ;;  %vm4358_vm9 = vcmp.ge.f32.partialorder %v4334_v43, 0.0 }
 0x384   : > { %v4340_v51 = vsub.f32 0.0, %v4337_v47  ;;  %v4335_v41 = vadd.f32 %v7201_v30, %v4332_v49 }
 0x385   : > { %v4327_v26 = vpop.f32.mrb[154].mxu1 }
 0x386   : > { %v4343_v48 = vmul.f32 1.442695, %v4340_v51  ;;  %v4338_v52 = vand.u32 2147483647, %v4335_v41  ;;  %v4333_v34 = vadd.f32 %v4327_v26, %v4262_v39  ;;  %v5574_v0 = vpop.f32.mrb[155].mxu1  ;;  %vm4359_vm10 = vcmp.ge.f32.partialorder %v4335_v41, 0.0 }
 0x388   : > { %5785 = vpow2.f32 %v4343_v48  ;;  %v4341_v53 = vsub.f32 0.0, %v4338_v52  ;;  %v4336_v55 = vadd.f32 %v7201_v30, %v4333_v34 }
 0x38a   : > { %v4345_v56 = vmul.f32 1.442695, %v4341_v53  ;;  %v4339_v57 = vand.u32 2147483647, %v4336_v55  ;;  %vm4360_vm11 = vcmp.ge.f32.partialorder %v4336_v55, 0.0 }
 0x38c   : > { %5787 = vpow2.f32 %v4345_v56  ;;  %v4342_v58 = vsub.f32 0.0, %v4339_v57 }
 0x38e   : > { %v4347_v38 = vmul.f32 1.442695, %v4342_v58 }
 0x390   : > { %5789 = vpow2.f32 %v4347_v38 }
 0x392   : > { %v5786_v61 = vpop.eup %5785 }
 0x393   : > { %v4349_v62 = vadd.f32 1.0, %v5786_v61 }
 0x395   : > { %5791 = vrcp.f32 %v4349_v62 }
 0x396   : > { %v5788_v63 = vpop.eup %5787 }
 0x397   : > { %v4350_v1 = vadd.f32 1.0, %v5788_v63 }
 0x399   : > { %5793 = vrcp.f32 %v4350_v1 }
 0x39a   : > { %v5790_v45 = vpop.eup %5789 }
 0x39b   : > { %v4351_v2 = vadd.f32 1.0, %v5790_v45 }
 0x39d   : > { %5795 = vrcp.f32 %v4351_v2 }
 0x39f   : > { %v5792_v30 = vpop.eup %5791 }
 0x3a0   : > { %v4361_v3 = vmul.f32 %v5792_v30, %v5786_v61 }
 0x3a2   : > { %v4364_v5 = vsel %vm4358_vm9, %v5792_v30, %v4361_v3 }
 0x3a3   : > { %v5794_v7 = vpop.eup %5793  ;;  %4741 = vst.msk [vmem:[%s7217_s26 + $0x48] sm:$0xff] %vm2357_vm15, %v4364_v5 }
 0x3a4   : > { %v4362_v8 = vmul.f32 %v5794_v7, %v5788_v63 }
 0x3a6   : > { %v4365_v9 = vsel %vm4359_vm10, %v5794_v7, %v4362_v8 }
 0x3a7   : > { %v5796_v10 = vpop.eup %5795  ;;  %4742 = vst.msk [vmem:[%s7217_s26 + $0x50] sm:$0xff] %vm2357_vm15, %v4365_v9 }
 0x3a8   : > { %v4363_v11 = vmul.f32 %v5796_v10, %v5790_v45 }
 0x3aa   : > { %v4366_v12 = vsel %vm4360_vm11, %v5796_v10, %v4363_v11 }
 0x3ab   : > { %4743 = vst.msk [vmem:[%s7217_s26 + $0x58] sm:$0xff] %vm2357_vm15, %v4366_v12 }
 0x3ac   : > { %5952 = shalt.err (!%p5949_p13)
}
 0x3ad   : > { %s5953_s6 = scalar_lea.hbm %s7281_s30, 1536  ;;  %s5957_s10 = scalar_lea.hbm %s7334_s5, 3072 }
 0x3ae   : > { %p5954_p9 = scmp.ne.s32.totalorder %s7281_s30, %s5953_s6  ;;  %p5958_p6 = scmp.lt.u32.totalorder %s7281_s30, %s7334_s5 }
 0x3af   : > { %p5959_p4 = scmp.lt.u32.totalorder %s5957_s10, %s5953_s6  ;;  %p5961_p3 = scmp.lt.u32.totalorder %s5953_s6, %s7281_s30 }
 0x3b0   : > { %p5955_p0 = pnand %p5954_p9, %p6218_p10 }
 0x3b1   : > { %p5960_p8 = por %p5959_p4, %p5958_p6 }
 0x3b2   : > { %p5956_p11 = pneg %p5955_p0 }
 0x3b3   : > { %p5962_p5 = por %p5961_p3, %p5960_p8 }
 0x3b5   : > { %p5963_p7 = pnand %p5962_p5, %p5956_p11 }
 0x3b7   : > { %5966 = shalt.err (!%p5963_p7)
}
 0x3b8   : > { %s6027_s9 = smov 128   ;;  %s6028_s8 = smov 8  }
 0x3b9   : > { %5604 = dma.vmem_to_hbm [thread:$0]  (%p6218_p10), %s7283_s12, 1536, %s7281_s30, %s4372_s22, %s6027_s9, %s6027_s9, %s6028_s8  }
 0x3ba PF: > { %s4400_s15 = sand.u32 1, %s6001_s18   ;;  %p7364_p12 = scmp.ne.s32.totalorder %s7339_s25, 0 }
 0x3bb   : > { %p7365_p2 = scmp.ge.s32.totalorder %s6013_s21, 2  ;;  %s4401_s7 = scalar_lea.sflag [#allocation5], %s4400_s15 }
 0x3bd   : > { %p5624_p1 = pnand %p7365_p2, %p7364_p12 }
 0x3bf   : > { %5996 = dma.done.wait (!%p5624_p1), %s4401_s7, 1536  }
 0x3c0   : > { %5998 = vsyncadd (!%p5624_p1), %s4401_s7, 4294965760  ;;  %p20_p13 = scmp.ge.s32.totalorder %s6208_s14, 4   ;;  %s7366_s18 = smov %s6005_s19 }
 0x3c1   : > { %s7367_s19 = smov %s6009_s20  ;;  %s7368_s20 = smov %s6224_s28 }
 0x3c2   : > { %s7369_s21 = smov %s6208_s14  ;;  %22 = sbr.rel (!%p20_p13) target bundleno = 7 (0x7), region = 107 }
 0x3c9   :  { %4406 = vsyncpa [#allocation4], 1 }
 0x3ca   :  { %4408 = vsyncpa [#allocation4 + $0x1], 1 }
 0x3cb   :  { %4409 = vsyncpa [#allocation7], 1 }
 0x3cc   :  { %4410 = vsyncpa [#allocation10], 1 }
 0x3cd   :  { %4411 = vsyncpa [#allocation5], 1 }
 0x3ce   :  { %4413 = vsyncpa [#allocation5 + $0x1], 1 }

</bundles_post_ra>
